<compile_context>
chip_gen: v6e
topology: v6e:2x2x1
jax: 0.10.0
libtpu: 0.0.40
codegen_flags: <defaults>
</compile_context>

<pallas_src>
import numpy as np
import jax
import jax.numpy as jnp
from jax.experimental import pallas as pl
from jax.experimental.pallas import tpu as pltpu


def _round_up(v, m):
    return ((v + m - 1) // m) * m


# ----------------------------- fused Pallas kernel ------------------------------

def _make_fused_kernel(layer_cfg, s_last, c_last):
    n_layers = len(layer_cfg)
    n_pools = sum(1 for cfg in layer_cfg if cfg[4])

    def kernel(*refs):
        it = iter(refs)
        x_ref = next(it)                                              # (1, H*W, Cin) f32
        conv_refs = [(next(it), next(it)) for _ in range(n_layers)]   # (w_grp, bias)
        sel_refs = [next(it) for _ in range(n_pools)]                 # stacked selectors
        w1_ref = next(it)        # (s_last*c_last, dh_pad) bf16
        b1_ref = next(it)        # (1, dh_pad) f32
        w2_ref = next(it)        # (dh_pad, nc_pad) bf16
        b2_ref = next(it)        # (1, nc_pad) f32
        o_ref = next(it)         # (1, 1, nc_pad) f32
        bufs = [next(it) for _ in range(n_layers)]                    # bf16 im2col stages
        accs = [next(it) for _ in range(n_layers)]                    # f32 conv accumulators
        flat_ref = next(it)                                           # (1, s_last*c_last) f32

        f = x_ref[0]                                   # (H*W, Cin) f32, channel-last
        pool_i = 0
        for li, (h, w, cin, cout, pool) in enumerate(layer_cfg):
            hw = h * w
            pad = _round_up(w + 1, 8)
            buf, acc = bufs[li], accs[li]
            w_ref, b_ref = conv_refs[li]

            # Zero only the halo rows actually read (top w rows / bottom w rows),
            # every grid step (scratch is per-core under megacore sharding).
            zhalo = jnp.zeros((w, 3 * cin), jnp.bfloat16)
            buf[pl.ds(pad - w, w), :] = zhalo
            buf[pl.ds(pad + hw, w), :] = zhalo

            # Left/right neighbours with SAME-padding column masks, pre-shifted by +/-1
            # row so every dy-group below is one contiguous, packing-aligned load.
            col = jax.lax.broadcasted_iota(jnp.int32, (hw, cin), 0)
            if (w & (w - 1)) == 0:
                col = jnp.bitwise_and(col, w - 1)
            else:
                col = col % w
            f_left = jnp.where(col == w - 1, 0.0, f)   # zero last-column pixels
            f_right = jnp.where(col == 0, 0.0, f)      # zero first-column pixels
            zrow = jnp.zeros((1, cin), jnp.float32)
            left_blk = jnp.concatenate([zrow, f_left[:hw - 1, :]], axis=0)   # shift down
            right_blk = jnp.concatenate([f_right[1:, :], zrow], axis=0)      # shift up

            # Single aligned store of the (hw, 3*cin) lane-concatenated feature (bf16).
            buf[pl.ds(pad, hw), :] = jnp.concatenate(
                [left_blk, f, right_blk], axis=1).astype(jnp.bfloat16)

            # 3 matmuls (one per kernel row), K = 3*cin, accumulated in VMEM scratch.
            for g in range(3):                         # dy = g - 1
                operand = buf[pl.ds(pad + (g - 1) * w, hw), :]      # (hw, 3*cin) bf16
                prod = jnp.dot(operand, w_ref[g],
                               preferred_element_type=jnp.float32)
                if g == 0:
                    acc[...] = prod
                else:
                    acc[...] += prod

            # Folded BatchNorm bias + ReLU (scale already folded into the weights).
            f = jnp.maximum(acc[...] + b_ref[...], 0.0)

            if pool:
                # 2x2 maxpool: ONE stacked-selector matmul + 3 VPU maxes on row blocks.
                sel_ref = sel_refs[pool_i]
                pool_i += 1
                n = (h // 2) * (w // 2)
                p_all = jnp.dot(sel_ref[...], f.astype(jnp.bfloat16),
                                preferred_element_type=jnp.float32)  # (4n, cout)
                f = jnp.maximum(
                    jnp.maximum(p_all[0:n], p_all[n:2 * n]),
                    jnp.maximum(p_all[2 * n:3 * n], p_all[3 * n:4 * n]))

        # Flatten into a lane-dense vector, then single-matmul FC1 (K=256) and FC2.
        for s in range(s_last):
            flat_ref[pl.ds(0, 1), pl.ds(s * c_last, c_last)] = f[s:s + 1, :]
        hvec = jnp.dot(flat_ref[...].astype(jnp.bfloat16), w1_ref[...],
                       preferred_element_type=jnp.float32)
        hvec = jnp.maximum(hvec + b1_ref[...], 0.0)
        out = jnp.dot(hvec.astype(jnp.bfloat16), w2_ref[...],
                      preferred_element_type=jnp.float32) + b2_ref[...]
        o_ref[0] = out

    return kernel


# ------------------------------- parameters / glue -------------------------------

def _make_pool_selector_stacked(h, w):
    """Stacked one-hot selectors: rows [p*n + out_idx] pick window-offset p for each
    2x2-pool output position; max over the 4 row blocks gives the max pool."""
    hp, wp = h // 2, w // 2
    n = hp * wp
    sel = np.zeros((4 * n, h * w), np.float32)
    for dy in range(2):
        for dx in range(2):
            p = dy * 2 + dx
            for yy in range(hp):
                for xx in range(wp):
                    sel[p * n + yy * wp + xx, (2 * yy + dy) * w + (2 * xx + dx)] = 1.0
    return jnp.asarray(sel, dtype=jnp.bfloat16)


def init_params(key, in_features, num_classes, input_size):
    cfg = [(in_features, 16, False), (16, 16, True),
           (16, 32, False), (32, 32, True),
           (32, 64, False), (64, 64, True)]
    params = {"convs": [], "pool_sel": [], "num_classes": num_classes}
    keys = jax.random.split(key, len(cfg) + 2)
    eps = 1e-5
    h = w = input_size
    layer_cfg = []
    for k, (cin, cout, pool) in zip(keys[:len(cfg)], cfg):
        k1, k2, k3, k4, k5 = jax.random.split(k, 5)
        wgt = jax.random.normal(k1, (cout, cin, 3, 3), jnp.float32) / jnp.sqrt(cin * 9.0)
        b_conv = 0.01 * jax.random.normal(k2, (cout,), jnp.float32)
        gamma = 1.0 + 0.1 * jax.random.normal(k3, (cout,), jnp.float32)
        beta = 0.1 * jax.random.normal(k4, (cout,), jnp.float32)
        run_mean = 0.01 * jax.random.normal(k5, (cout,), jnp.float32)
        run_var = jnp.ones((cout,), jnp.float32)
        # TODO(synk): training-mode BatchNorm (batch statistics) not modeled; eval-mode
        # running stats are folded into the conv weights / bias.
        scale = gamma / jnp.sqrt(run_var + eps)
        bias = (b_conv - run_mean) * scale + beta
        w_eff = wgt * scale[:, None, None, None]                 # BN scale folded (cout,cin,3,3)
        # Grouped tap weights: w_grp[g][j*cin + i, o] = w_eff[o, i, ky=g, kx=j],
        # matching the [left | center | right] lane layout of the staged feature.
        w_grp = jnp.stack(
            [jnp.concatenate([w_eff[:, :, g, j].T for j in range(3)], axis=0)
             for g in range(3)], axis=0).astype(jnp.bfloat16)    # (3, 3*cin, cout)
        params["convs"].append({
            "w_grp": w_grp,
            "bias": bias.reshape(1, cout),
            "w_oihw": wgt,                                       # for the pure-JAX reference
            "scale_vec": scale,
            "pool": pool,
        })
        layer_cfg.append((h, w, cin, cout, pool))
        if pool:
            params["pool_sel"].append(_make_pool_selector_stacked(h, w))
            h, w = h // 2, w // 2

    s_last = h * w
    c_last = cfg[-1][1]
    d_in = c_last * s_last
    dh_pad = _round_up(1000, 128)
    nc_pad = _round_up(num_classes, 128)

    k1a, k1b = jax.random.split(keys[-2])
    k2a, k2b = jax.random.split(keys[-1])
    w1 = jax.random.normal(k1a, (d_in, 1000), jnp.float32) / jnp.sqrt(float(d_in))
    b1 = 0.01 * jax.random.normal(k1b, (1, 1000), jnp.float32)
    w2 = jax.random.normal(k2a, (1000, num_classes), jnp.float32) / jnp.sqrt(1000.0)
    b2 = 0.01 * jax.random.normal(k2b, (1, num_classes), jnp.float32)
    params.update({"w1": w1, "b1": b1, "w2": w2, "b2": b2})

    # Fold the NCHW-flatten permutation into w1 (row s*c_last + c <- torch index c*s_last + s),
    # pad FC dims to lane multiples, cast matmul weights to bf16.
    w1p = jnp.transpose(w1.reshape(c_last, s_last, 1000), (1, 0, 2)).reshape(d_in, 1000)
    params["w1p"] = jnp.pad(w1p, ((0, 0), (0, dh_pad - 1000))).astype(jnp.bfloat16)
    params["b1p"] = jnp.pad(b1, ((0, 0), (0, dh_pad - 1000)))
    params["w2p"] = jnp.pad(
        w2, ((0, dh_pad - 1000), (0, nc_pad - num_classes))).astype(jnp.bfloat16)
    params["b2p"] = jnp.pad(b2, ((0, 0), (0, nc_pad - num_classes)))
    params["layer_cfg"] = layer_cfg
    params["s_last"] = s_last
    params["c_last"] = c_last
    params["dh_pad"] = dh_pad
    params["nc_pad"] = nc_pad
    return params


def cnn_forward(params, x_nchw):
    B, C, H, W = x_nchw.shape
    x = jnp.transpose(x_nchw, (0, 2, 3, 1)).reshape(B, H * W, C).astype(jnp.float32)

    layer_cfg = params["layer_cfg"]
    s_last, c_last = params["s_last"], params["c_last"]
    nc_pad = params["nc_pad"]

    def full_spec(arr):
        nd = arr.ndim
        return pl.BlockSpec(arr.shape, lambda b, nd=nd: (0,) * nd)

    inputs = [x]
    in_specs = [pl.BlockSpec((1, H * W, C), lambda b: (b, 0, 0))]
    for layer in params["convs"]:
        for name in ("w_grp", "bias"):
            inputs.append(layer[name])
            in_specs.append(full_spec(layer[name]))
    for sel in params["pool_sel"]:
        inputs.append(sel)
        in_specs.append(full_spec(sel))
    for name in ("w1p", "b1p", "w2p", "b2p"):
        inputs.append(params[name])
        in_specs.append(full_spec(params[name]))

    scratch = []
    for (h, w, cin, cout, pool) in layer_cfg:        # bf16 staging buffers (halo rows incl.)
        pad = _round_up(w + 1, 8)
        scratch.append(pltpu.VMEM((h * w + 2 * pad, 3 * cin), jnp.bfloat16))
    for (h, w, cin, cout, pool) in layer_cfg:        # f32 conv accumulators
        scratch.append(pltpu.VMEM((h * w, cout), jnp.float32))
    scratch.append(pltpu.VMEM((1, s_last * c_last), jnp.float32))   # lane-dense flatten

    kernel = _make_fused_kernel(layer_cfg, s_last, c_last)

    # TODO(synk): for large batches on v5e/v6e, fold a B_tile of images into the matmul M
    # dimension per grid step; at B=2 the parallel grid maps one image per TensorCore (v7x).
    out_padded = pl.pallas_call(
        kernel,
        out_shape=jax.ShapeDtypeStruct((B, 1, nc_pad), jnp.float32),
        grid=(B,),
        in_specs=in_specs,
        out_specs=pl.BlockSpec((1, 1, nc_pad), lambda b: (b, 0, 0)),
        scratch_shapes=scratch,
        compiler_params=pltpu.CompilerParams(dimension_semantics=("parallel",)),
    )(*inputs)
    return out_padded[:, 0, :params["num_classes"]]


# ----------------------------- pure-JAX reference check -----------------------------

def cnn_reference(params, x_nchw):
    """Reference with the same bf16 matmul operands / f32 accumulation as the kernel."""
    x = jnp.transpose(x_nchw, (0, 2, 3, 1)).astype(jnp.float32)     # NHWC
    for layer in params["convs"]:
        w_eff = layer["w_oihw"] * layer["scale_vec"][:, None, None, None]
        w_hwio = jnp.transpose(w_eff, (2, 3, 1, 0)).astype(jnp.bfloat16)
        y = jax.lax.conv_general_dilated(
            x.astype(jnp.bfloat16), w_hwio, window_strides=(1, 1), padding="SAME",
            dimension_numbers=("NHWC", "HWIO", "NHWC"),
            preferred_element_type=jnp.float32)
        y = jnp.maximum(y + layer["bias"][0], 0.0)
        if layer["pool"]:
            y = jax.lax.reduce_window(y, -jnp.inf, jax.lax.max,
                                      (1, 2, 2, 1), (1, 2, 2, 1), "VALID")
        x = y
    B = x.shape[0]
    xf = jnp.transpose(x, (0, 3, 1, 2)).reshape(B, -1)              # nn.Flatten on NCHW
    h = jnp.maximum(
        jnp.dot(xf.astype(jnp.bfloat16), params["w1"].astype(jnp.bfloat16),
                preferred_element_type=jnp.float32) + params["b1"], 0.0)
    return jnp.dot(h.astype(jnp.bfloat16), params["w2"].astype(jnp.bfloat16),
                   preferred_element_type=jnp.float32) + params["b2"]


# ---------------------------------------- main ----------------------------------------

if __name__ == "__main__":
    in_features, num_classes, input_size = 4, 10, 16
    B = 2
    key = jax.random.PRNGKey(0)
    kp, kx = jax.random.split(key)
    params = init_params(kp, in_features, num_classes, input_size)
    x = jax.random.normal(kx, (B, in_features, input_size, input_size), jnp.float32)

    out = cnn_forward(params, x)
    out = jax.block_until_ready(out)
    assert out.shape == (B, num_classes)

    ref = jax.block_until_ready(cnn_reference(params, x))
    if not jnp.allclose(out, ref, rtol=2e-2, atol=2e-2):
        raise AssertionError(f"mismatch vs reference: max |diff| = "
                             f"{float(jnp.max(jnp.abs(out - ref)))}")
    print("KERNEL_OK")
</pallas_src>

<mosaic_0001>
module attributes {stable_mosaic.version = 11 : i64} {
  func.func @kernel(%arg0: i32, %arg1: memref<1x256x4xf32, #tpu.memory_space<vmem>>, %arg2: memref<3x12x16xbf16, #tpu.memory_space<vmem>>, %arg3: memref<1x16xf32, #tpu.memory_space<vmem>>, %arg4: memref<3x48x16xbf16, #tpu.memory_space<vmem>>, %arg5: memref<1x16xf32, #tpu.memory_space<vmem>>, %arg6: memref<3x48x32xbf16, #tpu.memory_space<vmem>>, %arg7: memref<1x32xf32, #tpu.memory_space<vmem>>, %arg8: memref<3x96x32xbf16, #tpu.memory_space<vmem>>, %arg9: memref<1x32xf32, #tpu.memory_space<vmem>>, %arg10: memref<3x96x64xbf16, #tpu.memory_space<vmem>>, %arg11: memref<1x64xf32, #tpu.memory_space<vmem>>, %arg12: memref<3x192x64xbf16, #tpu.memory_space<vmem>>, %arg13: memref<1x64xf32, #tpu.memory_space<vmem>>, %arg14: memref<256x256xbf16, #tpu.memory_space<vmem>>, %arg15: memref<64x64xbf16, #tpu.memory_space<vmem>>, %arg16: memref<16x16xbf16, #tpu.memory_space<vmem>>, %arg17: memref<256x1024xbf16, #tpu.memory_space<vmem>>, %arg18: memref<1x1024xf32, #tpu.memory_space<vmem>>, %arg19: memref<1024x128xbf16, #tpu.memory_space<vmem>>, %arg20: memref<1x128xf32, #tpu.memory_space<vmem>>, %arg21: memref<1x1x128xf32, #tpu.memory_space<vmem>>, %arg22: memref<304x12xbf16, #tpu.memory_space<vmem>>, %arg23: memref<304x48xbf16, #tpu.memory_space<vmem>>, %arg24: memref<96x48xbf16, #tpu.memory_space<vmem>>, %arg25: memref<96x96xbf16, #tpu.memory_space<vmem>>, %arg26: memref<32x96xbf16, #tpu.memory_space<vmem>>, %arg27: memref<32x192xbf16, #tpu.memory_space<vmem>>, %arg28: memref<256x16xf32, #tpu.memory_space<vmem>>, %arg29: memref<256x16xf32, #tpu.memory_space<vmem>>, %arg30: memref<64x32xf32, #tpu.memory_space<vmem>>, %arg31: memref<64x32xf32, #tpu.memory_space<vmem>>, %arg32: memref<16x64xf32, #tpu.memory_space<vmem>>, %arg33: memref<16x64xf32, #tpu.memory_space<vmem>>, %arg34: memref<1x256xf32, #tpu.memory_space<vmem>>) attributes {dimension_semantics = [#tpu.dimension_semantics<parallel>], iteration_bounds = array<i64: 2>, scalar_prefetch = 0 : i64, scratch_operands = 13 : i64, tpu.core_type = #tpu.core_type<tc>, window_params = [{transform_indices = @transform_0, window_bounds = array<i64: 1, 256, 4>}, {pipeline_mode = #tpu.pipeline_mode<synchronous>, transform_indices = @transform_1, window_bounds = array<i64: 3, 12, 16>}, {pipeline_mode = #tpu.pipeline_mode<synchronous>, transform_indices = @transform_2, window_bounds = array<i64: 1, 16>}, {pipeline_mode = #tpu.pipeline_mode<synchronous>, transform_indices = @transform_3, window_bounds = array<i64: 3, 48, 16>}, {pipeline_mode = #tpu.pipeline_mode<synchronous>, transform_indices = @transform_4, window_bounds = array<i64: 1, 16>}, {pipeline_mode = #tpu.pipeline_mode<synchronous>, transform_indices = @transform_5, window_bounds = array<i64: 3, 48, 32>}, {pipeline_mode = #tpu.pipeline_mode<synchronous>, transform_indices = @transform_6, window_bounds = array<i64: 1, 32>}, {pipeline_mode = #tpu.pipeline_mode<synchronous>, transform_indices = @transform_7, window_bounds = array<i64: 3, 96, 32>}, {pipeline_mode = #tpu.pipeline_mode<synchronous>, transform_indices = @transform_8, window_bounds = array<i64: 1, 32>}, {pipeline_mode = #tpu.pipeline_mode<synchronous>, transform_indices = @transform_9, window_bounds = array<i64: 3, 96, 64>}, {pipeline_mode = #tpu.pipeline_mode<synchronous>, transform_indices = @transform_10, window_bounds = array<i64: 1, 64>}, {pipeline_mode = #tpu.pipeline_mode<synchronous>, transform_indices = @transform_11, window_bounds = array<i64: 3, 192, 64>}, {pipeline_mode = #tpu.pipeline_mode<synchronous>, transform_indices = @transform_12, window_bounds = array<i64: 1, 64>}, {pipeline_mode = #tpu.pipeline_mode<synchronous>, transform_indices = @transform_13, window_bounds = array<i64: 256, 256>}, {pipeline_mode = #tpu.pipeline_mode<synchronous>, transform_indices = @transform_14, window_bounds = array<i64: 64, 64>}, {pipeline_mode = #tpu.pipeline_mode<synchronous>, transform_indices = @transform_15, window_bounds = array<i64: 16, 16>}, {pipeline_mode = #tpu.pipeline_mode<synchronous>, transform_indices = @transform_16, window_bounds = array<i64: 256, 1024>}, {pipeline_mode = #tpu.pipeline_mode<synchronous>, transform_indices = @transform_17, window_bounds = array<i64: 1, 1024>}, {pipeline_mode = #tpu.pipeline_mode<synchronous>, transform_indices = @transform_18, window_bounds = array<i64: 1024, 128>}, {pipeline_mode = #tpu.pipeline_mode<synchronous>, transform_indices = @transform_19, window_bounds = array<i64: 1, 128>}, {transform_indices = @transform_20, window_bounds = array<i64: 1, 1, 128>}]} {
    %c0 = arith.constant 0 : index
    %c0_0 = arith.constant 0 : index
    %c0_1 = arith.constant 0 : index
    %0 = vector.load %arg1[%c0, %c0_0, %c0_1] : memref<1x256x4xf32, #tpu.memory_space<vmem>>, vector<1x256x4xf32>
    %1 = vector.shape_cast %0 : vector<1x256x4xf32> to vector<256x4xf32>
    %cst = arith.constant 0.000000e+00 : bf16
    %2 = vector.broadcast %cst : bf16 to vector<16x12xbf16>
    %c8 = arith.constant 8 : index
    %c0_2 = arith.constant 0 : index
    %3 = vector.load %arg22[%c8, %c0_2] : memref<304x12xbf16, #tpu.memory_space<vmem>>, vector<16x12xbf16>
    tpu.vector_store %arg22[%c8, %c0_2], %2 {strides = array<i32>} : memref<304x12xbf16, #tpu.memory_space<vmem>>, vector<16x12xbf16>,
    %c280 = arith.constant 280 : index
    %c0_3 = arith.constant 0 : index
    %4 = vector.load %arg22[%c280, %c0_3] : memref<304x12xbf16, #tpu.memory_space<vmem>>, vector<16x12xbf16>
    tpu.vector_store %arg22[%c280, %c0_3], %2 {strides = array<i32>} : memref<304x12xbf16, #tpu.memory_space<vmem>>, vector<16x12xbf16>,
    %5 = tpu.iota {dimensions = array<i32: 0>} : vector<256x4xi32>
    %c15_i32 = arith.constant 15 : i32
    %6 = vector.broadcast %c15_i32 : i32 to vector<256x4xi32>
    %7 = arith.andi %5, %6 : vector<256x4xi32>
    %c15_i32_4 = arith.constant 15 : i32
    %8 = vector.broadcast %c15_i32_4 : i32 to vector<256x4xi32>
    %9 = arith.cmpi eq, %7, %8 : vector<256x4xi32>
    %cst_5 = arith.constant 0.000000e+00 : f32
    %10 = vector.broadcast %cst_5 : f32 to vector<256x4xf32>
    %11 = arith.select %9, %10, %1 : vector<256x4xi1>, vector<256x4xf32>
    %c0_i32 = arith.constant 0 : i32
    %12 = vector.broadcast %c0_i32 : i32 to vector<256x4xi32>
    %13 = arith.cmpi eq, %7, %12 : vector<256x4xi32>
    %cst_6 = arith.constant 0.000000e+00 : f32
    %14 = vector.broadcast %cst_6 : f32 to vector<256x4xf32>
    %15 = arith.select %13, %14, %1 : vector<256x4xi1>, vector<256x4xf32>
    %cst_7 = arith.constant 0.000000e+00 : f32
    %16 = vector.broadcast %cst_7 : f32 to vector<1x4xf32>
    %17 = vector.extract_strided_slice %11 {offsets = [0, 0], sizes = [255, 4], strides = [1, 1]} : vector<256x4xf32> to vector<255x4xf32>
    %18 = tpu.concatenate %16, %17 in 0 : vector<1x4xf32>, vector<255x4xf32> -> vector<256x4xf32>
    %19 = vector.extract_strided_slice %15 {offsets = [1, 0], sizes = [255, 4], strides = [1, 1]} : vector<256x4xf32> to vector<255x4xf32>
    %20 = tpu.concatenate %19, %16 in 0 : vector<255x4xf32>, vector<1x4xf32> -> vector<256x4xf32>
    %21 = tpu.concatenate %18, %1, %20 in 1 : vector<256x4xf32>, vector<256x4xf32>, vector<256x4xf32> -> vector<256x12xf32>
    %22 = arith.truncf %21 : vector<256x12xf32> to vector<256x12xbf16>
    %c24 = arith.constant 24 : index
    %c0_8 = arith.constant 0 : index
    %23 = vector.load %arg22[%c24, %c0_8] : memref<304x12xbf16, #tpu.memory_space<vmem>>, vector<256x12xbf16>
    tpu.vector_store %arg22[%c24, %c0_8], %22 {strides = array<i32>} : memref<304x12xbf16, #tpu.memory_space<vmem>>, vector<256x12xbf16>,
    %c8_9 = arith.constant 8 : index
    %c0_10 = arith.constant 0 : index
    %24 = vector.load %arg22[%c8_9, %c0_10] : memref<304x12xbf16, #tpu.memory_space<vmem>>, vector<256x12xbf16>
    %c0_11 = arith.constant 0 : index
    %c0_12 = arith.constant 0 : index
    %c0_13 = arith.constant 0 : index
    %25 = vector.load %arg2[%c0_11, %c0_12, %c0_13] : memref<3x12x16xbf16, #tpu.memory_space<vmem>>, vector<1x12x16xbf16>
    %26 = vector.shape_cast %25 : vector<1x12x16xbf16> to vector<12x16xbf16>
    %cst_14 = arith.constant dense<0.000000e+00> : vector<256x16xf32>
    %27 = tpu.matmul %24, %26, %cst_14 {dimension_numbers = #tpu.dot_dimension_numbers<[1], [0], [0], [1], [0, 0, 1, 1], [], []>} : vector<256x12xbf16>, vector<12x16xbf16>, vector<256x16xf32> -> vector<256x16xf32>
    %c0_15 = arith.constant 0 : index
    %c0_16 = arith.constant 0 : index
    %28 = vector.load %arg28[%c0_15, %c0_16] : memref<256x16xf32, #tpu.memory_space<vmem>>, vector<256x16xf32>
    tpu.vector_store %arg28[%c0_15, %c0_16], %27 {strides = array<i32>} : memref<256x16xf32, #tpu.memory_space<vmem>>, vector<256x16xf32>,
    %c24_17 = arith.constant 24 : index
    %c0_18 = arith.constant 0 : index
    %29 = vector.load %arg22[%c24_17, %c0_18] : memref<304x12xbf16, #tpu.memory_space<vmem>>, vector<256x12xbf16>
    %c1 = arith.constant 1 : index
    %c0_19 = arith.constant 0 : index
    %c0_20 = arith.constant 0 : index
    %30 = vector.load %arg2[%c1, %c0_19, %c0_20] : memref<3x12x16xbf16, #tpu.memory_space<vmem>>, vector<1x12x16xbf16>
    %31 = vector.shape_cast %30 : vector<1x12x16xbf16> to vector<12x16xbf16>
    %cst_21 = arith.constant dense<0.000000e+00> : vector<256x16xf32>
    %32 = tpu.matmul %29, %31, %cst_21 {dimension_numbers = #tpu.dot_dimension_numbers<[1], [0], [0], [1], [0, 0, 1, 1], [], []>} : vector<256x12xbf16>, vector<12x16xbf16>, vector<256x16xf32> -> vector<256x16xf32>
    %c0_22 = arith.constant 0 : index
    %c0_23 = arith.constant 0 : index
    %33 = vector.load %arg28[%c0_22, %c0_23] : memref<256x16xf32, #tpu.memory_space<vmem>>, vector<256x16xf32>
    %34 = arith.addf %33, %32 : vector<256x16xf32>
    %c0_24 = arith.constant 0 : index
    %c0_25 = arith.constant 0 : index
    %35 = vector.load %arg28[%c0_24, %c0_25] : memref<256x16xf32, #tpu.memory_space<vmem>>, vector<256x16xf32>
    tpu.vector_store %arg28[%c0_24, %c0_25], %34 {strides = array<i32>} : memref<256x16xf32, #tpu.memory_space<vmem>>, vector<256x16xf32>,
    %c40 = arith.constant 40 : index
    %c0_26 = arith.constant 0 : index
    %36 = vector.load %arg22[%c40, %c0_26] : memref<304x12xbf16, #tpu.memory_space<vmem>>, vector<256x12xbf16>
    %c2 = arith.constant 2 : index
    %c0_27 = arith.constant 0 : index
    %c0_28 = arith.constant 0 : index
    %37 = vector.load %arg2[%c2, %c0_27, %c0_28] : memref<3x12x16xbf16, #tpu.memory_space<vmem>>, vector<1x12x16xbf16>
    %38 = vector.shape_cast %37 : vector<1x12x16xbf16> to vector<12x16xbf16>
    %cst_29 = arith.constant dense<0.000000e+00> : vector<256x16xf32>
    %39 = tpu.matmul %36, %38, %cst_29 {dimension_numbers = #tpu.dot_dimension_numbers<[1], [0], [0], [1], [0, 0, 1, 1], [], []>} : vector<256x12xbf16>, vector<12x16xbf16>, vector<256x16xf32> -> vector<256x16xf32>
    %c0_30 = arith.constant 0 : index
    %c0_31 = arith.constant 0 : index
    %40 = vector.load %arg28[%c0_30, %c0_31] : memref<256x16xf32, #tpu.memory_space<vmem>>, vector<256x16xf32>
    %41 = arith.addf %40, %39 : vector<256x16xf32>
    %c0_32 = arith.constant 0 : index
    %c0_33 = arith.constant 0 : index
    %42 = vector.load %arg28[%c0_32, %c0_33] : memref<256x16xf32, #tpu.memory_space<vmem>>, vector<256x16xf32>
    tpu.vector_store %arg28[%c0_32, %c0_33], %41 {strides = array<i32>} : memref<256x16xf32, #tpu.memory_space<vmem>>, vector<256x16xf32>,
    %c0_34 = arith.constant 0 : index
    %c0_35 = arith.constant 0 : index
    %43 = vector.load %arg28[%c0_34, %c0_35] : memref<256x16xf32, #tpu.memory_space<vmem>>, vector<256x16xf32>
    %c0_36 = arith.constant 0 : index
    %c0_37 = arith.constant 0 : index
    %44 = vector.load %arg3[%c0_36, %c0_37] : memref<1x16xf32, #tpu.memory_space<vmem>>, vector<1x16xf32>
    %45 = vector.broadcast %44 : vector<1x16xf32> to vector<256x16xf32>
    %46 = arith.addf %43, %45 : vector<256x16xf32>
    %cst_38 = arith.constant 0.000000e+00 : f32
    %47 = vector.broadcast %cst_38 : f32 to vector<256x16xf32>
    %48 = arith.maximumf %46, %47 : vector<256x16xf32>
    %cst_39 = arith.constant 0.000000e+00 : bf16
    %49 = vector.broadcast %cst_39 : bf16 to vector<16x48xbf16>
    %c8_40 = arith.constant 8 : index
    %c0_41 = arith.constant 0 : index
    %50 = vector.load %arg23[%c8_40, %c0_41] : memref<304x48xbf16, #tpu.memory_space<vmem>>, vector<16x48xbf16>
    tpu.vector_store %arg23[%c8_40, %c0_41], %49 {strides = array<i32>} : memref<304x48xbf16, #tpu.memory_space<vmem>>, vector<16x48xbf16>,
    %c280_42 = arith.constant 280 : index
    %c0_43 = arith.constant 0 : index
    %51 = vector.load %arg23[%c280_42, %c0_43] : memref<304x48xbf16, #tpu.memory_space<vmem>>, vector<16x48xbf16>
    tpu.vector_store %arg23[%c280_42, %c0_43], %49 {strides = array<i32>} : memref<304x48xbf16, #tpu.memory_space<vmem>>, vector<16x48xbf16>,
    %52 = tpu.iota {dimensions = array<i32: 0>} : vector<256x16xi32>
    %c15_i32_44 = arith.constant 15 : i32
    %53 = vector.broadcast %c15_i32_44 : i32 to vector<256x16xi32>
    %54 = arith.andi %52, %53 : vector<256x16xi32>
    %c15_i32_45 = arith.constant 15 : i32
    %55 = vector.broadcast %c15_i32_45 : i32 to vector<256x16xi32>
    %56 = arith.cmpi eq, %54, %55 : vector<256x16xi32>
    %cst_46 = arith.constant 0.000000e+00 : f32
    %57 = vector.broadcast %cst_46 : f32 to vector<256x16xf32>
    %58 = arith.select %56, %57, %48 : vector<256x16xi1>, vector<256x16xf32>
    %c0_i32_47 = arith.constant 0 : i32
    %59 = vector.broadcast %c0_i32_47 : i32 to vector<256x16xi32>
    %60 = arith.cmpi eq, %54, %59 : vector<256x16xi32>
    %cst_48 = arith.constant 0.000000e+00 : f32
    %61 = vector.broadcast %cst_48 : f32 to vector<256x16xf32>
    %62 = arith.select %60, %61, %48 : vector<256x16xi1>, vector<256x16xf32>
    %cst_49 = arith.constant 0.000000e+00 : f32
    %63 = vector.broadcast %cst_49 : f32 to vector<1x16xf32>
    %64 = vector.extract_strided_slice %58 {offsets = [0, 0], sizes = [255, 16], strides = [1, 1]} : vector<256x16xf32> to vector<255x16xf32>
    %65 = tpu.concatenate %63, %64 in 0 : vector<1x16xf32>, vector<255x16xf32> -> vector<256x16xf32>
    %66 = vector.extract_strided_slice %62 {offsets = [1, 0], sizes = [255, 16], strides = [1, 1]} : vector<256x16xf32> to vector<255x16xf32>
    %67 = tpu.concatenate %66, %63 in 0 : vector<255x16xf32>, vector<1x16xf32> -> vector<256x16xf32>
    %68 = tpu.concatenate %65, %48, %67 in 1 : vector<256x16xf32>, vector<256x16xf32>, vector<256x16xf32> -> vector<256x48xf32>
    %69 = arith.truncf %68 : vector<256x48xf32> to vector<256x48xbf16>
    %c24_50 = arith.constant 24 : index
    %c0_51 = arith.constant 0 : index
    %70 = vector.load %arg23[%c24_50, %c0_51] : memref<304x48xbf16, #tpu.memory_space<vmem>>, vector<256x48xbf16>
    tpu.vector_store %arg23[%c24_50, %c0_51], %69 {strides = array<i32>} : memref<304x48xbf16, #tpu.memory_space<vmem>>, vector<256x48xbf16>,
    %c8_52 = arith.constant 8 : index
    %c0_53 = arith.constant 0 : index
    %71 = vector.load %arg23[%c8_52, %c0_53] : memref<304x48xbf16, #tpu.memory_space<vmem>>, vector<256x48xbf16>
    %c0_54 = arith.constant 0 : index
    %c0_55 = arith.constant 0 : index
    %c0_56 = arith.constant 0 : index
    %72 = vector.load %arg4[%c0_54, %c0_55, %c0_56] : memref<3x48x16xbf16, #tpu.memory_space<vmem>>, vector<1x48x16xbf16>
    %73 = vector.shape_cast %72 : vector<1x48x16xbf16> to vector<48x16xbf16>
    %cst_57 = arith.constant dense<0.000000e+00> : vector<256x16xf32>
    %74 = tpu.matmul %71, %73, %cst_57 {dimension_numbers = #tpu.dot_dimension_numbers<[1], [0], [0], [1], [0, 0, 1, 1], [], []>} : vector<256x48xbf16>, vector<48x16xbf16>, vector<256x16xf32> -> vector<256x16xf32>
    %c0_58 = arith.constant 0 : index
    %c0_59 = arith.constant 0 : index
    %75 = vector.load %arg29[%c0_58, %c0_59] : memref<256x16xf32, #tpu.memory_space<vmem>>, vector<256x16xf32>
    tpu.vector_store %arg29[%c0_58, %c0_59], %74 {strides = array<i32>} : memref<256x16xf32, #tpu.memory_space<vmem>>, vector<256x16xf32>,
    %c24_60 = arith.constant 24 : index
    %c0_61 = arith.constant 0 : index
    %76 = vector.load %arg23[%c24_60, %c0_61] : memref<304x48xbf16, #tpu.memory_space<vmem>>, vector<256x48xbf16>
    %c1_62 = arith.constant 1 : index
    %c0_63 = arith.constant 0 : index
    %c0_64 = arith.constant 0 : index
    %77 = vector.load %arg4[%c1_62, %c0_63, %c0_64] : memref<3x48x16xbf16, #tpu.memory_space<vmem>>, vector<1x48x16xbf16>
    %78 = vector.shape_cast %77 : vector<1x48x16xbf16> to vector<48x16xbf16>
    %cst_65 = arith.constant dense<0.000000e+00> : vector<256x16xf32>
    %79 = tpu.matmul %76, %78, %cst_65 {dimension_numbers = #tpu.dot_dimension_numbers<[1], [0], [0], [1], [0, 0, 1, 1], [], []>} : vector<256x48xbf16>, vector<48x16xbf16>, vector<256x16xf32> -> vector<256x16xf32>
    %c0_66 = arith.constant 0 : index
    %c0_67 = arith.constant 0 : index
    %80 = vector.load %arg29[%c0_66, %c0_67] : memref<256x16xf32, #tpu.memory_space<vmem>>, vector<256x16xf32>
    %81 = arith.addf %80, %79 : vector<256x16xf32>
    %c0_68 = arith.constant 0 : index
    %c0_69 = arith.constant 0 : index
    %82 = vector.load %arg29[%c0_68, %c0_69] : memref<256x16xf32, #tpu.memory_space<vmem>>, vector<256x16xf32>
    tpu.vector_store %arg29[%c0_68, %c0_69], %81 {strides = array<i32>} : memref<256x16xf32, #tpu.memory_space<vmem>>, vector<256x16xf32>,
    %c40_70 = arith.constant 40 : index
    %c0_71 = arith.constant 0 : index
    %83 = vector.load %arg23[%c40_70, %c0_71] : memref<304x48xbf16, #tpu.memory_space<vmem>>, vector<256x48xbf16>
    %c2_72 = arith.constant 2 : index
    %c0_73 = arith.constant 0 : index
    %c0_74 = arith.constant 0 : index
    %84 = vector.load %arg4[%c2_72, %c0_73, %c0_74] : memref<3x48x16xbf16, #tpu.memory_space<vmem>>, vector<1x48x16xbf16>
    %85 = vector.shape_cast %84 : vector<1x48x16xbf16> to vector<48x16xbf16>
    %cst_75 = arith.constant dense<0.000000e+00> : vector<256x16xf32>
    %86 = tpu.matmul %83, %85, %cst_75 {dimension_numbers = #tpu.dot_dimension_numbers<[1], [0], [0], [1], [0, 0, 1, 1], [], []>} : vector<256x48xbf16>, vector<48x16xbf16>, vector<256x16xf32> -> vector<256x16xf32>
    %c0_76 = arith.constant 0 : index
    %c0_77 = arith.constant 0 : index
    %87 = vector.load %arg29[%c0_76, %c0_77] : memref<256x16xf32, #tpu.memory_space<vmem>>, vector<256x16xf32>
    %88 = arith.addf %87, %86 : vector<256x16xf32>
    %c0_78 = arith.constant 0 : index
    %c0_79 = arith.constant 0 : index
    %89 = vector.load %arg29[%c0_78, %c0_79] : memref<256x16xf32, #tpu.memory_space<vmem>>, vector<256x16xf32>
    tpu.vector_store %arg29[%c0_78, %c0_79], %88 {strides = array<i32>} : memref<256x16xf32, #tpu.memory_space<vmem>>, vector<256x16xf32>,
    %c0_80 = arith.constant 0 : index
    %c0_81 = arith.constant 0 : index
    %90 = vector.load %arg29[%c0_80, %c0_81] : memref<256x16xf32, #tpu.memory_space<vmem>>, vector<256x16xf32>
    %c0_82 = arith.constant 0 : index
    %c0_83 = arith.constant 0 : index
    %91 = vector.load %arg5[%c0_82, %c0_83] : memref<1x16xf32, #tpu.memory_space<vmem>>, vector<1x16xf32>
    %92 = vector.broadcast %91 : vector<1x16xf32> to vector<256x16xf32>
    %93 = arith.addf %90, %92 : vector<256x16xf32>
    %cst_84 = arith.constant 0.000000e+00 : f32
    %94 = vector.broadcast %cst_84 : f32 to vector<256x16xf32>
    %95 = arith.maximumf %93, %94 : vector<256x16xf32>
    %c0_85 = arith.constant 0 : index
    %c0_86 = arith.constant 0 : index
    %96 = vector.load %arg14[%c0_85, %c0_86] : memref<256x256xbf16, #tpu.memory_space<vmem>>, vector<256x256xbf16>
    %97 = arith.truncf %95 : vector<256x16xf32> to vector<256x16xbf16>
    %cst_87 = arith.constant dense<0.000000e+00> : vector<256x16xf32>
    %98 = tpu.matmul %96, %97, %cst_87 {dimension_numbers = #tpu.dot_dimension_numbers<[1], [0], [0], [1], [0, 0, 1, 1], [], []>} : vector<256x256xbf16>, vector<256x16xbf16>, vector<256x16xf32> -> vector<256x16xf32>
    %99 = vector.extract_strided_slice %98 {offsets = [0, 0], sizes = [64, 16], strides = [1, 1]} : vector<256x16xf32> to vector<64x16xf32>
    %100 = vector.extract_strided_slice %98 {offsets = [64, 0], sizes = [64, 16], strides = [1, 1]} : vector<256x16xf32> to vector<64x16xf32>
    %101 = arith.maximumf %99, %100 : vector<64x16xf32>
    %102 = vector.extract_strided_slice %98 {offsets = [128, 0], sizes = [64, 16], strides = [1, 1]} : vector<256x16xf32> to vector<64x16xf32>
    %103 = vector.extract_strided_slice %98 {offsets = [192, 0], sizes = [64, 16], strides = [1, 1]} : vector<256x16xf32> to vector<64x16xf32>
    %104 = arith.maximumf %102, %103 : vector<64x16xf32>
    %105 = arith.maximumf %101, %104 : vector<64x16xf32>
    %cst_88 = arith.constant 0.000000e+00 : bf16
    %106 = vector.broadcast %cst_88 : bf16 to vector<8x48xbf16>
    %c8_89 = arith.constant 8 : index
    %c0_90 = arith.constant 0 : index
    %107 = vector.load %arg24[%c8_89, %c0_90] : memref<96x48xbf16, #tpu.memory_space<vmem>>, vector<8x48xbf16>
    tpu.vector_store %arg24[%c8_89, %c0_90], %106 {strides = array<i32>} : memref<96x48xbf16, #tpu.memory_space<vmem>>, vector<8x48xbf16>,
    %c80 = arith.constant 80 : index
    %c0_91 = arith.constant 0 : index
    %108 = vector.load %arg24[%c80, %c0_91] : memref<96x48xbf16, #tpu.memory_space<vmem>>, vector<8x48xbf16>
    tpu.vector_store %arg24[%c80, %c0_91], %106 {strides = array<i32>} : memref<96x48xbf16, #tpu.memory_space<vmem>>, vector<8x48xbf16>,
    %109 = tpu.iota {dimensions = array<i32: 0>} : vector<64x16xi32>
    %c7_i32 = arith.constant 7 : i32
    %110 = vector.broadcast %c7_i32 : i32 to vector<64x16xi32>
    %111 = arith.andi %109, %110 : vector<64x16xi32>
    %c7_i32_92 = arith.constant 7 : i32
    %112 = vector.broadcast %c7_i32_92 : i32 to vector<64x16xi32>
    %113 = arith.cmpi eq, %111, %112 : vector<64x16xi32>
    %cst_93 = arith.constant 0.000000e+00 : f32
    %114 = vector.broadcast %cst_93 : f32 to vector<64x16xf32>
    %115 = arith.select %113, %114, %105 : vector<64x16xi1>, vector<64x16xf32>
    %c0_i32_94 = arith.constant 0 : i32
    %116 = vector.broadcast %c0_i32_94 : i32 to vector<64x16xi32>
    %117 = arith.cmpi eq, %111, %116 : vector<64x16xi32>
    %cst_95 = arith.constant 0.000000e+00 : f32
    %118 = vector.broadcast %cst_95 : f32 to vector<64x16xf32>
    %119 = arith.select %117, %118, %105 : vector<64x16xi1>, vector<64x16xf32>
    %cst_96 = arith.constant 0.000000e+00 : f32
    %120 = vector.broadcast %cst_96 : f32 to vector<1x16xf32>
    %121 = vector.extract_strided_slice %115 {offsets = [0, 0], sizes = [63, 16], strides = [1, 1]} : vector<64x16xf32> to vector<63x16xf32>
    %122 = tpu.concatenate %120, %121 in 0 : vector<1x16xf32>, vector<63x16xf32> -> vector<64x16xf32>
    %123 = vector.extract_strided_slice %119 {offsets = [1, 0], sizes = [63, 16], strides = [1, 1]} : vector<64x16xf32> to vector<63x16xf32>
    %124 = tpu.concatenate %123, %120 in 0 : vector<63x16xf32>, vector<1x16xf32> -> vector<64x16xf32>
    %125 = tpu.concatenate %122, %105, %124 in 1 : vector<64x16xf32>, vector<64x16xf32>, vector<64x16xf32> -> vector<64x48xf32>
    %126 = arith.truncf %125 : vector<64x48xf32> to vector<64x48xbf16>
    %c16 = arith.constant 16 : index
    %c0_97 = arith.constant 0 : index
    %127 = vector.load %arg24[%c16, %c0_97] : memref<96x48xbf16, #tpu.memory_space<vmem>>, vector<64x48xbf16>
    tpu.vector_store %arg24[%c16, %c0_97], %126 {strides = array<i32>} : memref<96x48xbf16, #tpu.memory_space<vmem>>, vector<64x48xbf16>,
    %c8_98 = arith.constant 8 : index
    %c0_99 = arith.constant 0 : index
    %128 = vector.load %arg24[%c8_98, %c0_99] : memref<96x48xbf16, #tpu.memory_space<vmem>>, vector<64x48xbf16>
    %c0_100 = arith.constant 0 : index
    %c0_101 = arith.constant 0 : index
    %c0_102 = arith.constant 0 : index
    %129 = vector.load %arg6[%c0_100, %c0_101, %c0_102] : memref<3x48x32xbf16, #tpu.memory_space<vmem>>, vector<1x48x32xbf16>
    %130 = vector.shape_cast %129 : vector<1x48x32xbf16> to vector<48x32xbf16>
    %cst_103 = arith.constant dense<0.000000e+00> : vector<64x32xf32>
    %131 = tpu.matmul %128, %130, %cst_103 {dimension_numbers = #tpu.dot_dimension_numbers<[1], [0], [0], [1], [0, 0, 1, 1], [], []>} : vector<64x48xbf16>, vector<48x32xbf16>, vector<64x32xf32> -> vector<64x32xf32>
    %c0_104 = arith.constant 0 : index
    %c0_105 = arith.constant 0 : index
    %132 = vector.load %arg30[%c0_104, %c0_105] : memref<64x32xf32, #tpu.memory_space<vmem>>, vector<64x32xf32>
    tpu.vector_store %arg30[%c0_104, %c0_105], %131 {strides = array<i32>} : memref<64x32xf32, #tpu.memory_space<vmem>>, vector<64x32xf32>,
    %c16_106 = arith.constant 16 : index
    %c0_107 = arith.constant 0 : index
    %133 = vector.load %arg24[%c16_106, %c0_107] : memref<96x48xbf16, #tpu.memory_space<vmem>>, vector<64x48xbf16>
    %c1_108 = arith.constant 1 : index
    %c0_109 = arith.constant 0 : index
    %c0_110 = arith.constant 0 : index
    %134 = vector.load %arg6[%c1_108, %c0_109, %c0_110] : memref<3x48x32xbf16, #tpu.memory_space<vmem>>, vector<1x48x32xbf16>
    %135 = vector.shape_cast %134 : vector<1x48x32xbf16> to vector<48x32xbf16>
    %cst_111 = arith.constant dense<0.000000e+00> : vector<64x32xf32>
    %136 = tpu.matmul %133, %135, %cst_111 {dimension_numbers = #tpu.dot_dimension_numbers<[1], [0], [0], [1], [0, 0, 1, 1], [], []>} : vector<64x48xbf16>, vector<48x32xbf16>, vector<64x32xf32> -> vector<64x32xf32>
    %c0_112 = arith.constant 0 : index
    %c0_113 = arith.constant 0 : index
    %137 = vector.load %arg30[%c0_112, %c0_113] : memref<64x32xf32, #tpu.memory_space<vmem>>, vector<64x32xf32>
    %138 = arith.addf %137, %136 : vector<64x32xf32>
    %c0_114 = arith.constant 0 : index
    %c0_115 = arith.constant 0 : index
    %139 = vector.load %arg30[%c0_114, %c0_115] : memref<64x32xf32, #tpu.memory_space<vmem>>, vector<64x32xf32>
    tpu.vector_store %arg30[%c0_114, %c0_115], %138 {strides = array<i32>} : memref<64x32xf32, #tpu.memory_space<vmem>>, vector<64x32xf32>,
    %c24_116 = arith.constant 24 : index
    %c0_117 = arith.constant 0 : index
    %140 = vector.load %arg24[%c24_116, %c0_117] : memref<96x48xbf16, #tpu.memory_space<vmem>>, vector<64x48xbf16>
    %c2_118 = arith.constant 2 : index
    %c0_119 = arith.constant 0 : index
    %c0_120 = arith.constant 0 : index
    %141 = vector.load %arg6[%c2_118, %c0_119, %c0_120] : memref<3x48x32xbf16, #tpu.memory_space<vmem>>, vector<1x48x32xbf16>
    %142 = vector.shape_cast %141 : vector<1x48x32xbf16> to vector<48x32xbf16>
    %cst_121 = arith.constant dense<0.000000e+00> : vector<64x32xf32>
    %143 = tpu.matmul %140, %142, %cst_121 {dimension_numbers = #tpu.dot_dimension_numbers<[1], [0], [0], [1], [0, 0, 1, 1], [], []>} : vector<64x48xbf16>, vector<48x32xbf16>, vector<64x32xf32> -> vector<64x32xf32>
    %c0_122 = arith.constant 0 : index
    %c0_123 = arith.constant 0 : index
    %144 = vector.load %arg30[%c0_122, %c0_123] : memref<64x32xf32, #tpu.memory_space<vmem>>, vector<64x32xf32>
    %145 = arith.addf %144, %143 : vector<64x32xf32>
    %c0_124 = arith.constant 0 : index
    %c0_125 = arith.constant 0 : index
    %146 = vector.load %arg30[%c0_124, %c0_125] : memref<64x32xf32, #tpu.memory_space<vmem>>, vector<64x32xf32>
    tpu.vector_store %arg30[%c0_124, %c0_125], %145 {strides = array<i32>} : memref<64x32xf32, #tpu.memory_space<vmem>>, vector<64x32xf32>,
    %c0_126 = arith.constant 0 : index
    %c0_127 = arith.constant 0 : index
    %147 = vector.load %arg30[%c0_126, %c0_127] : memref<64x32xf32, #tpu.memory_space<vmem>>, vector<64x32xf32>
    %c0_128 = arith.constant 0 : index
    %c0_129 = arith.constant 0 : index
    %148 = vector.load %arg7[%c0_128, %c0_129] : memref<1x32xf32, #tpu.memory_space<vmem>>, vector<1x32xf32>
    %149 = vector.broadcast %148 : vector<1x32xf32> to vector<64x32xf32>
    %150 = arith.addf %147, %149 : vector<64x32xf32>
    %cst_130 = arith.constant 0.000000e+00 : f32
    %151 = vector.broadcast %cst_130 : f32 to vector<64x32xf32>
    %152 = arith.maximumf %150, %151 : vector<64x32xf32>
    %cst_131 = arith.constant 0.000000e+00 : bf16
    %153 = vector.broadcast %cst_131 : bf16 to vector<8x96xbf16>
    %c8_132 = arith.constant 8 : index
    %c0_133 = arith.constant 0 : index
    %154 = vector.load %arg25[%c8_132, %c0_133] : memref<96x96xbf16, #tpu.memory_space<vmem>>, vector<8x96xbf16>
    tpu.vector_store %arg25[%c8_132, %c0_133], %153 {strides = array<i32>} : memref<96x96xbf16, #tpu.memory_space<vmem>>, vector<8x96xbf16>,
    %c80_134 = arith.constant 80 : index
    %c0_135 = arith.constant 0 : index
    %155 = vector.load %arg25[%c80_134, %c0_135] : memref<96x96xbf16, #tpu.memory_space<vmem>>, vector<8x96xbf16>
    tpu.vector_store %arg25[%c80_134, %c0_135], %153 {strides = array<i32>} : memref<96x96xbf16, #tpu.memory_space<vmem>>, vector<8x96xbf16>,
    %156 = tpu.iota {dimensions = array<i32: 0>} : vector<64x32xi32>
    %c7_i32_136 = arith.constant 7 : i32
    %157 = vector.broadcast %c7_i32_136 : i32 to vector<64x32xi32>
    %158 = arith.andi %156, %157 : vector<64x32xi32>
    %c7_i32_137 = arith.constant 7 : i32
    %159 = vector.broadcast %c7_i32_137 : i32 to vector<64x32xi32>
    %160 = arith.cmpi eq, %158, %159 : vector<64x32xi32>
    %cst_138 = arith.constant 0.000000e+00 : f32
    %161 = vector.broadcast %cst_138 : f32 to vector<64x32xf32>
    %162 = arith.select %160, %161, %152 : vector<64x32xi1>, vector<64x32xf32>
    %c0_i32_139 = arith.constant 0 : i32
    %163 = vector.broadcast %c0_i32_139 : i32 to vector<64x32xi32>
    %164 = arith.cmpi eq, %158, %163 : vector<64x32xi32>
    %cst_140 = arith.constant 0.000000e+00 : f32
    %165 = vector.broadcast %cst_140 : f32 to vector<64x32xf32>
    %166 = arith.select %164, %165, %152 : vector<64x32xi1>, vector<64x32xf32>
    %cst_141 = arith.constant 0.000000e+00 : f32
    %167 = vector.broadcast %cst_141 : f32 to vector<1x32xf32>
    %168 = vector.extract_strided_slice %162 {offsets = [0, 0], sizes = [63, 32], strides = [1, 1]} : vector<64x32xf32> to vector<63x32xf32>
    %169 = tpu.concatenate %167, %168 in 0 : vector<1x32xf32>, vector<63x32xf32> -> vector<64x32xf32>
    %170 = vector.extract_strided_slice %166 {offsets = [1, 0], sizes = [63, 32], strides = [1, 1]} : vector<64x32xf32> to vector<63x32xf32>
    %171 = tpu.concatenate %170, %167 in 0 : vector<63x32xf32>, vector<1x32xf32> -> vector<64x32xf32>
    %172 = tpu.concatenate %169, %152, %171 in 1 : vector<64x32xf32>, vector<64x32xf32>, vector<64x32xf32> -> vector<64x96xf32>
    %173 = arith.truncf %172 : vector<64x96xf32> to vector<64x96xbf16>
    %c16_142 = arith.constant 16 : index
    %c0_143 = arith.constant 0 : index
    %174 = vector.load %arg25[%c16_142, %c0_143] : memref<96x96xbf16, #tpu.memory_space<vmem>>, vector<64x96xbf16>
    tpu.vector_store %arg25[%c16_142, %c0_143], %173 {strides = array<i32>} : memref<96x96xbf16, #tpu.memory_space<vmem>>, vector<64x96xbf16>,
    %c8_144 = arith.constant 8 : index
    %c0_145 = arith.constant 0 : index
    %175 = vector.load %arg25[%c8_144, %c0_145] : memref<96x96xbf16, #tpu.memory_space<vmem>>, vector<64x96xbf16>
    %c0_146 = arith.constant 0 : index
    %c0_147 = arith.constant 0 : index
    %c0_148 = arith.constant 0 : index
    %176 = vector.load %arg8[%c0_146, %c0_147, %c0_148] : memref<3x96x32xbf16, #tpu.memory_space<vmem>>, vector<1x96x32xbf16>
    %177 = vector.shape_cast %176 : vector<1x96x32xbf16> to vector<96x32xbf16>
    %cst_149 = arith.constant dense<0.000000e+00> : vector<64x32xf32>
    %178 = tpu.matmul %175, %177, %cst_149 {dimension_numbers = #tpu.dot_dimension_numbers<[1], [0], [0], [1], [0, 0, 1, 1], [], []>} : vector<64x96xbf16>, vector<96x32xbf16>, vector<64x32xf32> -> vector<64x32xf32>
    %c0_150 = arith.constant 0 : index
    %c0_151 = arith.constant 0 : index
    %179 = vector.load %arg31[%c0_150, %c0_151] : memref<64x32xf32, #tpu.memory_space<vmem>>, vector<64x32xf32>
    tpu.vector_store %arg31[%c0_150, %c0_151], %178 {strides = array<i32>} : memref<64x32xf32, #tpu.memory_space<vmem>>, vector<64x32xf32>,
    %c16_152 = arith.constant 16 : index
    %c0_153 = arith.constant 0 : index
    %180 = vector.load %arg25[%c16_152, %c0_153] : memref<96x96xbf16, #tpu.memory_space<vmem>>, vector<64x96xbf16>
    %c1_154 = arith.constant 1 : index
    %c0_155 = arith.constant 0 : index
    %c0_156 = arith.constant 0 : index
    %181 = vector.load %arg8[%c1_154, %c0_155, %c0_156] : memref<3x96x32xbf16, #tpu.memory_space<vmem>>, vector<1x96x32xbf16>
    %182 = vector.shape_cast %181 : vector<1x96x32xbf16> to vector<96x32xbf16>
    %cst_157 = arith.constant dense<0.000000e+00> : vector<64x32xf32>
    %183 = tpu.matmul %180, %182, %cst_157 {dimension_numbers = #tpu.dot_dimension_numbers<[1], [0], [0], [1], [0, 0, 1, 1], [], []>} : vector<64x96xbf16>, vector<96x32xbf16>, vector<64x32xf32> -> vector<64x32xf32>
    %c0_158 = arith.constant 0 : index
    %c0_159 = arith.constant 0 : index
    %184 = vector.load %arg31[%c0_158, %c0_159] : memref<64x32xf32, #tpu.memory_space<vmem>>, vector<64x32xf32>
    %185 = arith.addf %184, %183 : vector<64x32xf32>
    %c0_160 = arith.constant 0 : index
    %c0_161 = arith.constant 0 : index
    %186 = vector.load %arg31[%c0_160, %c0_161] : memref<64x32xf32, #tpu.memory_space<vmem>>, vector<64x32xf32>
    tpu.vector_store %arg31[%c0_160, %c0_161], %185 {strides = array<i32>} : memref<64x32xf32, #tpu.memory_space<vmem>>, vector<64x32xf32>,
    %c24_162 = arith.constant 24 : index
    %c0_163 = arith.constant 0 : index
    %187 = vector.load %arg25[%c24_162, %c0_163] : memref<96x96xbf16, #tpu.memory_space<vmem>>, vector<64x96xbf16>
    %c2_164 = arith.constant 2 : index
    %c0_165 = arith.constant 0 : index
    %c0_166 = arith.constant 0 : index
    %188 = vector.load %arg8[%c2_164, %c0_165, %c0_166] : memref<3x96x32xbf16, #tpu.memory_space<vmem>>, vector<1x96x32xbf16>
    %189 = vector.shape_cast %188 : vector<1x96x32xbf16> to vector<96x32xbf16>
    %cst_167 = arith.constant dense<0.000000e+00> : vector<64x32xf32>
    %190 = tpu.matmul %187, %189, %cst_167 {dimension_numbers = #tpu.dot_dimension_numbers<[1], [0], [0], [1], [0, 0, 1, 1], [], []>} : vector<64x96xbf16>, vector<96x32xbf16>, vector<64x32xf32> -> vector<64x32xf32>
    %c0_168 = arith.constant 0 : index
    %c0_169 = arith.constant 0 : index
    %191 = vector.load %arg31[%c0_168, %c0_169] : memref<64x32xf32, #tpu.memory_space<vmem>>, vector<64x32xf32>
    %192 = arith.addf %191, %190 : vector<64x32xf32>
    %c0_170 = arith.constant 0 : index
    %c0_171 = arith.constant 0 : index
    %193 = vector.load %arg31[%c0_170, %c0_171] : memref<64x32xf32, #tpu.memory_space<vmem>>, vector<64x32xf32>
    tpu.vector_store %arg31[%c0_170, %c0_171], %192 {strides = array<i32>} : memref<64x32xf32, #tpu.memory_space<vmem>>, vector<64x32xf32>,
    %c0_172 = arith.constant 0 : index
    %c0_173 = arith.constant 0 : index
    %194 = vector.load %arg31[%c0_172, %c0_173] : memref<64x32xf32, #tpu.memory_space<vmem>>, vector<64x32xf32>
    %c0_174 = arith.constant 0 : index
    %c0_175 = arith.constant 0 : index
    %195 = vector.load %arg9[%c0_174, %c0_175] : memref<1x32xf32, #tpu.memory_space<vmem>>, vector<1x32xf32>
    %196 = vector.broadcast %195 : vector<1x32xf32> to vector<64x32xf32>
    %197 = arith.addf %194, %196 : vector<64x32xf32>
    %cst_176 = arith.constant 0.000000e+00 : f32
    %198 = vector.broadcast %cst_176 : f32 to vector<64x32xf32>
    %199 = arith.maximumf %197, %198 : vector<64x32xf32>
    %c0_177 = arith.constant 0 : index
    %c0_178 = arith.constant 0 : index
    %200 = vector.load %arg15[%c0_177, %c0_178] : memref<64x64xbf16, #tpu.memory_space<vmem>>, vector<64x64xbf16>
    %201 = arith.truncf %199 : vector<64x32xf32> to vector<64x32xbf16>
    %cst_179 = arith.constant dense<0.000000e+00> : vector<64x32xf32>
    %202 = tpu.matmul %200, %201, %cst_179 {dimension_numbers = #tpu.dot_dimension_numbers<[1], [0], [0], [1], [0, 0, 1, 1], [], []>} : vector<64x64xbf16>, vector<64x32xbf16>, vector<64x32xf32> -> vector<64x32xf32>
    %203 = vector.extract_strided_slice %202 {offsets = [0, 0], sizes = [16, 32], strides = [1, 1]} : vector<64x32xf32> to vector<16x32xf32>
    %204 = vector.extract_strided_slice %202 {offsets = [16, 0], sizes = [16, 32], strides = [1, 1]} : vector<64x32xf32> to vector<16x32xf32>
    %205 = arith.maximumf %203, %204 : vector<16x32xf32>
    %206 = vector.extract_strided_slice %202 {offsets = [32, 0], sizes = [16, 32], strides = [1, 1]} : vector<64x32xf32> to vector<16x32xf32>
    %207 = vector.extract_strided_slice %202 {offsets = [48, 0], sizes = [16, 32], strides = [1, 1]} : vector<64x32xf32> to vector<16x32xf32>
    %208 = arith.maximumf %206, %207 : vector<16x32xf32>
    %209 = arith.maximumf %205, %208 : vector<16x32xf32>
    %cst_180 = arith.constant 0.000000e+00 : bf16
    %210 = vector.broadcast %cst_180 : bf16 to vector<4x96xbf16>
    %c4 = arith.constant 4 : index
    %c0_181 = arith.constant 0 : index
    %211 = vector.load %arg26[%c4, %c0_181] : memref<32x96xbf16, #tpu.memory_space<vmem>>, vector<4x96xbf16>
    tpu.vector_store %arg26[%c4, %c0_181], %210 {strides = array<i32>} : memref<32x96xbf16, #tpu.memory_space<vmem>>, vector<4x96xbf16>,
    %c24_182 = arith.constant 24 : index
    %c0_183 = arith.constant 0 : index
    %212 = vector.load %arg26[%c24_182, %c0_183] : memref<32x96xbf16, #tpu.memory_space<vmem>>, vector<4x96xbf16>
    tpu.vector_store %arg26[%c24_182, %c0_183], %210 {strides = array<i32>} : memref<32x96xbf16, #tpu.memory_space<vmem>>, vector<4x96xbf16>,
    %213 = tpu.iota {dimensions = array<i32: 0>} : vector<16x32xi32>
    %c3_i32 = arith.constant 3 : i32
    %214 = vector.broadcast %c3_i32 : i32 to vector<16x32xi32>
    %215 = arith.andi %213, %214 : vector<16x32xi32>
    %c3_i32_184 = arith.constant 3 : i32
    %216 = vector.broadcast %c3_i32_184 : i32 to vector<16x32xi32>
    %217 = arith.cmpi eq, %215, %216 : vector<16x32xi32>
    %cst_185 = arith.constant 0.000000e+00 : f32
    %218 = vector.broadcast %cst_185 : f32 to vector<16x32xf32>
    %219 = arith.select %217, %218, %209 : vector<16x32xi1>, vector<16x32xf32>
    %c0_i32_186 = arith.constant 0 : i32
    %220 = vector.broadcast %c0_i32_186 : i32 to vector<16x32xi32>
    %221 = arith.cmpi eq, %215, %220 : vector<16x32xi32>
    %cst_187 = arith.constant 0.000000e+00 : f32
    %222 = vector.broadcast %cst_187 : f32 to vector<16x32xf32>
    %223 = arith.select %221, %222, %209 : vector<16x32xi1>, vector<16x32xf32>
    %cst_188 = arith.constant 0.000000e+00 : f32
    %224 = vector.broadcast %cst_188 : f32 to vector<1x32xf32>
    %225 = vector.extract_strided_slice %219 {offsets = [0, 0], sizes = [15, 32], strides = [1, 1]} : vector<16x32xf32> to vector<15x32xf32>
    %226 = tpu.concatenate %224, %225 in 0 : vector<1x32xf32>, vector<15x32xf32> -> vector<16x32xf32>
    %227 = vector.extract_strided_slice %223 {offsets = [1, 0], sizes = [15, 32], strides = [1, 1]} : vector<16x32xf32> to vector<15x32xf32>
    %228 = tpu.concatenate %227, %224 in 0 : vector<15x32xf32>, vector<1x32xf32> -> vector<16x32xf32>
    %229 = tpu.concatenate %226, %209, %228 in 1 : vector<16x32xf32>, vector<16x32xf32>, vector<16x32xf32> -> vector<16x96xf32>
    %230 = arith.truncf %229 : vector<16x96xf32> to vector<16x96xbf16>
    %c8_189 = arith.constant 8 : index
    %c0_190 = arith.constant 0 : index
    %231 = vector.load %arg26[%c8_189, %c0_190] : memref<32x96xbf16, #tpu.memory_space<vmem>>, vector<16x96xbf16>
    tpu.vector_store %arg26[%c8_189, %c0_190], %230 {strides = array<i32>} : memref<32x96xbf16, #tpu.memory_space<vmem>>, vector<16x96xbf16>,
    %c4_191 = arith.constant 4 : index
    %c0_192 = arith.constant 0 : index
    %232 = vector.load %arg26[%c4_191, %c0_192] : memref<32x96xbf16, #tpu.memory_space<vmem>>, vector<16x96xbf16>
    %c0_193 = arith.constant 0 : index
    %c0_194 = arith.constant 0 : index
    %c0_195 = arith.constant 0 : index
    %233 = vector.load %arg10[%c0_193, %c0_194, %c0_195] : memref<3x96x64xbf16, #tpu.memory_space<vmem>>, vector<1x96x64xbf16>
    %234 = vector.shape_cast %233 : vector<1x96x64xbf16> to vector<96x64xbf16>
    %cst_196 = arith.constant dense<0.000000e+00> : vector<16x64xf32>
    %235 = tpu.matmul %232, %234, %cst_196 {dimension_numbers = #tpu.dot_dimension_numbers<[1], [0], [0], [1], [0, 0, 1, 1], [], []>} : vector<16x96xbf16>, vector<96x64xbf16>, vector<16x64xf32> -> vector<16x64xf32>
    %c0_197 = arith.constant 0 : index
    %c0_198 = arith.constant 0 : index
    %236 = vector.load %arg32[%c0_197, %c0_198] : memref<16x64xf32, #tpu.memory_space<vmem>>, vector<16x64xf32>
    tpu.vector_store %arg32[%c0_197, %c0_198], %235 {strides = array<i32>} : memref<16x64xf32, #tpu.memory_space<vmem>>, vector<16x64xf32>,
    %c8_199 = arith.constant 8 : index
    %c0_200 = arith.constant 0 : index
    %237 = vector.load %arg26[%c8_199, %c0_200] : memref<32x96xbf16, #tpu.memory_space<vmem>>, vector<16x96xbf16>
    %c1_201 = arith.constant 1 : index
    %c0_202 = arith.constant 0 : index
    %c0_203 = arith.constant 0 : index
    %238 = vector.load %arg10[%c1_201, %c0_202, %c0_203] : memref<3x96x64xbf16, #tpu.memory_space<vmem>>, vector<1x96x64xbf16>
    %239 = vector.shape_cast %238 : vector<1x96x64xbf16> to vector<96x64xbf16>
    %cst_204 = arith.constant dense<0.000000e+00> : vector<16x64xf32>
    %240 = tpu.matmul %237, %239, %cst_204 {dimension_numbers = #tpu.dot_dimension_numbers<[1], [0], [0], [1], [0, 0, 1, 1], [], []>} : vector<16x96xbf16>, vector<96x64xbf16>, vector<16x64xf32> -> vector<16x64xf32>
    %c0_205 = arith.constant 0 : index
    %c0_206 = arith.constant 0 : index
    %241 = vector.load %arg32[%c0_205, %c0_206] : memref<16x64xf32, #tpu.memory_space<vmem>>, vector<16x64xf32>
    %242 = arith.addf %241, %240 : vector<16x64xf32>
    %c0_207 = arith.constant 0 : index
    %c0_208 = arith.constant 0 : index
    %243 = vector.load %arg32[%c0_207, %c0_208] : memref<16x64xf32, #tpu.memory_space<vmem>>, vector<16x64xf32>
    tpu.vector_store %arg32[%c0_207, %c0_208], %242 {strides = array<i32>} : memref<16x64xf32, #tpu.memory_space<vmem>>, vector<16x64xf32>,
    %c12 = arith.constant 12 : index
    %c0_209 = arith.constant 0 : index
    %244 = vector.load %arg26[%c12, %c0_209] : memref<32x96xbf16, #tpu.memory_space<vmem>>, vector<16x96xbf16>
    %c2_210 = arith.constant 2 : index
    %c0_211 = arith.constant 0 : index
    %c0_212 = arith.constant 0 : index
    %245 = vector.load %arg10[%c2_210, %c0_211, %c0_212] : memref<3x96x64xbf16, #tpu.memory_space<vmem>>, vector<1x96x64xbf16>
    %246 = vector.shape_cast %245 : vector<1x96x64xbf16> to vector<96x64xbf16>
    %cst_213 = arith.constant dense<0.000000e+00> : vector<16x64xf32>
    %247 = tpu.matmul %244, %246, %cst_213 {dimension_numbers = #tpu.dot_dimension_numbers<[1], [0], [0], [1], [0, 0, 1, 1], [], []>} : vector<16x96xbf16>, vector<96x64xbf16>, vector<16x64xf32> -> vector<16x64xf32>
    %c0_214 = arith.constant 0 : index
    %c0_215 = arith.constant 0 : index
    %248 = vector.load %arg32[%c0_214, %c0_215] : memref<16x64xf32, #tpu.memory_space<vmem>>, vector<16x64xf32>
    %249 = arith.addf %248, %247 : vector<16x64xf32>
    %c0_216 = arith.constant 0 : index
    %c0_217 = arith.constant 0 : index
    %250 = vector.load %arg32[%c0_216, %c0_217] : memref<16x64xf32, #tpu.memory_space<vmem>>, vector<16x64xf32>
    tpu.vector_store %arg32[%c0_216, %c0_217], %249 {strides = array<i32>} : memref<16x64xf32, #tpu.memory_space<vmem>>, vector<16x64xf32>,
    %c0_218 = arith.constant 0 : index
    %c0_219 = arith.constant 0 : index
    %251 = vector.load %arg32[%c0_218, %c0_219] : memref<16x64xf32, #tpu.memory_space<vmem>>, vector<16x64xf32>
    %c0_220 = arith.constant 0 : index
    %c0_221 = arith.constant 0 : index
    %252 = vector.load %arg11[%c0_220, %c0_221] : memref<1x64xf32, #tpu.memory_space<vmem>>, vector<1x64xf32>
    %253 = vector.broadcast %252 : vector<1x64xf32> to vector<16x64xf32>
    %254 = arith.addf %251, %253 : vector<16x64xf32>
    %cst_222 = arith.constant 0.000000e+00 : f32
    %255 = vector.broadcast %cst_222 : f32 to vector<16x64xf32>
    %256 = arith.maximumf %254, %255 : vector<16x64xf32>
    %cst_223 = arith.constant 0.000000e+00 : bf16
    %257 = vector.broadcast %cst_223 : bf16 to vector<4x192xbf16>
    %c4_224 = arith.constant 4 : index
    %c0_225 = arith.constant 0 : index
    %258 = vector.load %arg27[%c4_224, %c0_225] : memref<32x192xbf16, #tpu.memory_space<vmem>>, vector<4x192xbf16>
    tpu.vector_store %arg27[%c4_224, %c0_225], %257 {strides = array<i32>} : memref<32x192xbf16, #tpu.memory_space<vmem>>, vector<4x192xbf16>,
    %c24_226 = arith.constant 24 : index
    %c0_227 = arith.constant 0 : index
    %259 = vector.load %arg27[%c24_226, %c0_227] : memref<32x192xbf16, #tpu.memory_space<vmem>>, vector<4x192xbf16>
    tpu.vector_store %arg27[%c24_226, %c0_227], %257 {strides = array<i32>} : memref<32x192xbf16, #tpu.memory_space<vmem>>, vector<4x192xbf16>,
    %260 = tpu.iota {dimensions = array<i32: 0>} : vector<16x64xi32>
    %c3_i32_228 = arith.constant 3 : i32
    %261 = vector.broadcast %c3_i32_228 : i32 to vector<16x64xi32>
    %262 = arith.andi %260, %261 : vector<16x64xi32>
    %c3_i32_229 = arith.constant 3 : i32
    %263 = vector.broadcast %c3_i32_229 : i32 to vector<16x64xi32>
    %264 = arith.cmpi eq, %262, %263 : vector<16x64xi32>
    %cst_230 = arith.constant 0.000000e+00 : f32
    %265 = vector.broadcast %cst_230 : f32 to vector<16x64xf32>
    %266 = arith.select %264, %265, %256 : vector<16x64xi1>, vector<16x64xf32>
    %c0_i32_231 = arith.constant 0 : i32
    %267 = vector.broadcast %c0_i32_231 : i32 to vector<16x64xi32>
    %268 = arith.cmpi eq, %262, %267 : vector<16x64xi32>
    %cst_232 = arith.constant 0.000000e+00 : f32
    %269 = vector.broadcast %cst_232 : f32 to vector<16x64xf32>
    %270 = arith.select %268, %269, %256 : vector<16x64xi1>, vector<16x64xf32>
    %cst_233 = arith.constant 0.000000e+00 : f32
    %271 = vector.broadcast %cst_233 : f32 to vector<1x64xf32>
    %272 = vector.extract_strided_slice %266 {offsets = [0, 0], sizes = [15, 64], strides = [1, 1]} : vector<16x64xf32> to vector<15x64xf32>
    %273 = tpu.concatenate %271, %272 in 0 : vector<1x64xf32>, vector<15x64xf32> -> vector<16x64xf32>
    %274 = vector.extract_strided_slice %270 {offsets = [1, 0], sizes = [15, 64], strides = [1, 1]} : vector<16x64xf32> to vector<15x64xf32>
    %275 = tpu.concatenate %274, %271 in 0 : vector<15x64xf32>, vector<1x64xf32> -> vector<16x64xf32>
    %276 = tpu.concatenate %273, %256, %275 in 1 : vector<16x64xf32>, vector<16x64xf32>, vector<16x64xf32> -> vector<16x192xf32>
    %277 = arith.truncf %276 : vector<16x192xf32> to vector<16x192xbf16>
    %c8_234 = arith.constant 8 : index
    %c0_235 = arith.constant 0 : index
    %278 = vector.load %arg27[%c8_234, %c0_235] : memref<32x192xbf16, #tpu.memory_space<vmem>>, vector<16x192xbf16>
    tpu.vector_store %arg27[%c8_234, %c0_235], %277 {strides = array<i32>} : memref<32x192xbf16, #tpu.memory_space<vmem>>, vector<16x192xbf16>,
    %c4_236 = arith.constant 4 : index
    %c0_237 = arith.constant 0 : index
    %279 = vector.load %arg27[%c4_236, %c0_237] : memref<32x192xbf16, #tpu.memory_space<vmem>>, vector<16x192xbf16>
    %c0_238 = arith.constant 0 : index
    %c0_239 = arith.constant 0 : index
    %c0_240 = arith.constant 0 : index
    %280 = vector.load %arg12[%c0_238, %c0_239, %c0_240] : memref<3x192x64xbf16, #tpu.memory_space<vmem>>, vector<1x192x64xbf16>
    %281 = vector.shape_cast %280 : vector<1x192x64xbf16> to vector<192x64xbf16>
    %cst_241 = arith.constant dense<0.000000e+00> : vector<16x64xf32>
    %282 = tpu.matmul %279, %281, %cst_241 {dimension_numbers = #tpu.dot_dimension_numbers<[1], [0], [0], [1], [0, 0, 1, 1], [], []>} : vector<16x192xbf16>, vector<192x64xbf16>, vector<16x64xf32> -> vector<16x64xf32>
    %c0_242 = arith.constant 0 : index
    %c0_243 = arith.constant 0 : index
    %283 = vector.load %arg33[%c0_242, %c0_243] : memref<16x64xf32, #tpu.memory_space<vmem>>, vector<16x64xf32>
    tpu.vector_store %arg33[%c0_242, %c0_243], %282 {strides = array<i32>} : memref<16x64xf32, #tpu.memory_space<vmem>>, vector<16x64xf32>,
    %c8_244 = arith.constant 8 : index
    %c0_245 = arith.constant 0 : index
    %284 = vector.load %arg27[%c8_244, %c0_245] : memref<32x192xbf16, #tpu.memory_space<vmem>>, vector<16x192xbf16>
    %c1_246 = arith.constant 1 : index
    %c0_247 = arith.constant 0 : index
    %c0_248 = arith.constant 0 : index
    %285 = vector.load %arg12[%c1_246, %c0_247, %c0_248] : memref<3x192x64xbf16, #tpu.memory_space<vmem>>, vector<1x192x64xbf16>
    %286 = vector.shape_cast %285 : vector<1x192x64xbf16> to vector<192x64xbf16>
    %cst_249 = arith.constant dense<0.000000e+00> : vector<16x64xf32>
    %287 = tpu.matmul %284, %286, %cst_249 {dimension_numbers = #tpu.dot_dimension_numbers<[1], [0], [0], [1], [0, 0, 1, 1], [], []>} : vector<16x192xbf16>, vector<192x64xbf16>, vector<16x64xf32> -> vector<16x64xf32>
    %c0_250 = arith.constant 0 : index
    %c0_251 = arith.constant 0 : index
    %288 = vector.load %arg33[%c0_250, %c0_251] : memref<16x64xf32, #tpu.memory_space<vmem>>, vector<16x64xf32>
    %289 = arith.addf %288, %287 : vector<16x64xf32>
    %c0_252 = arith.constant 0 : index
    %c0_253 = arith.constant 0 : index
    %290 = vector.load %arg33[%c0_252, %c0_253] : memref<16x64xf32, #tpu.memory_space<vmem>>, vector<16x64xf32>
    tpu.vector_store %arg33[%c0_252, %c0_253], %289 {strides = array<i32>} : memref<16x64xf32, #tpu.memory_space<vmem>>, vector<16x64xf32>,
    %c12_254 = arith.constant 12 : index
    %c0_255 = arith.constant 0 : index
    %291 = vector.load %arg27[%c12_254, %c0_255] : memref<32x192xbf16, #tpu.memory_space<vmem>>, vector<16x192xbf16>
    %c2_256 = arith.constant 2 : index
    %c0_257 = arith.constant 0 : index
    %c0_258 = arith.constant 0 : index
    %292 = vector.load %arg12[%c2_256, %c0_257, %c0_258] : memref<3x192x64xbf16, #tpu.memory_space<vmem>>, vector<1x192x64xbf16>
    %293 = vector.shape_cast %292 : vector<1x192x64xbf16> to vector<192x64xbf16>
    %cst_259 = arith.constant dense<0.000000e+00> : vector<16x64xf32>
    %294 = tpu.matmul %291, %293, %cst_259 {dimension_numbers = #tpu.dot_dimension_numbers<[1], [0], [0], [1], [0, 0, 1, 1], [], []>} : vector<16x192xbf16>, vector<192x64xbf16>, vector<16x64xf32> -> vector<16x64xf32>
    %c0_260 = arith.constant 0 : index
    %c0_261 = arith.constant 0 : index
    %295 = vector.load %arg33[%c0_260, %c0_261] : memref<16x64xf32, #tpu.memory_space<vmem>>, vector<16x64xf32>
    %296 = arith.addf %295, %294 : vector<16x64xf32>
    %c0_262 = arith.constant 0 : index
    %c0_263 = arith.constant 0 : index
    %297 = vector.load %arg33[%c0_262, %c0_263] : memref<16x64xf32, #tpu.memory_space<vmem>>, vector<16x64xf32>
    tpu.vector_store %arg33[%c0_262, %c0_263], %296 {strides = array<i32>} : memref<16x64xf32, #tpu.memory_space<vmem>>, vector<16x64xf32>,
    %c0_264 = arith.constant 0 : index
    %c0_265 = arith.constant 0 : index
    %298 = vector.load %arg33[%c0_264, %c0_265] : memref<16x64xf32, #tpu.memory_space<vmem>>, vector<16x64xf32>
    %c0_266 = arith.constant 0 : index
    %c0_267 = arith.constant 0 : index
    %299 = vector.load %arg13[%c0_266, %c0_267] : memref<1x64xf32, #tpu.memory_space<vmem>>, vector<1x64xf32>
    %300 = vector.broadcast %299 : vector<1x64xf32> to vector<16x64xf32>
    %301 = arith.addf %298, %300 : vector<16x64xf32>
    %cst_268 = arith.constant 0.000000e+00 : f32
    %302 = vector.broadcast %cst_268 : f32 to vector<16x64xf32>
    %303 = arith.maximumf %301, %302 : vector<16x64xf32>
    %c0_269 = arith.constant 0 : index
    %c0_270 = arith.constant 0 : index
    %304 = vector.load %arg16[%c0_269, %c0_270] : memref<16x16xbf16, #tpu.memory_space<vmem>>, vector<16x16xbf16>
    %305 = arith.truncf %303 : vector<16x64xf32> to vector<16x64xbf16>
    %cst_271 = arith.constant dense<0.000000e+00> : vector<16x64xf32>
    %306 = tpu.matmul %304, %305, %cst_271 {dimension_numbers = #tpu.dot_dimension_numbers<[1], [0], [0], [1], [0, 0, 1, 1], [], []>} : vector<16x16xbf16>, vector<16x64xbf16>, vector<16x64xf32> -> vector<16x64xf32>
    %307 = vector.extract_strided_slice %306 {offsets = [0, 0], sizes = [4, 64], strides = [1, 1]} : vector<16x64xf32> to vector<4x64xf32>
    %308 = vector.extract_strided_slice %306 {offsets = [4, 0], sizes = [4, 64], strides = [1, 1]} : vector<16x64xf32> to vector<4x64xf32>
    %309 = arith.maximumf %307, %308 : vector<4x64xf32>
    %310 = vector.extract_strided_slice %306 {offsets = [8, 0], sizes = [4, 64], strides = [1, 1]} : vector<16x64xf32> to vector<4x64xf32>
    %311 = vector.extract_strided_slice %306 {offsets = [12, 0], sizes = [4, 64], strides = [1, 1]} : vector<16x64xf32> to vector<4x64xf32>
    %312 = arith.maximumf %310, %311 : vector<4x64xf32>
    %313 = arith.maximumf %309, %312 : vector<4x64xf32>
    %314 = vector.extract_strided_slice %313 {offsets = [0, 0], sizes = [1, 64], strides = [1, 1]} : vector<4x64xf32> to vector<1x64xf32>
    %c0_272 = arith.constant 0 : index
    %c0_273 = arith.constant 0 : index
    %315 = vector.load %arg34[%c0_272, %c0_273] : memref<1x256xf32, #tpu.memory_space<vmem>>, vector<1x64xf32>
    tpu.vector_store %arg34[%c0_272, %c0_273], %314 {strides = array<i32>} : memref<1x256xf32, #tpu.memory_space<vmem>>, vector<1x64xf32>,
    %316 = vector.extract_strided_slice %313 {offsets = [1, 0], sizes = [1, 64], strides = [1, 1]} : vector<4x64xf32> to vector<1x64xf32>
    %c0_274 = arith.constant 0 : index
    %c64 = arith.constant 64 : index
    %317 = vector.load %arg34[%c0_274, %c64] : memref<1x256xf32, #tpu.memory_space<vmem>>, vector<1x64xf32>
    tpu.vector_store %arg34[%c0_274, %c64], %316 {strides = array<i32>} : memref<1x256xf32, #tpu.memory_space<vmem>>, vector<1x64xf32>,
    %318 = vector.extract_strided_slice %313 {offsets = [2, 0], sizes = [1, 64], strides = [1, 1]} : vector<4x64xf32> to vector<1x64xf32>
    %c0_275 = arith.constant 0 : index
    %c128 = arith.constant 128 : index
    %319 = vector.load %arg34[%c0_275, %c128] : memref<1x256xf32, #tpu.memory_space<vmem>>, vector<1x64xf32>
    tpu.vector_store %arg34[%c0_275, %c128], %318 {strides = array<i32>} : memref<1x256xf32, #tpu.memory_space<vmem>>, vector<1x64xf32>,
    %320 = vector.extract_strided_slice %313 {offsets = [3, 0], sizes = [1, 64], strides = [1, 1]} : vector<4x64xf32> to vector<1x64xf32>
    %c0_276 = arith.constant 0 : index
    %c192 = arith.constant 192 : index
    %321 = vector.load %arg34[%c0_276, %c192] : memref<1x256xf32, #tpu.memory_space<vmem>>, vector<1x64xf32>
    tpu.vector_store %arg34[%c0_276, %c192], %320 {strides = array<i32>} : memref<1x256xf32, #tpu.memory_space<vmem>>, vector<1x64xf32>,
    %c0_277 = arith.constant 0 : index
    %c0_278 = arith.constant 0 : index
    %322 = vector.load %arg34[%c0_277, %c0_278] : memref<1x256xf32, #tpu.memory_space<vmem>>, vector<1x256xf32>
    %323 = arith.truncf %322 : vector<1x256xf32> to vector<1x256xbf16>
    %c0_279 = arith.constant 0 : index
    %c0_280 = arith.constant 0 : index
    %324 = vector.load %arg17[%c0_279, %c0_280] : memref<256x1024xbf16, #tpu.memory_space<vmem>>, vector<256x1024xbf16>
    %cst_281 = arith.constant dense<0.000000e+00> : vector<1x1024xf32>
    %325 = tpu.matmul %323, %324, %cst_281 {dimension_numbers = #tpu.dot_dimension_numbers<[1], [0], [0], [1], [0, 0, 1, 1], [], []>} : vector<1x256xbf16>, vector<256x1024xbf16>, vector<1x1024xf32> -> vector<1x1024xf32>
    %c0_282 = arith.constant 0 : index
    %c0_283 = arith.constant 0 : index
    %326 = vector.load %arg18[%c0_282, %c0_283] : memref<1x1024xf32, #tpu.memory_space<vmem>>, vector<1x1024xf32>
    %327 = arith.addf %325, %326 : vector<1x1024xf32>
    %cst_284 = arith.constant 0.000000e+00 : f32
    %328 = vector.broadcast %cst_284 : f32 to vector<1x1024xf32>
    %329 = arith.maximumf %327, %328 : vector<1x1024xf32>
    %330 = arith.truncf %329 : vector<1x1024xf32> to vector<1x1024xbf16>
    %c0_285 = arith.constant 0 : index
    %c0_286 = arith.constant 0 : index
    %331 = vector.load %arg19[%c0_285, %c0_286] : memref<1024x128xbf16, #tpu.memory_space<vmem>>, vector<1024x128xbf16>
    %cst_287 = arith.constant dense<0.000000e+00> : vector<1x128xf32>
    %332 = tpu.matmul %330, %331, %cst_287 {dimension_numbers = #tpu.dot_dimension_numbers<[1], [0], [0], [1], [0, 0, 1, 1], [], []>} : vector<1x1024xbf16>, vector<1024x128xbf16>, vector<1x128xf32> -> vector<1x128xf32>
    %c0_288 = arith.constant 0 : index
    %c0_289 = arith.constant 0 : index
    %333 = vector.load %arg20[%c0_288, %c0_289] : memref<1x128xf32, #tpu.memory_space<vmem>>, vector<1x128xf32>
    %334 = arith.addf %332, %333 : vector<1x128xf32>
    %c0_290 = arith.constant 0 : index
    %c0_291 = arith.constant 0 : index
    %c0_292 = arith.constant 0 : index
    %335 = vector.load %arg21[%c0_290, %c0_291, %c0_292] : memref<1x1x128xf32, #tpu.memory_space<vmem>>, vector<1x1x128xf32>
    %336 = vector.shape_cast %335 : vector<1x1x128xf32> to vector<1x128xf32>
    %337 = vector.shape_cast %334 : vector<1x128xf32> to vector<1x1x128xf32>
    tpu.vector_store %arg21[%c0_290, %c0_291, %c0_292], %337 {strides = array<i32>} : memref<1x1x128xf32, #tpu.memory_space<vmem>>, vector<1x1x128xf32>,
    return
  }
  func.func @transform_0(%arg0: i32) -> (i32, i32, i32) {
    %c0_i32 = arith.constant 0 : i32
    %c0_i32_0 = arith.constant 0 : i32
    %c0_i32_1 = arith.constant 0 : i32
    return %arg0, %c0_i32, %c0_i32_0 : i32, i32, i32
  }
  func.func @transform_1(%arg0: i32) -> (i32, i32, i32) {
    %c0_i32 = arith.constant 0 : i32
    %c0_i32_0 = arith.constant 0 : i32
    %c0_i32_1 = arith.constant 0 : i32
    %c0_i32_2 = arith.constant 0 : i32
    return %c0_i32, %c0_i32_0, %c0_i32_1 : i32, i32, i32
  }
  func.func @transform_2(%arg0: i32) -> (i32, i32) {
    %c0_i32 = arith.constant 0 : i32
    %c0_i32_0 = arith.constant 0 : i32
    %c0_i32_1 = arith.constant 0 : i32
    return %c0_i32, %c0_i32_0 : i32, i32
  }
  func.func @transform_3(%arg0: i32) -> (i32, i32, i32) {
    %c0_i32 = arith.constant 0 : i32
    %c0_i32_0 = arith.constant 0 : i32
    %c0_i32_1 = arith.constant 0 : i32
    %c0_i32_2 = arith.constant 0 : i32
    return %c0_i32, %c0_i32_0, %c0_i32_1 : i32, i32, i32
  }
  func.func @transform_4(%arg0: i32) -> (i32, i32) {
    %c0_i32 = arith.constant 0 : i32
    %c0_i32_0 = arith.constant 0 : i32
    %c0_i32_1 = arith.constant 0 : i32
    return %c0_i32, %c0_i32_0 : i32, i32
  }
  func.func @transform_5(%arg0: i32) -> (i32, i32, i32) {
    %c0_i32 = arith.constant 0 : i32
    %c0_i32_0 = arith.constant 0 : i32
    %c0_i32_1 = arith.constant 0 : i32
    %c0_i32_2 = arith.constant 0 : i32
    return %c0_i32, %c0_i32_0, %c0_i32_1 : i32, i32, i32
  }
  func.func @transform_6(%arg0: i32) -> (i32, i32) {
    %c0_i32 = arith.constant 0 : i32
    %c0_i32_0 = arith.constant 0 : i32
    %c0_i32_1 = arith.constant 0 : i32
    return %c0_i32, %c0_i32_0 : i32, i32
  }
  func.func @transform_7(%arg0: i32) -> (i32, i32, i32) {
    %c0_i32 = arith.constant 0 : i32
    %c0_i32_0 = arith.constant 0 : i32
    %c0_i32_1 = arith.constant 0 : i32
    %c0_i32_2 = arith.constant 0 : i32
    return %c0_i32, %c0_i32_0, %c0_i32_1 : i32, i32, i32
  }
  func.func @transform_8(%arg0: i32) -> (i32, i32) {
    %c0_i32 = arith.constant 0 : i32
    %c0_i32_0 = arith.constant 0 : i32
    %c0_i32_1 = arith.constant 0 : i32
    return %c0_i32, %c0_i32_0 : i32, i32
  }
  func.func @transform_9(%arg0: i32) -> (i32, i32, i32) {
    %c0_i32 = arith.constant 0 : i32
    %c0_i32_0 = arith.constant 0 : i32
    %c0_i32_1 = arith.constant 0 : i32
    %c0_i32_2 = arith.constant 0 : i32
    return %c0_i32, %c0_i32_0, %c0_i32_1 : i32, i32, i32
  }
  func.func @transform_10(%arg0: i32) -> (i32, i32) {
    %c0_i32 = arith.constant 0 : i32
    %c0_i32_0 = arith.constant 0 : i32
    %c0_i32_1 = arith.constant 0 : i32
    return %c0_i32, %c0_i32_0 : i32, i32
  }
  func.func @transform_11(%arg0: i32) -> (i32, i32, i32) {
    %c0_i32 = arith.constant 0 : i32
    %c0_i32_0 = arith.constant 0 : i32
    %c0_i32_1 = arith.constant 0 : i32
    %c0_i32_2 = arith.constant 0 : i32
    return %c0_i32, %c0_i32_0, %c0_i32_1 : i32, i32, i32
  }
  func.func @transform_12(%arg0: i32) -> (i32, i32) {
    %c0_i32 = arith.constant 0 : i32
    %c0_i32_0 = arith.constant 0 : i32
    %c0_i32_1 = arith.constant 0 : i32
    return %c0_i32, %c0_i32_0 : i32, i32
  }
  func.func @transform_13(%arg0: i32) -> (i32, i32) {
    %c0_i32 = arith.constant 0 : i32
    %c0_i32_0 = arith.constant 0 : i32
    %c0_i32_1 = arith.constant 0 : i32
    return %c0_i32, %c0_i32_0 : i32, i32
  }
  func.func @transform_14(%arg0: i32) -> (i32, i32) {
    %c0_i32 = arith.constant 0 : i32
    %c0_i32_0 = arith.constant 0 : i32
    %c0_i32_1 = arith.constant 0 : i32
    return %c0_i32, %c0_i32_0 : i32, i32
  }
  func.func @transform_15(%arg0: i32) -> (i32, i32) {
    %c0_i32 = arith.constant 0 : i32
    %c0_i32_0 = arith.constant 0 : i32
    %c0_i32_1 = arith.constant 0 : i32
    return %c0_i32, %c0_i32_0 : i32, i32
  }
  func.func @transform_16(%arg0: i32) -> (i32, i32) {
    %c0_i32 = arith.constant 0 : i32
    %c0_i32_0 = arith.constant 0 : i32
    %c0_i32_1 = arith.constant 0 : i32
    return %c0_i32, %c0_i32_0 : i32, i32
  }
  func.func @transform_17(%arg0: i32) -> (i32, i32) {
    %c0_i32 = arith.constant 0 : i32
    %c0_i32_0 = arith.constant 0 : i32
    %c0_i32_1 = arith.constant 0 : i32
    return %c0_i32, %c0_i32_0 : i32, i32
  }
  func.func @transform_18(%arg0: i32) -> (i32, i32) {
    %c0_i32 = arith.constant 0 : i32
    %c0_i32_0 = arith.constant 0 : i32
    %c0_i32_1 = arith.constant 0 : i32
    return %c0_i32, %c0_i32_0 : i32, i32
  }
  func.func @transform_19(%arg0: i32) -> (i32, i32) {
    %c0_i32 = arith.constant 0 : i32
    %c0_i32_0 = arith.constant 0 : i32
    %c0_i32_1 = arith.constant 0 : i32
    return %c0_i32, %c0_i32_0 : i32, i32
  }
  func.func @transform_20(%arg0: i32) -> (i32, i32, i32) {
    %c0_i32 = arith.constant 0 : i32
    %c0_i32_0 = arith.constant 0 : i32
    %c0_i32_1 = arith.constant 0 : i32
    return %arg0, %c0_i32, %c0_i32_0 : i32, i32, i32
  }
}

</mosaic_0001>

<bundles_post_ra>
// kernel: tpu_custom_call.1
= control target key start
LH: loop header
LB: loop body
LE: loop exit
PB: predicated region body
PF: predicated region fallthrough
CT: control target
= control target key end

     0   :  { %s15912_s0 = inlined_call_operand.vmem [shape: f32[2,256,4], index: 0, kind: input, shape index: {}]   ;;  %s15913_s1 = inlined_call_operand.vmem [shape: bf16[3,12,16], index: 1, kind: input, shape index: {}]   ;;  %s15914_s2 = inlined_call_operand.vmem [shape: f32[1,16], index: 2, kind: input, shape index: {}]   ;;  %s15915_s3 = inlined_call_operand.vmem [shape: bf16[3,48,16], index: 3, kind: input, shape index: {}]   ;;  %s15916_s4 = inlined_call_operand.vmem [shape: f32[1,16], index: 4, kind: input, shape index: {}]   ;;  %s15917_s5 = inlined_call_operand.vmem [shape: bf16[3,48,32], index: 5, kind: input, shape index: {}]   ;;  %s15918_s6 = inlined_call_operand.vmem [shape: f32[1,32], index: 6, kind: input, shape index: {}]   ;;  %s15919_s7 = inlined_call_operand.vmem [shape: bf16[3,96,32], index: 7, kind: input, shape index: {}]   ;;  %s15920_s8 = inlined_call_operand.vmem [shape: f32[1,32], index: 8, kind: input, shape index: {}]   ;;  %s15921_s9 = inlined_call_operand.vmem [shape: bf16[3,96,64], index: 9, kind: input, shape index: {}]   ;;  %s15922_s10 = inlined_call_operand.vmem [shape: f32[1,64], index: 10, kind: input, shape index: {}]   ;;  %s15923_s11 = inlined_call_operand.vmem [shape: bf16[3,192,64], index: 11, kind: input, shape index: {}]   ;;  %s15924_s12 = inlined_call_operand.vmem [shape: f32[1,64], index: 12, kind: input, shape index: {}]   ;;  %s15925_s13 = inlined_call_operand.hbm [shape: bf16[256,256], index: 13, kind: input, shape index: {}]   ;;  %s15926_s14 = inlined_call_operand.vmem [shape: bf16[64,64], index: 14, kind: input, shape index: {}]   ;;  %s15927_s15 = inlined_call_operand.vmem [shape: bf16[16,16], index: 15, kind: input, shape index: {}]   ;;  %s15928_s16 = inlined_call_operand.vmem [shape: bf16[256,1024], index: 16, kind: input, shape index: {}]   ;;  %s15929_s17 = inlined_call_operand.vmem [shape: f32[1,1024], index: 17, kind: input, shape index: {}]   ;;  %s15930_s18 = inlined_call_operand.vmem [shape: bf16[1024,128], index: 18, kind: input, shape index: {}]   ;;  %s15931_s19 = inlined_call_operand.vmem [shape: f32[1,128], index: 19, kind: input, shape index: {}]   ;;  %s15932_s20 = inlined_call_operand.hbm [shape: f32[2,1,128], index: 20, kind: output, shape index: {}]  }
   0x1   :  { %16044 = sst [smem:[#allocation56_spill]] %s15912_s0 }
   0x2   :  { %16045 = sst [smem:[#allocation57_spill]] %s15913_s1 }
   0x3   :  { %16046 = sst [smem:[#allocation58_spill]] %s15914_s2 }
   0x4   :  { %16047 = sst [smem:[#allocation59_spill]] %s15915_s3 }
   0x5   :  { %16048 = sst [smem:[#allocation60_spill]] %s15916_s4 }
   0x6   :  { %16049 = sst [smem:[#allocation61_spill]] %s15917_s5 }
   0x7   :  { %16050 = sst [smem:[#allocation62_spill]] %s15918_s6 }
   0x8   :  { %16051 = sst [smem:[#allocation63_spill]] %s15919_s7 }
   0x9   :  { %16052 = sst [smem:[#allocation64_spill]] %s15920_s8 }
   0xa   :  { %16053 = sst [smem:[#allocation65_spill]] %s15921_s9 }
   0xb   :  { %16054 = sst [smem:[#allocation66_spill]] %s15922_s10 }
   0xc   :  { %25 = vsyncpa [#allocation16], 0 }
   0xd   :  { %26 = vsyncpa [#allocation17], 0 }
   0xe   :  { %28 = vsyncpa [#allocation17 + $0x1], 0  ;;  %s12431_s1 = smov 0   ;;  %s12433_s22 = smov 0  }
   0xf   :  { %s12435_s23 = smov 0   ;;  %s12437_s24 = smov 0  }
  0x10 LB: > { %16055 = sst [smem:[#allocation21_spill]] %s12307_s23  ;;  %s12452_s2 = sadd.s32 4294967295, %s12311_s24   ;;  %s12311_s24 = sphi %s12437_s24, %s16748_s24   ;;  %s12307_s23 = sphi %s12435_s23, %s16745_s23   ;;  %s12303_s22 = sphi %s12433_s22, %s16747_s22   ;;  %s12299_s1 = sphi %s12431_s1, %s16746_s1  }
  0x11   : > { %s9742_s25 = sadd.s32 4294967294, %s12311_s24   ;;  %s12456_s3 = sadd.s32 1, %s12311_s24  }
  0x12   : > { %s466_s26 = sadd.s32 1, %s12307_s23  ;;  %s463_s27 = ssub.s32 %s12311_s24, %s12456_s3 }
  0x13   : > { %p476_p0 = scmp.ne.s32.totalorder %s12307_s23, %s12303_s22  ;;  %p464_p1 = scmp.eq.s32.totalorder %s463_s27, 0 }
  0x14   : > { %p477_p2 = scmp.eq.s32.totalorder %s12452_s2, 1  ;;  %p482_p3 = scmp.ne.s32.totalorder %s12303_s22, %s12299_s1 }
  0x15   : > { %p483_p4 = scmp.eq.s32.totalorder %s9742_s25, 1  ;;  %p9743_p7 = scmp.ge.s32.totalorder %s12311_s24, 1 }
  0x16   : > { %s12467_s28 = scalar_select %p464_p1, %s12307_s23, %s466_s26  }
  0x17   : > { %p12469_p5 = por %p477_p2, %p476_p0  ;;  %p12473_p6 = por %p483_p4, %p482_p3 }
  0x18   : > { %16056 = sst [smem:[#allocation22_spill]] %s12467_s28  ;;  %p490_p8 = scmp.lt.s32.totalorder %s12311_s24, 3 }
  0x19   : > { %s16058_s29 = scalar_select %p12473_p6, 1, 0 }
  0x1a   : > { %p11438_p9 = scmp.eq.s32.totalorder %s12452_s2, 0  ;;  %p12480_p10 = pnand %p9743_p7, %p490_p8 }
  0x1b   : > { %s12313_s0 = smov [#allocation15]  }
  0x1c   : > { %s538_s21 = sshll.u32 %s12313_s0, 4  ;;  %p11430_p11 = pneg %p12480_p10  ;;  %s539_s21 = int_to_ptr.vmem [resolvable:$true] %s538_s21 }
  0x1d   : > { %s12232_s25 = scalar_lea.vmem %s539_s21, 4096  ;;  %p12240_p3 = scmp.lt.s32.totalorder %s539_s21, %s539_s21 }
  0x1e   : > { %p11431_p12 = pnand %p11438_p9, %p11430_p11  ;;  %p12233_p0 = scmp.ne.s32.totalorder %s539_s21, %s12232_s25 }
  0x1f   : > { %p12241_p4 = scmp.lt.s32.totalorder %s12232_s25, %s12232_s25 }
  0x20   : > { %p12223_p13 = pneg %p11431_p12 }
  0x21   : > { %p12242_p6 = por %p12241_p4, %p12240_p3 }
  0x22   : > { %p12235_p1 = pnand %p12233_p0, %p12223_p13 }
  0x24   : > { %p12236_p2 = pneg %p12235_p1 }
  0x26   : > { %p12243_p7 = pnand %p12242_p6, %p12236_p2 }
  0x28   : > { %12246 = shalt.err (!%p12243_p7)
}
  0x29   : > { %s12314_s26 = smov 128   ;;  %s12315_s27 = smov 8  }
  0x2a   : > { %11433 = dma.hbm_to_vmem [thread:$0]  (!%p11431_p12), %s15925_s13, 4096, %s539_s21, [#allocation16], %s12314_s26, %s12314_s26, %s12315_s27  }
  0x2b   : > { %580 = sbr.rel (%p12480_p10) target bundleno = 3916 (0xf4c), region = 100 }
  0x30   : > { %12290 = dma.done.wait (%p11438_p9), [#allocation16], 4096  }
  0x31   : > { %12292 = vsyncadd (%p11438_p9), [#allocation16], 4294963200  ;;  %p637_p8 = scmp.lt.s32.totalorder %s12452_s2, 1  ;;  %v15936_v0 = vlaneseq  ;;  %s16064_s30 = sld [smem:[#allocation56_spill]]  ;;  %vm15940_vm3 = vcmask 1046528   ;;  %v16077_v39 = vmov 0 }
  0x32   : > { %s12316_s26 = smov 4   ;;  %s12317_s27 = smov 8  }
  0x33   : > { %s638_s0 = scalar_select %p637_p8, %s12452_s2, 1  ;;  %v12500_v1 = vshrl.u32 %v15936_v0, 7 }
  0x34   : > { %s16186_s23 = sld [smem:[#allocation57_spill]] }
  0x35   : > { %16060 = vst [vmem:[#allocation23_spill] sm:$0xff] %v12500_v1  ;;  %s10555_s25 = sshll.u32 %s638_s0, 8  ;;  %v12503_v2 = vadd.s32 16, %v12500_v1  ;;  %v12506_v3 = vadd.s32 24, %v12500_v1  ;;  %v12509_v4 = vadd.s32 8, %v12500_v1  ;;  %v713_v5 = vand.u32 15, %v12500_v1 }
  0x36   : > { %v12518_v6 = vadd.s32 32, %v12500_v1  ;;  %v12521_v7 = vadd.s32 40, %v12500_v1  ;;  %v12538_v15 = vadd.s32 48, %v12500_v1  ;;  %v12541_v16 = vadd.s32 56, %v12500_v1  ;;  %s16550_s5 = sld [smem:[#allocation61_spill]] }
  0x37   : > { %16061 = vst [vmem:[#allocation24_spill] sm:$0xff] %v12503_v2  ;;  %16062 = vst [vmem:[#allocation25_spill] sm:$0xff] %v12506_v3  ;;  %s12515_s21 = scalar_lea.vmem %s16064_s30, %s10555_s25  ;;  %v715_v8 = vand.u32 15, %v12503_v2  ;;  %v716_v9 = vand.u32 15, %v12506_v3  ;;  %v714_v10 = vand.u32 15, %v12509_v4  ;;  %vm12532_vm0 = vcmp.eq.s32.totalorder %v713_v5, 0 }
  0x38   : > { %16063 = vst [vmem:[#allocation26_spill] sm:$0xff] %v12509_v4  ;;  %16065 = vst [vmem:[#allocation27_spill] sm:$0xff] %v12518_v6  ;;  %v12527_v11 = vld [vmem:[%s12515_s21 + $0x10] sm:$0xff]  ;;  %v12530_v12 = vld [vmem:[%s12515_s21 + $0x18] sm:$0xff]  ;;  %v717_v14 = vand.u32 15, %v12518_v6  ;;  %v718_v22 = vand.u32 15, %v12521_v7 }
  0x39   : > { %16066 = vst [vmem:[#allocation28_spill] sm:$0xff] %v12521_v7  ;;  %16069 = vst [vmem:[#allocation29_spill] sm:$0xff] %v12538_v15  ;;  %vm12543_vm1 = vcmp.eq.s32.totalorder %v716_v9, 15  ;;  %vm12547_vm2 = vcmp.eq.s32.totalorder %v715_v8, 0  ;;  %v11490_v19 = vpack.i.bf16 %v12530_v12, %v12527_v11  ;;  %v12554_v20 = vld [vmem:[%s12515_s21] sm:$0xff]  ;;  %v644_v21 = vld [vmem:[%s12515_s21 + $0x8] sm:$0xff] }
  0x3a   : > { %16070 = vst [vmem:[#allocation30_spill] sm:$0xff] %v12541_v16  ;;  %v780_v23 = vsel %vm12543_vm1, 0.0, %v12530_v12  ;;  %v1040_v24 = vrot.slane %v12530_v12, 1  ;;  %v843_v25 = vsel %vm12547_vm2, 0.0, %v12527_v11  ;;  %vm12565_vm4 = vcmp.eq.s32.totalorder %v714_v10, 15  ;;  %v12576_v31 = vld [vmem:[%s12515_s21 + $0x20] sm:$0xff]  ;;  %s16187_s28 = smov %s16186_s23 }
  0x3b   : > { %v12569_v27 = vrot.slane %v780_v23, 7  ;;  %11491 = vrot.lane.b32.xlu1 %v11490_v19, %s12316_s26  ;;  %v1038_v29 = vrot.slane %v843_v25, 1  ;;  %v778_v30 = vsel %vm12565_vm4, 0.0, %v644_v21  ;;  %v648_v32 = vld [vmem:[%s12515_s21 + $0x28] sm:$0xff]  ;;  %v1036_v34 = vrot.slane %v644_v21, 1  ;;  %v12595_v41 = vld [vmem:[%s12515_s21 + $0x30] sm:$0xff] }
  0x3c   : > { %v12579_v33 = vrot.slane %v778_v30, 7  ;;  %v11485_v35 = vpack.i.bf16 %v644_v21, %v12554_v20  ;;  %v841_v36 = vsel %vm12532_vm0, 0.0, %v12554_v20  ;;  %vm12586_vm5 = vcmp.eq.s32.totalorder %v718_v22, 15  ;;  %v650_v42 = vld [vmem:[%s12515_s21 + $0x38] sm:$0xff]  ;;  %v12610_v51 = vld [vmem:[%s12515_s21 + $0x40] sm:$0xff]  ;;  %v12613_v52 = vld [vmem:[%s12515_s21 + $0x48] sm:$0xff] }
  0x3d   : > { %v1035_v38 = vrot.slane %v841_v36, 1  ;;  %v16078_v39 = vsel %vm12586_vm5, 4294967295, %v16077_v39  ;;  %vm12590_vm6 = vcmp.eq.s32.totalorder %v717_v14, 0  ;;  %v782_v43 = vsel %vm12586_vm5, 0.0, %v648_v32  ;;  %v12778_v48 = vld [vmem:[%s12515_s21 + $0xd0] sm:$0xff]  ;;  %v12813_v7 = vld [vmem:[%s12515_s21 + $0xd8] sm:$0xff] }
  0x3e   : > { %16079 = vst [vmem:[#allocation31_spill] sm:$0xff] %v16078_v39  ;;  %11486 = vrot.lane.b32.xlu0 %v11485_v35, %s12316_s26  ;;  %v1044_v44 = vrot.slane %v648_v32, 1  ;;  %v11495_v45 = vpack.i.bf16 %v648_v32, %v12576_v31  ;;  %v845_v46 = vsel %vm12590_vm6, 0.0, %v12576_v31  ;;  %v12605_v47 = vrot.slane %v782_v43, 7  ;;  %s16349_s25 = sld [smem:[#allocation58_spill]] }
  0x3f   : > { %v1042_v49 = vrot.slane %v845_v46, 1  ;;  %v719_v50 = vand.u32 15, %v12538_v15  ;;  %v720_v53 = vand.u32 15, %v12541_v16  ;;  %v1048_v54 = vrot.slane %v650_v42, 1  ;;  %v12670_v46 = vld [vmem:[%s12515_s21 + $0x50] sm:$0xff]  ;;  %v12809_v15 = vld [vmem:[%s12515_s21 + $0xe0] sm:$0xff] }
  0x40   : > { %11496 = vrot.lane.b32.xlu1 %v11495_v45, %s12316_s26  ;;  %v11500_v55 = vpack.i.bf16 %v650_v42, %v12595_v41  ;;  %v689_v58 = vadd.s32 64, %v12500_v1  ;;  %v690_v59 = vadd.s32 72, %v12500_v1  ;;  %v1052_v60 = vrot.slane %v12613_v52, 1  ;;  %s16649_s7 = sld [smem:[#allocation63_spill]] }
  0x41   : > { %vm12619_vm7 = vcmp.eq.s32.totalorder %v719_v50, 0  ;;  %vm12626_vm8 = vcmp.eq.s32.totalorder %v720_v53, 15  ;;  %v11505_v63 = vpack.i.bf16 %v12613_v52, %v12610_v51  ;;  %v1037_v21 = vsel %vm15940_vm3, %v1035_v38, %v1036_v34  ;;  %v12674_v53 = vld [vmem:[%s12515_s21 + $0xc8] sm:$0xff]  ;;  %s16652_s6 = sld [smem:[#allocation62_spill]] }
  0x42   : > { %v847_v62 = vsel %vm12619_vm7, 0.0, %v12595_v41  ;;  %11501 = vrot.lane.b32.xlu0 %v11500_v55, %s12316_s26  ;;  %v784_v8 = vsel %vm12626_vm8, 0.0, %v650_v42  ;;  %v721_v10 = vand.u32 15, %v689_v58  ;;  %v722_v14 = vand.u32 15, %v690_v59  ;;  %v666_v55 = vld [vmem:[%s12515_s21 + $0xb8] sm:$0xff]  ;;  %v12680_v59 = vld [vmem:[%s12515_s21 + $0xc0] sm:$0xff] }
  0x43   : > { %v1046_v9 = vrot.slane %v847_v62, 1  ;;  %v12639_v19 = vrot.slane %v784_v8, 7  ;;  %v1039_v22 = vsel %vm15940_vm3, %v1036_v34, %v1038_v29  ;;  %v1045_v23 = vsel %vm15940_vm3, %v1042_v49, %v1044_v44  ;;  %s16712_s8 = sld [smem:[#allocation64_spill]] }
  0x44   : > { %11506 = vrot.lane.b32.xlu1 %v11505_v63, %s12316_s26  ;;  %vm12645_vm9 = vcmp.eq.s32.totalorder %v722_v14, 15  ;;  %v16086_v25 = vmov 0  ;;  %vm12649_vm10 = vcmp.eq.s32.totalorder %v721_v10, 0  ;;  %v16089_v30 = vmov 0  ;;  %s16713_s9 = sld [smem:[#allocation65_spill]] }
  0x45   : > { %v16087_v25 = vsel %vm12645_vm9, 4294967295, %v16086_v25  ;;  %v16090_v30 = vsel %vm12649_vm10, 4294967295, %v16089_v30  ;;  %v11510_v32 = vpack.i.bf16 %v1039_v22, %v1037_v21  ;;  %v1047_v35 = vsel %vm15940_vm3, %v1044_v44, %v1046_v9  ;;  %v12690_v22 = vld [vmem:[%s12515_s21 + $0xb0] sm:$0xff]  ;;  %s16731_s10 = sld [smem:[#allocation66_spill]] }
  0x46   : > { %16088 = vst [vmem:[#allocation32_spill] sm:$0xff] %v16087_v25  ;;  %16091 = vst [vmem:[#allocation33_spill] sm:$0xff] %v16090_v30  ;;  %v786_v36 = vsel %vm12645_vm9, 0.0, %v12613_v52  ;;  %v849_v34 = vsel %vm12649_vm10, 0.0, %v12610_v51  ;;  %v11520_v38 = vpack.i.bf16 %v1047_v35, %v1045_v23  ;;  %v1041_v42 = vsel %vm15940_vm3, %v1038_v29, %v1040_v24 }
  0x47   : > { %v12663_v43 = vrot.slane %v786_v36, 7  ;;  %v1050_v45 = vrot.slane %v849_v34, 1  ;;  %11511 = vrot.lane.b32.xlu0 %v11510_v32, %s12317_s27  ;;  %v1043_v44 = vsel %vm15940_vm3, %v1040_v24, %v1042_v49  ;;  %v691_v50 = vadd.s32 80, %v12500_v1 }
  0x48   : > { %11521 = vrot.lane.b32.xlu1 %v11520_v38, %s12317_s27  ;;  %v11515_v29 = vpack.i.bf16 %v1043_v44, %v1041_v42  ;;  %v1049_v58 = vsel %vm15940_vm3, %v1046_v9, %v1048_v54  ;;  %v705_v62 = vadd.s32 192, %v12500_v1  ;;  %v706_v12 = vadd.s32 200, %v12500_v1 }
  0x49   : > { %v723_v24 = vand.u32 15, %v691_v50  ;;  %v1051_v49 = vsel %vm15940_vm3, %v1048_v54, %v1050_v45  ;;  %v1053_v8 = vsel %vm15940_vm3, %v1050_v45, %v1052_v60  ;;  %v16092_v9 = vmov 0 }
  0x4a   : > { %v11525_v10 = vpack.i.bf16 %v1051_v49, %v1049_v58  ;;  %v737_v14 = vand.u32 15, %v705_v62  ;;  %v738_v21 = vand.u32 15, %v706_v12  ;;  %v703_v54 = vadd.s32 176, %v12500_v1 }
  0x4b   : > { %11516 = vrot.lane.b32.xlu0 %v11515_v29, %s12317_s27  ;;  %vm12693_vm11 = vcmp.eq.s32.totalorder %v723_v24, 0  ;;  %v704_v32 = vadd.s32 184, %v12500_v1  ;;  %v16095_v36 = vmov 0  ;;  %v16098_v34 = vmov 0 }
  0x4c   : > { %v16093_v9 = vsel %vm12693_vm11, 4294967295, %v16092_v9  ;;  %v851_v35 = vsel %vm12693_vm11, 0.0, %v12670_v46  ;;  %vm12703_vm12 = vcmp.eq.s32.totalorder %v738_v21, 15  ;;  %vm12707_vm13 = vcmp.eq.s32.totalorder %v737_v14, 0  ;;  %v12732_v14 = vld [vmem:[%s12515_s21 + $0x58] sm:$0xff] }
  0x4d   : > { %16094 = vst [vmem:[#allocation34_spill] sm:$0xff] %v16093_v9  ;;  %v16096_v36 = vsel %vm12703_vm12, 4294967295, %v16095_v36  ;;  %v16099_v34 = vsel %vm12707_vm13, 4294967295, %v16098_v34  ;;  %v1080_v38 = vrot.slane %v666_v55, 1  ;;  %v12711_v42 = vrot.slane %v851_v35, 1 }
  0x4e   : > { %16097 = vst [vmem:[#allocation35_spill] sm:$0xff] %v16096_v36  ;;  %16100 = vst [vmem:[#allocation36_spill] sm:$0xff] %v16099_v34  ;;  %v802_v45 = vsel %vm12703_vm12, 0.0, %v12674_v53  ;;  %v865_v44 = vsel %vm12707_vm13, 0.0, %v12680_v59  ;;  %v735_v50 = vand.u32 15, %v703_v54  ;;  %v736_v62 = vand.u32 15, %v704_v32 }
  0x4f   : > { %v12719_v29 = vrot.slane %v802_v45, 7  ;;  %v1082_v58 = vrot.slane %v865_v44, 1  ;;  %v1055_v12 = vsel %vm15940_vm3, %v1052_v60, %v12711_v42  ;;  %11526 = vrot.lane.b32.xlu0 %v11525_v10, %s12317_s27  ;;  %v16101_v24 = vmov 0  ;;  %v12744_v10 = vld [vmem:[%s12515_s21 + $0x68] sm:$0xff]  ;;  %v12895_v34 = vld [vmem:[%s12515_s21 + $0x80] sm:$0xff] }
  0x50   : > { %vm12726_vm14 = vcmp.eq.s32.totalorder %v735_v50, 0  ;;  %v11535_v49 = vpack.i.bf16 %v666_v55, %v12690_v22  ;;  %v692_v21 = vadd.s32 88, %v12500_v1  ;;  %v11530_v54 = vpack.i.bf16 %v1055_v12, %v1053_v8  ;;  %v12753_v50 = vld [vmem:[%s12515_s21 + $0x60] sm:$0xff] }
  0x51   : > { %v16102_v24 = vsel %vm12726_vm14, 4294967295, %v16101_v24  ;;  %vm12735_vm15 = vcmp.eq.s32.totalorder %v736_v62, 15  ;;  %v16104_v32 = vmov 0  ;;  %v863_v52 = vsel %vm12726_vm14, 0.0, %v12690_v22 }
  0x52   : > { %16103 = vst [vmem:[#allocation37_spill] sm:$0xff] %v16102_v24  ;;  %v16105_v32 = vsel %vm12735_vm15, 4294967295, %v16104_v32  ;;  %v11540_v35 = vpack.i.bf16 %v12674_v53, %v12680_v59  ;;  %v800_v45 = vsel %vm12735_vm15, 0.0, %v666_v55  ;;  %v12750_v44 = vrot.slane %v863_v52, 1  ;;  %11531 = vrot.lane.b32.xlu1 %v11530_v54, %s12317_s27 }
  0x53   : > { %16106 = vst [vmem:[#allocation38_spill] sm:$0xff] %v16105_v32  ;;  %v724_v8 = vand.u32 15, %v692_v21  ;;  %v1056_v62 = vrot.slane %v12732_v14, 1  ;;  %v1083_v12 = vsel %vm15940_vm3, %v1080_v38, %v1082_v58  ;;  %v693_v0 = vadd.s32 96, %v12500_v1  ;;  %11536 = vrot.lane.b32.xlu0 %v11535_v49, %s12316_s26 }
  0x54   : > { %v694_v60 = vadd.s32 104, %v12500_v1  ;;  %v12760_v23 = vrot.slane %v800_v45, 7  ;;  %v16107_v55 = vmov 0  ;;  %v1081_v21 = vsel %vm15940_vm3, %v12750_v44, %v1080_v38 }
  0x55   : > { %vm12763_vm12 = vcmp.eq.s32.totalorder %v724_v8, 15  ;;  %v11545_v52 = vpack.i.bf16 %v1083_v12, %v1081_v21  ;;  %v725_v5 = vand.u32 15, %v693_v0  ;;  %v11550_v49 = vpack.i.bf16 %v12732_v14, %v12670_v46  ;;  %v12804_v21 = vld [vmem:[%s12515_s21 + $0xe8] sm:$0xff] }
  0x56   : > { %v16108_v55 = vsel %vm12763_vm12, 4294967295, %v16107_v55  ;;  %v788_v54 = vsel %vm12763_vm12, 0.0, %v12732_v14  ;;  %v726_v56 = vand.u32 15, %v694_v60  ;;  %v1060_v8 = vrot.slane %v12744_v10, 1  ;;  %11541 = vrot.lane.b32.xlu1 %v11540_v35, %s12316_s26  ;;  %v12793_v60 = vld [vmem:[%s12515_s21 + $0x70] sm:$0xff] }
  0x57   : > { %16109 = vst [vmem:[#allocation39_spill] sm:$0xff] %v16108_v55  ;;  %v12772_v45 = vrot.slane %v788_v54, 7  ;;  %v707_v37 = vadd.s32 208, %v12500_v1  ;;  %v16110_v38 = vmov 0  ;;  %vm12786_vm13 = vcmp.eq.s32.totalorder %v725_v5, 0  ;;  %11546 = vrot.lane.b32.xlu0 %v11545_v52, %s12317_s27 }
  0x58   : > { %vm12782_vm3 = vcmp.eq.s32.totalorder %v726_v56, 15  ;;  %v16113_v0 = vmov 0  ;;  %v11560_v14 = vpack.i.bf16 %v12744_v10, %v12753_v50  ;;  %v695_v12 = vadd.s32 112, %v12500_v1 }
  0x59   : > { %v16111_v38 = vsel %vm12782_vm3, 4294967295, %v16110_v38  ;;  %v16114_v0 = vsel %vm12786_vm13, 4294967295, %v16113_v0  ;;  %v790_v56 = vsel %vm12782_vm3, 0.0, %v12744_v10  ;;  %v853_v5 = vsel %vm12786_vm13, 0.0, %v12753_v50 }
  0x5a   : > { %16112 = vst [vmem:[#allocation40_spill] sm:$0xff] %v16111_v38  ;;  %16115 = vst [vmem:[#allocation41_spill] sm:$0xff] %v16114_v0  ;;  %v739_v35 = vand.u32 15, %v707_v37  ;;  %v709_v54 = vadd.s32 224, %v12500_v1  ;;  %v1058_v63 = vrot.slane %v853_v5, 1  ;;  %v727_v16 = vand.u32 15, %v695_v12  ;;  %11551 = vrot.lane.b32.xlu1 %v11550_v49, %s12316_s26 }
  0x5b   : > { %v710_v52 = vadd.s32 232, %v12500_v1  ;;  %v12815_v10 = vrot.slane %v790_v56, 7  ;;  %v16116_v6 = vmov 0  ;;  %v16119_v37 = vrot.slane %v12674_v53, 1  ;;  %v12940_v0 = vld [vmem:[%s12515_s21 + $0x98] sm:$0xff] }
  0x5c   : > { %vm12817_vm15 = vcmp.eq.s32.totalorder %v739_v35, 0  ;;  %vm16120_vm14 = vcmask 1046528   ;;  %v741_v2 = vand.u32 15, %v709_v54  ;;  %vm12828_vm3 = vcmp.eq.s32.totalorder %v727_v16, 0 }
  0x5d   : > { %v16117_v6 = vsel %vm12817_vm15, 4294967295, %v16116_v6  ;;  %v1085_v3 = vsel %vm16120_vm14, %v1082_v58, %v16119_v37  ;;  %v867_v12 = vsel %vm12817_vm15, 0.0, %v12778_v48  ;;  %v16121_v5 = vmov 0  ;;  %vm16124_vm13 = vmmov %vm16120_vm14 }
  0x5e   : > { %16118 = vst [vmem:[#allocation42_spill] sm:$0xff] %v16117_v6  ;;  %v16122_v5 = vsel %vm12828_vm3, 4294967295, %v16121_v5  ;;  %v1057_v56 = vsel %vm16124_vm13, %v12711_v42, %v1056_v62  ;;  %v1086_v28 = vrot.slane %v867_v12, 1  ;;  %v855_v58 = vsel %vm12828_vm3, 0.0, %v12793_v60  ;;  %vm16125_vm14 = vmmov %vm16124_vm13  ;;  %11561 = vrot.lane.b32.xlu1 %v11560_v14, %s12316_s26 }
  0x5f   : > { %16123 = vst [vmem:[#allocation43_spill] sm:$0xff] %v16122_v5  ;;  %v1061_v49 = vsel %vm16125_vm14, %v1058_v63, %v1060_v8  ;;  %v742_v54 = vand.u32 15, %v710_v52  ;;  %v12839_v37 = vrot.slane %v855_v58, 1  ;;  %vm16126_vm15 = vmmov %vm16124_vm13  ;;  %vm12842_vm9 = vcmp.eq.s32.totalorder %v741_v2, 0 }
  0x60   : > { %v1059_v16 = vsel %vm16126_vm15, %v1056_v62, %v1058_v63  ;;  %v16127_v4 = vmov 0  ;;  %v708_v42 = vadd.s32 216, %v12500_v1  ;;  %v16130_v12 = vrot.slane %v12674_v53, 1  ;;  %vm16134_vm15 = vmmov %vm16124_vm13 }
  0x61   : > { %v16128_v4 = vsel %vm12842_vm9, 4294967295, %v16127_v4  ;;  %vm12850_vm12 = vcmp.eq.s32.totalorder %v742_v54, 15  ;;  %v16131_v36 = vmov 0  ;;  %v869_v52 = vsel %vm12842_vm9, 0.0, %v12809_v15  ;;  %v12865_v54 = vld [vmem:[%s12515_s21 + $0x78] sm:$0xff]  ;;  %vm16135_vm14 = vmmov %vm16124_vm13 }
  0x62   : > { %16129 = vst [vmem:[#allocation44_spill] sm:$0xff] %v16128_v4  ;;  %v1087_v35 = vsel %vm16124_vm13, %v16130_v12, %v1086_v28  ;;  %v16132_v36 = vsel %vm12850_vm12, 4294967295, %v16131_v36  ;;  %v1088_v63 = vrot.slane %v12813_v7, 1  ;;  %v1063_v62 = vsel %vm16134_vm15, %v1060_v8, %v12839_v37  ;;  %vm16139_vm15 = vmmov %vm16135_vm14 }
  0x63   : > { %16133 = vst [vmem:[#allocation45_spill] sm:$0xff] %v16132_v36  ;;  %v11555_v2 = vpack.i.bf16 %v1087_v35, %v1085_v3  ;;  %v806_v53 = vsel %vm12850_vm12, 0.0, %v12804_v21  ;;  %v1090_v58 = vrot.slane %v869_v52, 1  ;;  %v11570_v12 = vpack.i.bf16 %v1063_v62, %v1061_v49  ;;  %v12881_v62 = vld [vmem:[%s12515_s21 + $0x88] sm:$0xff] }
  0x64   : > { %v11580_v4 = vpack.i.bf16 %v12804_v21, %v12809_v15  ;;  %v740_v6 = vand.u32 15, %v708_v42  ;;  %v11565_v3 = vpack.i.bf16 %v1059_v16, %v1057_v56  ;;  %v12871_v14 = vrot.slane %v806_v53, 7 }
  0x65   : > { %11556 = vrot.lane.b32.xlu0 %v11555_v2, %s12317_s27  ;;  %v696_v8 = vadd.s32 120, %v12500_v1  ;;  %v1089_v35 = vsel %vm16135_vm14, %v1086_v28, %v1088_v63  ;;  %v16136_v52 = vmov 0  ;;  %v1091_v49 = vsel %vm16139_vm15, %v1088_v63, %v1090_v58  ;;  %11571 = vrot.lane.b32.xlu1 %v11570_v12, %s12317_s27 }
  0x66   : > { %vm12875_vm13 = vcmp.eq.s32.totalorder %v740_v6, 15  ;;  %v697_v42 = vadd.s32 128, %v12500_v1  ;;  %v698_v56 = vadd.s32 136, %v12500_v1  ;;  %v11575_v6 = vpack.i.bf16 %v12813_v7, %v12778_v48 }
  0x67   : > { %v16137_v52 = vsel %vm12875_vm13, 4294967295, %v16136_v52  ;;  %v804_v16 = vsel %vm12875_vm13, 0.0, %v12813_v7  ;;  %v728_v28 = vand.u32 15, %v696_v8  ;;  %v1064_v63 = vrot.slane %v12865_v54, 1  ;;  %v12906_v8 = vld [vmem:[%s12515_s21 + $0xf0] sm:$0xff] }
  0x68   : > { %16138 = vst [vmem:[#allocation46_spill] sm:$0xff] %v16137_v52  ;;  %v11590_v2 = vpack.i.bf16 %v12865_v54, %v12793_v60  ;;  %v11585_v53 = vpack.i.bf16 %v1091_v49, %v1089_v35  ;;  %v729_v36 = vand.u32 15, %v697_v42  ;;  %v730_v32 = vand.u32 15, %v698_v56  ;;  %v12921_v42 = vld [vmem:[%s12515_s21 + $0x90] sm:$0xff] }
  0x69   : > { %11566 = vrot.lane.b32.xlu0 %v11565_v3, %s12317_s27  ;;  %v12898_v12 = vrot.slane %v804_v16, 7  ;;  %vm12900_vm14 = vcmp.eq.s32.totalorder %v728_v28, 15  ;;  %v16140_v52 = vmov 0  ;;  %v1068_v7 = vrot.slane %v12881_v62, 1  ;;  %11581 = vrot.lane.b32.xlu1 %v11580_v4, %s12316_s26  ;;  %v12934_v28 = vld [vmem:[%s12515_s21 + $0xa8] sm:$0xff] }
  0x6a   : > { %v16141_v52 = vsel %vm12900_vm14, 4294967295, %v16140_v52  ;;  %v711_v24 = vadd.s32 240, %v12500_v1  ;;  %v792_v35 = vsel %vm12900_vm14, 0.0, %v12865_v54  ;;  %vm12912_vm15 = vcmp.eq.s32.totalorder %v730_v32, 15 }
  0x6b   : > { %16142 = vst [vmem:[#allocation47_spill] sm:$0xff] %v16141_v52  ;;  %v16143_v3 = vmov 0  ;;  %vm12916_vm12 = vcmp.eq.s32.totalorder %v729_v36, 0  ;;  %v16146_v49 = vmov 0  ;;  %v699_v56 = vadd.s32 144, %v12500_v1 }
  0x6c   : > { %v16144_v3 = vsel %vm12912_vm15, 4294967295, %v16143_v3  ;;  %v16147_v49 = vsel %vm12916_vm12, 4294967295, %v16146_v49  ;;  %v794_v54 = vsel %vm12912_vm15, 0.0, %v12881_v62  ;;  %v11600_v32 = vpack.i.bf16 %v12881_v62, %v12895_v34 }
  0x6d   : > { %16145 = vst [vmem:[#allocation48_spill] sm:$0xff] %v16144_v3  ;;  %16148 = vst [vmem:[#allocation49_spill] sm:$0xff] %v16147_v49  ;;  %v857_v36 = vsel %vm12916_vm12, 0.0, %v12895_v34  ;;  %v743_v16 = vand.u32 15, %v711_v24  ;;  %v12936_v38 = vrot.slane %v792_v35, 7  ;;  %v731_v5 = vand.u32 15, %v699_v56  ;;  %11576 = vrot.lane.b32.xlu0 %v11575_v6, %s12316_s26  ;;  %11591 = vrot.lane.b32.xlu1 %v11590_v2, %s12316_s26 }
  0x6e   : > { %v1066_v4 = vrot.slane %v857_v36, 1  ;;  %v12943_v3 = vrot.slane %v794_v54, 7  ;;  %v16149_v62 = vmov 0  ;;  %v12950_v24 = vld [vmem:[%s12515_s21 + $0xa0] sm:$0xff]  ;;  %v701_v49 = vadd.s32 160, %v12500_v1 }
  0x6f   : > { %vm12945_vm13 = vcmp.eq.s32.totalorder %v743_v16, 0  ;;  %v702_v35 = vadd.s32 168, %v12500_v1  ;;  %v16152_v36 = vrot.slane %v12804_v21, 1  ;;  %vm16153_vm9 = vcmask 1046528  }
  0x70   : > { %v16150_v62 = vsel %vm12945_vm13, 4294967295, %v16149_v62  ;;  %v871_v56 = vsel %vm12945_vm13, 0.0, %v12906_v8  ;;  %vm12960_vm15 = vcmp.eq.s32.totalorder %v731_v5, 0  ;;  %v16154_v54 = vmov 0  ;;  %vm16157_vm12 = vmmov %vm16153_vm9 }
  0x71   : > { %16151 = vst [vmem:[#allocation50_spill] sm:$0xff] %v16150_v62  ;;  %v1093_v6 = vsel %vm16153_vm9, %v1090_v58, %v16152_v36  ;;  %v16155_v54 = vsel %vm12960_vm15, 4294967295, %v16154_v54  ;;  %v1065_v16 = vsel %vm16157_vm12, %v12839_v37, %v1064_v63  ;;  %v1094_v52 = vrot.slane %v871_v56, 1  ;;  %vm16158_vm13 = vmmov %vm16153_vm9  ;;  %11586 = vrot.lane.b32.xlu0 %v11585_v53, %s12317_s27  ;;  %11601 = vrot.lane.b32.xlu1 %v11600_v32, %s12316_s26 }
  0x72   : > { %16156 = vst [vmem:[#allocation51_spill] sm:$0xff] %v16155_v54  ;;  %v859_v25 = vsel %vm12960_vm15, 0.0, %v12921_v42  ;;  %v733_v62 = vand.u32 15, %v701_v49  ;;  %v1076_v55 = vrot.slane %v12934_v28, 1  ;;  %v1069_v9 = vsel %vm16158_vm13, %v1066_v4, %v1068_v7  ;;  %vm16160_vm12 = vmmov %vm16153_vm9 }
  0x73   : > { %v1070_v58 = vrot.slane %v859_v25, 1  ;;  %v1067_v5 = vsel %vm16153_vm9, %v1064_v63, %v1066_v4  ;;  %v734_v36 = vand.u32 15, %v702_v35  ;;  %v16159_v37 = vrot.slane %v12804_v21, 1  ;;  %vm16164_vm13 = vmmov %vm16153_vm9 }
  0x74   : > { %vm12977_vm14 = vcmp.eq.s32.totalorder %v733_v62, 0  ;;  %v16161_v56 = vmov 0  ;;  %v700_v49 = vadd.s32 152, %v12500_v1  ;;  %v1072_v54 = vrot.slane %v12940_v0, 1 }
  0x75   : > { %v1095_v2 = vsel %vm16160_vm12, %v16159_v37, %v1094_v52  ;;  %v16162_v56 = vsel %vm12977_vm14, 4294967295, %v16161_v56  ;;  %v1071_v25 = vsel %vm16164_vm13, %v1068_v7, %v1070_v58  ;;  %vm12984_vm9 = vcmp.eq.s32.totalorder %v734_v36, 15 }
  0x76   : > { %16163 = vst [vmem:[#allocation52_spill] sm:$0xff] %v16162_v56  ;;  %v11595_v30 = vpack.i.bf16 %v1095_v2, %v1093_v6  ;;  %v16165_v63 = vmov 0  ;;  %v861_v21 = vsel %vm12977_vm14, 0.0, %v12950_v24  ;;  %v11610_v53 = vpack.i.bf16 %v1071_v25, %v1069_v9  ;;  %v12996_v6 = vld [vmem:[%s12515_s21 + $0xf8] sm:$0xff]  ;;  %s16548_s21 = sld [smem:[#allocation60_spill]] }
  0x77   : > { %v16166_v63 = vsel %vm12984_vm9, 4294967295, %v16165_v63  ;;  %v798_v4 = vsel %vm12984_vm9, 0.0, %v12934_v28  ;;  %v1074_v62 = vrot.slane %v861_v21, 1  ;;  %v732_v35 = vand.u32 15, %v700_v49  ;;  %vm16171_vm9 = vmmov %vm16164_vm13 }
  0x78   : > { %16167 = vst [vmem:[#allocation53_spill] sm:$0xff] %v16166_v63  ;;  %v11605_v7 = vpack.i.bf16 %v1067_v5, %v1065_v16  ;;  %v12998_v36 = vrot.slane %v798_v4, 7  ;;  %11596 = vrot.lane.b32.xlu0 %v11595_v30, %s12317_s27  ;;  %v11620_v2 = vpack.i.bf16 %v12934_v28, %v12950_v24  ;;  %v16168_v9 = vmov 0  ;;  %vm16172_vm14 = vmmov %vm16171_vm9  ;;  %11611 = vrot.lane.b32.xlu1 %v11610_v53, %s12317_s27 }
  0x79   : > { %vm13004_vm12 = vcmp.eq.s32.totalorder %v732_v35, 15  ;;  %v11615_v32 = vpack.i.bf16 %v12940_v0, %v12921_v42  ;;  %v712_v49 = vadd.s32 248, %v12500_v1  ;;  %v1077_v16 = vsel %vm16164_vm13, %v1074_v62, %v1076_v55  ;;  %vm16173_vm15 = vmmov %vm16171_vm9 }
  0x7a   : > { %v16169_v9 = vsel %vm13004_vm12, 4294967295, %v16168_v9  ;;  %v1079_v5 = vsel %vm16171_vm9, %v1076_v55, %v12750_v44  ;;  %v1073_v25 = vsel %vm16172_vm14, %v1070_v58, %v1072_v54  ;;  %v1075_v30 = vsel %vm16173_vm15, %v1072_v54, %v1074_v62 }
  0x7b   : > { %16170 = vst [vmem:[#allocation54_spill] sm:$0xff] %v16169_v9  ;;  %v796_v28 = vsel %vm13004_vm12, 0.0, %v12940_v0  ;;  %v744_v21 = vand.u32 15, %v712_v49  ;;  %v1096_v4 = vrot.slane %v12996_v6, 1  ;;  %v16174_v35 = vrot.slane %v12527_v11, 7 }
  0x7c   : > { %vm16175_vm13 = vcmask 1040384   ;;  %v16178_v54 = vrot.slane %v12554_v20, 7  ;;  %v16180_v58 = vrot.slane %v12576_v31, 7  ;;  %11606 = vrot.lane.b32.xlu0 %v11605_v7, %s12317_s27  ;;  %v11630_v49 = vpack.i.bf16 %v1079_v5, %v1077_v16  ;;  %11621 = vrot.lane.b32.xlu1 %v11620_v2, %s12316_s26 }
  0x7d   : > { %v13025_v37 = vsel %vm16175_vm13, %v12579_v33, %v16174_v35  ;;  %v16176_v44 = vmov %v16174_v35  ;;  %vm16177_vm14 = vmmov %vm16175_vm13  ;;  %v11625_v35 = vpack.i.bf16 %v1075_v30, %v1073_v25  ;;  %v16191_v5 = vrot.slane %v12610_v51, 7 }
  0x7e   : > { %v13031_v55 = vsel %vm16177_vm14, %v16176_v44, %v12569_v27  ;;  %vm16179_vm15 = vmmov %vm16175_vm13  ;;  %v16182_v62 = vmov %v16180_v58  ;;  %v16184_v44 = vrot.slane %v12595_v41, 7  ;;  %v943_v25 = vrot.slane %v796_v28, 7 }
  0x7f   : > { %v13037_v0 = vsel %vm16179_vm15, %v16178_v54, %v12579_v33  ;;  %vm16181_vm9 = vmmov %vm16175_vm13  ;;  %v11635_v33 = vpack.i.bf16 %v12996_v6, %v12906_v8  ;;  %vm16188_vm15 = vcmask 1046528   ;;  %v16193_v30 = vmov 0 }
  0x80   : > { %v13043_v53 = vsel %vm16181_vm9, %v12569_v27, %v16180_v58  ;;  %vm16183_vm13 = vmmov %vm16181_vm9  ;;  %v11880_v27 = vld [vmem:[%s16186_s23] sm:$0x3f]   ;;  %v1097_v31 = vsel %vm16188_vm15, %v1094_v52, %v1096_v4  ;;  %v16190_v7 = vmov %v16184_v44  ;;  %v16196_v52 = vmov %v16191_v5  ;;  %11616 = vrot.lane.b32.xlu0 %v11615_v32, %s12316_s26  ;;  %11631 = vrot.lane.b32.xlu1 %v11630_v49, %s12317_s27  ;;  %s16347_s23 = sld [smem:[#allocation59_spill]] }
  0x81   : > { %v13049_v11 = vsel %vm16183_vm13, %v16182_v62, %v12605_v47  ;;  %vm16185_vm14 = vmmov %vm16181_vm9  ;;  %v13069_v16 = vsel %vm16183_vm13, %v16190_v7, %v12639_v19 }
  0x82   : > { %v13058_v54 = vsel %vm16185_vm14, %v12605_v47, %v16184_v44  ;;  %vm16189_vm9 = vmmov %vm16188_vm15  ;;  %vm13078_vm14 = vcmp.eq.s32.totalorder %v744_v21, 15  ;;  %v16201_v21 = vrot.slane %v12690_v22, 7  ;;  %v925_v22 = vrot.slane %v12670_v46, 7 }
  0x83   : > { %v1099_v58 = vsel %vm16189_vm9, %v1096_v4, 0.0  ;;  %vm16192_vm12 = vmmov %vm16183_vm13  ;;  %v16194_v30 = vsel %vm13078_vm14, 4294967295, %v16193_v30  ;;  %vm16006_vm9 = vcmask 93184   ;;  %v13091_v4 = vld [vmem:[%s16187_s28 + $0x8] sm:$0x3f]  }
  0x84   : > { %v13075_v47 = vsel %vm16192_vm12, %v12639_v19, %v16191_v5  ;;  %16195 = vst [vmem:[#allocation55_spill] sm:$0xff] %v16194_v30  ;;  %vm16197_vm15 = vmmov %vm16192_vm12  ;;  %vm16007_vm12 = vcmask 1045504   ;;  %v16198_v19 = vrot.slane %v12680_v59, 7  ;;  %v11640_v44 = vpack.i.bf16 %v1099_v58, %v1097_v31  ;;  %11626 = vrot.lane.b32.xlu0 %v11625_v35, %s12317_s27 }
  0x85   : > { %v13086_v41 = vsel %vm16197_vm15, %v16196_v52, %v12663_v43  ;;  %vm16200_vm3 = vmmov %vm16183_vm13  ;;  %11420 = vmatprep.subr.msk.bf16.mxu0 %vm16007_vm12, %v11880_v27  ;;  %v16203_v7 = vmov %v16201_v21  ;;  %v1721_v59 = vsel %vm16007_vm12, %v11880_v27, 0  ;;  %v13123_v52 = vld [vmem:[%s16187_s28 + $0x10] sm:$0x3f]   ;;  %11421 = vmatprep.subr.msk.bf16.mxu1 %vm16007_vm12, %v11880_v27  ;;  %v16216_v27 = vrot.slane %v12950_v24, 7 }
  0x86   : > { %v13097_v2 = vsel %vm16183_vm13, %v12760_v23, %v16198_v19  ;;  %v16199_v28 = vmov %v16198_v19  ;;  %vm16202_vm15 = vmmov %vm16200_vm3  ;;  %11031 = vmatpush3.bf16.msra.mxu0 %v1721_v59  ;;  %v16009_v19 = vmov 0   ;;  %11419 = vmatpush3.bf16.msra.mxu1 %v1721_v59  ;;  %v808_v35 = vsel %vm13078_vm14, 0.0, %v12996_v6  ;;  %s16348_s30 = smov %s16347_s23 }
  0x87   : > { %v13103_v51 = vsel %vm16200_vm3, %v16199_v28, %v12719_v29  ;;  %v13109_v62 = vsel %vm16202_vm15, %v12998_v36, %v16201_v21  ;;  %vm16204_vm13 = vmmov %vm16200_vm3  ;;  %676 = vst.msk [vmem:[#allocation2 + $0x4] sm:$0xf] %vm16006_vm9, %v16009_v19  ;;  %v16208_v28 = vrot.slane %v12809_v15, 7  ;;  %11641 = vrot.lane.b32.xlu1 %v11640_v44, %s12317_s27  ;;  %v967_v6 = vrot.slane %v808_v35, 7  ;;  %s16041_s27 = smov 64  }
  0x88   : > { %v13117_v5 = vsel %vm16204_vm13, %v16203_v7, %v12760_v23  ;;  %677 = vst.msk [vmem:[#allocation2 + $0x8] sm:$0xf] %vm16006_vm9, %v16009_v19  ;;  %678 = vst.msk [vmem:[#allocation2 + $0x8c] sm:$0xf] %vm16006_vm9, %v16009_v19  ;;  %v16205_v23 = vrot.slane %v12753_v50, 7  ;;  %v957_v50 = vrot.slane %v12778_v48, 7  ;;  %11636 = vrot.lane.b32.xlu0 %v11635_v33, %s12316_s26 }
  0x89   : > { %679 = vst.msk [vmem:[#allocation2 + $0x90] sm:$0xf] %vm16006_vm9, %v16009_v19  ;;  %vm16207_vm15 = vmmov %vm16200_vm3  ;;  %v16210_v46 = vmov %v16208_v28  ;;  %v16228_v33 = vrot.slane %v12554_v20, 7  ;;  %vm16234_vm14 = vcmask 64512   ;;  %s12319_s26 = smov 16  }
  0x8a   : > { %v13138_v32 = vsel %vm16200_vm3, %v12772_v45, %v16205_v23  ;;  %v16206_v31 = vmov %v16205_v23  ;;  %vm16209_vm13 = vmmov %vm16200_vm3  ;;  %v13158_v7 = vsel %vm16200_vm3, %v16210_v46, %v12871_v14  ;;  %v933_v23 = vrot.slane %v12793_v60, 7 }
  0x8b   : > { %v13144_v58 = vsel %vm16207_vm15, %v16206_v31, %v12815_v10  ;;  %v13150_v21 = vsel %vm16209_vm13, %v12898_v12, %v16208_v28  ;;  %v16211_v31 = vrot.slane %v12895_v34, 7  ;;  %vm16212_vm15 = vmmov %vm16200_vm3 }
  0x8c   : > { %vm16213_vm13 = vmmov %vm16200_vm3 }
  0x8d   : > { %v13166_v28 = vsel %vm16212_vm15, %v12936_v38, %v16211_v31  ;;  %v13170_v49 = vsel %vm16213_vm13, %v12663_v43, %v925_v22  ;;  %vm16214_vm9 = vmmov %vm16200_vm3  ;;  %v16215_v48 = vmov %v16211_v31  ;;  %vm16218_vm15 = vcmask 1045504  }
  0x8e   : > { %v13174_v15 = vsel %vm16214_vm9, %v925_v22, %v12772_v45  ;;  %v13180_v60 = vsel %vm16200_vm3, %v16215_v48, %v12943_v3  ;;  %vm16217_vm12 = vmmov %vm16200_vm3  ;;  %11422 = vmatprep.subr.msk.bf16.mxu1 %vm16218_vm15, %v13091_v4  ;;  %v13200_v45 = vsel %vm16200_vm3, %v12815_v10, %v933_v23  ;;  %vm16008_vm15 = vcmask 97280  }
  0x8f   : > { %v13185_v59 = vsel %vm16217_vm12, %v943_v25, %v16216_v27  ;;  %vm16219_vm13 = vmmov %vm16200_vm3  ;;  %v11881_v24 = vld [vmem:[#allocation2 + $0x4] sm:$0xff]  }
  0x90   : > { %v13192_v43 = vsel %vm16219_vm13, %v12719_v29, %v957_v50  ;;  %vm16220_vm9 = vmmov %vm16200_vm3  ;;  %v16222_v29 = vmov %v16216_v27  ;;  %11032 = vmatprep.mubr.msk.bf16.mxu0 %vm16008_vm15, %v11881_v24  ;;  %vm16021_vm15 = vcmask 64512  }
  0x91   : > { %v13196_v34 = vsel %vm16220_vm9, %v957_v50, %v12898_v12  ;;  %vm16221_vm12 = vmmov %vm16200_vm3  ;;  %v941_v12 = vrot.slane %v12921_v42, 7  ;;  %vm16224_vm9 = vcmask 1045504   ;;  %v965_v42 = vrot.slane %v12906_v8, 7 }
  0x92   : > { %v13204_v22 = vsel %vm16221_vm12, %v933_v23, %v12936_v38  ;;  %vm16223_vm13 = vmmov %vm16200_vm3  ;;  %11423 = vmatprep.subr.msk.bf16.mxu0 %vm16224_vm9, %v13123_v52 }
  0x93   : > { %v13213_v46 = vsel %vm16223_vm13, %v16222_v29, %v12998_v36  ;;  %v13221_v38 = vsel %vm16200_vm3, %v12943_v3, %v941_v12  ;;  %vm16225_vm12 = vmmov %vm16200_vm3 }
  0x94   : > { %v13224_v10 = vsel %vm16225_vm12, %v941_v12, %v943_v25  ;;  %vm16226_vm13 = vmmov %vm16200_vm3 }
  0x95   : > { %v13231_v36 = vsel %vm16226_vm13, %v12871_v14, %v965_v42  ;;  %vm16227_vm9 = vmmov %vm16200_vm3  ;;  %vm16024_vm3 = vcmask 31744   ;;  %vm16230_vm13 = vcmask 93184  }
  0x96   : > { %v13234_v44 = vsel %vm16227_vm9, %v965_v42, %v967_v6  ;;  %vm16229_vm12 = vmmov %vm16227_vm9 }
  0x97   : > { %v1001_v48 = vsel %vm16229_vm12, 0.0, %v16228_v33  ;;  %vm16231_vm9 = vmmov %vm16230_vm13 }
  0x98   : > { %vm16232_vm12 = vmmov %vm16231_vm9 }
  0x99   : > { %vm16235_vm11 = vmmov %vm16234_vm14 }
  0xad   : > { %v11492_v3 = vpop.permute.xlu1 %11491 }
  0xae   : > { %v11494_v12 = vunpack.i.h.bf16 %v11492_v3  ;;  %v11493_v24 = vunpack.i.l.bf16 %v11492_v3 }
  0xb0   : > { %v11487_v50 = vpop.permute.xlu0 %11486 }
  0xb1   : > { %v11489_v27 = vunpack.i.h.bf16 %v11487_v50  ;;  %v11488_v35 = vunpack.i.l.bf16 %v11487_v50 }
  0xb2   : > { %v11497_v25 = vpop.permute.xlu1 %11496 }
  0xb3   : > { %v11499_v8 = vunpack.i.h.bf16 %v11497_v25  ;;  %v11498_v29 = vunpack.i.l.bf16 %v11497_v25  ;;  %v1326_v1 = vsel %vm16024_vm3, %v1001_v48, %v11488_v35  ;;  %v1327_v30 = vsel %vm16024_vm3, %v13037_v0, %v11489_v27 }
  0xb4   : > { %v11502_v23 = vpop.permute.xlu0 %11501 }
  0xb5   : > { %v1331_v33 = vsel %vm16024_vm3, %v13049_v11, %v11499_v8  ;;  %v1330_v50 = vsel %vm16024_vm3, %v13043_v53, %v11498_v29  ;;  %v1328_v11 = vsel %vm16024_vm3, %v13025_v37, %v11493_v24  ;;  %v1329_v53 = vsel %vm16024_vm3, %v13031_v55, %v11494_v12 }
  0xb6   : > { %v11507_v31 = vpop.permute.xlu1 %11506  ;;  %v11503_v8 = vunpack.i.l.bf16 %v11502_v23 }
  0xb7   : > { %v11509_v24 = vunpack.i.h.bf16 %v11507_v31 }
  0xb9   : > { %v11512_v14 = vpop.permute.xlu0 %11511 }
  0xba   : > { %v11514_v6 = vunpack.i.h.bf16 %v11512_v14  ;;  %v11513_v42 = vunpack.i.l.bf16 %v11512_v14  ;;  %v11522_v19 = vpop.permute.xlu1 %11521 }
  0xbb   : > { %v11524_v63 = vunpack.i.h.bf16 %v11522_v19  ;;  %v11523_v20 = vunpack.i.l.bf16 %v11522_v19 }
  0xbc   : > { %v1360_v25 = vsel %vm16021_vm15, %v1327_v30, %v11514_v6  ;;  %v1359_v3 = vsel %vm16021_vm15, %v1326_v1, %v11513_v42  ;;  %v11504_v30 = vunpack.i.h.bf16 %v11502_v23  ;;  %v11508_v6 = vunpack.i.l.bf16 %v11507_v31 }
  0xbd   : > { %v10557_v56 = vpack.c.bf16 %v1360_v25, %v1360_v25  ;;  %v10556_v14 = vpack.c.bf16 %v1359_v3, %v1359_v3  ;;  %v1363_v9 = vsel %vm16021_vm15, %v1330_v50, %v11523_v20  ;;  %v1364_v48 = vsel %vm16021_vm15, %v1331_v33, %v11524_v63  ;;  %v11517_v35 = vpop.permute.xlu0 %11516  ;;  %vm16233_vm15 = vmmov %vm16231_vm9 }
  0xbe   : > { %v10560_v0 = vpack.c.bf16 %v1363_v9, %v1363_v9  ;;  %v10561_v27 = vpack.c.bf16 %v1364_v48, %v1364_v48  ;;  %v11519_v19 = vunpack.i.h.bf16 %v11517_v35  ;;  %v11518_v39 = vunpack.i.l.bf16 %v11517_v35 }
  0xbf   : > { %1520 = vst.msk [vmem:[#allocation2 + $0x10] sm:$0xf] %vm16230_vm13, %v10557_v56  ;;  %v1333_v56 = vsel %vm16024_vm3, %v13069_v16, %v11504_v30  ;;  %v1332_v23 = vsel %vm16024_vm3, %v13058_v54, %v11503_v8  ;;  %vm16236_vm13 = vmmov %vm16231_vm9  ;;  %v1335_v16 = vsel %vm16024_vm3, %v13086_v41, %v11509_v24  ;;  %v1334_v54 = vsel %vm16024_vm3, %v13075_v47, %v11508_v6 }
  0xc0   : > { %1519 = vst.msk [vmem:[#allocation2 + $0xc] sm:$0xf] %vm16231_vm9, %v10556_v14  ;;  %v1362_v1 = vsel %vm16234_vm14, %v1329_v53, %v11519_v19  ;;  %v1361_v63 = vsel %vm16235_vm11, %v1328_v11, %v11518_v39  ;;  %vm16238_vm14 = vmmov %vm16235_vm11 }
  0xc1   : > { %1523 = vst.msk [vmem:[#allocation2 + $0x1c] sm:$0xf] %vm16232_vm12, %v10560_v0  ;;  %v10559_v9 = vpack.c.bf16 %v1362_v1, %v1362_v1  ;;  %v10558_v29 = vpack.c.bf16 %v1361_v63, %v1361_v63  ;;  %v11527_v37 = vpop.permute.xlu0 %11526  ;;  %vm16240_vm12 = vmmov %vm16235_vm11 }
  0xc2   : > { %1524 = vst.msk [vmem:[#allocation2 + $0x20] sm:$0xf] %vm16233_vm15, %v10561_v27  ;;  %v11529_v55 = vunpack.i.h.bf16 %v11527_v37  ;;  %v11528_v12 = vunpack.i.l.bf16 %v11527_v37  ;;  %vm16237_vm15 = vmmov %vm16231_vm9  ;;  %vm16239_vm9 = vcmask 1045504  }
  0xc3   : > { %1522 = vst.msk [vmem:[#allocation2 + $0x18] sm:$0xf] %vm16236_vm13, %v10559_v9  ;;  %v2514_v48 = vsel %vm16239_vm9, %v13123_v52, 0  ;;  %vm16241_vm13 = vmmov %vm16235_vm11 }
  0xc4   : > { %1521 = vst.msk [vmem:[#allocation2 + $0x14] sm:$0xf] %vm16237_vm15, %v10558_v29  ;;  %v11532_v42 = vpop.permute.xlu1 %11531  ;;  %v1366_v39 = vsel %vm16238_vm14, %v1333_v56, %v11529_v55  ;;  %v1365_v20 = vsel %vm16235_vm11, %v1332_v23, %v11528_v12  ;;  %vm16242_vm14 = vmmov %vm16237_vm15  ;;  %vm16243_vm11 = vcmask 97280  }
  0xc5   : > { %v11534_v33 = vunpack.i.h.bf16 %v11532_v42  ;;  %v11533_v50 = vunpack.i.l.bf16 %v11532_v42  ;;  %v10563_v31 = vpack.c.bf16 %v1366_v39, %v1366_v39  ;;  %v10562_v25 = vpack.c.bf16 %v1365_v20, %v1365_v20  ;;  %v11537_v3 = vpop.permute.xlu0 %11536  ;;  %vm16244_vm3 = vmmov %vm16242_vm14 }
  0xc6   : > { %v11539_v27 = vunpack.i.h.bf16 %v11537_v3  ;;  %v11538_v19 = vunpack.i.l.bf16 %v11537_v3  ;;  %vm16245_vm9 = vmmov %vm16244_vm3 }
  0xc7   : > { %v11882_v14 = vld [vmem:[#allocation2 + $0xc] sm:$0xff]   ;;  %v1367_v35 = vsel %vm16240_vm12, %v1334_v54, %v11533_v50  ;;  %v1368_v0 = vsel %vm16241_vm13, %v1335_v16, %v11534_v33  ;;  %1526 = vst.msk [vmem:[#allocation2 + $0x28] sm:$0xf] %vm16237_vm15, %v10563_v31  ;;  %vm16246_vm12 = vcmask 31744   ;;  %vm16248_vm15 = vcmask 64512  }
  0xc8   : > { %1525 = vst.msk [vmem:[#allocation2 + $0x24] sm:$0xf] %vm16242_vm14, %v10562_v25  ;;  %v10564_v11 = vpack.c.bf16 %v1367_v35, %v1367_v35  ;;  %v10565_v53 = vpack.c.bf16 %v1368_v0, %v1368_v0  ;;  %v11542_v41 = vpop.permute.xlu1 %11541  ;;  %11033 = vmatmul.mubr.msk.bf16.vlgmr.msra.gmra.mxu0 %vm16243_vm11, %v11882_v14  ;;  %v1349_v1 = vsel %vm16246_vm12, %v13117_v5, %v11539_v27  ;;  %vm16247_vm13 = vmmov %vm16246_vm12 }
  0xc9   : > { %v11547_v47 = vpop.permute.xlu0 %11546  ;;  %11099 = vmatpush3.bf16.msra.mxu0 %v2514_v48  ;;  %v1348_v63 = vsel %vm16247_vm13, %v13109_v62, %v11538_v19  ;;  %vm16249_vm14 = vmmov %vm16248_vm15  ;;  %v11884_v55 = vld [vmem:[#allocation2 + $0x1c] sm:$0xff]   ;;  %v11544_v56 = vunpack.i.h.bf16 %v11542_v41  ;;  %v11543_v5 = vunpack.i.l.bf16 %v11542_v41 }
  0xca   : > { %1527 = vst.msk [vmem:[#allocation2 + $0x2c] sm:$0xf] %vm16244_vm3, %v10564_v11  ;;  %v11549_v52 = vunpack.i.h.bf16 %v11547_v47  ;;  %v11548_v30 = vunpack.i.l.bf16 %v11547_v47  ;;  %vm16251_vm12 = vmmov %vm16243_vm11 }
  0xcb   : > { %1528 = vst.msk [vmem:[#allocation2 + $0x30] sm:$0xf] %vm16245_vm9, %v10565_v53  ;;  %v11883_v8 = vld [vmem:[#allocation2 + $0x14] sm:$0xff]   ;;  %vm16250_vm9 = vmmov %vm16244_vm3 }
  0xcc   : > { %v11552_v9 = vpop.permute.xlu1 %11551  ;;  %v1381_v29 = vsel %vm16248_vm15, %v1348_v63, %v11548_v30  ;;  %v1382_v37 = vsel %vm16249_vm14, %v1349_v1, %v11549_v52  ;;  %11036 = vmatprep.mubr.msk.bf16.mxu0 %vm16243_vm11, %v11883_v8  ;;  %vm16252_vm13 = vmmov %vm16243_vm11  ;;  %vm16253_vm15 = vcmask 31744  }
  0xcd   : > { %v10578_v24 = vpack.c.bf16 %v1381_v29, %v1381_v29  ;;  %v10579_v6 = vpack.c.bf16 %v1382_v37, %v1382_v37  ;;  %v11554_v23 = vunpack.i.h.bf16 %v11552_v9  ;;  %v1351_v31 = vsel %vm16253_vm15, %v13103_v51, %v11544_v56  ;;  %vm16254_vm14 = vmmov %vm16253_vm15 }
  0xce   : > { %v1350_v25 = vsel %vm16254_vm14, %v13097_v2, %v11543_v5  ;;  %vm16255_vm11 = vmmov %vm16254_vm14  ;;  %v11553_v16 = vunpack.i.l.bf16 %v11552_v9 }
  0xcf   : > { %v11885_v12 = vld [vmem:[#allocation2 + $0x24] sm:$0xff]   ;;  %1541 = vst.msk [vmem:[#allocation2 + $0x64] sm:$0xf] %vm16244_vm3, %v10578_v24  ;;  %v1337_v3 = vsel %vm16255_vm11, %v13174_v15, %v11554_v23  ;;  %vm16256_vm3 = vcmask 64512  }
  0xd0   : > { %1542 = vst.msk [vmem:[#allocation2 + $0x68] sm:$0xf] %vm16250_vm9, %v10579_v6  ;;  %v11562_v42 = vpop.permute.xlu1 %11561  ;;  %11037 = vmatmul.mubr.msk.bf16.gmra.mxu0 %vm16251_vm12, %v11884_v55  ;;  %vm16257_vm9 = vmmov %vm16256_vm3  ;;  %v1336_v8 = vsel %vm16255_vm11, %v13170_v49, %v11553_v16 }
  0xd1   : > { %11040 = vmatprep.mubr.msk.bf16.mxu0 %vm16252_vm13, %v11885_v12  ;;  %v11564_v62 = vunpack.i.h.bf16 %v11562_v42  ;;  %v11563_v39 = vunpack.i.l.bf16 %v11562_v42  ;;  %vm16258_vm12 = vmmov %vm16255_vm11 }
  0xd2   : > { %v11886_v14 = vld [vmem:[#allocation2 + $0x2c] sm:$0xff]   ;;  %vm16259_vm13 = vmmov %vm16255_vm11 }
  0xd3   : > { %v1339_v19 = vsel %vm16258_vm12, %v13144_v58, %v11564_v62  ;;  %v1338_v51 = vsel %vm16259_vm13, %v13138_v32, %v11563_v39  ;;  %vm16260_vm15 = vmmov %vm16256_vm3  ;;  %vm16264_vm12 = vcmask 97280  }
  0xd4   : > { %vm16261_vm14 = vmmov %vm16256_vm3 }
  0xd5   : > { %vm16265_vm13 = vmmov %vm16264_vm12 }
  0xd6   : > { %vm16266_vm10 = vmmov %vm16261_vm14 }
  0xd7   : > { %v11557_v20 = vpop.permute.xlu0 %11556  ;;  %v11572_v54 = vpop.permute.xlu1 %11571  ;;  %v11887_v41 = vld [vmem:[#allocation2 + $0x64] sm:$0xff]  }
  0xd8   : > { %v11559_v33 = vunpack.i.h.bf16 %v11557_v20  ;;  %v11558_v50 = vunpack.i.l.bf16 %v11557_v20  ;;  %v11574_v0 = vunpack.i.h.bf16 %v11572_v54  ;;  %v11573_v27 = vunpack.i.l.bf16 %v11572_v54  ;;  %11041 = vmatmul.mubr.msk.bf16.gmra.mxu0 %vm16264_vm12, %v11886_v14  ;;  %11056 = vmatprep.mubr.msk.bf16.mxu1 %vm16265_vm13, %v11887_v41 }
  0xda   : > { %v1384_v48 = vsel %vm16256_vm3, %v1351_v31, %v11559_v33  ;;  %v1383_v35 = vsel %vm16257_vm9, %v1350_v25, %v11558_v50  ;;  %v1371_v15 = vsel %vm16260_vm15, %v1338_v51, %v11573_v27  ;;  %v1372_v47 = vsel %vm16261_vm14, %v1339_v19, %v11574_v0  ;;  %vm16267_vm15 = vmmov %vm16266_vm10 }
  0xdb   : > { %v10581_v11 = vpack.c.bf16 %v1384_v48, %v1384_v48  ;;  %v10580_v2 = vpack.c.bf16 %v1383_v35, %v1383_v35  ;;  %v11567_v53 = vpop.permute.xlu0 %11566  ;;  %vm16262_vm3 = vcmask 93184   ;;  %v10568_v58 = vpack.c.bf16 %v1371_v15, %v1371_v15  ;;  %v11582_v32 = vpop.permute.xlu1 %11581  ;;  %vm16274_vm12 = vmmov %vm16267_vm15 }
  0xdc   : > { %v11569_v52 = vunpack.i.h.bf16 %v11567_v53  ;;  %v11568_v30 = vunpack.i.l.bf16 %v11567_v53  ;;  %vm16263_vm9 = vmmov %vm16262_vm3  ;;  %v10569_v1 = vpack.c.bf16 %v1372_v47, %v1372_v47  ;;  %v11584_v62 = vunpack.i.h.bf16 %v11582_v32 }
  0xdd   : > { %1544 = vst.msk [vmem:[#allocation2 + $0x70] sm:$0xf] %vm16262_vm3, %v10581_v11  ;;  %vm16268_vm14 = vmmov %vm16262_vm3  ;;  %v11583_v39 = vunpack.i.l.bf16 %v11582_v32 }
  0xde   : > { %1543 = vst.msk [vmem:[#allocation2 + $0x6c] sm:$0xf] %vm16263_vm9, %v10580_v2  ;;  %v1370_v63 = vsel %vm16266_vm10, %v1337_v3, %v11569_v52  ;;  %v1369_v9 = vsel %vm16267_vm15, %v1336_v8, %v11568_v30  ;;  %vm16269_vm5 = vmmov %vm16262_vm3  ;;  %vm16271_vm10 = vcmask 1045504   ;;  %vm16276_vm15 = vcmask 97280  }
  0xdf   : > { %1531 = vst.msk [vmem:[#allocation2 + $0x3c] sm:$0xf] %vm16268_vm14, %v10568_v58  ;;  %v10567_v49 = vpack.c.bf16 %v1370_v63, %v1370_v63  ;;  %v10566_v29 = vpack.c.bf16 %v1369_v9, %v1369_v9  ;;  %v11577_v37 = vpop.permute.xlu0 %11576  ;;  %vm16270_vm11 = vmmov %vm16262_vm3  ;;  %v11592_v55 = vpop.permute.xlu1 %11591  ;;  %v2086_v42 = vsel %vm16271_vm10, %v13091_v4, 0 }
  0xe0   : > { %1532 = vst.msk [vmem:[#allocation2 + $0x40] sm:$0xf] %vm16269_vm5, %v10569_v1  ;;  %v11579_v24 = vunpack.i.h.bf16 %v11577_v37  ;;  %v11578_v6 = vunpack.i.l.bf16 %v11577_v37  ;;  %vm16272_vm5 = vcmask 31744   ;;  %vm16275_vm13 = vmmov %vm16274_vm12  ;;  %v11594_v19 = vunpack.i.h.bf16 %v11592_v55 }
  0xe1   : > { %1530 = vst.msk [vmem:[#allocation2 + $0x38] sm:$0xf] %vm16270_vm11, %v10567_v49  ;;  %vm16273_vm9 = vmmov %vm16272_vm5  ;;  %v11593_v51 = vunpack.i.l.bf16 %v11592_v55 }
  0xe2   : > { %1529 = vst.msk [vmem:[#allocation2 + $0x34] sm:$0xf] %vm16262_vm3, %v10566_v29  ;;  %v1353_v20 = vsel %vm16272_vm5, %v13196_v34, %v11579_v24  ;;  %v1352_v33 = vsel %vm16273_vm9, %v13192_v43, %v11578_v6  ;;  %vm16277_vm14 = vmmov %vm16272_vm5 }
  0xe3   : > { %v11587_v12 = vpop.permute.xlu0 %11586  ;;  %v11602_v50 = vpop.permute.xlu1 %11601  ;;  %v1355_v43 = vsel %vm16277_vm14, %v13158_v7, %v11584_v62  ;;  %vm16278_vm11 = vmmov %vm16272_vm5 }
  0xe4   : > { %v11589_v56 = vunpack.i.h.bf16 %v11587_v12  ;;  %v11588_v5 = vunpack.i.l.bf16 %v11587_v12  ;;  %v11604_v54 = vunpack.i.h.bf16 %v11602_v50  ;;  %v11603_v14 = vunpack.i.l.bf16 %v11602_v50  ;;  %vm16279_vm10 = vmmov %vm16262_vm3 }
  0xe5   : > { %v11888_v23 = vld [vmem:[#allocation2 + $0x6c] sm:$0xff]   ;;  %v1354_v27 = vsel %vm16278_vm11, %v13150_v21, %v11583_v39  ;;  %vm16280_vm5 = vmmov %vm16274_vm12 }
  0xe6   : > { %v1385_v31 = vsel %vm16274_vm12, %v1352_v33, %v11588_v5  ;;  %v1386_v25 = vsel %vm16275_vm13, %v1353_v20, %v11589_v56  ;;  %11057 = vmatmul.mubr.msk.bf16.vlgmr.msra.gmra.mxu1 %vm16276_vm15, %v11888_v23  ;;  %vm16281_vm9 = vmmov %vm16280_vm5 }
  0xe7   : > { %v10582_v3 = vpack.c.bf16 %v1385_v31, %v1385_v31  ;;  %v10583_v16 = vpack.c.bf16 %v1386_v25, %v1386_v25  ;;  %v11890_v48 = vld [vmem:[#allocation2 + $0x3c] sm:$0xff]   ;;  %11065 = vmatpush3.bf16.msra.mxu1 %v2086_v42  ;;  %vm16282_vm12 = vmmov %vm16276_vm15 }
  0xe8   : > { %vm16283_vm13 = vmmov %vm16278_vm11 }
  0xe9   : > { %v11889_v34 = vld [vmem:[#allocation2 + $0x34] sm:$0xff]   ;;  %1545 = vst.msk [vmem:[#allocation2 + $0x74] sm:$0xf] %vm16262_vm3, %v10582_v3  ;;  %v1343_v7 = vsel %vm16283_vm13, %v13180_v60, %v11604_v54  ;;  %vm16284_vm15 = vmmov %vm16278_vm11 }
  0xea   : > { %v11597_v4 = vpop.permute.xlu0 %11596  ;;  %1546 = vst.msk [vmem:[#allocation2 + $0x78] sm:$0xf] %vm16279_vm10, %v10583_v16  ;;  %v11612_v11 = vpop.permute.xlu1 %11611  ;;  %11044 = vmatprep.mubr.msk.bf16.mxu0 %vm16282_vm12, %v11889_v34  ;;  %v1342_v21 = vsel %vm16284_vm15, %v13166_v28, %v11603_v14  ;;  %vm16285_vm14 = vmmov %vm16282_vm12 }
  0xeb   : > { %v11599_v35 = vunpack.i.h.bf16 %v11597_v4  ;;  %v11598_v0 = vunpack.i.l.bf16 %v11597_v4  ;;  %v11614_v41 = vunpack.i.h.bf16 %v11612_v11  ;;  %v11613_v15 = vunpack.i.l.bf16 %v11612_v11  ;;  %11045 = vmatmul.mubr.msk.bf16.gmra.mxu0 %vm16285_vm14, %v11890_v48  ;;  %vm16286_vm11 = vmmov %vm16280_vm5 }
  0xec   : > { %vm16287_vm3 = vmmov %vm16280_vm5 }
  0xed   : > { %v1388_v2 = vsel %vm16280_vm5, %v1355_v43, %v11599_v35  ;;  %v1387_v53 = vsel %vm16281_vm9, %v1354_v27, %v11598_v0  ;;  %v1375_v8 = vsel %vm16286_vm11, %v1342_v21, %v11613_v15  ;;  %v1376_v58 = vsel %vm16287_vm3, %v1343_v7, %v11614_v41  ;;  %vm16288_vm10 = vmmov %vm16283_vm13  ;;  %v11899_v15 = vld [vmem:[#allocation2 + $0x1c] sm:$0xff]  }
  0xee   : > { %v10585_v47 = vpack.c.bf16 %v1388_v2, %v1388_v2  ;;  %v10584_v52 = vpack.c.bf16 %v1387_v53, %v1387_v53  ;;  %v11607_v30 = vpop.permute.xlu0 %11606  ;;  %v1341_v63 = vsel %vm16288_vm10, %v13204_v22, %v11594_v19  ;;  %vm16289_vm5 = vmmov %vm16288_vm10  ;;  %vm16290_vm9 = vcmask 93184   ;;  %v11622_v49 = vpop.permute.xlu1 %11621 }
  0xef   : > { %v11609_v1 = vunpack.i.h.bf16 %v11607_v30  ;;  %v11608_v32 = vunpack.i.l.bf16 %v11607_v30  ;;  %v1340_v60 = vsel %vm16289_vm5, %v13200_v45, %v11593_v51  ;;  %vm16291_vm12 = vmmov %vm16290_vm9  ;;  %v10572_v28 = vpack.c.bf16 %v1375_v8, %v1375_v8  ;;  %v11902_v8 = vld [vmem:[#allocation2 + $0x14] sm:$0xff]  }
  0xf0   : > { %1548 = vst.msk [vmem:[#allocation2 + $0x80] sm:$0xf] %vm16290_vm9, %v10585_v47  ;;  %v10573_v9 = vpack.c.bf16 %v1376_v58, %v1376_v58  ;;  %vm16292_vm13 = vmmov %vm16287_vm3  ;;  %v11624_v6 = vunpack.i.h.bf16 %v11622_v49  ;;  %v11623_v55 = vunpack.i.l.bf16 %v11622_v49  ;;  %vm16298_vm5 = vcmask 97280   ;;  %v11898_v47 = vld [vmem:[#allocation2 + $0x14] sm:$0xff]   ;;  %v11903_v58 = vld [vmem:[#allocation2 + $0x24] sm:$0xff]  }
  0xf1   : > { %1547 = vst.msk [vmem:[#allocation2 + $0x7c] sm:$0xf] %vm16291_vm12, %v10584_v52  ;;  %v1374_v29 = vsel %vm16292_vm13, %v1341_v63, %v11609_v1  ;;  %vm16293_vm15 = vmmov %vm16287_vm3  ;;  %v11891_v12 = vld [vmem:[#allocation2 + $0x74] sm:$0xff]   ;;  %v11904_v1 = vld [vmem:[#allocation2 + $0x2c] sm:$0xff]  }
  0xf2   : > { %v1373_v37 = vsel %vm16293_vm15, %v1340_v60, %v11608_v32  ;;  %vm16294_vm14 = vmmov %vm16290_vm9  ;;  %v10571_v24 = vpack.c.bf16 %v1374_v29, %v1374_v29  ;;  %v11617_v45 = vpop.permute.xlu0 %11616  ;;  %v11632_v23 = vpop.permute.xlu1 %11631  ;;  %11060 = vmatprep.mubr.msk.bf16.mxu1 %vm16298_vm5, %v11891_v12  ;;  %v11905_v32 = vld [vmem:[#allocation2 + $0x1c] sm:$0xff]   ;;  %v11906_v63 = vld [vmem:[#allocation2 + $0x24] sm:$0xff]  }
  0xf3   : > { %1535 = vst.msk [vmem:[#allocation2 + $0x4c] sm:$0xf] %vm16294_vm14, %v10572_v28  ;;  %vm16295_vm11 = vmmov %vm16290_vm9  ;;  %v10570_v22 = vpack.c.bf16 %v1373_v37, %v1373_v37  ;;  %v11619_v56 = vunpack.i.h.bf16 %v11617_v45  ;;  %v11618_v5 = vunpack.i.l.bf16 %v11617_v45  ;;  %v11634_v42 = vunpack.i.h.bf16 %v11632_v23  ;;  %v11907_v60 = vld [vmem:[#allocation2 + $0x34] sm:$0xff]   ;;  %v11908_v28 = vld [vmem:[#allocation2 + $0x3c] sm:$0xff]  }
  0xf4   : > { %1536 = vst.msk [vmem:[#allocation2 + $0x50] sm:$0xf] %vm16295_vm11, %v10573_v9  ;;  %vm16296_vm3 = vmmov %vm16290_vm9  ;;  %v11633_v62 = vunpack.i.l.bf16 %v11632_v23  ;;  %vm16299_vm9 = vcmask 31744   ;;  %v11909_v9 = vld [vmem:[#allocation2 + $0x2c] sm:$0xff]   ;;  %v11910_v49 = vld [vmem:[#allocation2 + $0x34] sm:$0xff]  }
  0xf5   : > { %1534 = vst.msk [vmem:[#allocation2 + $0x48] sm:$0xf] %vm16296_vm3, %v10571_v24  ;;  %vm16297_vm10 = vmmov %vm16296_vm3  ;;  %v1347_v39 = vsel %vm16299_vm9, %v13213_v46, %v11624_v6  ;;  %v11893_v46 = vld [vmem:[#allocation2 + $0xc] sm:$0xff]   ;;  %v11913_v24 = vld [vmem:[#allocation2 + $0x3c] sm:$0xff]  }
  0xf6   : > { %1533 = vst.msk [vmem:[#allocation2 + $0x44] sm:$0xf] %vm16297_vm10, %v10570_v22  ;;  %vm16300_vm12 = vmmov %vm16299_vm9  ;;  %v11627_v33 = vpop.permute.xlu0 %11626 }
  0xf7   : > { %v1346_v20 = vsel %vm16300_vm12, %v13185_v59, %v11623_v55  ;;  %vm16301_vm15 = vmmov %vm16292_vm13  ;;  %v11629_v25 = vunpack.i.h.bf16 %v11627_v33  ;;  %v11628_v3 = vunpack.i.l.bf16 %v11627_v33  ;;  %v11926_v33 = vld [vmem:[#allocation2 + $0x74] sm:$0xff]  }
  0xf8   : > { %v1379_v50 = vsel %vm16292_vm13, %v1346_v20, %v11633_v62  ;;  %v1380_v31 = vsel %vm16301_vm15, %v1347_v39, %v11634_v42  ;;  %v11892_v16 = vld [vmem:[#allocation2 + $0x7c] sm:$0xff]   ;;  %vm16302_vm14 = vmmov %vm16299_vm9  ;;  %v11922_v42 = vld [vmem:[#allocation2 + $0x64] sm:$0xff]  }
  0xf9   : > { %v1345_v54 = vsel %vm16302_vm14, %v13224_v10, %v11619_v56  ;;  %vm16303_vm11 = vmmov %vm16299_vm9  ;;  %v10576_v4 = vpack.c.bf16 %v1379_v50, %v1379_v50  ;;  %v10577_v48 = vpack.c.bf16 %v1380_v31, %v1380_v31  ;;  %v11642_v35 = vpop.permute.xlu1 %11641  ;;  %11061 = vmatmul.mubr.msk.bf16.gmra.mxu1 %vm16298_vm5, %v11892_v16  ;;  %vm16306_vm9 = vcmask 93184   ;;  %v11919_v56 = vld [vmem:[#allocation2 + $0x64] sm:$0xff]   ;;  %v11923_v62 = vld [vmem:[#allocation2 + $0x74] sm:$0xff]  }
  0xfa   : > { %v1344_v14 = vsel %vm16303_vm11, %v13221_v38, %v11618_v5  ;;  %vm16304_vm3 = vmmov %vm16292_vm13  ;;  %v11637_v38 = vpop.permute.xlu0 %11636  ;;  %v11644_v27 = vunpack.i.h.bf16 %v11642_v35  ;;  %v11643_v19 = vunpack.i.l.bf16 %v11642_v35  ;;  %v11920_v5 = vld [vmem:[#allocation2 + $0x6c] sm:$0xff]   ;;  %v11924_v39 = vld [vmem:[#allocation2 + $0x7c] sm:$0xff]  }
  0xfb   : > { %v1377_v59 = vsel %vm16304_vm3, %v1344_v14, %v11628_v3  ;;  %vm16305_vm10 = vmmov %vm16304_vm3  ;;  %1539 = vst.msk [vmem:[#allocation2 + $0x5c] sm:$0xf] %vm16306_vm9, %v10576_v4  ;;  %v11896_v10 = vld [vmem:[#allocation2 + $0x4c] sm:$0xff]   ;;  %v11639_v11 = vunpack.i.h.bf16 %v11637_v38  ;;  %v11638_v2 = vunpack.i.l.bf16 %v11637_v38  ;;  %vm16312_vm3 = vcmask 31744   ;;  %v11928_v31 = vld [vmem:[#allocation2 + $0x7c] sm:$0xff]  }
  0xfc   : > { %v1378_v0 = vsel %vm16305_vm10, %v1345_v54, %v11629_v25  ;;  %vm16307_vm12 = vmmov %vm16306_vm9  ;;  %v10574_v34 = vpack.c.bf16 %v1377_v59, %v1377_v59  ;;  %v11912_v37 = vld [vmem:[#allocation2 + $0x4c] sm:$0xff]  }
  0xfd   : > { %1540 = vst.msk [vmem:[#allocation2 + $0x60] sm:$0xf] %vm16307_vm12, %v10577_v48  ;;  %v10575_v43 = vpack.c.bf16 %v1378_v0, %v1378_v0  ;;  %vm16308_vm13 = vmmov %vm16298_vm5  ;;  %v11894_v51 = vld [vmem:[#allocation2 + $0x44] sm:$0xff]   ;;  %v1357_v53 = vsel %vm16312_vm3, %v13234_v44, %v11639_v11  ;;  %v11917_v45 = vld [vmem:[#allocation2 + $0x4c] sm:$0xff]  }
  0xfe   : > { %11066 = vmatprep.mubr.msk.bf16.mxu1 %vm16308_vm13, %v11893_v46  ;;  %vm16309_vm15 = vmmov %vm16306_vm9  ;;  %v11911_v29 = vld [vmem:[#allocation2 + $0x44] sm:$0xff]   ;;  %v11925_v20 = vld [vmem:[#allocation2 + $0x6c] sm:$0xff]  }
  0xff   : > { %1537 = vst.msk [vmem:[#allocation2 + $0x54] sm:$0xf] %vm16309_vm15, %v10574_v34  ;;  %vm16310_vm14 = vmmov %vm16306_vm9  ;;  %vm16314_vm9 = vcmask 64512   ;;  %v11914_v22 = vld [vmem:[#allocation2 + $0x44] sm:$0xff]   ;;  %v11930_v3 = vld [vmem:[#allocation2 + $0x8c] sm:$0xff]  }
 0x100   : > { %1538 = vst.msk [vmem:[#allocation2 + $0x58] sm:$0xf] %vm16310_vm14, %v10575_v43  ;;  %vm16311_vm11 = vmmov %vm16298_vm5 }
 0x101   : > { %11048 = vmatprep.mubr.msk.bf16.mxu0 %vm16311_vm11, %v11894_v51  ;;  %vm16313_vm10 = vmmov %vm16312_vm3 }
 0x102   : > { %v1356_v41 = vsel %vm16313_vm10, %v13231_v36, %v11638_v2  ;;  %11049 = vmatmul.mubr.msk.bf16.gmra.mxu0 %vm16298_vm5, %v11896_v10  ;;  %vm16315_vm12 = vmmov %vm16314_vm9  ;;  %v11931_v10 = vld [vmem:[%s16347_s23 + $0x10] sm:$0xff]   ;;  %s16722_s23 = smov 32  }
 0x103   : > { %v1389_v7 = vsel %vm16314_vm9, %v1356_v41, %v11643_v19  ;;  %v1390_v21 = vsel %vm16315_vm12, %v1357_v53, %v11644_v27  ;;  %vm16316_vm13 = vmmov %vm16298_vm5  ;;  %11132 = vmatprep.subr.bf16.mxu1 %v11931_v10 }
 0x104   : > { %v10586_v52 = vpack.c.bf16 %v1389_v7, %v1389_v7  ;;  %v10587_v30 = vpack.c.bf16 %v1390_v21, %v1390_v21  ;;  %11067 = vmatmul.mubr.msk.bf16.vlgmr.msra.gmra.mxu1 %vm16316_vm13, %v11898_v47  ;;  %vm16317_vm15 = vmmov %vm16310_vm14  ;;  %v11901_v44 = vld [vmem:[#allocation2 + $0x5c] sm:$0xff]  }
 0x105   : > { %vm16318_vm11 = vmmov %vm16298_vm5  ;;  %v11916_v55 = vld [vmem:[#allocation2 + $0x5c] sm:$0xff]   ;;  %11133 = vmatpush3.bf16.msra.mxu1 %v11931_v10 }
 0x106   : > { %1549 = vst.msk [vmem:[#allocation2 + $0x84] sm:$0xf] %vm16317_vm15, %v10586_v52  ;;  %11070 = vmatprep.mubr.msk.bf16.mxu1 %vm16318_vm11, %v11899_v15  ;;  %vm16319_vm3 = vmmov %vm16298_vm5  ;;  %v11921_v23 = vld [vmem:[#allocation2 + $0x5c] sm:$0xff]  }
 0x107   : > { %1550 = vst.msk [vmem:[#allocation2 + $0x88] sm:$0xf] %vm16310_vm14, %v10587_v30  ;;  %v11900_v36 = vld [vmem:[#allocation2 + $0x54] sm:$0xff]   ;;  %vm16320_vm10 = vmmov %vm16319_vm3 }
 0x108   : > { %11052 = vmatprep.mubr.msk.bf16.mxu0 %vm16319_vm3, %v11900_v36  ;;  %vm16321_vm5 = vmmov %vm16319_vm3  ;;  %v11915_v6 = vld [vmem:[#allocation2 + $0x54] sm:$0xff]  }
 0x109   : > { %vm16322_vm9 = vmmov %vm16319_vm3  ;;  %v11918_v12 = vld [vmem:[#allocation2 + $0x54] sm:$0xff]  }
 0x10a   : > { %11053 = vmatmul.mubr.msk.bf16.gmra.mxu0 %vm16320_vm10, %v11901_v44  ;;  %vm16323_vm12 = vmmov %vm16319_vm3 }
 0x10b   : > { %11100 = vmatprep.mubr.msk.bf16.mxu0 %vm16321_vm5, %v11902_v8  ;;  %vm16324_vm13 = vmmov %vm16319_vm3 }
 0x10c   : > { %11071 = vmatmul.mubr.msk.bf16.gmra.mxu1 %vm16322_vm9, %v11903_v58  ;;  %vm16325_vm15 = vmmov %vm16319_vm3 }
 0x10d   : > { %11074 = vmatprep.mubr.msk.bf16.mxu1 %vm16323_vm12, %v11904_v1  ;;  %vm16326_vm14 = vmmov %vm16319_vm3 }
 0x10e   : > { %vm16327_vm11 = vmmov %vm16319_vm3  ;;  %v11927_v50 = vld [vmem:[#allocation2 + $0x84] sm:$0xff]  }
 0x10f   : > { %vm16328_vm10 = vmmov %vm16319_vm3  ;;  %v11929_v25 = vld [vmem:[#allocation2 + $0x84] sm:$0xff]  }
 0x110   : > { %vm16329_vm5 = vmmov %vm16319_vm3 }
 0x111   : > { %vm16330_vm9 = vmmov %vm16319_vm3 }
 0x112   : > { %11101 = vmatmul.mubr.msk.bf16.vlgmr.msra.gmra.mxu0 %vm16324_vm13, %v11905_v32  ;;  %vm16331_vm12 = vmmov %vm16319_vm3 }
 0x113   : > { %11104 = vmatprep.mubr.msk.bf16.mxu0 %vm16325_vm15, %v11906_v63  ;;  %vm16332_vm13 = vmmov %vm16319_vm3 }
 0x114   : > { %11075 = vmatmul.mubr.msk.bf16.gmra.mxu1 %vm16326_vm14, %v11907_v60  ;;  %vm16333_vm15 = vmmov %vm16319_vm3 }
 0x115   : > { %11078 = vmatprep.mubr.msk.bf16.mxu1 %vm16327_vm11, %v11908_v28  ;;  %vm16334_vm14 = vmmov %vm16319_vm3 }
 0x116   : > { %vm16335_vm11 = vmmov %vm16319_vm3 }
 0x11a   : > { %11105 = vmatmul.mubr.msk.bf16.gmra.mxu0 %vm16319_vm3, %v11909_v9 }
 0x11b   : > { %11108 = vmatprep.mubr.msk.bf16.mxu0 %vm16328_vm10, %v11910_v49  ;;  %vm16336_vm10 = vmmov %vm16319_vm3 }
 0x11c   : > { %11079 = vmatmul.mubr.msk.bf16.gmra.mxu1 %vm16329_vm5, %v11911_v29  ;;  %vm16337_vm5 = vmmov %vm16319_vm3 }
 0x11d   : > { %11082 = vmatprep.mubr.msk.bf16.mxu1 %vm16330_vm9, %v11912_v37  ;;  %vm16338_vm9 = vmmov %vm16319_vm3 }
 0x122   : > { %11109 = vmatmul.mubr.msk.bf16.gmra.mxu0 %vm16331_vm12, %v11913_v24  ;;  %vm16339_vm12 = vmmov %vm16319_vm3 }
 0x123   : > { %11112 = vmatprep.mubr.msk.bf16.mxu0 %vm16332_vm13, %v11914_v22  ;;  %vm16340_vm13 = vmmov %vm16319_vm3 }
 0x124   : > { %11083 = vmatmul.mubr.msk.bf16.gmra.mxu1 %vm16333_vm15, %v11915_v6  ;;  %vm16341_vm15 = vmmov %vm16319_vm3 }
 0x125   : > { %11086 = vmatprep.mubr.msk.bf16.mxu1 %vm16334_vm14, %v11916_v55  ;;  %vm16342_vm14 = vmmov %vm16319_vm3 }
 0x12a   : > { %11113 = vmatmul.mubr.msk.bf16.gmra.mxu0 %vm16335_vm11, %v11917_v45  ;;  %vm16343_vm11 = vmmov %vm16319_vm3 }
 0x12b   : > { %11116 = vmatprep.mubr.msk.bf16.mxu0 %vm16319_vm3, %v11918_v12 }
 0x12c   : > { %11087 = vmatmul.mubr.msk.bf16.gmra.mxu1 %vm16336_vm10, %v11919_v56  ;;  %vm16344_vm10 = vmmov %vm16319_vm3 }
 0x12d   : > { %11090 = vmatprep.mubr.msk.bf16.mxu1 %vm16337_vm5, %v11920_v5  ;;  %vm16345_vm5 = vmmov %vm16319_vm3 }
 0x132   : > { %11117 = vmatmul.mubr.msk.bf16.gmra.mxu0 %vm16338_vm9, %v11921_v23  ;;  %vm16346_vm9 = vmmov %vm16319_vm3 }
 0x133   : > { %11120 = vmatprep.mubr.msk.bf16.mxu0 %vm16339_vm12, %v11922_v42  ;;  %vm16032_vm12 = vcmask 130048  }
 0x134   : > { %11091 = vmatmul.mubr.msk.bf16.gmra.mxu1 %vm16340_vm13, %v11923_v62  ;;  %vm16030_vm13 = vcmask 388096  }
 0x135   : > { %11094 = vmatprep.mubr.msk.bf16.mxu1 %vm16341_vm15, %v11924_v39 }
 0x13a   : > { %11121 = vmatmul.mubr.msk.bf16.gmra.mxu0 %vm16342_vm14, %v11925_v20 }
 0x13b   : > { %11124 = vmatprep.mubr.msk.bf16.mxu0 %vm16343_vm11, %v11926_v33 }
 0x13c   : > { %11095 = vmatmul.mubr.msk.bf16.gmra.mxu1 %vm16319_vm3, %v11927_v50 }
 0x142   : > { %11125 = vmatmul.mubr.msk.bf16.gmra.mxu0 %vm16344_vm10, %v11928_v31  ;;  %vm16364_vm10 = vcmask 1040384  }
 0x143   : > { %11128 = vmatprep.mubr.msk.bf16.mxu0 %vm16345_vm5, %v11929_v25 }
 0x14a   : > { %11129 = vmatmul.mubr.msk.bf16.gmra.mxu0 %vm16346_vm9, %v11930_v3 }
 0x188   : > { %v11034_v16 = vpop.f32.mrf.mxu0 }
 0x189   : > { %1887 = vst.msk [vmem:[#allocation8 + $0x10] sm:$0xff] %vm16032_vm12, %v11034_v16 }
 0x18a   : > { %v1757_v54 = vpop.f32.mrf.mxu0 }
 0x18b   : > { %1885 = vst.msk [vmem:[#allocation8] sm:$0xff] %vm16032_vm12, %v1757_v54 }
 0x18c   : > { %v11035_v14 = vpop.f32.mrf.mxu0 }
 0x18d   : > { %1888 = vst.msk [vmem:[#allocation8 + $0x18] sm:$0xff] %vm16032_vm12, %v11035_v14 }
 0x18e   : > { %v1760_v4 = vpop.f32.mrf.mxu0 }
 0x18f   : > { %1886 = vst.msk [vmem:[#allocation8 + $0x8] sm:$0xff] %vm16032_vm12, %v1760_v4 }
 0x190   : > { %v11038_v48 = vpop.f32.mrf.mxu0  ;;  %v2251_v8 = vld [vmem:[#allocation8 + $0x10] sm:$0xff] }
 0x191   : > { %1891 = vst.msk [vmem:[#allocation8 + $0x30] sm:$0xff] %vm16032_vm12, %v11038_v48 }
 0x192   : > { %v1773_v46 = vpop.f32.mrf.mxu0  ;;  %v2249_v63 = vld [vmem:[#allocation8] sm:$0xff] }
 0x193   : > { %1889 = vst.msk [vmem:[#allocation8 + $0x20] sm:$0xff] %vm16032_vm12, %v1773_v46 }
 0x194   : > { %v11039_v35 = vpop.f32.mrf.mxu0  ;;  %v2252_v49 = vld [vmem:[#allocation8 + $0x18] sm:$0xff] }
 0x195   : > { %1892 = vst.msk [vmem:[#allocation8 + $0x38] sm:$0xff] %vm16032_vm12, %v11039_v35 }
 0x196   : > { %v1776_v59 = vpop.f32.mrf.mxu0  ;;  %v2250_v22 = vld [vmem:[#allocation8 + $0x8] sm:$0xff] }
 0x197   : > { %1890 = vst.msk [vmem:[#allocation8 + $0x28] sm:$0xff] %vm16032_vm12, %v1776_v59 }
 0x198   : > { %v11042_v0 = vpop.f32.mrf.mxu0  ;;  %v2255_v12 = vld [vmem:[#allocation8 + $0x30] sm:$0xff] }
 0x199   : > { %1895 = vst.msk [vmem:[#allocation8 + $0x50] sm:$0xff] %vm16032_vm12, %v11042_v0 }
 0x19a   : > { %v1789_v34 = vpop.f32.mrf.mxu0  ;;  %v2253_v42 = vld [vmem:[#allocation8 + $0x20] sm:$0xff] }
 0x19b   : > { %1893 = vst.msk [vmem:[#allocation8 + $0x40] sm:$0xff] %vm16032_vm12, %v1789_v34 }
 0x19c   : > { %v11043_v43 = vpop.f32.mrf.mxu0  ;;  %v2256_v33 = vld [vmem:[#allocation8 + $0x38] sm:$0xff] }
 0x19d   : > { %1896 = vst.msk [vmem:[#allocation8 + $0x58] sm:$0xff] %vm16032_vm12, %v11043_v43 }
 0x19e   : > { %v1792_v38 = vpop.f32.mrf.mxu0  ;;  %v2254_v54 = vld [vmem:[#allocation8 + $0x28] sm:$0xff] }
 0x19f   : > { %1894 = vst.msk [vmem:[#allocation8 + $0x48] sm:$0xff] %vm16032_vm12, %v1792_v38 }
 0x1a0   : > { %v2259_v59 = vld [vmem:[#allocation8 + $0x50] sm:$0xff] }
 0x1a6   : > { %v11058_v27 = vpop.f32.mrf.mxu1 }
 0x1a7   : > { %1911 = vst.msk [vmem:[#allocation8 + $0xd0] sm:$0xff] %vm16032_vm12, %v11058_v27  ;;  %v2257_v27 = vld [vmem:[#allocation8 + $0x40] sm:$0xff] }
 0x1a8   : > { %v1853_v19 = vpop.f32.mrf.mxu1 }
 0x1a9   : > { %1909 = vst.msk [vmem:[#allocation8 + $0xc0] sm:$0xff] %vm16032_vm12, %v1853_v19 }
 0x1aa   : > { %v11059_v51 = vpop.f32.mrf.mxu1 }
 0x1ab   : > { %1912 = vst.msk [vmem:[#allocation8 + $0xd8] sm:$0xff] %vm16032_vm12, %v11059_v51  ;;  %v11046_v11 = vpop.f32.mrf.mxu0 }
 0x1ac   : > { %1899 = vst.msk [vmem:[#allocation8 + $0x70] sm:$0xff] %vm16032_vm12, %v11046_v11  ;;  %v1856_v2 = vpop.f32.mrf.mxu1 }
 0x1ad   : > { %1910 = vst.msk [vmem:[#allocation8 + $0xc8] sm:$0xff] %vm16032_vm12, %v1856_v2  ;;  %v1805_v53 = vpop.f32.mrf.mxu0 }
 0x1ae   : > { %1897 = vst.msk [vmem:[#allocation8 + $0x60] sm:$0xff] %vm16032_vm12, %v1805_v53 }
 0x1af   : > { %v11047_v41 = vpop.f32.mrf.mxu0 }
 0x1b0   : > { %1900 = vst.msk [vmem:[#allocation8 + $0x78] sm:$0xff] %vm16032_vm12, %v11047_v41  ;;  %v2260_v41 = vld [vmem:[#allocation8 + $0x58] sm:$0xff] }
 0x1b1   : > { %v1808_v15 = vpop.f32.mrf.mxu0 }
 0x1b2   : > { %1898 = vst.msk [vmem:[#allocation8 + $0x68] sm:$0xff] %vm16032_vm12, %v1808_v15 }
 0x1b9   : > { %v11062_v7 = vpop.f32.mrf.mxu1 }
 0x1ba   : > { %1915 = vst.msk [vmem:[#allocation8 + $0xf0] sm:$0xff] %vm16032_vm12, %v11062_v7 }
 0x1bb   : > { %v1869_v21 = vpop.f32.mrf.mxu1 }
 0x1bc   : > { %1913 = vst.msk [vmem:[#allocation8 + $0xe0] sm:$0xff] %vm16032_vm12, %v1869_v21 }
 0x1bd   : > { %v11063_v47 = vpop.f32.mrf.mxu1 }
 0x1be   : > { %1916 = vst.msk [vmem:[#allocation8 + $0xf8] sm:$0xff] %vm16032_vm12, %v11063_v47  ;;  %v13468_v47 = vld [vmem:[%s16349_s25] ss:$0 sm:$0xff]  ;;  %s16043_s25 = smov 32  }
 0x1bf   : > { %v1872_v30 = vpop.f32.mrf.mxu1 }
 0x1c0   : > { %1914 = vst.msk [vmem:[#allocation8 + $0xe8] sm:$0xff] %vm16032_vm12, %v1872_v30 }
 0x1c2   : > { %v11050_v52 = vpop.f32.mrf.mxu0 }
 0x1c3   : > { %1903 = vst.msk [vmem:[#allocation8 + $0x90] sm:$0xff] %vm16032_vm12, %v11050_v52 }
 0x1c4   : > { %v1821_v44 = vpop.f32.mrf.mxu0  ;;  %v11068_v36 = vpop.f32.mrf.mxu1 }
 0x1c5   : > { %1901 = vst.msk [vmem:[#allocation8 + $0x80] sm:$0xff] %vm16032_vm12, %v1821_v44  ;;  %v2283_v58 = vadd.f32 %v11068_v36, %v2251_v8  ;;  %v2258_v44 = vld [vmem:[#allocation8 + $0x48] sm:$0xff] }
 0x1c6   : > { %v11051_v1 = vpop.f32.mrf.mxu0  ;;  %v2122_v32 = vpop.f32.mrf.mxu1 }
 0x1c7   : > { %1904 = vst.msk [vmem:[#allocation8 + $0x98] sm:$0xff] %vm16032_vm12, %v11051_v1  ;;  %2315 = vst.msk [vmem:[#allocation8 + $0x10] sm:$0xff] %vm16032_vm12, %v2283_v58  ;;  %v2281_v60 = vadd.f32 %v2249_v63, %v2122_v32 }
 0x1c8   : > { %v1824_v28 = vpop.f32.mrf.mxu0  ;;  %v11069_v9 = vpop.f32.mrf.mxu1 }
 0x1c9   : > { %1902 = vst.msk [vmem:[#allocation8 + $0x88] sm:$0xff] %vm16032_vm12, %v1824_v28  ;;  %2313 = vst.msk [vmem:[#allocation8] sm:$0xff] %vm16032_vm12, %v2281_v60  ;;  %v2284_v29 = vadd.f32 %v11069_v9, %v2252_v49  ;;  %v2263_v60 = vld [vmem:[#allocation8 + $0x70] sm:$0xff] }
 0x1ca   : > { %v11054_v37 = vpop.f32.mrf.mxu0  ;;  %v2125_v24 = vpop.f32.mrf.mxu1 }
 0x1cb   : > { %1907 = vst.msk [vmem:[#allocation8 + $0xb0] sm:$0xff] %vm16032_vm12, %v11054_v37  ;;  %2316 = vst.msk [vmem:[#allocation8 + $0x18] sm:$0xff] %vm16032_vm12, %v2284_v29  ;;  %v2282_v6 = vadd.f32 %v2250_v22, %v2125_v24 }
 0x1cc   : > { %v1837_v55 = vpop.f32.mrf.mxu0  ;;  %v11072_v45 = vpop.f32.mrf.mxu1 }
 0x1cd   : > { %1905 = vst.msk [vmem:[#allocation8 + $0xa0] sm:$0xff] %vm16032_vm12, %v1837_v55  ;;  %2314 = vst.msk [vmem:[#allocation8 + $0x8] sm:$0xff] %vm16032_vm12, %v2282_v6  ;;  %v2287_v56 = vadd.f32 %v11072_v45, %v2255_v12  ;;  %v2261_v6 = vld [vmem:[#allocation8 + $0x60] sm:$0xff]  ;;  %v16350_v12 = vmov 0  }
 0x1ce   : > { %v11055_v5 = vpop.f32.mrf.mxu0  ;;  %v2138_v23 = vpop.f32.mrf.mxu1  ;;  %v2679_v25 = vld [vmem:[#allocation8 + $0x10] sm:$0xff]  ;;  %2877 = vst.msk [vmem:[#allocation3 + $0x4] sm:$0xf] %vm16030_vm13, %v16350_v12  ;;  %2878 = vst.msk [vmem:[#allocation3 + $0x8] sm:$0xf] %vm16030_vm13, %v16350_v12 }
 0x1cf   : > { %1908 = vst.msk [vmem:[#allocation8 + $0xb8] sm:$0xff] %vm16032_vm12, %v11055_v5  ;;  %2319 = vst.msk [vmem:[#allocation8 + $0x30] sm:$0xff] %vm16032_vm12, %v2287_v56  ;;  %v2285_v62 = vadd.f32 %v2253_v42, %v2138_v23 }
 0x1d0   : > { %v1840_v39 = vpop.f32.mrf.mxu0  ;;  %v11073_v20 = vpop.f32.mrf.mxu1  ;;  %v2677_v48 = vld [vmem:[#allocation8] sm:$0xff]  ;;  %2879 = vst.msk [vmem:[#allocation3 + $0x8c] sm:$0xf] %vm16030_vm13, %v16350_v12  ;;  %2880 = vst.msk [vmem:[#allocation3 + $0x90] sm:$0xf] %vm16030_vm13, %v16350_v12 }
 0x1d1   : > { %1906 = vst.msk [vmem:[#allocation8 + $0xa8] sm:$0xff] %vm16032_vm12, %v1840_v39  ;;  %2317 = vst.msk [vmem:[#allocation8 + $0x20] sm:$0xff] %vm16032_vm12, %v2285_v62  ;;  %v2288_v50 = vadd.f32 %v11073_v20, %v2256_v33  ;;  %v2264_v20 = vld [vmem:[#allocation8 + $0x78] sm:$0xff] }
 0x1d2   : > { %v11102_v31 = vpop.f32.mrf.mxu0  ;;  %v2141_v16 = vpop.f32.mrf.mxu1  ;;  %v2680_v43 = vld [vmem:[#allocation8 + $0x18] sm:$0xff]  ;;  %5378 = vst.msk [vmem:[#allocation4 + $0x4] sm:$0xf] %vm16030_vm13, %v16350_v12  ;;  %5379 = vst.msk [vmem:[#allocation4 + $0x28] sm:$0xf] %vm16030_vm13, %v16350_v12 }
 0x1d3   : > { %v2711_v3 = vadd.f32 %v11102_v31, %v2679_v25  ;;  %2320 = vst.msk [vmem:[#allocation8 + $0x38] sm:$0xff] %vm16032_vm12, %v2288_v50  ;;  %v2286_v14 = vadd.f32 %v2254_v54, %v2141_v16 }
 0x1d4   : > { %v2550_v4 = vpop.f32.mrf.mxu0  ;;  %v11076_v35 = vpop.f32.mrf.mxu1  ;;  %v2678_v11 = vld [vmem:[#allocation8 + $0x8] sm:$0xff] }
 0x1d5   : > { %2743 = vst.msk [vmem:[#allocation8 + $0x10] sm:$0xff] %vm16032_vm12, %v2711_v3  ;;  %v2709_v46 = vadd.f32 %v2677_v48, %v2550_v4  ;;  %2318 = vst.msk [vmem:[#allocation8 + $0x28] sm:$0xff] %vm16032_vm12, %v2286_v14  ;;  %v2291_v0 = vadd.f32 %v11076_v35, %v2259_v59  ;;  %v2262_v48 = vld [vmem:[#allocation8 + $0x68] sm:$0xff] }
 0x1d6   : > { %v11103_v34 = vpop.f32.mrf.mxu0  ;;  %v2154_v38 = vpop.f32.mrf.mxu1  ;;  %v2683_v21 = vld [vmem:[#allocation8 + $0x30] sm:$0xff] }
 0x1d7   : > { %2741 = vst.msk [vmem:[#allocation8] sm:$0xff] %vm16032_vm12, %v2709_v46  ;;  %v2712_v10 = vadd.f32 %v11103_v34, %v2680_v43  ;;  %2323 = vst.msk [vmem:[#allocation8 + $0x50] sm:$0xff] %vm16032_vm12, %v2291_v0  ;;  %v2289_v19 = vadd.f32 %v2257_v27, %v2154_v38 }
 0x1d8   : > { %v2553_v51 = vpop.f32.mrf.mxu0  ;;  %v11077_v53 = vpop.f32.mrf.mxu1  ;;  %v2681_v58 = vld [vmem:[#allocation8 + $0x20] sm:$0xff] }
 0x1d9   : > { %2744 = vst.msk [vmem:[#allocation8 + $0x18] sm:$0xff] %vm16032_vm12, %v2712_v10  ;;  %v2710_v2 = vadd.f32 %v2678_v11, %v2553_v51  ;;  %2321 = vst.msk [vmem:[#allocation8 + $0x40] sm:$0xff] %vm16032_vm12, %v2289_v19  ;;  %v2292_v15 = vadd.f32 %v11077_v53, %v2260_v41  ;;  %v2267_v11 = vld [vmem:[#allocation8 + $0x90] sm:$0xff] }
 0x1da   : > { %v11106_v7 = vpop.f32.mrf.mxu0  ;;  %v2157_v30 = vpop.f32.mrf.mxu1  ;;  %v2684_v29 = vld [vmem:[#allocation8 + $0x38] sm:$0xff] }
 0x1db   : > { %2742 = vst.msk [vmem:[#allocation8 + $0x8] sm:$0xff] %vm16032_vm12, %v2710_v2  ;;  %v2715_v52 = vadd.f32 %v11106_v7, %v2683_v21  ;;  %2324 = vst.msk [vmem:[#allocation8 + $0x58] sm:$0xff] %vm16032_vm12, %v2292_v15  ;;  %v2290_v36 = vadd.f32 %v2258_v44, %v2157_v30  ;;  %v2265_v2 = vld [vmem:[#allocation8 + $0x80] sm:$0xff] }
 0x1dc   : > { %v2566_v8 = vpop.f32.mrf.mxu0  ;;  %v2775_v1 = vld [vmem:[#allocation8 + $0x10] sm:$0xff]  ;;  %v11080_v63 = vpop.f32.mrf.mxu1  ;;  %v2682_v23 = vld [vmem:[#allocation8 + $0x28] sm:$0xff] }
 0x1dd   : > { %2747 = vst.msk [vmem:[#allocation8 + $0x30] sm:$0xff] %vm16032_vm12, %v2715_v52  ;;  %v2713_v32 = vadd.f32 %v2681_v58, %v2566_v8  ;;  %v2814_v28 = vadd.f32 %v13468_v47, %v2775_v1  ;;  %2322 = vst.msk [vmem:[#allocation8 + $0x48] sm:$0xff] %vm16032_vm12, %v2290_v36  ;;  %v2295_v9 = vadd.f32 %v11080_v63, %v2263_v60 }
 0x1de   : > { %v11107_v49 = vpop.f32.mrf.mxu0  ;;  %v2773_v37 = vld [vmem:[#allocation8] sm:$0xff]  ;;  %v2170_v22 = vpop.f32.mrf.mxu1  ;;  %v2687_v16 = vld [vmem:[#allocation8 + $0x50] sm:$0xff] }
 0x1df   : > { %2745 = vst.msk [vmem:[#allocation8 + $0x20] sm:$0xff] %vm16032_vm12, %v2713_v32  ;;  %v2716_v24 = vadd.f32 %v11107_v49, %v2684_v29  ;;  %v2812_v55 = vadd.f32 %v13468_v47, %v2773_v37  ;;  %v13477_v45 = vmax.f32 %v2814_v28, 0.0  ;;  %2327 = vst.msk [vmem:[#allocation8 + $0x70] sm:$0xff] %vm16032_vm12, %v2295_v9  ;;  %v2293_v56 = vadd.f32 %v2261_v6, %v2170_v22  ;;  %v2268_v32 = vld [vmem:[#allocation8 + $0x98] sm:$0xff] }
 0x1e0   : > { %v2569_v5 = vpop.f32.mrf.mxu0  ;;  %v2776_v42 = vld [vmem:[#allocation8 + $0x18] sm:$0xff]  ;;  %v11081_v39 = vpop.f32.mrf.mxu1  ;;  %v2685_v34 = vld [vmem:[#allocation8 + $0x40] sm:$0xff] }
 0x1e1   : > { %2748 = vst.msk [vmem:[#allocation8 + $0x38] sm:$0xff] %vm16032_vm12, %v2716_v24  ;;  %v2714_v62 = vadd.f32 %v2682_v23, %v2569_v5  ;;  %v13493_v33 = vmax.f32 %v2812_v55, 0.0  ;;  %v2915_v50 = vsel %vm12547_vm2, 0.0, %v13477_v45  ;;  %v2815_v31 = vadd.f32 %v13468_v47, %v2776_v42  ;;  %2325 = vst.msk [vmem:[#allocation8 + $0x60] sm:$0xff] %vm16032_vm12, %v2293_v56 }
 0x1e2   : > { %v2296_v25 = vadd.f32 %v11081_v39, %v2264_v20  ;;  %v11110_v3 = vpop.f32.mrf.mxu0  ;;  %v2774_v54 = vld [vmem:[#allocation8 + $0x8] sm:$0xff]  ;;  %v2173_v4 = vpop.f32.mrf.mxu1  ;;  %v3108_v10 = vrot.slane %v2915_v50, 1  ;;  %v2980_v27 = vrot.slane %v13477_v45, 7  ;;  %v2688_v21 = vld [vmem:[#allocation8 + $0x58] sm:$0xff] }
 0x1e3   : > { %2746 = vst.msk [vmem:[#allocation8 + $0x28] sm:$0xff] %vm16032_vm12, %v2714_v62  ;;  %v2719_v14 = vadd.f32 %v11110_v3, %v2687_v16  ;;  %v2813_v46 = vadd.f32 %v13468_v47, %v2774_v54  ;;  %v2913_v18 = vsel %vm12532_vm0, 0.0, %v13493_v33  ;;  %v13505_v35 = vmax.f32 %v2815_v31, 0.0  ;;  %v11932_v31 = vld [vmem:[%s16348_s30 + $0x8] sm:$0xff]  }
 0x1e4   : > { %2328 = vst.msk [vmem:[#allocation8 + $0x78] sm:$0xff] %vm16032_vm12, %v2296_v25  ;;  %v2294_v59 = vadd.f32 %v2262_v48, %v2173_v4  ;;  %v2582_v0 = vpop.f32.mrf.mxu0  ;;  %v3105_v43 = vrot.slane %v2913_v18, 1  ;;  %v2779_v38 = vld [vmem:[#allocation8 + $0x30] sm:$0xff]  ;;  %v11084_v51 = vpop.f32.mrf.mxu1  ;;  %v16028_v41 = vrot.slane %v13493_v33, 7  ;;  %v2686_v1 = vld [vmem:[#allocation8 + $0x48] sm:$0xff]  ;;  %vm16351_vm0 = vcmask 1046528   ;;  %11134 = vmatprep.subr.bf16.mxu1 %v11932_v31 }
 0x1e5   : > { %2751 = vst.msk [vmem:[#allocation8 + $0x50] sm:$0xff] %vm16032_vm12, %v2719_v14  ;;  %v2717_v19 = vadd.f32 %v2685_v34, %v2582_v0  ;;  %v2845_v13 = vmax.f32 %v2813_v46, 0.0  ;;  %v11650_v53 = vpack.i.bf16 %v13505_v35, %v13477_v45  ;;  %v2299_v15 = vadd.f32 %v11084_v51, %v2267_v11  ;;  %vm16353_vm2 = vmmov %vm16351_vm0  ;;  %v11933_v25 = vld [vmem:[%s16348_s30 + $0x28] sm:$0xff]   ;;  %11135 = vmatpush3.bf16.msra.mxu1 %v11932_v31 }
 0x1e6   : > { %2326 = vst.msk [vmem:[#allocation8 + $0x68] sm:$0xff] %vm16032_vm12, %v2294_v59  ;;  %v11111_v7 = vpop.f32.mrf.mxu0  ;;  %v2884_v52 = vsel %vm12543_vm1, 0.0, %v13505_v35  ;;  %v2777_v30 = vld [vmem:[#allocation8 + $0x20] sm:$0xff]  ;;  %v3110_v44 = vrot.slane %v13505_v35, 1  ;;  %v2818_v36 = vadd.f32 %v13468_v47, %v2779_v38  ;;  %v2186_v58 = vpop.f32.mrf.mxu1  ;;  %v2691_v6 = vld [vmem:[#allocation8 + $0x70] sm:$0xff]  ;;  %vm16352_vm1 = vmmov %vm16351_vm0  ;;  %11170 = vmatprep.subr.bf16.mxu0 %v11933_v25 }
 0x1e7   : > { %2749 = vst.msk [vmem:[#allocation8 + $0x40] sm:$0xff] %vm16032_vm12, %v2717_v19  ;;  %v2720_v8 = vadd.f32 %v11111_v7, %v2688_v21  ;;  %v11645_v63 = vpack.i.bf16 %v2845_v13, %v13493_v33  ;;  %v2882_v60 = vsel %vm12565_vm4, 0.0, %v2845_v13  ;;  %v3106_v28 = vrot.slane %v2845_v13, 1  ;;  %2331 = vst.msk [vmem:[#allocation8 + $0x90] sm:$0xff] %vm16032_vm12, %v2299_v15  ;;  %v2266_v54 = vld [vmem:[#allocation8 + $0x88] sm:$0xff]  ;;  %v2271_v19 = vld [vmem:[#allocation8 + $0xb0] sm:$0xff]  ;;  %11171 = vmatpush3.bf16.msra.mxu0 %v11933_v25 }
 0x1e8   : > { %v2297_v17 = vadd.f32 %v2265_v2, %v2186_v58  ;;  %v2585_v9 = vpop.f32.mrf.mxu0  ;;  %v2816_v49 = vadd.f32 %v13468_v47, %v2777_v30  ;;  %v13528_v29 = vsel %vm16351_vm0, %v3108_v10, %v3110_v44  ;;  %v2780_v37 = vld [vmem:[#allocation8 + $0x38] sm:$0xff]  ;;  %v13530_v24 = vmax.f32 %v2818_v36, 0.0  ;;  %v11085_v26 = vpop.f32.mrf.mxu1  ;;  %v2689_v18 = vld [vmem:[#allocation8 + $0x60] sm:$0xff]  ;;  %vm16354_vm4 = vmmov %vm16351_vm0 }
 0x1e9   : > { %2752 = vst.msk [vmem:[#allocation8 + $0x58] sm:$0xff] %vm16032_vm12, %v2720_v8  ;;  %v2718_v22 = vadd.f32 %v2686_v1, %v2585_v9  ;;  %11646 = vrot.lane.b32.xlu0 %v11645_v63, %s12319_s26  ;;  %v3107_v55 = vsel %vm16352_vm1, %v3105_v43, %v3106_v28  ;;  %v3109_v56 = vsel %vm16353_vm2, %v3106_v28, %v3108_v10  ;;  %v13560_v34 = vrot.slane %v2882_v60, 7  ;;  %v11934_v2 = vld [vmem:[%s16348_s30] sm:$0xff]   ;;  %vm16358_vm15 = vmmov %vm16351_vm0 }
 0x1ea   : > { %v2819_v5 = vadd.f32 %v13468_v47, %v2780_v37  ;;  %2329 = vst.msk [vmem:[#allocation8 + $0x80] sm:$0xff] %vm16032_vm12, %v2297_v17  ;;  %v2300_v23 = vadd.f32 %v11085_v26, %v2268_v32  ;;  %v11114_v42 = vpop.f32.mrf.mxu0  ;;  %v11655_v62 = vpack.i.bf16 %v3109_v56, %v3107_v55  ;;  %v13538_v39 = vmax.f32 %v2816_v49, 0.0  ;;  %v2778_v20 = vld [vmem:[#allocation8 + $0x28] sm:$0xff]  ;;  %v2189_v16 = vpop.f32.mrf.mxu1  ;;  %v11935_v13 = vld [vmem:[%s16348_s30 + $0x20] sm:$0xff]   ;;  %11136 = vmatprep.subr.bf16.mxu1 %v11934_v2  ;;  %v2272_v55 = vld [vmem:[#allocation8 + $0xb8] sm:$0xff] }
 0x1eb   : > { %v2919_v50 = vsel %vm12619_vm7, 0.0, %v13530_v24  ;;  %2750 = vst.msk [vmem:[#allocation8 + $0x48] sm:$0xff] %vm16032_vm12, %v2718_v22  ;;  %v2723_v3 = vadd.f32 %v11114_v42, %v2691_v6  ;;  %v2817_v14 = vadd.f32 %v13468_v47, %v2778_v20  ;;  %v2298_v57 = vadd.f32 %v2266_v54, %v2189_v16  ;;  %v2269_v1 = vld [vmem:[#allocation8 + $0xa0] sm:$0xff]  ;;  %11172 = vmatprep.subr.bf16.mxu0 %v11935_v13  ;;  %vm16357_vm7 = vmmov %vm16351_vm0 }
 0x1ec   : > { %v13551_v4 = vmax.f32 %v2819_v5, 0.0  ;;  %v13553_v48 = vrot.slane %v2919_v50, 1  ;;  %2332 = vst.msk [vmem:[#allocation8 + $0x98] sm:$0xff] %vm16032_vm12, %v2300_v23  ;;  %11656 = vrot.lane.b32.xlu1 %v11655_v62, %s16043_s25  ;;  %v2598_v46 = vpop.f32.mrf.mxu0  ;;  %v2917_v59 = vsel %vm12590_vm6, 0.0, %v13538_v39  ;;  %v2783_v0 = vld [vmem:[#allocation8 + $0x50] sm:$0xff]  ;;  %v13562_v43 = vrot.slane %v2884_v52, 7  ;;  %v11088_v38 = vpop.f32.mrf.mxu1  ;;  %11137 = vmatpush3.bf16.msra.mxu1 %v11934_v2  ;;  %vm16359_vm14 = vmmov %vm16351_vm0 }
 0x1ed   : > { %2755 = vst.msk [vmem:[#allocation8 + $0x70] sm:$0xff] %vm16032_vm12, %v2723_v3  ;;  %v2721_v10 = vadd.f32 %v2689_v18, %v2598_v46  ;;  %11651 = vrot.lane.b32.xlu0 %v11650_v53, %s12319_s26  ;;  %v3112_v51 = vrot.slane %v2917_v59, 1  ;;  %v13569_v11 = vmax.f32 %v2817_v14, 0.0  ;;  %2330 = vst.msk [vmem:[#allocation8 + $0x88] sm:$0xff] %vm16032_vm12, %v2298_v57  ;;  %v2303_v15 = vadd.f32 %v11088_v38, %v2271_v19  ;;  %v2692_v53 = vld [vmem:[#allocation8 + $0x78] sm:$0xff]  ;;  %v16355_v60 = vld [vmem:[#allocation31_spill] sm:$0xff] }
 0x1ee   : > { %v11670_v40 = vpack.i.bf16 %v13551_v4, %v13530_v24  ;;  %v11115_v7 = vpop.f32.mrf.mxu0  ;;  %v2888_v21 = vsel %vm12626_vm8, 0.0, %v13551_v4  ;;  %v2781_v52 = vld [vmem:[#allocation8 + $0x40] sm:$0xff]  ;;  %v3118_v30 = vrot.slane %v13551_v4, 1  ;;  %v2822_v36 = vadd.f32 %v13468_v47, %v2783_v0  ;;  %v2202_v58 = vpop.f32.mrf.mxu1  ;;  %v2690_v49 = vld [vmem:[#allocation8 + $0x68] sm:$0xff]  ;;  %v2695_v62 = vld [vmem:[#allocation8 + $0x90] sm:$0xff]  ;;  %11173 = vmatpush3.bf16.msra.mxu0 %v11935_v13 }
 0x1ef   : > { %2753 = vst.msk [vmem:[#allocation8 + $0x60] sm:$0xff] %vm16032_vm12, %v2721_v10  ;;  %v2724_v8 = vadd.f32 %v11115_v7, %v2692_v53  ;;  %v3113_v32 = vsel %vm16354_vm4, %v3110_v44, %v3112_v51  ;;  %v11660_v63 = vpack.i.bf16 %v13569_v11, %v13538_v39  ;;  %vm16356_vm6 = vnez %v16355_v60  ;;  %2335 = vst.msk [vmem:[#allocation8 + $0xb0] sm:$0xff] %vm16032_vm12, %v2303_v15  ;;  %v11939_v3 = vld [vmem:[%s16348_s30 + $0x18] sm:$0xff]   ;;  %v2270_v14 = vld [vmem:[#allocation8 + $0xa8] sm:$0xff] }
 0x1f0   : > { %v2886_v28 = vsel %vm16356_vm6, 0.0, %v13569_v11  ;;  %v2301_v17 = vadd.f32 %v2269_v1, %v2202_v58  ;;  %v2601_v9 = vpop.f32.mrf.mxu0  ;;  %v11665_v37 = vpack.i.bf16 %v3113_v32, %v13528_v29  ;;  %v3114_v35 = vrot.slane %v13569_v11, 1  ;;  %v2784_v22 = vld [vmem:[#allocation8 + $0x58] sm:$0xff]  ;;  %v11089_v6 = vpop.f32.mrf.mxu1  ;;  %11174 = vmatprep.subr.bf16.mxu0 %v11939_v3  ;;  %v2275_v7 = vld [vmem:[#allocation8 + $0xd0] sm:$0xff]  ;;  %v16365_v32 = vld [vmem:[#allocation39_spill] sm:$0xff] }
 0x1f1   : > { %v2820_v44 = vadd.f32 %v13468_v47, %v2781_v52  ;;  %2756 = vst.msk [vmem:[#allocation8 + $0x78] sm:$0xff] %vm16032_vm12, %v2724_v8  ;;  %v2722_v26 = vadd.f32 %v2690_v49, %v2601_v9  ;;  %11661 = vrot.lane.b32.xlu1 %v11660_v63, %s12319_s26  ;;  %v13604_v56 = vsel %vm16357_vm7, %v13553_v48, %v3118_v30  ;;  %v13607_v5 = vmax.f32 %v2822_v36, 0.0  ;;  %v2693_v0 = vld [vmem:[#allocation8 + $0x80] sm:$0xff]  ;;  %v16360_v10 = vld [vmem:[#allocation33_spill] sm:$0xff]  ;;  %vm16367_vm9 = vmmov %vm16351_vm0 }
 0x1f2   : > { %v2823_v29 = vadd.f32 %v13468_v47, %v2784_v22  ;;  %2333 = vst.msk [vmem:[#allocation8 + $0xa0] sm:$0xff] %vm16032_vm12, %v2301_v17  ;;  %v2304_v23 = vadd.f32 %v11089_v6, %v2272_v55  ;;  %11666 = vrot.lane.b32.xlu0 %v11665_v37, %s16043_s25  ;;  %v11118_v42 = vpop.f32.mrf.mxu0  ;;  %v3115_v20 = vsel %vm16358_vm15, %v3112_v51, %v3114_v35  ;;  %v2782_v25 = vld [vmem:[#allocation8 + $0x48] sm:$0xff]  ;;  %v2205_v54 = vpop.f32.mrf.mxu1  ;;  %v16362_v19 = vld [vmem:[#allocation34_spill] sm:$0xff]  ;;  %vm16370_vm2 = vmmov %vm16352_vm1 }
 0x1f3   : > { %v3117_v50 = vsel %vm16359_vm14, %v3114_v35, %v13553_v48  ;;  %v13614_v31 = vmax.f32 %v2820_v44, 0.0  ;;  %2754 = vst.msk [vmem:[#allocation8 + $0x68] sm:$0xff] %vm16032_vm12, %v2722_v26  ;;  %v2727_v16 = vadd.f32 %v11118_v42, %v2695_v62  ;;  %v2821_v46 = vadd.f32 %v13468_v47, %v2782_v25  ;;  %v2696_v1 = vld [vmem:[#allocation8 + $0x98] sm:$0xff]  ;;  %v2273_v22 = vld [vmem:[#allocation8 + $0xc0] sm:$0xff]  ;;  %v16368_v6 = vld [vmem:[#allocation32_spill] sm:$0xff]  ;;  %11175 = vmatpush3.bf16.msra.mxu0 %v11939_v3 }
 0x1f4   : > { %v11675_v57 = vpack.i.bf16 %v3117_v50, %v3115_v20  ;;  %v13621_v18 = vmax.f32 %v2823_v29, 0.0  ;;  %2336 = vst.msk [vmem:[#allocation8 + $0xb8] sm:$0xff] %vm16032_vm12, %v2304_v23  ;;  %v2302_v48 = vadd.f32 %v2270_v14, %v2205_v54  ;;  %v2614_v59 = vpop.f32.mrf.mxu0  ;;  %vm16361_vm11 = vnez %v16360_v10  ;;  %v11092_v15 = vpop.f32.mrf.mxu1  ;;  %v2787_v37 = vld [vmem:[#allocation8 + $0x70] sm:$0xff]  ;;  %v2694_v42 = vld [vmem:[#allocation8 + $0x88] sm:$0xff]  ;;  %v2276_v54 = vld [vmem:[#allocation8 + $0xd8] sm:$0xff] }
 0x1f5   : > { %v2921_v38 = vsel %vm16361_vm11, 0.0, %v13614_v31  ;;  %vm16363_vm3 = vnez %v16362_v19  ;;  %v13634_v2 = vsel %vm16364_vm10, %v16028_v41, %v13560_v34  ;;  %2759 = vst.msk [vmem:[#allocation8 + $0x90] sm:$0xff] %vm16032_vm12, %v2727_v16  ;;  %v2725_v13 = vadd.f32 %v2693_v0, %v2614_v59  ;;  %vm16371_vm4 = vmmov %vm16352_vm1  ;;  %v16400_v60 = vld [vmem:[#allocation38_spill] sm:$0xff] }
 0x1f6   : > { %v2923_v51 = vsel %vm16363_vm3, 0.0, %v13607_v5  ;;  %11676 = vrot.lane.b32.xlu1 %v11675_v57, %s16043_s25  ;;  %v3120_v53 = vrot.slane %v2921_v38, 1  ;;  %v13638_v52 = vmax.f32 %v2821_v46, 0.0  ;;  %v11690_v36 = vpack.i.bf16 %v13621_v18, %v13607_v5  ;;  %2334 = vst.msk [vmem:[#allocation8 + $0xa8] sm:$0xff] %vm16032_vm12, %v2302_v48  ;;  %11671 = vrot.lane.b32.xlu0 %v11670_v40, %s12319_s26  ;;  %v11119_v58 = vpop.f32.mrf.mxu0  ;;  %v2785_v9 = vld [vmem:[#allocation8 + $0x60] sm:$0xff]  ;;  %v2218_v44 = vpop.f32.mrf.mxu1  ;;  %v2699_v48 = vld [vmem:[#allocation8 + $0xb0] sm:$0xff]  ;;  %vm16374_vm15 = vmmov %vm16364_vm10 }
 0x1f7   : > { %v2307_v8 = vadd.f32 %v11092_v15, %v2275_v7  ;;  %vm16366_vm5 = vnez %v16365_v32  ;;  %v3124_v17 = vrot.slane %v2923_v51, 1  ;;  %v3126_v49 = vrot.slane %v13621_v18, 1  ;;  %2757 = vst.msk [vmem:[#allocation8 + $0x80] sm:$0xff] %vm16032_vm12, %v2725_v13  ;;  %v2274_v13 = vld [vmem:[#allocation8 + $0xc8] sm:$0xff]  ;;  %vm16379_vm3 = vmmov %vm16352_vm1 }
 0x1f8   : > { %v2728_v35 = vadd.f32 %v11119_v58, %v2696_v1  ;;  %v3121_v40 = vsel %vm16367_vm9, %v3118_v30, %v3120_v53  ;;  %v11680_v26 = vpack.i.bf16 %v13638_v52, %v13614_v31  ;;  %vm16369_vm0 = vnez %v16368_v6  ;;  %v2617_v23 = vpop.f32.mrf.mxu0  ;;  %v2788_v30 = vld [vmem:[#allocation8 + $0x78] sm:$0xff]  ;;  %v11093_v16 = vpop.f32.mrf.mxu1  ;;  %vm16382_vm9 = vmmov %vm16352_vm1 }
 0x1f9   : > { %v2890_v55 = vsel %vm16369_vm0, 0.0, %v13638_v52  ;;  %2339 = vst.msk [vmem:[#allocation8 + $0xd0] sm:$0xff] %vm16032_vm12, %v2307_v8  ;;  %v2305_v29 = vadd.f32 %v2273_v22, %v2218_v44  ;;  %v11685_v62 = vpack.i.bf16 %v3121_v40, %v13604_v56  ;;  %v3122_v20 = vrot.slane %v13638_v52, 1  ;;  %v2279_v40 = vld [vmem:[#allocation8 + $0xf0] sm:$0xff]  ;;  %vm16402_vm6 = vmmov %vm16352_vm1 }
 0x1fa   : > { %v2824_v50 = vadd.f32 %v13468_v47, %v2785_v9  ;;  %2760 = vst.msk [vmem:[#allocation8 + $0x98] sm:$0xff] %vm16032_vm12, %v2728_v35  ;;  %v2726_v25 = vadd.f32 %v2694_v42, %v2617_v23  ;;  %11681 = vrot.lane.b32.xlu1 %v11680_v26, %s12319_s26  ;;  %v13669_v3 = vsel %vm16352_vm1, %v3124_v17, %v3126_v49  ;;  %v11122_v46 = vpop.f32.mrf.mxu0  ;;  %v2786_v38 = vld [vmem:[#allocation8 + $0x68] sm:$0xff]  ;;  %v2221_v51 = vpop.f32.mrf.mxu1  ;;  %v2996_v6 = vrot.slane %v13607_v5, 7 }
 0x1fb   : > { %v2826_v14 = vadd.f32 %v13468_v47, %v2787_v37  ;;  %v2827_v56 = vadd.f32 %v13468_v47, %v2788_v30  ;;  %2337 = vst.msk [vmem:[#allocation8 + $0xc0] sm:$0xff] %vm16032_vm12, %v2305_v29  ;;  %v2308_v57 = vadd.f32 %v11093_v16, %v2276_v54  ;;  %11686 = vrot.lane.b32.xlu0 %v11685_v62, %s16043_s25  ;;  %v16375_v23 = vld [vmem:[#allocation43_spill] sm:$0xff]  ;;  %v16431_v5 = vsel %vm16366_vm5, 0.0, %v13621_v18 }
 0x1fc   : > { %v3123_v59 = vsel %vm16370_vm2, %v3120_v53, %v3122_v20  ;;  %v3125_v0 = vsel %vm16371_vm4, %v3122_v20, %v3124_v17  ;;  %v13677_v10 = vmax.f32 %v2824_v50, 0.0  ;;  %2758 = vst.msk [vmem:[#allocation8 + $0x88] sm:$0xff] %vm16032_vm12, %v2726_v25  ;;  %v2731_v19 = vadd.f32 %v11122_v46, %v2699_v48  ;;  %v2630_v1 = vpop.f32.mrf.mxu0  ;;  %v2697_v53 = vld [vmem:[#allocation8 + $0xa0] sm:$0xff]  ;;  %v16372_v17 = vld [vmem:[#allocation41_spill] sm:$0xff]  ;;  %v11096_v22 = vpop.f32.mrf.mxu1  ;;  %vm16383_vm2 = vmmov %vm16352_vm1 }
 0x1fd   : > { %v11695_v15 = vpack.i.bf16 %v3125_v0, %v3123_v59  ;;  %v2825_v7 = vadd.f32 %v13468_v47, %v2786_v38  ;;  %v13681_v8 = vmax.f32 %v2826_v14, 0.0  ;;  %2340 = vst.msk [vmem:[#allocation8 + $0xd8] sm:$0xff] %vm16032_vm12, %v2308_v57  ;;  %v2306_v58 = vadd.f32 %v2274_v13, %v2221_v51  ;;  %v2700_v50 = vld [vmem:[#allocation8 + $0xb8] sm:$0xff]  ;;  %v16377_v25 = vld [vmem:[#allocation47_spill] sm:$0xff]  ;;  %v16380_v0 = vld [vmem:[#allocation40_spill] sm:$0xff] }
 0x1fe   : > { %vm16373_vm7 = vnez %v16372_v17  ;;  %v13687_v37 = vmax.f32 %v2827_v56, 0.0  ;;  %v13693_v35 = vsel %vm16374_vm15, %v2980_v27, %v13562_v43  ;;  %2763 = vst.msk [vmem:[#allocation8 + $0xb0] sm:$0xff] %vm16032_vm12, %v2731_v19  ;;  %v2729_v44 = vadd.f32 %v2697_v53, %v2630_v1  ;;  %v11123_v20 = vpop.f32.mrf.mxu0  ;;  %v2789_v14 = vld [vmem:[#allocation8 + $0x80] sm:$0xff]  ;;  %v2791_v56 = vld [vmem:[#allocation8 + $0x90] sm:$0xff]  ;;  %v2234_v46 = vpop.f32.mrf.mxu1  ;;  %v2698_v13 = vld [vmem:[#allocation8 + $0xa8] sm:$0xff] }
 0x1ff   : > { %v2925_v9 = vsel %vm16373_vm7, 0.0, %v13677_v10  ;;  %11696 = vrot.lane.b32.xlu1 %v11695_v15, %s16043_s25  ;;  %v13697_v29 = vmax.f32 %v2825_v7, 0.0  ;;  %vm16376_vm14 = vnez %v16375_v23  ;;  %2338 = vst.msk [vmem:[#allocation8 + $0xc8] sm:$0xff] %vm16032_vm12, %v2306_v58  ;;  %v2311_v62 = vadd.f32 %v11096_v22, %v2279_v40  ;;  %11691 = vrot.lane.b32.xlu0 %v11690_v36, %s12319_s26  ;;  %v2277_v48 = vld [vmem:[#allocation8 + $0xe0] sm:$0xff]  ;;  %v2280_v17 = vld [vmem:[#allocation8 + $0xf8] sm:$0xff] }
 0x200   : > { %v3128_v26 = vrot.slane %v2925_v9, 1  ;;  %v2927_v42 = vsel %vm16376_vm14, 0.0, %v13681_v8  ;;  %v11710_v30 = vpack.i.bf16 %v13687_v37, %v13681_v8  ;;  %vm16378_vm11 = vnez %v16377_v25  ;;  %2761 = vst.msk [vmem:[#allocation8 + $0xa0] sm:$0xff] %vm16032_vm12, %v2729_v44  ;;  %v2633_v51 = vpop.f32.mrf.mxu0  ;;  %v11097_v53 = vpop.f32.mrf.mxu1  ;;  %v2703_v23 = vld [vmem:[#allocation8 + $0xd0] sm:$0xff]  ;;  %vm16390_vm14 = vmmov %vm16352_vm1  ;;  %v11936_v38 = vld [vmem:[#allocation3 + $0x4] sm:$0xff]  }
 0x201   : > { %v3132_v54 = vrot.slane %v2927_v42, 1  ;;  %v2732_v57 = vadd.f32 %v11123_v20, %v2700_v50  ;;  %v11700_v59 = vpack.i.bf16 %v13697_v29, %v13677_v10  ;;  %vm16381_vm10 = vnez %v16380_v0  ;;  %2343 = vst.msk [vmem:[#allocation8 + $0xf0] sm:$0xff] %vm16032_vm12, %v2311_v62  ;;  %v2792_v1 = vld [vmem:[#allocation8 + $0x98] sm:$0xff] }
 0x202   : > { %v3129_v36 = vsel %vm16379_vm3, %v3126_v49, %v3128_v26  ;;  %v2309_v19 = vadd.f32 %v2277_v48, %v2234_v46  ;;  %v3130_v7 = vrot.slane %v13697_v29, 1  ;;  %v2828_v58 = vadd.f32 %v13468_v47, %v2789_v14  ;;  %v11126_v40 = vpop.f32.mrf.mxu0 }
 0x203   : > { %v11705_v15 = vpack.i.bf16 %v3129_v36, %v13669_v3  ;;  %2764 = vst.msk [vmem:[#allocation8 + $0xb8] sm:$0xff] %vm16032_vm12, %v2732_v57  ;;  %v2730_v49 = vadd.f32 %v2698_v13, %v2633_v51  ;;  %11701 = vrot.lane.b32.xlu1 %v11700_v59, %s12319_s26  ;;  %v3134_v9 = vrot.slane %v13687_v37, 1  ;;  %v2830_v44 = vadd.f32 %v13468_v47, %v2791_v56  ;;  %v2790_v50 = vld [vmem:[#allocation8 + $0x88] sm:$0xff]  ;;  %v2237_v56 = vpop.f32.mrf.mxu1  ;;  %v16384_v51 = vld [vmem:[#allocation49_spill] sm:$0xff] }
 0x204   : > { %v2831_v22 = vadd.f32 %v13468_v47, %v2792_v1  ;;  %2341 = vst.msk [vmem:[#allocation8 + $0xe0] sm:$0xff] %vm16032_vm12, %v2309_v19  ;;  %v2312_v3 = vadd.f32 %v11097_v53, %v2280_v17  ;;  %v3131_v42 = vsel %vm16382_vm9, %v3128_v26, %v3130_v7  ;;  %v3133_v62 = vsel %vm16352_vm1, %v3130_v7, %v3132_v54  ;;  %v2278_v57 = vld [vmem:[#allocation8 + $0xe8] sm:$0xff]  ;;  %v2646_v19 = vpop.f32.mrf.mxu0  ;;  %v2701_v26 = vld [vmem:[#allocation8 + $0xc0] sm:$0xff] }
 0x205   : > { %11706 = vrot.lane.b32.xlu0 %v11705_v15, %s16043_s25  ;;  %v13734_v20 = vmax.f32 %v2828_v58, 0.0  ;;  %2762 = vst.msk [vmem:[#allocation8 + $0xa8] sm:$0xff] %vm16032_vm12, %v2730_v49  ;;  %v2735_v14 = vadd.f32 %v11126_v40, %v2703_v23  ;;  %v11715_v46 = vpack.i.bf16 %v3133_v62, %v3131_v42  ;;  %v3135_v48 = vsel %vm16383_vm2, %v3132_v54, %v3134_v9  ;;  %v2795_v58 = vld [vmem:[#allocation8 + $0xb0] sm:$0xff]  ;;  %v16388_v23 = vld [vmem:[#allocation51_spill] sm:$0xff]  ;;  %vm16394_vm2 = vmmov %vm16352_vm1 }
 0x206   : > { %v2829_v36 = vadd.f32 %v13468_v47, %v2790_v50  ;;  %2344 = vst.msk [vmem:[#allocation8 + $0xf8] sm:$0xff] %vm16032_vm12, %v2312_v3  ;;  %v2310_v59 = vadd.f32 %v2278_v57, %v2237_v56  ;;  %vm16385_vm4 = vnez %v16384_v51  ;;  %v13743_v15 = vmax.f32 %v2830_v44, 0.0  ;;  %v11127_v17 = vpop.f32.mrf.mxu0  ;;  %v2704_v44 = vld [vmem:[#allocation8 + $0xd8] sm:$0xff]  ;;  %v16391_v57 = vld [vmem:[#allocation48_spill] sm:$0xff] }
 0x207   : > { %v2929_v13 = vsel %vm16385_vm4, 0.0, %v13734_v20  ;;  %v13745_v7 = vmax.f32 %v2831_v22, 0.0  ;;  %2767 = vst.msk [vmem:[#allocation8 + $0xd0] sm:$0xff] %vm16032_vm12, %v2735_v14  ;;  %v2733_v1 = vadd.f32 %v2701_v26, %v2646_v19  ;;  %11716 = vrot.lane.b32.xlu1 %v11715_v46, %s16043_s25  ;;  %v2834_v53 = vadd.f32 %v13468_v47, %v2795_v58  ;;  %v16386_v3 = vld [vmem:[#allocation54_spill] sm:$0xff]  ;;  %vm16395_vm4 = vmmov %vm16352_vm1 }
 0x208   : > { %v3136_v54 = vrot.slane %v2929_v13, 1  ;;  %v13749_v49 = vmax.f32 %v2829_v36, 0.0  ;;  %2342 = vst.msk [vmem:[#allocation8 + $0xe8] sm:$0xff] %vm16032_vm12, %v2310_v59  ;;  %vm16387_vm7 = vnez %v16386_v3  ;;  %vm16389_vm15 = vnez %v16388_v23  ;;  %v2793_v62 = vld [vmem:[#allocation8 + $0xa0] sm:$0xff]  ;;  %v2649_v36 = vpop.f32.mrf.mxu0  ;;  %v2702_v59 = vld [vmem:[#allocation8 + $0xc8] sm:$0xff]  ;;  %v2707_v23 = vld [vmem:[#allocation8 + $0xf0] sm:$0xff] }
 0x209   : > { %11711 = vrot.lane.b32.xlu0 %v11710_v30, %s12319_s26  ;;  %v11730_v22 = vpack.i.bf16 %v13745_v7, %v13743_v15  ;;  %v2931_v42 = vsel %vm16389_vm15, 0.0, %v13743_v15  ;;  %v3142_v50 = vrot.slane %v13745_v7, 1  ;;  %2765 = vst.msk [vmem:[#allocation8 + $0xc0] sm:$0xff] %vm16032_vm12, %v2733_v1  ;;  %v2736_v14 = vadd.f32 %v11127_v17, %v2704_v44 }
 0x20a   : > { %v3137_v30 = vsel %vm16390_vm14, %v3134_v9, %v3136_v54  ;;  %v11720_v56 = vpack.i.bf16 %v13749_v49, %v13734_v20  ;;  %vm16392_vm3 = vnez %v16391_v57  ;;  %v3138_v26 = vrot.slane %v13749_v49, 1  ;;  %v2796_v58 = vld [vmem:[#allocation8 + $0xb8] sm:$0xff]  ;;  %v11130_v44 = vpop.f32.mrf.mxu0 }
 0x20b   : > { %v11725_v19 = vpack.i.bf16 %v3137_v30, %v3135_v48  ;;  %v3140_v51 = vrot.slane %v2931_v42, 1  ;;  %v2832_v13 = vadd.f32 %v13468_v47, %v2793_v62  ;;  %2768 = vst.msk [vmem:[#allocation8 + $0xd8] sm:$0xff] %vm16032_vm12, %v2736_v14  ;;  %v2734_v1 = vadd.f32 %v2702_v59, %v2649_v36  ;;  %v2705_v59 = vld [vmem:[#allocation8 + $0xe0] sm:$0xff] }
 0x20c   : > { %11721 = vrot.lane.b32.xlu1 %v11720_v56, %s12319_s26  ;;  %v2835_v9 = vadd.f32 %v13468_v47, %v2796_v58  ;;  %v13775_v17 = vmax.f32 %v2834_v53, 0.0  ;;  %vm16393_vm9 = vcmask 1040384   ;;  %v3139_v42 = vsel %vm16352_vm1, %v3136_v54, %v3138_v26  ;;  %v2794_v53 = vld [vmem:[#allocation8 + $0xa8] sm:$0xff]  ;;  %v2662_v36 = vpop.f32.mrf.mxu0 }
 0x20d   : > { %v13781_v48 = vsel %vm16393_vm9, %v13560_v34, %v2980_v27  ;;  %11726 = vrot.lane.b32.xlu0 %v11725_v19, %s16043_s25  ;;  %v3141_v62 = vsel %vm16394_vm2, %v3138_v26, %v3140_v51  ;;  %v13786_v14 = vmax.f32 %v2832_v13, 0.0  ;;  %v3143_v30 = vsel %vm16395_vm4, %v3140_v51, %v3142_v50  ;;  %2766 = vst.msk [vmem:[#allocation8 + $0xc8] sm:$0xff] %vm16032_vm12, %v2734_v1  ;;  %v16396_v19 = vld [vmem:[#allocation52_spill] sm:$0xff]  ;;  %v16398_v26 = vld [vmem:[#allocation37_spill] sm:$0xff] }
 0x20e   : > { %v2739_v45 = vadd.f32 %v11130_v44, %v2707_v23  ;;  %v11735_v56 = vpack.i.bf16 %v3141_v62, %v3139_v42  ;;  %v2833_v27 = vadd.f32 %v13468_v47, %v2794_v53  ;;  %v13791_v34 = vmax.f32 %v2835_v9, 0.0  ;;  %v2799_v51 = vld [vmem:[#allocation8 + $0xd0] sm:$0xff]  ;;  %v11131_v62 = vpop.f32.mrf.mxu0 }
 0x20f   : > { %vm16397_vm15 = vnez %v16396_v19  ;;  %vm16399_vm14 = vnez %v16398_v26  ;;  %v2984_v58 = vrot.slane %v13538_v39, 7  ;;  %v2986_v1 = vrot.slane %v2886_v28, 7  ;;  %v2708_v39 = vld [vmem:[#allocation8 + $0xf8] sm:$0xff]  ;;  %v2706_v26 = vld [vmem:[#allocation8 + $0xe8] sm:$0xff] }
 0x210   : > { %v2933_v54 = vsel %vm16397_vm15, 0.0, %v13786_v14  ;;  %v2935_v13 = vsel %vm16399_vm14, 0.0, %v13775_v17  ;;  %2771 = vst.msk [vmem:[#allocation8 + $0xf0] sm:$0xff] %vm16032_vm12, %v2739_v45  ;;  %v2737_v9 = vadd.f32 %v2705_v59, %v2662_v36  ;;  %11736 = vrot.lane.b32.xlu1 %v11735_v56, %s16043_s25  ;;  %v13806_v23 = vmax.f32 %v2833_v27, 0.0  ;;  %v2797_v53 = vld [vmem:[#allocation8 + $0xc0] sm:$0xff]  ;;  %v16403_v59 = vld [vmem:[#allocation53_spill] sm:$0xff]  ;;  %vm16406_vm15 = vmmov %vm16394_vm2 }
 0x211   : > { %v3144_v44 = vrot.slane %v2933_v54, 1  ;;  %v11750_v42 = vpack.i.bf16 %v13791_v34, %v13775_v17  ;;  %11731 = vrot.lane.b32.xlu0 %v11730_v22, %s12319_s26  ;;  %vm16401_vm9 = vnez %v16400_v60  ;;  %v3148_v28 = vrot.slane %v2935_v13, 1  ;;  %v2665_v54 = vpop.f32.mrf.mxu0  ;;  %vm16407_vm14 = vmmov %vm16394_vm2 }
 0x212   : > { %v3150_v45 = vrot.slane %v13791_v34, 1  ;;  %v2838_v56 = vadd.f32 %v13468_v47, %v2799_v51  ;;  %2769 = vst.msk [vmem:[#allocation8 + $0xe0] sm:$0xff] %vm16032_vm12, %v2737_v9  ;;  %v2740_v27 = vadd.f32 %v11131_v62, %v2708_v39  ;;  %v11740_v22 = vpack.i.bf16 %v13806_v23, %v13786_v14  ;;  %v2800_v9 = vld [vmem:[#allocation8 + $0xd8] sm:$0xff] }
 0x213   : > { %v3145_v36 = vsel %vm16402_vm6, %v3142_v50, %v3144_v44  ;;  %vm16404_vm1 = vnez %v16403_v59  ;;  %v3146_v41 = vrot.slane %v13806_v23, 1  ;;  %v2836_v11 = vadd.f32 %v13468_v47, %v2797_v53 }
 0x214   : > { %v11745_v13 = vpack.i.bf16 %v3145_v36, %v3143_v30  ;;  %v3151_v51 = vsel %vm16394_vm2, %v3148_v28, %v3150_v45  ;;  %2772 = vst.msk [vmem:[#allocation8 + $0xf8] sm:$0xff] %vm16032_vm12, %v2740_v27  ;;  %v2738_v50 = vadd.f32 %v2706_v26, %v2665_v54  ;;  %11741 = vrot.lane.b32.xlu1 %v11740_v22, %s12319_s26  ;;  %v13829_v39 = vmax.f32 %v2838_v56, 0.0  ;;  %v2798_v27 = vld [vmem:[#allocation8 + $0xc8] sm:$0xff]  ;;  %v13846_v56 = vld [vmem:[%s16348_s30 + $0x40] sm:$0xff]  }
 0x215   : > { %v2839_v62 = vadd.f32 %v13468_v47, %v2800_v9  ;;  %vm16405_vm4 = vcmask 1040384   ;;  %v3147_v30 = vsel %vm16406_vm15, %v3144_v44, %v3146_v41  ;;  %v3149_v53 = vsel %vm16407_vm14, %v3146_v41, %v3148_v28  ;;  %v16409_v41 = vld [vmem:[#allocation42_spill] sm:$0xff]  ;;  %11208 = vmatprep.subr.bf16.mxu1 %v13846_v56 }
 0x216   : > { %v13833_v19 = vsel %vm16405_vm4, %v13562_v43, %v2984_v58  ;;  %11746 = vrot.lane.b32.xlu0 %v11745_v13, %s16043_s25  ;;  %v13838_v36 = vmax.f32 %v2836_v11, 0.0  ;;  %vm16408_vm6 = vmmov %vm16405_vm4  ;;  %2770 = vst.msk [vmem:[#allocation8 + $0xe8] sm:$0xff] %vm16032_vm12, %v2738_v50  ;;  %v11755_v43 = vpack.i.bf16 %v3149_v53, %v3147_v30  ;;  %v2837_v22 = vadd.f32 %v13468_v47, %v2798_v27  ;;  %v16411_v11 = vld [vmem:[#allocation36_spill] sm:$0xff]  ;;  %v16413_v27 = vld [vmem:[#allocation46_spill] sm:$0xff] }
 0x217   : > { %v13841_v54 = vsel %vm16408_vm6, %v2984_v58, %v2986_v1  ;;  %v13850_v26 = vmax.f32 %v2839_v62, 0.0  ;;  %vm16410_vm2 = vnez %v16409_v41  ;;  %vm16412_vm4 = vnez %v16411_v11  ;;  %v2803_v13 = vld [vmem:[#allocation8 + $0xf0] sm:$0xff]  ;;  %vm16415_vm8 = vmmov %vm16408_vm6  ;;  %v16418_v11 = vld [vmem:[#allocation35_spill] sm:$0xff] }
 0x218   : > { %v2939_v44 = vsel %vm16410_vm2, 0.0, %v13829_v39  ;;  %v2937_v58 = vsel %vm16412_vm4, 0.0, %v13838_v36  ;;  %v2988_v9 = vrot.slane %v13530_v24, 7  ;;  %v2990_v50 = vrot.slane %v2888_v21, 7  ;;  %11756 = vrot.lane.b32.xlu1 %v11755_v43, %s16043_s25  ;;  %vm16416_vm14 = vmmov %vm16408_vm6 }
 0x219   : > { %v3156_v28 = vrot.slane %v2939_v44, 1  ;;  %v3152_v62 = vrot.slane %v2937_v58, 1  ;;  %v13865_v30 = vmax.f32 %v2837_v22, 0.0  ;;  %v11770_v53 = vpack.i.bf16 %v13850_v26, %v13829_v39  ;;  %v2801_v61 = vld [vmem:[#allocation8 + $0xe0] sm:$0xff] }
 0x21a   : > { %vm16414_vm15 = vnez %v16413_v27  ;;  %11751 = vrot.lane.b32.xlu0 %v11750_v42, %s12319_s26  ;;  %v3158_v24 = vrot.slane %v13850_v26, 1  ;;  %v2842_v4 = vadd.f32 %v13468_v47, %v2803_v13  ;;  %v13876_v21 = vsel %vm16415_vm8, %v2986_v1, %v2988_v9 }
 0x21b   : > { %v13879_v43 = vsel %vm16416_vm14, %v2988_v9, %v2990_v50  ;;  %vm16417_vm6 = vcmask 1046528   ;;  %v11760_v44 = vpack.i.bf16 %v13865_v30, %v13838_v36  ;;  %vm16419_vm2 = vnez %v16418_v11  ;;  %v2804_v40 = vld [vmem:[#allocation8 + $0xf8] sm:$0xff] }
 0x21c   : > { %v3153_v22 = vsel %vm16417_vm6, %v3150_v45, %v3152_v62  ;;  %v3154_v58 = vrot.slane %v13865_v30, 1  ;;  %v2840_v13 = vadd.f32 %v13468_v47, %v2801_v61  ;;  %vm16420_vm4 = vmmov %vm16417_vm6  ;;  %v13890_v46 = vmax.f32 %v2842_v4, 0.0  ;;  %v16423_v4 = vld [vmem:[#allocation50_spill] sm:$0xff] }
 0x21d   : > { %v11765_v41 = vpack.i.bf16 %v3153_v22, %v3151_v51  ;;  %v3159_v1 = vsel %vm16420_vm4, %v3156_v28, %v3158_v24  ;;  %11761 = vrot.lane.b32.xlu1 %v11760_v44, %s12319_s26  ;;  %vm16421_vm8 = vmmov %vm16420_vm4  ;;  %v2843_v16 = vadd.f32 %v13468_v47, %v2804_v40  ;;  %v2992_v42 = vrot.slane %v13614_v31, 7  ;;  %v2802_v22 = vld [vmem:[#allocation8 + $0xe8] sm:$0xff] }
 0x21e   : > { %v3155_v45 = vsel %vm16421_vm8, %v3152_v62, %v3154_v58  ;;  %vm16422_vm14 = vmmov %vm16420_vm4  ;;  %v13898_v61 = vmax.f32 %v2840_v13, 0.0  ;;  %vm16424_vm6 = vnez %v16423_v4  ;;  %v2841_v40 = vadd.f32 %v13468_v47, %v2802_v22  ;;  %v16426_v44 = vld [vmem:[#allocation44_spill] sm:$0xff]  ;;  %v16433_v4 = vld [vmem:[#allocation45_spill] sm:$0xff] }
 0x21f   : > { %v3157_v9 = vsel %vm16422_vm14, %v3154_v58, %v3156_v28  ;;  %11766 = vrot.lane.b32.xlu0 %v11765_v41, %s16043_s25  ;;  %v2943_v63 = vsel %vm16424_vm6, 0.0, %v13890_v46  ;;  %v2994_v28 = vrot.slane %v2890_v55, 7  ;;  %v13908_v62 = vmax.f32 %v2843_v16, 0.0  ;;  %v16429_v55 = vld [vmem:[#allocation55_spill] sm:$0xff] }
 0x220   : > { %v11775_v51 = vpack.i.bf16 %v3157_v9, %v3155_v45  ;;  %v3164_v31 = vrot.slane %v2943_v63, 1  ;;  %vm16425_vm4 = vcmask 1040384   ;;  %vm16427_vm8 = vnez %v16426_v44 }
 0x221   : > { %v13911_v41 = vsel %vm16425_vm4, %v2990_v50, %v2992_v42  ;;  %v2941_v58 = vsel %vm16427_vm8, 0.0, %v13898_v61  ;;  %vm16428_vm14 = vmmov %vm16425_vm4  ;;  %vm16029_vm6 = vcmask 392192   ;;  %v2873_v47 = vmax.f32 %v2841_v40, 0.0 }
 0x222   : > { %v13917_v13 = vsel %vm16428_vm14, %v2992_v42, %v2994_v28  ;;  %11776 = vrot.lane.b32.xlu1 %v11775_v51, %s16043_s25  ;;  %v3160_v52 = vrot.slane %v2941_v58, 1  ;;  %v11795_v63 = vpack.i.bf16 %v13908_v62, %v13890_v46  ;;  %vm16430_vm0 = vnez %v16429_v55  ;;  %11138 = vmatprep.mubr.msk.bf16.mxu1 %vm16029_vm6, %v11936_v38 }
 0x223   : > { %v2912_v16 = vsel %vm16430_vm0, 0.0, %v13908_v62  ;;  %11771 = vrot.lane.b32.xlu0 %v11770_v53, %s12319_s26  ;;  %v3166_v50 = vrot.slane %v13908_v62, 1  ;;  %v13930_v42 = vsel %vm16425_vm4, %v2994_v28, %v2996_v6  ;;  %v2998_v45 = vrot.slane %v16431_v5, 7 }
 0x224   : > { %v3000_v9 = vrot.slane %v13677_v10, 7  ;;  %vm16432_vm8 = vcmask 1046528   ;;  %v11780_v22 = vpack.i.bf16 %v2873_v47, %v13898_v61  ;;  %vm16434_vm14 = vnez %v16433_v4 }
 0x225   : > { %v3161_v51 = vsel %vm16432_vm8, %v3158_v24, %v3160_v52  ;;  %v2910_v38 = vsel %vm16434_vm14, 0.0, %v2873_v47  ;;  %v3162_v53 = vrot.slane %v2873_v47, 1  ;;  %vm16435_vm0 = vmmov %vm16432_vm8  ;;  %vm16437_vm6 = vcmask 1040384  }
 0x226   : > { %v11785_v40 = vpack.i.bf16 %v3161_v51, %v3159_v1  ;;  %v3167_v62 = vsel %vm16435_vm0, %v3164_v31, %v3166_v50  ;;  %vm16436_vm4 = vmmov %vm16435_vm0  ;;  %v13944_v32 = vsel %vm16437_vm6, %v2996_v6, %v2998_v45  ;;  %11781 = vrot.lane.b32.xlu1 %v11780_v22, %s12319_s26  ;;  %v16441_v58 = vsel %vm16381_vm10, 0.0, %v13697_v29 }
 0x227   : > { %v3169_v28 = vsel %vm16436_vm4, %v3166_v50, 0.0  ;;  %vm16438_vm5 = vmmov %vm16435_vm0  ;;  %v3002_v47 = vrot.slane %v16441_v58, 7  ;;  %v3004_v6 = vrot.slane %v13681_v8, 7  ;;  %v16443_v50 = vsel %vm16392_vm3, 0.0, %v13749_v49 }
 0x228   : > { %v3163_v18 = vsel %vm16438_vm5, %v3160_v52, %v3162_v53  ;;  %vm16439_vm13 = vmmov %vm16435_vm0  ;;  %v11800_v24 = vpack.i.bf16 %v3169_v28, %v3167_v62  ;;  %11786 = vrot.lane.b32.xlu0 %v11785_v40, %s16043_s25  ;;  %v16442_v52 = vsel %vm16378_vm11, 0.0, %v13687_v37  ;;  %v3010_v5 = vrot.slane %v16443_v50, 7 }
 0x229   : > { %v3165_v10 = vsel %vm16439_vm13, %v3162_v53, %v3164_v31  ;;  %vm16440_vm8 = vmmov %vm16437_vm6  ;;  %v3006_v55 = vrot.slane %v16442_v52, 7  ;;  %v3008_v31 = vrot.slane %v13734_v20, 7  ;;  %v16444_v29 = vsel %vm16387_vm7, 0.0, %v13745_v7 }
 0x22a   : > { %v13950_v44 = vsel %vm16440_vm8, %v2998_v45, %v3000_v9  ;;  %v11790_v1 = vpack.i.bf16 %v3165_v10, %v3163_v18  ;;  %v3012_v45 = vrot.slane %v13743_v15, 7  ;;  %v3014_v0 = vrot.slane %v16444_v29, 7  ;;  %vm16445_vm13 = vmmov %vm16437_vm6 }
 0x22b   : > { %v13973_v8 = vsel %vm16445_vm13, %v3000_v9, %v3002_v47  ;;  %vm16446_vm10 = vmmov %vm16437_vm6  ;;  %v3016_v20 = vrot.slane %v13786_v14, 7  ;;  %v16453_v14 = vsel %vm16404_vm1, 0.0, %v13806_v23  ;;  %v3020_v51 = vrot.slane %v13775_v17, 7 }
 0x22c   : > { %v13976_v37 = vsel %vm16446_vm10, %v3002_v47, %v3004_v6  ;;  %vm16447_vm11 = vmmov %vm16437_vm6  ;;  %11791 = vrot.lane.b32.xlu1 %v11790_v1, %s16043_s25  ;;  %11796 = vrot.lane.b32.xlu0 %v11795_v63, %s12319_s26  ;;  %v3018_v9 = vrot.slane %v16453_v14, 7  ;;  %v16454_v22 = vsel %vm16401_vm9, 0.0, %v13791_v34  ;;  %v3024_v53 = vrot.slane %v13838_v36, 7 }
 0x22d   : > { %v13979_v25 = vsel %vm16447_vm11, %v3004_v6, %v3006_v55  ;;  %vm16448_vm3 = vmmov %vm16437_vm6  ;;  %v3022_v4 = vrot.slane %v16454_v22, 7  ;;  %v16455_v63 = vsel %vm16419_vm2, 0.0, %v13865_v30  ;;  %v3028_v62 = vrot.slane %v13829_v39, 7 }
 0x22e   : > { %v13984_v15 = vsel %vm16448_vm3, %v3006_v55, %v3008_v31  ;;  %vm16449_vm6 = vmmov %vm16448_vm3  ;;  %v3026_v40 = vrot.slane %v16455_v63, 7  ;;  %v16456_v23 = vsel %vm16414_vm15, 0.0, %v13850_v26  ;;  %v3032_v36 = vrot.slane %v13898_v61, 7 }
 0x22f   : > { %v13987_v49 = vsel %vm16449_vm6, %v3008_v31, %v3010_v5  ;;  %vm16450_vm7 = vmmov %vm16448_vm3  ;;  %v3030_v59 = vrot.slane %v16456_v23, 7  ;;  %v3034_v28 = vrot.slane %v2910_v38, 7  ;;  %v3036_v61 = vrot.slane %v13890_v46, 7 }
 0x230   : > { %v13990_v7 = vsel %vm16450_vm7, %v3010_v5, %v3012_v45  ;;  %vm16451_vm14 = vmmov %vm16448_vm3  ;;  %11801 = vrot.lane.b32.xlu1 %v11800_v24, %s16043_s25  ;;  %v3038_v18 = vrot.slane %v2912_v16, 7  ;;  %vm16031_vm6 = vcmask 261120   ;;  %v16468_v55 = vrot.slane %v13493_v33, 7 }
 0x231   : > { %v13993_v3 = vsel %vm16451_vm14, %v3012_v45, %v3014_v0  ;;  %vm16452_vm0 = vmmov %vm16448_vm3  ;;  %vm16470_vm14 = vcmask 388096  }
 0x232   : > { %v13997_v57 = vsel %vm16452_vm0, %v3014_v0, %v3016_v20  ;;  %vm16457_vm1 = vmmov %vm16452_vm0 }
 0x233   : > { %v14019_v17 = vsel %vm16457_vm1, %v3016_v20, %v3018_v9  ;;  %vm16458_vm4 = vmmov %vm16452_vm0 }
 0x234   : > { %v14022_v34 = vsel %vm16458_vm4, %v3018_v9, %v3020_v51  ;;  %vm16459_vm9 = vmmov %vm16452_vm0 }
 0x235   : > { %v14025_v60 = vsel %vm16459_vm9, %v3020_v51, %v3022_v4  ;;  %vm16460_vm2 = vmmov %vm16452_vm0 }
 0x236   : > { %v14030_v39 = vsel %vm16460_vm2, %v3022_v4, %v3024_v53  ;;  %vm16461_vm5 = vmmov %vm16452_vm0 }
 0x237   : > { %v14033_v30 = vsel %vm16461_vm5, %v3024_v53, %v3026_v40  ;;  %vm16462_vm15 = vmmov %vm16452_vm0  ;;  %vm16476_vm5 = vcmask 392192  }
 0x238   : > { %v14036_v26 = vsel %vm16462_vm15, %v3026_v40, %v3028_v62  ;;  %vm16463_vm8 = vmmov %vm16452_vm0 }
 0x239   : > { %v14039_v27 = vsel %vm16463_vm8, %v3028_v62, %v3030_v59  ;;  %vm16464_vm13 = vmmov %vm16452_vm0 }
 0x23a   : > { %v14042_v11 = vsel %vm16464_vm13, %v3030_v59, %v3032_v36  ;;  %vm16465_vm10 = vmmov %vm16452_vm0 }
 0x23b   : > { %v14046_v10 = vsel %vm16465_vm10, %v3032_v36, %v3034_v28  ;;  %vm16466_vm11 = vmmov %vm16452_vm0 }
 0x23c   : > { %v14049_v24 = vsel %vm16466_vm11, %v3034_v28, %v3036_v61  ;;  %vm16467_vm3 = vmmov %vm16452_vm0 }
 0x23d   : > { %v14052_v1 = vsel %vm16467_vm3, %v3036_v61, %v3038_v18  ;;  %vm16469_vm7 = vmmov %vm16452_vm0 }
 0x23e   : > { %v3072_v38 = vsel %vm16469_vm7, 0.0, %v16468_v55  ;;  %vm16471_vm0 = vmmov %vm16470_vm14 }
 0x23f   : > { %vm16472_vm1 = vmmov %vm16471_vm0 }
 0x240   : > { %vm16473_vm4 = vmmov %vm16471_vm0 }
 0x241   : > { %vm16474_vm9 = vmmov %vm16471_vm0 }
 0x242   : > { %vm16475_vm2 = vmmov %vm16471_vm0 }
 0x243   : > { %vm16477_vm15 = vmmov %vm16476_vm5 }
 0x244   : > { %vm16478_vm8 = vmmov %vm16471_vm0 }
 0x245   : > { %vm16479_vm13 = vmmov %vm16471_vm0 }
 0x246   : > { %vm16480_vm10 = vmmov %vm16476_vm5 }
 0x247   : > { %vm16481_vm11 = vmmov %vm16476_vm5 }
 0x248   : > { %vm16482_vm3 = vmmov %vm16471_vm0 }
 0x249   : > { %vm16483_vm7 = vmmov %vm16471_vm0 }
 0x25b   : > { %v11647_v58 = vpop.permute.xlu0 %11646 }
 0x25c   : > { %v11649_v47 = vunpack.i.h.bf16 %v11647_v58  ;;  %v11648_v6 = vunpack.i.l.bf16 %v11647_v58 }
 0x25e   : > { %v11657_v52 = vpop.permute.xlu1 %11656  ;;  %v3395_v50 = vsel %vm16032_vm12, %v3072_v38, %v11648_v6  ;;  %v3396_v5 = vsel %vm16032_vm12, %v13634_v2, %v11649_v47  ;;  %v11967_v38 = vld [vmem:[%s16348_s30 + $0x38] sm:$0xff]  }
 0x25f   : > { %v11659_v46 = vunpack.i.h.bf16 %v11657_v52  ;;  %v11658_v16 = vunpack.i.l.bf16 %v11657_v52  ;;  %v11652_v31 = vpop.permute.xlu0 %11651 }
 0x260   : > { %v11654_v14 = vunpack.i.h.bf16 %v11652_v31  ;;  %v11653_v9 = vunpack.i.l.bf16 %v11652_v31 }
 0x261   : > { %v3428_v45 = vsel %vm16031_vm6, %v3395_v50, %v11658_v16  ;;  %v3429_v29 = vsel %vm16031_vm6, %v3396_v5, %v11659_v46 }
 0x262   : > { %v10588_v0 = vpack.c.bf16 %v3428_v45, %v3428_v45  ;;  %v10589_v20 = vpack.c.bf16 %v3429_v29, %v3429_v29  ;;  %v3398_v2 = vsel %vm16032_vm12, %v13693_v35, %v11654_v14  ;;  %v3397_v40 = vsel %vm16032_vm12, %v13781_v48, %v11653_v9 }
 0x263   : > { %v11662_v51 = vpop.permute.xlu1 %11661 }
 0x264   : > { %3588 = vst.msk [vmem:[#allocation3 + $0xc] sm:$0xf] %vm16470_vm14, %v10588_v0  ;;  %v11667_v33 = vpop.permute.xlu0 %11666  ;;  %v11664_v53 = vunpack.i.h.bf16 %v11662_v51  ;;  %v11663_v63 = vunpack.i.l.bf16 %v11662_v51  ;;  %vm16484_vm14 = vmmov %vm16476_vm5 }
 0x265   : > { %3589 = vst.msk [vmem:[#allocation3 + $0x10] sm:$0xf] %vm16471_vm0, %v10589_v20  ;;  %v11669_v22 = vunpack.i.h.bf16 %v11667_v33  ;;  %v11668_v4 = vunpack.i.l.bf16 %v11667_v33  ;;  %vm16485_vm0 = vmmov %vm16476_vm5 }
 0x266   : > { %v3399_v47 = vsel %vm16032_vm12, %v13833_v19, %v11663_v63  ;;  %v3400_v6 = vsel %vm16032_vm12, %v13841_v54, %v11664_v53 }
 0x267   : > { %v3431_v62 = vsel %vm16031_vm6, %v3398_v2, %v11669_v22  ;;  %v3430_v23 = vsel %vm16031_vm6, %v3397_v40, %v11668_v4 }
 0x268   : > { %v11677_v59 = vpop.permute.xlu1 %11676  ;;  %v10591_v36 = vpack.c.bf16 %v3431_v62, %v3431_v62  ;;  %v10590_v28 = vpack.c.bf16 %v3430_v23, %v3430_v23  ;;  %v11672_v61 = vpop.permute.xlu0 %11671 }
 0x269   : > { %v11679_v18 = vunpack.i.h.bf16 %v11677_v59  ;;  %v11678_v58 = vunpack.i.l.bf16 %v11677_v59  ;;  %v11674_v35 = vunpack.i.h.bf16 %v11672_v61  ;;  %v11673_v48 = vunpack.i.l.bf16 %v11672_v61 }
 0x26a   : > { %3591 = vst.msk [vmem:[#allocation3 + $0x18] sm:$0xf] %vm16472_vm1, %v10591_v36 }
 0x26b   : > { %3590 = vst.msk [vmem:[#allocation3 + $0x14] sm:$0xf] %vm16473_vm4, %v10590_v28  ;;  %v3432_v52 = vsel %vm16031_vm6, %v3399_v47, %v11678_v58  ;;  %v3433_v55 = vsel %vm16031_vm6, %v3400_v6, %v11679_v18  ;;  %v3401_v20 = vsel %vm16032_vm12, %v13876_v21, %v11673_v48  ;;  %v3402_v14 = vsel %vm16032_vm12, %v13879_v43, %v11674_v35  ;;  %v11972_v21 = vld [vmem:[%s16348_s30 + $0x30] sm:$0xff]   ;;  %vm16486_vm4 = vmmov %vm16472_vm1 }
 0x26c   : > { %v10592_v46 = vpack.c.bf16 %v3432_v52, %v3432_v52  ;;  %v10593_v16 = vpack.c.bf16 %v3433_v55, %v3433_v55  ;;  %v11682_v19 = vpop.permute.xlu1 %11681  ;;  %v11937_v31 = vld [vmem:[#allocation3 + $0xc] sm:$0xff]  }
 0x26d   : > { %v11687_v50 = vpop.permute.xlu0 %11686  ;;  %v11938_v54 = vld [vmem:[#allocation3 + $0xc] sm:$0xff]   ;;  %v11684_v29 = vunpack.i.h.bf16 %v11682_v19  ;;  %v11683_v0 = vunpack.i.l.bf16 %v11682_v19  ;;  %11139 = vmatmul.mubr.msk.bf16.vlgmr.msra.gmra.mxu1 %vm16476_vm5, %v11937_v31  ;;  %vm16489_vm5 = vmmov %vm16472_vm1 }
 0x26e   : > { %3592 = vst.msk [vmem:[#allocation3 + $0x1c] sm:$0xf] %vm16474_vm9, %v10592_v46  ;;  %v11689_v5 = vunpack.i.h.bf16 %v11687_v50  ;;  %v11688_v45 = vunpack.i.l.bf16 %v11687_v50  ;;  %11176 = vmatprep.mubr.msk.bf16.mxu0 %vm16477_vm15, %v11938_v54  ;;  %11209 = vmatpush3.bf16.msra.mxu1 %v13846_v56  ;;  %vm16487_vm9 = vmmov %vm16485_vm0 }
 0x26f   : > { %3593 = vst.msk [vmem:[#allocation3 + $0x20] sm:$0xf] %vm16475_vm2, %v10593_v16  ;;  %11210 = vmatprep.subr.bf16.mxu1 %v11967_v38  ;;  %v3403_v43 = vsel %vm16032_vm12, %v13911_v41, %v11683_v0  ;;  %v3404_v56 = vsel %vm16032_vm12, %v13917_v13, %v11684_v29  ;;  %vm16488_vm2 = vmmov %vm16485_vm0 }
 0x270   : > { %v3435_v9 = vsel %vm16031_vm6, %v3402_v14, %v11689_v5  ;;  %v3434_v51 = vsel %vm16031_vm6, %v3401_v20, %v11688_v45  ;;  %vm16490_vm15 = vmmov %vm16472_vm1 }
 0x271   : > { %v11697_v33 = vpop.permute.xlu1 %11696  ;;  %v10595_v22 = vpack.c.bf16 %v3435_v9, %v3435_v9  ;;  %v10594_v4 = vpack.c.bf16 %v3434_v51, %v3434_v51  ;;  %v11692_v53 = vpop.permute.xlu0 %11691 }
 0x272   : > { %v11699_v63 = vunpack.i.h.bf16 %v11697_v33  ;;  %v11698_v2 = vunpack.i.l.bf16 %v11697_v33  ;;  %v11940_v40 = vld [vmem:[#allocation3 + $0x14] sm:$0xff]   ;;  %v11694_v62 = vunpack.i.h.bf16 %v11692_v53  ;;  %v11693_v23 = vunpack.i.l.bf16 %v11692_v53  ;;  %11211 = vmatpush3.bf16.msra.mxu1 %v11967_v38 }
 0x273   : > { %3595 = vst.msk [vmem:[#allocation3 + $0x28] sm:$0xf] %vm16478_vm8, %v10595_v22  ;;  %v11941_v28 = vld [vmem:[#allocation3 + $0x14] sm:$0xff]   ;;  %11142 = vmatprep.mubr.msk.bf16.mxu1 %vm16480_vm10, %v11940_v40  ;;  %11212 = vmatprep.subr.bf16.mxu1 %v11972_v21  ;;  %vm16491_vm8 = vmmov %vm16485_vm0 }
 0x274   : > { %3594 = vst.msk [vmem:[#allocation3 + $0x24] sm:$0xf] %vm16479_vm13, %v10594_v4  ;;  %v3436_v59 = vsel %vm16031_vm6, %v3403_v43, %v11698_v2  ;;  %v3437_v36 = vsel %vm16031_vm6, %v3404_v56, %v11699_v63  ;;  %11177 = vmatmul.mubr.msk.bf16.vlgmr.msra.gmra.mxu0 %vm16481_vm11, %v11941_v28  ;;  %v3405_v55 = vsel %vm16032_vm12, %v13930_v42, %v11693_v23  ;;  %vm16492_vm13 = vmmov %vm16485_vm0 }
 0x275   : > { %v10596_v61 = vpack.c.bf16 %v3436_v59, %v3436_v59  ;;  %v10597_v18 = vpack.c.bf16 %v3437_v36, %v3437_v36  ;;  %v11702_v41 = vpop.permute.xlu1 %11701  ;;  %v3406_v38 = vsel %vm16032_vm12, %v13944_v32, %v11694_v62  ;;  %vm16493_vm10 = vmmov %vm16472_vm1 }
 0x276   : > { %v11942_v58 = vld [vmem:[#allocation3 + $0x1c] sm:$0xff]   ;;  %v11704_v35 = vunpack.i.h.bf16 %v11702_v41  ;;  %v11703_v48 = vunpack.i.l.bf16 %v11702_v41  ;;  %11213 = vmatpush3.bf16.msra.mxu1 %v11972_v21  ;;  %vm16494_vm11 = vmmov %vm16472_vm1 }
 0x277   : > { %v11707_v13 = vpop.permute.xlu0 %11706  ;;  %3596 = vst.msk [vmem:[#allocation3 + $0x2c] sm:$0xf] %vm16482_vm3, %v10596_v61  ;;  %v11943_v52 = vld [vmem:[#allocation3 + $0x1c] sm:$0xff]   ;;  %11143 = vmatmul.mubr.msk.bf16.gmra.mxu1 %vm16484_vm14, %v11942_v58  ;;  %vm16495_vm3 = vmmov %vm16485_vm0 }
 0x278   : > { %3597 = vst.msk [vmem:[#allocation3 + $0x30] sm:$0xf] %vm16483_vm7, %v10597_v18  ;;  %v11709_v47 = vunpack.i.h.bf16 %v11707_v13  ;;  %v11708_v6 = vunpack.i.l.bf16 %v11707_v13  ;;  %11180 = vmatprep.mubr.msk.bf16.mxu0 %vm16485_vm0, %v11943_v52  ;;  %v3407_v42 = vsel %vm16032_vm12, %v13950_v44, %v11703_v48  ;;  %v3408_v32 = vsel %vm16032_vm12, %v13973_v8, %v11704_v35  ;;  %vm16496_vm7 = vmmov %vm16485_vm0 }
 0x279   : > { %v11717_v19 = vpop.permute.xlu1 %11716  ;;  %vm16497_vm14 = vmmov %vm16472_vm1 }
 0x27a   : > { %v3439_v46 = vsel %vm16031_vm6, %v3406_v38, %v11709_v47  ;;  %v3438_v16 = vsel %vm16031_vm6, %v3405_v55, %v11708_v6  ;;  %v11719_v5 = vunpack.i.h.bf16 %v11717_v19  ;;  %v11718_v45 = vunpack.i.l.bf16 %v11717_v19  ;;  %vm16498_vm0 = vmmov %vm16472_vm1 }
 0x27b   : > { %v10599_v31 = vpack.c.bf16 %v3439_v46, %v3439_v46  ;;  %v10598_v50 = vpack.c.bf16 %v3438_v16, %v3438_v16  ;;  %v11712_v54 = vpop.permute.xlu0 %11711  ;;  %v11944_v29 = vld [vmem:[#allocation3 + $0x24] sm:$0xff]  }
 0x27c   : > { %v11714_v0 = vunpack.i.h.bf16 %v11712_v54  ;;  %v11713_v20 = vunpack.i.l.bf16 %v11712_v54  ;;  %v3440_v14 = vsel %vm16031_vm6, %v3407_v42, %v11718_v45  ;;  %v3441_v9 = vsel %vm16031_vm6, %v3408_v32, %v11719_v5  ;;  %v11945_v51 = vld [vmem:[#allocation3 + $0x24] sm:$0xff]   ;;  %11146 = vmatprep.mubr.msk.bf16.mxu1 %vm16487_vm9, %v11944_v29  ;;  %vm16501_vm9 = vmmov %vm16498_vm0 }
 0x27d   : > { %3599 = vst.msk [vmem:[#allocation3 + $0x38] sm:$0xf] %vm16472_vm1, %v10599_v31  ;;  %v10600_v33 = vpack.c.bf16 %v3440_v14, %v3440_v14  ;;  %v10601_v22 = vpack.c.bf16 %v3441_v9, %v3441_v9  ;;  %11181 = vmatmul.mubr.msk.bf16.gmra.mxu0 %vm16488_vm2, %v11945_v51  ;;  %vm16499_vm1 = vmmov %vm16488_vm2 }
 0x27e   : > { %3598 = vst.msk [vmem:[#allocation3 + $0x34] sm:$0xf] %vm16486_vm4, %v10598_v50  ;;  %v11722_v44 = vpop.permute.xlu1 %11721  ;;  %v3409_v56 = vsel %vm16032_vm12, %v13976_v37, %v11713_v20  ;;  %v3410_v40 = vsel %vm16032_vm12, %v13979_v25, %v11714_v0  ;;  %vm16500_vm4 = vmmov %vm16499_vm1 }
 0x27f   : > { %v11727_v8 = vpop.permute.xlu0 %11726  ;;  %v11946_v4 = vld [vmem:[#allocation3 + $0x2c] sm:$0xff]   ;;  %3600 = vst.msk [vmem:[#allocation3 + $0x3c] sm:$0xf] %vm16489_vm5, %v10600_v33  ;;  %v11724_v2 = vunpack.i.h.bf16 %v11722_v44  ;;  %v11723_v21 = vunpack.i.l.bf16 %v11722_v44  ;;  %vm16502_vm2 = vmmov %vm16498_vm0 }
 0x280   : > { %3601 = vst.msk [vmem:[#allocation3 + $0x40] sm:$0xf] %vm16490_vm15, %v10601_v22  ;;  %v11729_v53 = vunpack.i.h.bf16 %v11727_v8  ;;  %v11728_v63 = vunpack.i.l.bf16 %v11727_v8  ;;  %v11947_v43 = vld [vmem:[#allocation3 + $0x2c] sm:$0xff]   ;;  %11147 = vmatmul.mubr.msk.bf16.gmra.mxu1 %vm16491_vm8, %v11946_v4  ;;  %vm16503_vm5 = vmmov %vm16499_vm1 }
 0x281   : > { %11184 = vmatprep.mubr.msk.bf16.mxu0 %vm16492_vm13, %v11947_v43  ;;  %v3411_v37 = vsel %vm16032_vm12, %v13984_v15, %v11723_v21  ;;  %v3412_v25 = vsel %vm16032_vm12, %v13987_v49, %v11724_v2  ;;  %vm16504_vm15 = vmmov %vm16499_vm1 }
 0x282   : > { %v3443_v62 = vsel %vm16031_vm6, %v3410_v40, %v11729_v53  ;;  %v3442_v23 = vsel %vm16031_vm6, %v3409_v56, %v11728_v63  ;;  %v11737_v59 = vpop.permute.xlu1 %11736  ;;  %vm16505_vm8 = vmmov %vm16498_vm0 }
 0x283   : > { %v10603_v36 = vpack.c.bf16 %v3443_v62, %v3443_v62  ;;  %v10602_v28 = vpack.c.bf16 %v3442_v23, %v3442_v23  ;;  %v11732_v61 = vpop.permute.xlu0 %11731  ;;  %v11739_v18 = vunpack.i.h.bf16 %v11737_v59  ;;  %v11738_v41 = vunpack.i.l.bf16 %v11737_v59  ;;  %vm16506_vm13 = vmmov %vm16498_vm0 }
 0x284   : > { %v11734_v58 = vunpack.i.h.bf16 %v11732_v61  ;;  %v11733_v47 = vunpack.i.l.bf16 %v11732_v61 }
 0x285   : > { %v11948_v13 = vld [vmem:[#allocation3 + $0x34] sm:$0xff]   ;;  %3603 = vst.msk [vmem:[#allocation3 + $0x48] sm:$0xf] %vm16493_vm10, %v10603_v36  ;;  %v3444_v6 = vsel %vm16031_vm6, %v3411_v37, %v11738_v41  ;;  %v3445_v35 = vsel %vm16031_vm6, %v3412_v25, %v11739_v18  ;;  %vm16507_vm10 = vmmov %vm16499_vm1 }
 0x286   : > { %3602 = vst.msk [vmem:[#allocation3 + $0x44] sm:$0xf] %vm16494_vm11, %v10602_v28  ;;  %v11949_v48 = vld [vmem:[#allocation3 + $0x34] sm:$0xff]   ;;  %v10604_v52 = vpack.c.bf16 %v3444_v6, %v3444_v6  ;;  %v10605_v55 = vpack.c.bf16 %v3445_v35, %v3445_v35  ;;  %11150 = vmatprep.mubr.msk.bf16.mxu1 %vm16495_vm3, %v11948_v13  ;;  %v11742_v15 = vpop.permute.xlu1 %11741  ;;  %v3413_v54 = vsel %vm16032_vm12, %v13990_v7, %v11733_v47  ;;  %vm16508_vm11 = vmmov %vm16499_vm1 }
 0x287   : > { %11185 = vmatmul.mubr.msk.bf16.gmra.mxu0 %vm16496_vm7, %v11949_v48  ;;  %v11950_v38 = vld [vmem:[#allocation3 + $0x3c] sm:$0xff]   ;;  %v11744_v19 = vunpack.i.h.bf16 %v11742_v15  ;;  %v11743_v31 = vunpack.i.l.bf16 %v11742_v15  ;;  %v3414_v5 = vsel %vm16032_vm12, %v13993_v3, %v11734_v58  ;;  %vm16509_vm3 = vmmov %vm16498_vm0 }
 0x288   : > { %v11747_v49 = vpop.permute.xlu0 %11746  ;;  %3604 = vst.msk [vmem:[#allocation3 + $0x4c] sm:$0xf] %vm16497_vm14, %v10604_v52  ;;  %v11951_v50 = vld [vmem:[#allocation3 + $0x3c] sm:$0xff]   ;;  %11151 = vmatmul.mubr.msk.bf16.gmra.mxu1 %vm16499_vm1, %v11950_v38  ;;  %vm16510_vm7 = vmmov %vm16498_vm0 }
 0x289   : > { %3605 = vst.msk [vmem:[#allocation3 + $0x50] sm:$0xf] %vm16498_vm0, %v10605_v55  ;;  %v11749_v46 = vunpack.i.h.bf16 %v11747_v49  ;;  %v11748_v16 = vunpack.i.l.bf16 %v11747_v49  ;;  %11188 = vmatprep.mubr.msk.bf16.mxu0 %vm16500_vm4, %v11951_v50  ;;  %v3415_v7 = vsel %vm16032_vm12, %v13997_v57, %v11743_v31  ;;  %v3416_v3 = vsel %vm16032_vm12, %v14019_v17, %v11744_v19  ;;  %vm16511_vm14 = vmmov %vm16499_vm1 }
 0x28a   : > { %v11757_v32 = vpop.permute.xlu1 %11756  ;;  %vm16512_vm0 = vmmov %vm16499_vm1 }
 0x28b   : > { %v3447_v45 = vsel %vm16031_vm6, %v3414_v5, %v11749_v46  ;;  %v3446_v42 = vsel %vm16031_vm6, %v3413_v54, %v11748_v16  ;;  %v11759_v14 = vunpack.i.h.bf16 %v11757_v32  ;;  %v11758_v9 = vunpack.i.l.bf16 %v11757_v32  ;;  %vm16513_vm1 = vmmov %vm16502_vm2 }
 0x28c   : > { %v10607_v29 = vpack.c.bf16 %v3447_v45, %v3447_v45  ;;  %v10606_v0 = vpack.c.bf16 %v3446_v42, %v3446_v42  ;;  %v11752_v20 = vpop.permute.xlu0 %11751  ;;  %vm16514_vm4 = vmmov %vm16513_vm1 }
 0x28d   : > { %v11952_v51 = vld [vmem:[#allocation3 + $0x44] sm:$0xff]   ;;  %v11754_v33 = vunpack.i.h.bf16 %v11752_v20  ;;  %v11753_v22 = vunpack.i.l.bf16 %v11752_v20  ;;  %v3448_v44 = vsel %vm16031_vm6, %v3415_v7, %v11758_v9  ;;  %v3449_v8 = vsel %vm16031_vm6, %v3416_v3, %v11759_v14 }
 0x28e   : > { %3607 = vst.msk [vmem:[#allocation3 + $0x58] sm:$0xf] %vm16501_vm9, %v10607_v29  ;;  %v11953_v4 = vld [vmem:[#allocation3 + $0x44] sm:$0xff]   ;;  %v10608_v53 = vpack.c.bf16 %v3448_v44, %v3448_v44  ;;  %v10609_v63 = vpack.c.bf16 %v3449_v8, %v3449_v8  ;;  %11154 = vmatprep.mubr.msk.bf16.mxu1 %vm16503_vm5, %v11952_v51  ;;  %vm16515_vm9 = vmmov %vm16512_vm0 }
 0x28f   : > { %3606 = vst.msk [vmem:[#allocation3 + $0x54] sm:$0xf] %vm16502_vm2, %v10606_v0  ;;  %v11762_v57 = vpop.permute.xlu1 %11761  ;;  %11189 = vmatmul.mubr.msk.bf16.gmra.mxu0 %vm16504_vm15, %v11953_v4  ;;  %v3417_v23 = vsel %vm16032_vm12, %v14022_v34, %v11753_v22  ;;  %v3418_v59 = vsel %vm16032_vm12, %v14025_v60, %v11754_v33  ;;  %vm16516_vm2 = vmmov %vm16512_vm0 }
 0x290   : > { %v11954_v2 = vld [vmem:[#allocation3 + $0x4c] sm:$0xff]   ;;  %3608 = vst.msk [vmem:[#allocation3 + $0x5c] sm:$0xf] %vm16505_vm8, %v10608_v53  ;;  %v11764_v56 = vunpack.i.h.bf16 %v11762_v57  ;;  %v11763_v40 = vunpack.i.l.bf16 %v11762_v57  ;;  %vm16517_vm5 = vmmov %vm16513_vm1 }
 0x291   : > { %v11767_v17 = vpop.permute.xlu0 %11766  ;;  %3609 = vst.msk [vmem:[#allocation3 + $0x60] sm:$0xf] %vm16506_vm13, %v10609_v63  ;;  %v11955_v62 = vld [vmem:[#allocation3 + $0x4c] sm:$0xff]   ;;  %11155 = vmatmul.mubr.msk.bf16.gmra.mxu1 %vm16507_vm10, %v11954_v2  ;;  %vm16518_vm15 = vmmov %vm16513_vm1 }
 0x292   : > { %v11769_v21 = vunpack.i.h.bf16 %v11767_v17  ;;  %v11768_v43 = vunpack.i.l.bf16 %v11767_v17  ;;  %11192 = vmatprep.mubr.msk.bf16.mxu0 %vm16508_vm11, %v11955_v62  ;;  %v3420_v34 = vsel %vm16032_vm12, %v14033_v30, %v11764_v56  ;;  %v3419_v60 = vsel %vm16032_vm12, %v14030_v39, %v11763_v40  ;;  %vm16519_vm8 = vmmov %vm16512_vm0  ;;  %v11970_v40 = vld [vmem:[#allocation3 + $0x14] sm:$0xff]  }
 0x293   : > { %vm16520_vm13 = vmmov %vm16512_vm0 }
 0x294   : > { %v3451_v36 = vsel %vm16031_vm6, %v3418_v59, %v11769_v21  ;;  %v3450_v28 = vsel %vm16031_vm6, %v3417_v23, %v11768_v43  ;;  %v11777_v61 = vpop.permute.xlu1 %11776  ;;  %vm16521_vm10 = vmmov %vm16513_vm1 }
 0x295   : > { %v10611_v18 = vpack.c.bf16 %v3451_v36, %v3451_v36  ;;  %v10610_v41 = vpack.c.bf16 %v3450_v28, %v3450_v28  ;;  %v11772_v37 = vpop.permute.xlu0 %11771  ;;  %v11779_v25 = vunpack.i.h.bf16 %v11777_v61  ;;  %v11778_v13 = vunpack.i.l.bf16 %v11777_v61  ;;  %vm16522_vm11 = vmmov %vm16513_vm1  ;;  %v11973_v36 = vld [vmem:[#allocation3 + $0x1c] sm:$0xff]   ;;  %v11974_v28 = vld [vmem:[#allocation3 + $0x24] sm:$0xff]  }
 0x296   : > { %v11957_v58 = vld [vmem:[#allocation3 + $0x54] sm:$0xff]   ;;  %v11774_v47 = vunpack.i.h.bf16 %v11772_v37  ;;  %v11773_v6 = vunpack.i.l.bf16 %v11772_v37  ;;  %v11975_v61 = vld [vmem:[#allocation3 + $0x2c] sm:$0xff]   ;;  %v11978_v37 = vld [vmem:[#allocation3 + $0x44] sm:$0xff]  }
 0x297   : > { %3611 = vst.msk [vmem:[#allocation3 + $0x68] sm:$0xf] %vm16509_vm3, %v10611_v18  ;;  %v3452_v35 = vsel %vm16031_vm6, %v3419_v60, %v11778_v13  ;;  %v3453_v48 = vsel %vm16031_vm6, %v3420_v34, %v11779_v25  ;;  %v11958_v52 = vld [vmem:[#allocation3 + $0x54] sm:$0xff]   ;;  %11158 = vmatprep.mubr.msk.bf16.mxu1 %vm16511_vm14, %v11957_v58  ;;  %vm16523_vm3 = vmmov %vm16512_vm0  ;;  %v11979_v25 = vld [vmem:[#allocation3 + $0x4c] sm:$0xff]  }
 0x298   : > { %3610 = vst.msk [vmem:[#allocation3 + $0x64] sm:$0xf] %vm16510_vm7, %v10610_v41  ;;  %v10612_v55 = vpack.c.bf16 %v3452_v35, %v3452_v35  ;;  %v10613_v15 = vpack.c.bf16 %v3453_v48, %v3453_v48  ;;  %v11782_v30 = vpop.permute.xlu1 %11781  ;;  %11193 = vmatmul.mubr.msk.bf16.gmra.mxu0 %vm16512_vm0, %v11958_v52  ;;  %v11959_v49 = vld [vmem:[#allocation3 + $0x5c] sm:$0xff]   ;;  %v3421_v50 = vsel %vm16032_vm12, %v14036_v26, %v11773_v6  ;;  %vm16524_vm7 = vmmov %vm16512_vm0  ;;  %v11976_v18 = vld [vmem:[#allocation3 + $0x34] sm:$0xff]  }
 0x299   : > { %v11784_v16 = vunpack.i.h.bf16 %v11782_v30  ;;  %v11783_v19 = vunpack.i.l.bf16 %v11782_v30  ;;  %v11960_v31 = vld [vmem:[#allocation3 + $0x5c] sm:$0xff]   ;;  %v3422_v54 = vsel %vm16032_vm12, %v14039_v27, %v11774_v47  ;;  %11159 = vmatmul.mubr.msk.bf16.gmra.mxu1 %vm16515_vm9, %v11959_v49  ;;  %vm16525_vm14 = vmmov %vm16513_vm1  ;;  %v11980_v13 = vld [vmem:[#allocation3 + $0x54] sm:$0xff]  }
 0x29a   : > { %v11787_v39 = vpop.permute.xlu0 %11786  ;;  %3612 = vst.msk [vmem:[#allocation3 + $0x6c] sm:$0xf] %vm16513_vm1, %v10612_v55  ;;  %11196 = vmatprep.mubr.msk.bf16.mxu0 %vm16516_vm2, %v11960_v31  ;;  %vm16526_vm0 = vmmov %vm16513_vm1  ;;  %v11977_v41 = vld [vmem:[#allocation3 + $0x3c] sm:$0xff]   ;;  %v11987_v48 = vld [vmem:[#allocation3 + $0x8c] sm:$0xff]  }
 0x29b   : > { %3613 = vst.msk [vmem:[#allocation3 + $0x70] sm:$0xf] %vm16514_vm4, %v10613_v15  ;;  %v11789_v38 = vunpack.i.h.bf16 %v11787_v39  ;;  %v11788_v46 = vunpack.i.l.bf16 %v11787_v39  ;;  %v3424_v26 = vsel %vm16032_vm12, %v14046_v10, %v11784_v16  ;;  %v3423_v27 = vsel %vm16032_vm12, %v14042_v11, %v11783_v19  ;;  %vm16527_vm1 = vmmov %vm16516_vm2  ;;  %v11981_v34 = vld [vmem:[#allocation3 + $0x5c] sm:$0xff]  }
 0x29c   : > { %vm16528_vm4 = vmmov %vm16527_vm1 }
 0x29d   : > { %v3455_v5 = vsel %vm16031_vm6, %v3422_v54, %v11789_v38  ;;  %v3454_v45 = vsel %vm16031_vm6, %v3421_v50, %v11788_v46  ;;  %vm16529_vm9 = vmmov %vm16527_vm1 }
 0x29e   : > { %v11792_v42 = vpop.permute.xlu1 %11791  ;;  %v10615_v32 = vpack.c.bf16 %v3455_v5, %v3455_v5  ;;  %v10614_v29 = vpack.c.bf16 %v3454_v45, %v3454_v45  ;;  %v11797_v0 = vpop.permute.xlu0 %11796  ;;  %vm16530_vm2 = vmmov %vm16527_vm1 }
 0x29f   : > { %v11794_v20 = vunpack.i.h.bf16 %v11792_v42  ;;  %v11793_v14 = vunpack.i.l.bf16 %v11792_v42  ;;  %v11799_v9 = vunpack.i.h.bf16 %v11797_v0  ;;  %v11798_v7 = vunpack.i.l.bf16 %v11797_v0  ;;  %v11961_v3 = vld [vmem:[#allocation3 + $0x64] sm:$0xff]  }
 0x2a0   : > { %3615 = vst.msk [vmem:[#allocation3 + $0x78] sm:$0xf] %vm16517_vm5, %v10615_v32  ;;  %v11962_v22 = vld [vmem:[#allocation3 + $0x64] sm:$0xff]   ;;  %11162 = vmatprep.mubr.msk.bf16.mxu1 %vm16519_vm8, %v11961_v3  ;;  %vm16531_vm5 = vmmov %vm16527_vm1 }
 0x2a1   : > { %3614 = vst.msk [vmem:[#allocation3 + $0x74] sm:$0xf] %vm16518_vm15, %v10614_v29  ;;  %v3456_v51 = vsel %vm16031_vm6, %v3423_v27, %v11793_v14  ;;  %v3457_v33 = vsel %vm16031_vm6, %v3424_v26, %v11794_v20  ;;  %11197 = vmatmul.mubr.msk.bf16.gmra.mxu0 %vm16520_vm13, %v11962_v22  ;;  %v3425_v63 = vsel %vm16032_vm12, %v14049_v24, %v11798_v7  ;;  %vm16532_vm15 = vmmov %vm16527_vm1  ;;  %v11982_v60 = vld [vmem:[#allocation3 + $0x64] sm:$0xff]  }
 0x2a2   : > { %v10616_v44 = vpack.c.bf16 %v3456_v51, %v3456_v51  ;;  %v10617_v8 = vpack.c.bf16 %v3457_v33, %v3457_v33  ;;  %v11802_v4 = vpop.permute.xlu1 %11801  ;;  %v11963_v11 = vld [vmem:[#allocation3 + $0x6c] sm:$0xff]   ;;  %v3426_v57 = vsel %vm16032_vm12, %v14052_v1, %v11799_v9  ;;  %vm16533_vm8 = vmmov %vm16527_vm1 }
 0x2a3   : > { %v11804_v10 = vunpack.i.h.bf16 %v11802_v4  ;;  %v11803_v53 = vunpack.i.l.bf16 %v11802_v4  ;;  %v11964_v17 = vld [vmem:[#allocation3 + $0x6c] sm:$0xff]   ;;  %11163 = vmatmul.mubr.msk.bf16.gmra.mxu1 %vm16523_vm3, %v11963_v11  ;;  %vm16534_vm13 = vmmov %vm16527_vm1 }
 0x2a4   : > { %3616 = vst.msk [vmem:[#allocation3 + $0x7c] sm:$0xf] %vm16521_vm10, %v10616_v44  ;;  %11200 = vmatprep.mubr.msk.bf16.mxu0 %vm16524_vm7, %v11964_v17  ;;  %vm16535_vm10 = vmmov %vm16527_vm1  ;;  %v11983_v58 = vld [vmem:[#allocation3 + $0x6c] sm:$0xff]  }
 0x2a5   : > { %3617 = vst.msk [vmem:[#allocation3 + $0x80] sm:$0xf] %vm16522_vm11, %v10617_v8  ;;  %v3459_v2 = vsel %vm16031_vm6, %v3426_v57, %v11804_v10  ;;  %v3458_v21 = vsel %vm16031_vm6, %v3425_v63, %v11803_v53  ;;  %vm16536_vm11 = vmmov %vm16527_vm1  ;;  %vm16589_vm6 = vcmask 1040384  }
 0x2a6   : > { %v10619_v43 = vpack.c.bf16 %v3459_v2, %v3459_v2  ;;  %v10618_v56 = vpack.c.bf16 %v3458_v21, %v3458_v21  ;;  %vm16537_vm3 = vmmov %vm16527_vm1 }
 0x2a7   : > { %vm16538_vm7 = vmmov %vm16527_vm1 }
 0x2a8   : > { %3619 = vst.msk [vmem:[#allocation3 + $0x88] sm:$0xf] %vm16525_vm14, %v10619_v43  ;;  %v11965_v24 = vld [vmem:[#allocation3 + $0x74] sm:$0xff]   ;;  %vm16539_vm14 = vmmov %vm16527_vm1 }
 0x2a9   : > { %3618 = vst.msk [vmem:[#allocation3 + $0x84] sm:$0xf] %vm16526_vm0, %v10618_v56  ;;  %v11966_v1 = vld [vmem:[#allocation3 + $0x74] sm:$0xff]   ;;  %11166 = vmatprep.mubr.msk.bf16.mxu1 %vm16527_vm1, %v11965_v24  ;;  %vm16540_vm0 = vmmov %vm16527_vm1 }
 0x2aa   : > { %11201 = vmatmul.mubr.msk.bf16.gmra.mxu0 %vm16528_vm4, %v11966_v1  ;;  %vm16541_vm1 = vmmov %vm16540_vm0  ;;  %v11984_v47 = vld [vmem:[#allocation3 + $0x74] sm:$0xff]  }
 0x2ab   : > { %vm16542_vm4 = vmmov %vm16540_vm0 }
 0x2ac   : > { %v11968_v62 = vld [vmem:[#allocation3 + $0x7c] sm:$0xff]  }
 0x2ad   : > { %v11969_v23 = vld [vmem:[#allocation3 + $0x7c] sm:$0xff]   ;;  %11167 = vmatmul.mubr.msk.bf16.gmra.mxu1 %vm16529_vm9, %v11968_v62  ;;  %vm16543_vm9 = vmmov %vm16540_vm0 }
 0x2ae   : > { %11204 = vmatprep.mubr.msk.bf16.mxu0 %vm16530_vm2, %v11969_v23  ;;  %11214 = vmatprep.mubr.msk.bf16.mxu1 %vm16531_vm5, %v11970_v40  ;;  %vm16544_vm2 = vmmov %vm16540_vm0  ;;  %v11985_v6 = vld [vmem:[#allocation3 + $0x7c] sm:$0xff]  }
 0x2af   : > { %vm16545_vm5 = vmmov %vm16540_vm0 }
 0x2b0   : > { %v11971_v59 = vld [vmem:[#allocation3 + $0x84] sm:$0xff]  }
 0x2b1   : > { %v11986_v35 = vld [vmem:[#allocation3 + $0x84] sm:$0xff]  }
 0x2b2   : > { %11205 = vmatmul.mubr.msk.bf16.gmra.mxu0 %vm16532_vm15, %v11971_v59  ;;  %vm16546_vm15 = vmmov %vm16540_vm0 }
 0x2b5   : > { %11215 = vmatmul.mubr.msk.bf16.vlgmr.msra.gmra.mxu1 %vm16533_vm8, %v11973_v36  ;;  %vm16547_vm8 = vmmov %vm16540_vm0 }
 0x2b6   : > { %11218 = vmatprep.mubr.msk.bf16.mxu1 %vm16534_vm13, %v11974_v28 }
 0x2bd   : > { %11219 = vmatmul.mubr.msk.bf16.gmra.mxu1 %vm16535_vm10, %v11975_v61 }
 0x2be   : > { %11222 = vmatprep.mubr.msk.bf16.mxu1 %vm16536_vm11, %v11976_v18 }
 0x2c5   : > { %11223 = vmatmul.mubr.msk.bf16.gmra.mxu1 %vm16537_vm3, %v11977_v41 }
 0x2c6   : > { %11226 = vmatprep.mubr.msk.bf16.mxu1 %vm16538_vm7, %v11978_v37 }
 0x2cd   : > { %11227 = vmatmul.mubr.msk.bf16.gmra.mxu1 %vm16539_vm14, %v11979_v25 }
 0x2ce   : > { %11230 = vmatprep.mubr.msk.bf16.mxu1 %vm16540_vm0, %v11980_v13  ;;  %vm16567_vm0 = vcmask 1046528  }
 0x2d5   : > { %11231 = vmatmul.mubr.msk.bf16.gmra.mxu1 %vm16541_vm1, %v11981_v34  ;;  %vm16568_vm1 = vcmask 1040384  }
 0x2d6   : > { %11234 = vmatprep.mubr.msk.bf16.mxu1 %vm16542_vm4, %v11982_v60 }
 0x2dd   : > { %11235 = vmatmul.mubr.msk.bf16.gmra.mxu1 %vm16543_vm9, %v11983_v58 }
 0x2de   : > { %11238 = vmatprep.mubr.msk.bf16.mxu1 %vm16544_vm2, %v11984_v47 }
 0x2e5   : > { %11239 = vmatmul.mubr.msk.bf16.gmra.mxu1 %vm16545_vm5, %v11985_v6  ;;  %vm16575_vm5 = vmmov %vm16567_vm0 }
 0x2e6   : > { %11242 = vmatprep.mubr.msk.bf16.mxu1 %vm16546_vm15, %v11986_v35  ;;  %vm16576_vm15 = vmmov %vm16568_vm1 }
 0x2ed   : > { %11243 = vmatmul.mubr.msk.bf16.gmra.mxu1 %vm16547_vm8, %v11987_v48 }
 0x32d   : > { %v11140_v52 = vpop.f32.mrf.mxu1 }
 0x32e   : > { %3968 = vst.msk [vmem:[#allocation9 + $0x10] sm:$0xff] %vm16032_vm12, %v11140_v52 }
 0x32f   : > { %v3839_v55 = vpop.f32.mrf.mxu1 }
 0x330   : > { %3966 = vst.msk [vmem:[#allocation9] sm:$0xff] %vm16032_vm12, %v3839_v55 }
 0x331   : > { %v11141_v15 = vpop.f32.mrf.mxu1 }
 0x332   : > { %3969 = vst.msk [vmem:[#allocation9 + $0x18] sm:$0xff] %vm16032_vm12, %v11141_v15 }
 0x333   : > { %v3842_v30 = vpop.f32.mrf.mxu1 }
 0x334   : > { %v11178_v39 = vpop.f32.mrf.mxu0  ;;  %3967 = vst.msk [vmem:[#allocation9 + $0x8] sm:$0xff] %vm16032_vm12, %v3842_v30 }
 0x335   : > { %v4346_v49 = vld [vmem:[#allocation9 + $0x10] sm:$0xff] }
 0x336   : > { %v4378_v38 = vadd.f32 %v11178_v39, %v4346_v49  ;;  %v4217_v46 = vpop.f32.mrf.mxu0 }
 0x337   : > { %v11144_v16 = vpop.f32.mrf.mxu1  ;;  %v4344_v19 = vld [vmem:[#allocation9] sm:$0xff] }
 0x338   : > { %3972 = vst.msk [vmem:[#allocation9 + $0x30] sm:$0xff] %vm16032_vm12, %v11144_v16  ;;  %4410 = vst.msk [vmem:[#allocation9 + $0x10] sm:$0xff] %vm16032_vm12, %v4378_v38  ;;  %v4376_v31 = vadd.f32 %v4344_v19, %v4217_v46  ;;  %v11179_v50 = vpop.f32.mrf.mxu0 }
 0x339   : > { %v3855_v54 = vpop.f32.mrf.mxu1  ;;  %v4347_v5 = vld [vmem:[#allocation9 + $0x18] sm:$0xff] }
 0x33a   : > { %3970 = vst.msk [vmem:[#allocation9 + $0x20] sm:$0xff] %vm16032_vm12, %v3855_v54  ;;  %4408 = vst.msk [vmem:[#allocation9] sm:$0xff] %vm16032_vm12, %v4376_v31  ;;  %v4379_v45 = vadd.f32 %v11179_v50, %v4347_v5  ;;  %v4220_v42 = vpop.f32.mrf.mxu0 }
 0x33b   : > { %v11145_v32 = vpop.f32.mrf.mxu1  ;;  %v4345_v29 = vld [vmem:[#allocation9 + $0x8] sm:$0xff] }
 0x33c   : > { %3973 = vst.msk [vmem:[#allocation9 + $0x38] sm:$0xff] %vm16032_vm12, %v11145_v32  ;;  %4411 = vst.msk [vmem:[#allocation9 + $0x18] sm:$0xff] %vm16032_vm12, %v4379_v45  ;;  %v4377_v0 = vadd.f32 %v4345_v29, %v4220_v42  ;;  %v11990_v45 = vld [vmem:[#allocation15 + $0x4] ss:$8 sps:$4 sm:$0xff]  }
 0x33d   : > { %v11182_v20 = vpop.f32.mrf.mxu0  ;;  %v3858_v14 = vpop.f32.mrf.mxu1  ;;  %5225 = vmatprep.mubr.bf16.mxu0 %v11990_v45 }
 0x33e   : > { %3971 = vst.msk [vmem:[#allocation9 + $0x28] sm:$0xff] %vm16032_vm12, %v3858_v14  ;;  %4409 = vst.msk [vmem:[#allocation9 + $0x8] sm:$0xff] %vm16032_vm12, %v4377_v0 }
 0x33f   : > { %v4350_v26 = vld [vmem:[#allocation9 + $0x30] sm:$0xff]  ;;  %v4233_v27 = vpop.f32.mrf.mxu0 }
 0x340   : > { %v11148_v9 = vpop.f32.mrf.mxu1  ;;  %v4382_v7 = vadd.f32 %v11182_v20, %v4350_v26 }
 0x341   : > { %3976 = vst.msk [vmem:[#allocation9 + $0x50] sm:$0xff] %vm16032_vm12, %v11148_v9  ;;  %v4348_v3 = vld [vmem:[#allocation9 + $0x20] sm:$0xff]  ;;  %v11183_v51 = vpop.f32.mrf.mxu0 }
 0x342   : > { %v3871_v33 = vpop.f32.mrf.mxu1  ;;  %4414 = vst.msk [vmem:[#allocation9 + $0x30] sm:$0xff] %vm16032_vm12, %v4382_v7  ;;  %v4380_v22 = vadd.f32 %v4348_v3, %v4233_v27 }
 0x343   : > { %3974 = vst.msk [vmem:[#allocation9 + $0x40] sm:$0xff] %vm16032_vm12, %v3871_v33  ;;  %v4351_v44 = vld [vmem:[#allocation9 + $0x38] sm:$0xff]  ;;  %v4236_v8 = vpop.f32.mrf.mxu0 }
 0x344   : > { %v11149_v4 = vpop.f32.mrf.mxu1  ;;  %4412 = vst.msk [vmem:[#allocation9 + $0x20] sm:$0xff] %vm16032_vm12, %v4380_v22  ;;  %v4383_v10 = vadd.f32 %v11183_v51, %v4351_v44 }
 0x345   : > { %3977 = vst.msk [vmem:[#allocation9 + $0x58] sm:$0xff] %vm16032_vm12, %v11149_v4  ;;  %v4349_v53 = vld [vmem:[#allocation9 + $0x28] sm:$0xff] }
 0x346   : > { %v3874_v63 = vpop.f32.mrf.mxu1  ;;  %4415 = vst.msk [vmem:[#allocation9 + $0x38] sm:$0xff] %vm16032_vm12, %v4383_v10  ;;  %v4381_v57 = vadd.f32 %v4349_v53, %v4236_v8 }
 0x347   : > { %v11186_v11 = vpop.f32.mrf.mxu0  ;;  %3975 = vst.msk [vmem:[#allocation9 + $0x48] sm:$0xff] %vm16032_vm12, %v3874_v63 }
 0x348   : > { %v4354_v17 = vld [vmem:[#allocation9 + $0x50] sm:$0xff]  ;;  %v11152_v21 = vpop.f32.mrf.mxu1  ;;  %4413 = vst.msk [vmem:[#allocation9 + $0x28] sm:$0xff] %vm16032_vm12, %v4381_v57 }
 0x349   : > { %v4249_v2 = vpop.f32.mrf.mxu0  ;;  %v4386_v43 = vadd.f32 %v11186_v11, %v4354_v17  ;;  %3980 = vst.msk [vmem:[#allocation9 + $0x70] sm:$0xff] %vm16032_vm12, %v11152_v21 }
 0x34a   : > { %v4352_v56 = vld [vmem:[#allocation9 + $0x40] sm:$0xff]  ;;  %v3887_v1 = vpop.f32.mrf.mxu1 }
 0x34b   : > { %v11187_v24 = vpop.f32.mrf.mxu0  ;;  %4418 = vst.msk [vmem:[#allocation9 + $0x50] sm:$0xff] %vm16032_vm12, %v4386_v43  ;;  %v4384_v40 = vadd.f32 %v4352_v56, %v4249_v2  ;;  %3978 = vst.msk [vmem:[#allocation9 + $0x60] sm:$0xff] %vm16032_vm12, %v3887_v1 }
 0x34c   : > { %v4355_v62 = vld [vmem:[#allocation9 + $0x58] sm:$0xff]  ;;  %v11153_v59 = vpop.f32.mrf.mxu1 }
 0x34d   : > { %v4252_v23 = vpop.f32.mrf.mxu0  ;;  %4416 = vst.msk [vmem:[#allocation9 + $0x40] sm:$0xff] %vm16032_vm12, %v4384_v40  ;;  %v4387_v36 = vadd.f32 %v11187_v24, %v4355_v62  ;;  %3981 = vst.msk [vmem:[#allocation9 + $0x78] sm:$0xff] %vm16032_vm12, %v11153_v59 }
 0x34e   : > { %v4353_v28 = vld [vmem:[#allocation9 + $0x48] sm:$0xff]  ;;  %v3890_v18 = vpop.f32.mrf.mxu1 }
 0x34f   : > { %v11190_v61 = vpop.f32.mrf.mxu0  ;;  %4419 = vst.msk [vmem:[#allocation9 + $0x58] sm:$0xff] %vm16032_vm12, %v4387_v36  ;;  %v4385_v41 = vadd.f32 %v4353_v28, %v4252_v23  ;;  %3979 = vst.msk [vmem:[#allocation9 + $0x68] sm:$0xff] %vm16032_vm12, %v3890_v18 }
 0x350   : > { %v4358_v37 = vld [vmem:[#allocation9 + $0x70] sm:$0xff] }
 0x351   : > { %v4265_v25 = vpop.f32.mrf.mxu0  ;;  %v11156_v13 = vpop.f32.mrf.mxu1  ;;  %4417 = vst.msk [vmem:[#allocation9 + $0x48] sm:$0xff] %vm16032_vm12, %v4385_v41  ;;  %v4390_v34 = vadd.f32 %v11190_v61, %v4358_v37 }
 0x352   : > { %3984 = vst.msk [vmem:[#allocation9 + $0x90] sm:$0xff] %vm16032_vm12, %v11156_v13  ;;  %v4356_v60 = vld [vmem:[#allocation9 + $0x60] sm:$0xff] }
 0x353   : > { %v11191_v58 = vpop.f32.mrf.mxu0  ;;  %v3903_v47 = vpop.f32.mrf.mxu1  ;;  %4422 = vst.msk [vmem:[#allocation9 + $0x70] sm:$0xff] %vm16032_vm12, %v4390_v34  ;;  %v4388_v6 = vadd.f32 %v4356_v60, %v4265_v25 }
 0x354   : > { %3982 = vst.msk [vmem:[#allocation9 + $0x80] sm:$0xff] %vm16032_vm12, %v3903_v47  ;;  %v4359_v35 = vld [vmem:[#allocation9 + $0x78] sm:$0xff] }
 0x355   : > { %v4268_v48 = vpop.f32.mrf.mxu0  ;;  %v11157_v52 = vpop.f32.mrf.mxu1  ;;  %4420 = vst.msk [vmem:[#allocation9 + $0x60] sm:$0xff] %vm16032_vm12, %v4388_v6  ;;  %v4391_v55 = vadd.f32 %v11191_v58, %v4359_v35  ;;  %v4788_v58 = vld [vmem:[#allocation9 + $0x10] sm:$0xff] }
 0x356   : > { %3985 = vst.msk [vmem:[#allocation9 + $0x98] sm:$0xff] %vm16032_vm12, %v11157_v52  ;;  %v4357_v15 = vld [vmem:[#allocation9 + $0x68] sm:$0xff] }
 0x357   : > { %v3906_v39 = vpop.f32.mrf.mxu1  ;;  %4423 = vst.msk [vmem:[#allocation9 + $0x78] sm:$0xff] %vm16032_vm12, %v4391_v55  ;;  %v4389_v49 = vadd.f32 %v4357_v15, %v4268_v48  ;;  %v4786_v55 = vld [vmem:[#allocation9] sm:$0xff] }
 0x358   : > { %v11194_v30 = vpop.f32.mrf.mxu0  ;;  %3983 = vst.msk [vmem:[#allocation9 + $0x88] sm:$0xff] %vm16032_vm12, %v3906_v39 }
 0x359   : > { %v4362_v38 = vld [vmem:[#allocation9 + $0x90] sm:$0xff]  ;;  %v11160_v16 = vpop.f32.mrf.mxu1  ;;  %4421 = vst.msk [vmem:[#allocation9 + $0x68] sm:$0xff] %vm16032_vm12, %v4389_v49 }
 0x35a   : > { %v4281_v46 = vpop.f32.mrf.mxu0  ;;  %v4394_v19 = vadd.f32 %v11194_v30, %v4362_v38  ;;  %3988 = vst.msk [vmem:[#allocation9 + $0xb0] sm:$0xff] %vm16032_vm12, %v11160_v16  ;;  %v4789_v38 = vld [vmem:[#allocation9 + $0x18] sm:$0xff] }
 0x35b   : > { %v4360_v31 = vld [vmem:[#allocation9 + $0x80] sm:$0xff]  ;;  %v3919_v54 = vpop.f32.mrf.mxu1 }
 0x35c   : > { %v11195_v50 = vpop.f32.mrf.mxu0  ;;  %4426 = vst.msk [vmem:[#allocation9 + $0x90] sm:$0xff] %vm16032_vm12, %v4394_v19  ;;  %v4392_v5 = vadd.f32 %v4360_v31, %v4281_v46  ;;  %3986 = vst.msk [vmem:[#allocation9 + $0xa0] sm:$0xff] %vm16032_vm12, %v3919_v54  ;;  %v4787_v54 = vld [vmem:[#allocation9 + $0x8] sm:$0xff] }
 0x35d   : > { %v4363_v42 = vld [vmem:[#allocation9 + $0x98] sm:$0xff]  ;;  %v11161_v29 = vpop.f32.mrf.mxu1 }
 0x35e   : > { %v4284_v32 = vpop.f32.mrf.mxu0  ;;  %4424 = vst.msk [vmem:[#allocation9 + $0x80] sm:$0xff] %vm16032_vm12, %v4392_v5  ;;  %v4395_v0 = vadd.f32 %v11195_v50, %v4363_v42  ;;  %3989 = vst.msk [vmem:[#allocation9 + $0xb8] sm:$0xff] %vm16032_vm12, %v11161_v29 }
 0x35f   : > { %v4361_v20 = vld [vmem:[#allocation9 + $0x88] sm:$0xff]  ;;  %v3922_v26 = vpop.f32.mrf.mxu1 }
 0x360   : > { %4427 = vst.msk [vmem:[#allocation9 + $0x98] sm:$0xff] %vm16032_vm12, %v4395_v0  ;;  %v4393_v27 = vadd.f32 %v4361_v20, %v4284_v32  ;;  %3987 = vst.msk [vmem:[#allocation9 + $0xa8] sm:$0xff] %vm16032_vm12, %v3922_v26  ;;  %v4792_v32 = vld [vmem:[#allocation9 + $0x30] sm:$0xff]  ;;  %v4790_v20 = vld [vmem:[#allocation9 + $0x20] sm:$0xff] }
 0x361   : > { %v11198_v14 = vpop.f32.mrf.mxu0  ;;  %v4366_v9 = vld [vmem:[#allocation9 + $0xb0] sm:$0xff] }
 0x362   : > { %4425 = vst.msk [vmem:[#allocation9 + $0x88] sm:$0xff] %vm16032_vm12, %v4393_v27  ;;  %v4398_v51 = vadd.f32 %v11198_v14, %v4366_v9  ;;  %v4793_v27 = vld [vmem:[#allocation9 + $0x38] sm:$0xff] }
 0x363   : > { %v4297_v7 = vpop.f32.mrf.mxu0  ;;  %v11164_v3 = vpop.f32.mrf.mxu1  ;;  %v4364_v33 = vld [vmem:[#allocation9 + $0xa0] sm:$0xff] }
 0x364   : > { %3992 = vst.msk [vmem:[#allocation9 + $0xd0] sm:$0xff] %vm16032_vm12, %v11164_v3  ;;  %4430 = vst.msk [vmem:[#allocation9 + $0xb0] sm:$0xff] %vm16032_vm12, %v4398_v51  ;;  %v4396_v8 = vadd.f32 %v4364_v33, %v4297_v7  ;;  %v4791_v3 = vld [vmem:[#allocation9 + $0x28] sm:$0xff] }
 0x365   : > { %v11199_v22 = vpop.f32.mrf.mxu0  ;;  %v3935_v44 = vpop.f32.mrf.mxu1  ;;  %v4367_v4 = vld [vmem:[#allocation9 + $0xb8] sm:$0xff] }
 0x366   : > { %3990 = vst.msk [vmem:[#allocation9 + $0xc0] sm:$0xff] %vm16032_vm12, %v3935_v44  ;;  %4428 = vst.msk [vmem:[#allocation9 + $0xa0] sm:$0xff] %vm16032_vm12, %v4396_v8  ;;  %v4399_v11 = vadd.f32 %v11199_v22, %v4367_v4  ;;  %v4796_v22 = vld [vmem:[#allocation9 + $0x50] sm:$0xff]  ;;  %v4794_v4 = vld [vmem:[#allocation9 + $0x40] sm:$0xff] }
 0x367   : > { %v4300_v10 = vpop.f32.mrf.mxu0  ;;  %v11165_v53 = vpop.f32.mrf.mxu1  ;;  %v4365_v63 = vld [vmem:[#allocation9 + $0xa8] sm:$0xff] }
 0x368   : > { %3993 = vst.msk [vmem:[#allocation9 + $0xd8] sm:$0xff] %vm16032_vm12, %v11165_v53  ;;  %4431 = vst.msk [vmem:[#allocation9 + $0xb8] sm:$0xff] %vm16032_vm12, %v4399_v11  ;;  %v4397_v2 = vadd.f32 %v4365_v63, %v4300_v10  ;;  %v4797_v11 = vld [vmem:[#allocation9 + $0x58] sm:$0xff] }
 0x369   : > { %v3938_v17 = vpop.f32.mrf.mxu1 }
 0x36a   : > { %v11202_v57 = vpop.f32.mrf.mxu0  ;;  %3991 = vst.msk [vmem:[#allocation9 + $0xc8] sm:$0xff] %vm16032_vm12, %v3938_v17  ;;  %4429 = vst.msk [vmem:[#allocation9 + $0xa8] sm:$0xff] %vm16032_vm12, %v4397_v2  ;;  %v4795_v17 = vld [vmem:[#allocation9 + $0x48] sm:$0xff] }
 0x36b   : > { %v4370_v21 = vld [vmem:[#allocation9 + $0xd0] sm:$0xff] }
 0x36c   : > { %v4313_v43 = vpop.f32.mrf.mxu0  ;;  %v4402_v24 = vadd.f32 %v11202_v57, %v4370_v21 }
 0x36d   : > { %v11168_v56 = vpop.f32.mrf.mxu1  ;;  %v4368_v1 = vld [vmem:[#allocation9 + $0xc0] sm:$0xff] }
 0x36e   : > { %3996 = vst.msk [vmem:[#allocation9 + $0xf0] sm:$0xff] %vm16032_vm12, %v11168_v56  ;;  %v11203_v40 = vpop.f32.mrf.mxu0  ;;  %4434 = vst.msk [vmem:[#allocation9 + $0xd0] sm:$0xff] %vm16032_vm12, %v4402_v24  ;;  %v4400_v23 = vadd.f32 %v4368_v1, %v4313_v43  ;;  %v4800_v43 = vld [vmem:[#allocation9 + $0x70] sm:$0xff]  ;;  %v4798_v1 = vld [vmem:[#allocation9 + $0x60] sm:$0xff] }
 0x36f   : > { %v3951_v62 = vpop.f32.mrf.mxu1  ;;  %v4371_v59 = vld [vmem:[#allocation9 + $0xd8] sm:$0xff] }
 0x370   : > { %3994 = vst.msk [vmem:[#allocation9 + $0xe0] sm:$0xff] %vm16032_vm12, %v3951_v62  ;;  %v4316_v36 = vpop.f32.mrf.mxu0  ;;  %4432 = vst.msk [vmem:[#allocation9 + $0xc0] sm:$0xff] %vm16032_vm12, %v4400_v23  ;;  %v4403_v61 = vadd.f32 %v11203_v40, %v4371_v59  ;;  %v4801_v23 = vld [vmem:[#allocation9 + $0x78] sm:$0xff] }
 0x371   : > { %v11169_v28 = vpop.f32.mrf.mxu1  ;;  %v4369_v18 = vld [vmem:[#allocation9 + $0xc8] sm:$0xff] }
 0x372   : > { %3997 = vst.msk [vmem:[#allocation9 + $0xf8] sm:$0xff] %vm16032_vm12, %v11169_v28  ;;  %v11206_v41 = vpop.f32.mrf.mxu0  ;;  %4435 = vst.msk [vmem:[#allocation9 + $0xd8] sm:$0xff] %vm16032_vm12, %v4403_v61  ;;  %v4401_v25 = vadd.f32 %v4369_v18, %v4316_v36  ;;  %v4799_v28 = vld [vmem:[#allocation9 + $0x68] sm:$0xff] }
 0x373   : > { %v3954_v37 = vpop.f32.mrf.mxu1 }
 0x374   : > { %3995 = vst.msk [vmem:[#allocation9 + $0xe8] sm:$0xff] %vm16032_vm12, %v3954_v37  ;;  %v4329_v34 = vpop.f32.mrf.mxu0  ;;  %4433 = vst.msk [vmem:[#allocation9 + $0xc8] sm:$0xff] %vm16032_vm12, %v4401_v25 }
 0x375   : > { %v4374_v13 = vld [vmem:[#allocation9 + $0xf0] sm:$0xff]  ;;  %v11216_v60 = vpop.f32.mrf.mxu1 }
 0x376   : > { %v4406_v47 = vadd.f32 %v11206_v41, %v4374_v13  ;;  %v4820_v6 = vadd.f32 %v11216_v60, %v4788_v58  ;;  %v11207_v48 = vpop.f32.mrf.mxu0  ;;  %v4804_v41 = vld [vmem:[#allocation9 + $0x90] sm:$0xff]  ;;  %v4802_v13 = vld [vmem:[#allocation9 + $0x80] sm:$0xff]  ;;  %v4805_v58 = vld [vmem:[#allocation9 + $0x98] sm:$0xff] }
 0x377   : > { %v4372_v35 = vld [vmem:[#allocation9 + $0xe0] sm:$0xff]  ;;  %v4659_v52 = vpop.f32.mrf.mxu1 }
 0x378   : > { %4438 = vst.msk [vmem:[#allocation9 + $0xf0] sm:$0xff] %vm16032_vm12, %v4406_v47  ;;  %v4404_v15 = vadd.f32 %v4372_v35, %v4329_v34  ;;  %4852 = vst.msk [vmem:[#allocation9 + $0x10] sm:$0xff] %vm16032_vm12, %v4820_v6  ;;  %v4818_v30 = vadd.f32 %v4786_v55, %v4659_v52  ;;  %v4332_v19 = vpop.f32.mrf.mxu0  ;;  %v4803_v35 = vld [vmem:[#allocation9 + $0x88] sm:$0xff]  ;;  %v4808_v55 = vld [vmem:[#allocation9 + $0xb0] sm:$0xff] }
 0x379   : > { %v4375_v39 = vld [vmem:[#allocation9 + $0xf8] sm:$0xff]  ;;  %v11217_v49 = vpop.f32.mrf.mxu1 }
 0x37a   : > { %4436 = vst.msk [vmem:[#allocation9 + $0xe0] sm:$0xff] %vm16032_vm12, %v4404_v15  ;;  %v4407_v46 = vadd.f32 %v11207_v48, %v4375_v39  ;;  %4850 = vst.msk [vmem:[#allocation9] sm:$0xff] %vm16032_vm12, %v4818_v30  ;;  %v4821_v16 = vadd.f32 %v11217_v49, %v4789_v38  ;;  %v4806_v39 = vld [vmem:[#allocation9 + $0xa0] sm:$0xff] }
 0x37b   : > { %v4373_v31 = vld [vmem:[#allocation9 + $0xe8] sm:$0xff]  ;;  %v4662_v50 = vpop.f32.mrf.mxu1 }
 0x37c   : > { %4439 = vst.msk [vmem:[#allocation9 + $0xf8] sm:$0xff] %vm16032_vm12, %v4407_v46  ;;  %v4405_v5 = vadd.f32 %v4373_v31, %v4332_v19  ;;  %4853 = vst.msk [vmem:[#allocation9 + $0x18] sm:$0xff] %vm16032_vm12, %v4821_v16  ;;  %v4819_v45 = vadd.f32 %v4787_v54, %v4662_v50  ;;  %v4809_v46 = vld [vmem:[#allocation9 + $0xb8] sm:$0xff]  ;;  %v4807_v31 = vld [vmem:[#allocation9 + $0xa8] sm:$0xff] }
 0x37d   : > { %v11220_v42 = vpop.f32.mrf.mxu1 }
 0x37e   : > { %4437 = vst.msk [vmem:[#allocation9 + $0xe8] sm:$0xff] %vm16032_vm12, %v4405_v5  ;;  %4851 = vst.msk [vmem:[#allocation9 + $0x8] sm:$0xff] %vm16032_vm12, %v4819_v45  ;;  %v4824_v29 = vadd.f32 %v11220_v42, %v4792_v32  ;;  %v4812_v5 = vld [vmem:[#allocation9 + $0xd0] sm:$0xff]  ;;  %v4810_v32 = vld [vmem:[#allocation9 + $0xc0] sm:$0xff] }
 0x37f   : > { %v4675_v0 = vpop.f32.mrf.mxu1 }
 0x380   : > { %4856 = vst.msk [vmem:[#allocation9 + $0x30] sm:$0xff] %vm16032_vm12, %v4824_v29  ;;  %v4822_v14 = vadd.f32 %v4790_v20, %v4675_v0  ;;  %v4813_v20 = vld [vmem:[#allocation9 + $0xd8] sm:$0xff] }
 0x381   : > { %v11221_v26 = vpop.f32.mrf.mxu1 }
 0x382   : > { %4854 = vst.msk [vmem:[#allocation9 + $0x20] sm:$0xff] %vm16032_vm12, %v4822_v14  ;;  %v4825_v9 = vadd.f32 %v11221_v26, %v4793_v27  ;;  %v4811_v27 = vld [vmem:[#allocation9 + $0xc8] sm:$0xff] }
 0x383   : > { %v4678_v7 = vpop.f32.mrf.mxu1 }
 0x384   : > { %4857 = vst.msk [vmem:[#allocation9 + $0x38] sm:$0xff] %vm16032_vm12, %v4825_v9  ;;  %v4823_v51 = vadd.f32 %v4791_v3, %v4678_v7  ;;  %v4816_v3 = vld [vmem:[#allocation9 + $0xf0] sm:$0xff] }
 0x385   : > { %v11224_v33 = vpop.f32.mrf.mxu1 }
 0x386   : > { %4855 = vst.msk [vmem:[#allocation9 + $0x28] sm:$0xff] %vm16032_vm12, %v4823_v51  ;;  %v4828_v44 = vadd.f32 %v11224_v33, %v4796_v22  ;;  %v4814_v22 = vld [vmem:[#allocation9 + $0xe0] sm:$0xff] }
 0x387   : > { %v4691_v8 = vpop.f32.mrf.mxu1 }
 0x388   : > { %4860 = vst.msk [vmem:[#allocation9 + $0x50] sm:$0xff] %vm16032_vm12, %v4828_v44  ;;  %v4826_v10 = vadd.f32 %v4794_v4, %v4691_v8  ;;  %v4817_v4 = vld [vmem:[#allocation9 + $0xf8] sm:$0xff] }
 0x389   : > { %v11225_v53 = vpop.f32.mrf.mxu1 }
 0x38a   : > { %4858 = vst.msk [vmem:[#allocation9 + $0x40] sm:$0xff] %vm16032_vm12, %v4826_v10  ;;  %v4829_v63 = vadd.f32 %v11225_v53, %v4797_v11  ;;  %v4815_v11 = vld [vmem:[#allocation9 + $0xe8] sm:$0xff] }
 0x38b   : > { %v4694_v57 = vpop.f32.mrf.mxu1 }
 0x38c   : > { %4861 = vst.msk [vmem:[#allocation9 + $0x58] sm:$0xff] %vm16032_vm12, %v4829_v63  ;;  %v4827_v2 = vadd.f32 %v4795_v17, %v4694_v57 }
 0x38d   : > { %v11228_v21 = vpop.f32.mrf.mxu1 }
 0x38e   : > { %4859 = vst.msk [vmem:[#allocation9 + $0x48] sm:$0xff] %vm16032_vm12, %v4827_v2  ;;  %v4832_v56 = vadd.f32 %v11228_v21, %v4800_v43  ;;  %v14337_v2 = vld [vmem:[%s16548_s21] ss:$0 sm:$0xff] }
 0x38f   : > { %v4707_v24 = vpop.f32.mrf.mxu1 }
 0x390   : > { %4864 = vst.msk [vmem:[#allocation9 + $0x70] sm:$0xff] %vm16032_vm12, %v4832_v56  ;;  %v4830_v40 = vadd.f32 %v4798_v1, %v4707_v24 }
 0x391   : > { %v11229_v62 = vpop.f32.mrf.mxu1 }
 0x392   : > { %4862 = vst.msk [vmem:[#allocation9 + $0x60] sm:$0xff] %vm16032_vm12, %v4830_v40  ;;  %v4833_v59 = vadd.f32 %v11229_v62, %v4801_v23 }
 0x393   : > { %v4710_v36 = vpop.f32.mrf.mxu1 }
 0x394   : > { %4865 = vst.msk [vmem:[#allocation9 + $0x78] sm:$0xff] %vm16032_vm12, %v4833_v59  ;;  %v4831_v61 = vadd.f32 %v4799_v28, %v4710_v36 }
 0x395   : > { %v11232_v18 = vpop.f32.mrf.mxu1 }
 0x396   : > { %4863 = vst.msk [vmem:[#allocation9 + $0x68] sm:$0xff] %vm16032_vm12, %v4831_v61  ;;  %v4836_v37 = vadd.f32 %v11232_v18, %v4804_v41 }
 0x397   : > { %v4723_v25 = vpop.f32.mrf.mxu1  ;;  %v4896_v21 = vld [vmem:[#allocation9 + $0x70] sm:$0xff] }
 0x398   : > { %4868 = vst.msk [vmem:[#allocation9 + $0x90] sm:$0xff] %vm16032_vm12, %v4836_v37  ;;  %v4834_v34 = vadd.f32 %v4802_v13, %v4723_v25  ;;  %v4935_v62 = vadd.f32 %v14337_v2, %v4896_v21 }
 0x399   : > { %v11233_v60 = vpop.f32.mrf.mxu1  ;;  %v4894_v28 = vld [vmem:[#allocation9 + $0x60] sm:$0xff] }
 0x39a   : > { %4866 = vst.msk [vmem:[#allocation9 + $0x80] sm:$0xff] %vm16032_vm12, %v4834_v34  ;;  %v4837_v47 = vadd.f32 %v11233_v60, %v4805_v58  ;;  %v4893_v58 = vld [vmem:[#allocation9 + $0x58] sm:$0xff] }
 0x39b   : > { %v4726_v6 = vpop.f32.mrf.mxu1  ;;  %v4897_v57 = vld [vmem:[#allocation9 + $0x78] sm:$0xff] }
 0x39c   : > { %4869 = vst.msk [vmem:[#allocation9 + $0x98] sm:$0xff] %vm16032_vm12, %v4837_v47  ;;  %v4835_v48 = vadd.f32 %v4803_v35, %v4726_v6  ;;  %v4936_v43 = vadd.f32 %v14337_v2, %v4897_v57  ;;  %v4967_v47 = vmax.f32 %v4935_v62, 0.0  ;;  %v4933_v6 = vadd.f32 %v14337_v2, %v4894_v28 }
 0x39d   : > { %v11236_v52 = vpop.f32.mrf.mxu1  ;;  %v4895_v1 = vld [vmem:[#allocation9 + $0x68] sm:$0xff] }
 0x39e   : > { %4867 = vst.msk [vmem:[#allocation9 + $0x88] sm:$0xff] %vm16032_vm12, %v4835_v48  ;;  %v4840_v15 = vadd.f32 %v11236_v52, %v4808_v55  ;;  %v4968_v61 = vmax.f32 %v4936_v43, 0.0  ;;  %v4934_v41 = vadd.f32 %v14337_v2, %v4895_v1  ;;  %v4887_v43 = vld [vmem:[#allocation9 + $0x28] sm:$0xff] }
 0x39f   : > { %v4739_v30 = vpop.f32.mrf.mxu1  ;;  %v4926_v28 = vadd.f32 %v14337_v2, %v4887_v43  ;;  %v12012_v43 = vld [vmem:[#allocation15 + $0x80] ss:$8 sps:$4 sm:$0xff]  }
 0x3a0   : > { %4872 = vst.msk [vmem:[#allocation9 + $0xb0] sm:$0xff] %vm16032_vm12, %v4840_v15  ;;  %v4838_v49 = vadd.f32 %v4806_v39, %v4739_v30  ;;  %v4892_v30 = vld [vmem:[#allocation9 + $0x50] sm:$0xff]  ;;  %v5024_v39 = vpack.c.bf16 %v4968_v61, %v4967_v47 }
 0x3a1   : > { %v11237_v38 = vpop.f32.mrf.mxu1  ;;  %v4900_v61 = vld [vmem:[#allocation9 + $0x90] sm:$0xff] }
 0x3a2   : > { %4870 = vst.msk [vmem:[#allocation9 + $0xa0] sm:$0xff] %vm16032_vm12, %v4838_v49  ;;  %v4841_v16 = vadd.f32 %v11237_v38, %v4809_v46  ;;  %v4966_v49 = vmax.f32 %v4934_v41, 0.0  ;;  %v4932_v38 = vadd.f32 %v14337_v2, %v4893_v58  ;;  %v4939_v47 = vadd.f32 %v14337_v2, %v4900_v61  ;;  %v12027_v61 = vld [vmem:[#allocation15 + $0xd0] ss:$8 sps:$4 sm:$0xff]  }
 0x3a3   : > { %v4742_v19 = vpop.f32.mrf.mxu1  ;;  %v4901_v1 = vld [vmem:[#allocation9 + $0x98] sm:$0xff] }
 0x3a4   : > { %4873 = vst.msk [vmem:[#allocation9 + $0xb8] sm:$0xff] %vm16032_vm12, %v4841_v16  ;;  %v4839_v50 = vadd.f32 %v4807_v31, %v4742_v19 }
 0x3a5   : > { %v11240_v54 = vpop.f32.mrf.mxu1 }
 0x3a6   : > { %4871 = vst.msk [vmem:[#allocation9 + $0xa8] sm:$0xff] %vm16032_vm12, %v4839_v50  ;;  %v4844_v45 = vadd.f32 %v11240_v54, %v4812_v5  ;;  %v4891_v50 = vld [vmem:[#allocation9 + $0x48] sm:$0xff]  ;;  %v4965_v54 = vmax.f32 %v4933_v6, 0.0  ;;  %v4931_v5 = vadd.f32 %v14337_v2, %v4892_v30  ;;  %v4884_v6 = vld [vmem:[#allocation9 + $0x10] sm:$0xff] }
 0x3a7   : > { %v4755_v42 = vpop.f32.mrf.mxu1 }
 0x3a8   : > { %4876 = vst.msk [vmem:[#allocation9 + $0xd0] sm:$0xff] %vm16032_vm12, %v4844_v45  ;;  %v4842_v29 = vadd.f32 %v4810_v32, %v4755_v42 }
 0x3a9   : > { %v11241_v0 = vpop.f32.mrf.mxu1 }
 0x3aa   : > { %4874 = vst.msk [vmem:[#allocation9 + $0xc0] sm:$0xff] %vm16032_vm12, %v4842_v29  ;;  %v4845_v14 = vadd.f32 %v11241_v0, %v4813_v20  ;;  %v4890_v29 = vld [vmem:[#allocation9 + $0x40] sm:$0xff]  ;;  %v5023_v0 = vpack.c.bf16 %v4966_v49, %v4965_v54  ;;  %v4964_v20 = vmax.f32 %v4932_v38, 0.0  ;;  %v4883_v49 = vld [vmem:[#allocation9 + $0x8] sm:$0xff] }
 0x3ab   : > { %v4758_v26 = vpop.f32.mrf.mxu1  ;;  %v4905_v45 = vld [vmem:[#allocation9 + $0xb8] sm:$0xff] }
 0x3ac   : > { %4877 = vst.msk [vmem:[#allocation9 + $0xd8] sm:$0xff] %vm16032_vm12, %v4845_v14  ;;  %v4843_v9 = vadd.f32 %v4811_v27, %v4758_v26  ;;  %v4930_v14 = vadd.f32 %v14337_v2, %v4891_v50  ;;  %v4904_v26 = vld [vmem:[#allocation9 + $0xb0] sm:$0xff] }
 0x3ad   : > { %v11244_v7 = vpop.f32.mrf.mxu1 }
 0x3ae   : > { %4875 = vst.msk [vmem:[#allocation9 + $0xc8] sm:$0xff] %vm16032_vm12, %v4843_v9  ;;  %v4848_v51 = vadd.f32 %v11244_v7, %v4816_v3  ;;  %v4944_v7 = vadd.f32 %v14337_v2, %v4905_v45  ;;  %v4889_v3 = vld [vmem:[#allocation9 + $0x38] sm:$0xff] }
 0x3af   : > { %v4771_v33 = vpop.f32.mrf.mxu1  ;;  %v4908_v37 = vld [vmem:[#allocation9 + $0xd0] sm:$0xff] }
 0x3b0   : > { %4880 = vst.msk [vmem:[#allocation9 + $0xf0] sm:$0xff] %vm16032_vm12, %v4848_v51  ;;  %v4846_v44 = vadd.f32 %v4814_v22, %v4771_v33  ;;  %v4947_v15 = vadd.f32 %v14337_v2, %v4908_v37  ;;  %v4963_v51 = vmax.f32 %v4931_v5, 0.0  ;;  %v4929_v33 = vadd.f32 %v14337_v2, %v4890_v29  ;;  %v4903_v22 = vld [vmem:[#allocation9 + $0xa8] sm:$0xff] }
 0x3b1   : > { %v11245_v8 = vpop.f32.mrf.mxu1  ;;  %v4906_v46 = vld [vmem:[#allocation9 + $0xc0] sm:$0xff]  ;;  %v4942_v21 = vadd.f32 %v14337_v2, %v4903_v22  ;;  %v4940_v37 = vadd.f32 %v14337_v2, %v4901_v1  ;;  %v4922_v5 = vadd.f32 %v14337_v2, %v4883_v49 }
 0x3b2   : > { %4878 = vst.msk [vmem:[#allocation9 + $0xe0] sm:$0xff] %vm16032_vm12, %v4846_v44  ;;  %v4849_v10 = vadd.f32 %v11245_v8, %v4817_v4  ;;  %v4979_v42 = vmax.f32 %v4947_v15, 0.0  ;;  %v4945_v32 = vadd.f32 %v14337_v2, %v4906_v46  ;;  %v4943_v8 = vadd.f32 %v14337_v2, %v4904_v26  ;;  %v4888_v4 = vld [vmem:[#allocation9 + $0x30] sm:$0xff]  ;;  %v11996_v22 = vld [vmem:[#allocation15 + $0x20] ss:$8 sps:$4 sm:$0xff]  }
 0x3b3   : > { %v4774_v53 = vpop.f32.mrf.mxu1  ;;  %v4909_v23 = vld [vmem:[#allocation9 + $0xd8] sm:$0xff]  ;;  %v4974_v41 = vmax.f32 %v4942_v21, 0.0  ;;  %v4972_v30 = vmax.f32 %v4940_v37, 0.0  ;;  %v4923_v46 = vadd.f32 %v14337_v2, %v4884_v6  ;;  %v12014_v21 = vld [vmem:[#allocation15 + $0x84] ss:$8 sps:$4 sm:$0xff]  }
 0x3b4   : > { %4881 = vst.msk [vmem:[#allocation9 + $0xf8] sm:$0xff] %vm16032_vm12, %v4849_v10  ;;  %v4847_v63 = vadd.f32 %v4815_v11, %v4774_v53  ;;  %v4948_v60 = vadd.f32 %v14337_v2, %v4909_v23  ;;  %v4977_v44 = vmax.f32 %v4945_v32, 0.0  ;;  %v5022_v10 = vpack.c.bf16 %v4964_v20, %v4963_v51  ;;  %v4886_v23 = vld [vmem:[#allocation9 + $0x20] sm:$0xff]  ;;  %v11993_v51 = vld [vmem:[#allocation15 + $0x10] ss:$8 sps:$4 sm:$0xff]  }
 0x3b5   : > { %v4907_v35 = vld [vmem:[#allocation9 + $0xc8] sm:$0xff]  ;;  %v4962_v53 = vmax.f32 %v4930_v14, 0.0  ;;  %v4928_v11 = vadd.f32 %v14337_v2, %v4889_v3  ;;  %v4955_v32 = vmax.f32 %v4923_v46, 0.0  ;;  %v4954_v14 = vmax.f32 %v4922_v5, 0.0  ;;  %v11991_v3 = vld [vmem:[#allocation15 + $0x14] ss:$8 sps:$4 sm:$0xff]  }
 0x3b6   : > { %4879 = vst.msk [vmem:[#allocation9 + $0xe8] sm:$0xff] %vm16032_vm12, %v4847_v63  ;;  %v4980_v19 = vmax.f32 %v4948_v60, 0.0  ;;  %v4946_v31 = vadd.f32 %v14337_v2, %v4907_v35  ;;  %v4902_v63 = vld [vmem:[#allocation9 + $0xa0] sm:$0xff]  ;;  %v4899_v60 = vld [vmem:[#allocation9 + $0x88] sm:$0xff] }
 0x3b7   : > { %v4912_v17 = vld [vmem:[#allocation9 + $0xf0] sm:$0xff]  ;;  %v4941_v62 = vadd.f32 %v14337_v2, %v4902_v63  ;;  %v12006_v63 = vld [vmem:[#allocation15 + $0x60] ss:$8 sps:$4 sm:$0xff]  }
 0x3b8   : > { %v4951_v24 = vadd.f32 %v14337_v2, %v4912_v17  ;;  %v5030_v27 = vpack.c.bf16 %v4980_v19, %v4979_v42  ;;  %v4978_v9 = vmax.f32 %v4946_v31, 0.0  ;;  %v4976_v17 = vmax.f32 %v4944_v7, 0.0  ;;  %v4882_v31 = vld [vmem:[#allocation9] sm:$0xff] }
 0x3b9   : > { %v4910_v56 = vld [vmem:[#allocation9 + $0xe0] sm:$0xff]  ;;  %v4973_v58 = vmax.f32 %v4941_v62, 0.0  ;;  %v4921_v29 = vadd.f32 %v14337_v2, %v4882_v31 }
 0x3ba   : > { %v4949_v36 = vadd.f32 %v14337_v2, %v4910_v56  ;;  %v4983_v25 = vmax.f32 %v4951_v24, 0.0  ;;  %v5029_v57 = vpack.c.bf16 %v4978_v9, %v4977_v44  ;;  %v4961_v56 = vmax.f32 %v4929_v33, 0.0  ;;  %v11988_v7 = vld [vmem:[#allocation15] ss:$8 sps:$4 sm:$0xff]   ;;  %v11994_v33 = vld [vmem:[#allocation15 + $0x24] ss:$8 sps:$4 sm:$0xff]  }
 0x3bb   : > { %v4913_v40 = vld [vmem:[#allocation9 + $0xf8] sm:$0xff]  ;;  %v4927_v24 = vadd.f32 %v14337_v2, %v4888_v4  ;;  %v5027_v15 = vpack.c.bf16 %v4974_v41, %v4973_v58  ;;  %v12002_v4 = vld [vmem:[#allocation15 + $0x40] ss:$8 sps:$4 sm:$0xff]   ;;  %v12020_v1 = vld [vmem:[#allocation15 + $0xa4] ss:$8 sps:$4 sm:$0xff]  }
 0x3bc   : > { %v4952_v59 = vadd.f32 %v14337_v2, %v4913_v40  ;;  %v4981_v52 = vmax.f32 %v4949_v36, 0.0  ;;  %v4975_v40 = vmax.f32 %v4943_v8, 0.0  ;;  %v4960_v36 = vmax.f32 %v4928_v11, 0.0  ;;  %v11999_v44 = vld [vmem:[#allocation15 + $0x30] ss:$8 sps:$4 sm:$0xff]  }
 0x3bd   : > { %v4911_v18 = vld [vmem:[#allocation9 + $0xe8] sm:$0xff]  ;;  %v12023_v62 = vld [vmem:[#allocation15 + $0xb4] ss:$8 sps:$4 sm:$0xff]  }
 0x3be   : > { %v4984_v13 = vmax.f32 %v4952_v59, 0.0  ;;  %v4950_v34 = vadd.f32 %v14337_v2, %v4911_v18  ;;  %v5021_v59 = vpack.c.bf16 %v4962_v53, %v4961_v56  ;;  %v5028_v18 = vpack.c.bf16 %v4976_v17, %v4975_v40  ;;  %v12000_v8 = vld [vmem:[#allocation15 + $0x44] ss:$8 sps:$4 sm:$0xff]   ;;  %v12005_v53 = vld [vmem:[#allocation15 + $0x50] ss:$8 sps:$4 sm:$0xff]  }
 0x3bf   : > { %v12008_v11 = vld [vmem:[#allocation15 + $0x64] ss:$8 sps:$4 sm:$0xff]   ;;  %v12009_v17 = vld [vmem:[#allocation15 + $0x70] ss:$8 sps:$4 sm:$0xff]   ;;  %v12017_v56 = vld [vmem:[#allocation15 + $0x94] ss:$8 sps:$4 sm:$0xff]  }
 0x3c0   : > { %v5032_v48 = vpack.c.bf16 %v4984_v13, %v4983_v25  ;;  %v4982_v55 = vmax.f32 %v4950_v34, 0.0  ;;  %v4885_v25 = vld [vmem:[#allocation9 + $0x18] sm:$0xff]  ;;  %v4959_v13 = vmax.f32 %v4927_v24, 0.0  ;;  %v4925_v34 = vadd.f32 %v14337_v2, %v4886_v23  ;;  %v12018_v40 = vld [vmem:[#allocation15 + $0xa0] ss:$8 sps:$4 sm:$0xff]  }
 0x3c1   : > { %v12015_v24 = vld [vmem:[#allocation15 + $0x90] ss:$8 sps:$4 sm:$0xff]   ;;  %v12030_v41 = vld [vmem:[#allocation15 + $0xe0] ss:$8 sps:$4 sm:$0xff]   ;;  %v12035_v37 = vld [vmem:[#allocation15 + $0xf4] ss:$8 sps:$4 sm:$0xff]  }
 0x3c2   : > { %10748 = vmatprep.subr.bf16.mxu0 %v5032_v48  ;;  %v5031_v16 = vpack.c.bf16 %v4982_v55, %v4981_v52  ;;  %v5020_v35 = vpack.c.bf16 %v4960_v36, %v4959_v13  ;;  %v4958_v48 = vmax.f32 %v4926_v28, 0.0  ;;  %v4924_v52 = vadd.f32 %v14337_v2, %v4885_v25  ;;  %v4898_v55 = vld [vmem:[#allocation9 + $0x80] sm:$0xff]  ;;  %v12021_v23 = vld [vmem:[#allocation15 + $0xb0] ss:$8 sps:$4 sm:$0xff]  }
 0x3c3   : > { %10749 = vmatpush3.bf16.msra.mxu0 %v5024_v39  ;;  %v4938_v39 = vadd.f32 %v14337_v2, %v4899_v60  ;;  %v4957_v38 = vmax.f32 %v4925_v34, 0.0  ;;  %v4937_v19 = vadd.f32 %v14337_v2, %v4898_v55  ;;  %v11997_v2 = vld [vmem:[#allocation15 + $0x34] ss:$8 sps:$4 sm:$0xff]   ;;  %v12024_v36 = vld [vmem:[#allocation15 + $0xc0] ss:$8 sps:$4 sm:$0xff]  }
 0x3c4   : > { %10750 = vmatprep.subr.bf16.mxu0 %v5031_v16  ;;  %v4971_v16 = vmax.f32 %v4939_v47, 0.0  ;;  %v4956_v54 = vmax.f32 %v4924_v52, 0.0  ;;  %v12029_v28 = vld [vmem:[#allocation15 + $0xd4] ss:$8 sps:$4 sm:$0xff]   ;;  %v12033_v25 = vld [vmem:[#allocation15 + $0xf0] ss:$8 sps:$4 sm:$0xff]  }
 0x3c5   : > { %v5019_v50 = vpack.c.bf16 %v4958_v48, %v4957_v38  ;;  %v4970_v42 = vmax.f32 %v4938_v39, 0.0 }
 0x3c6   : > { %v5026_v45 = vpack.c.bf16 %v4972_v30, %v4971_v16  ;;  %v5018_v20 = vpack.c.bf16 %v4956_v54, %v4955_v32 }
 0x3c7   : > { %10751 = vmatpush3.bf16.msra.mxu0 %v5023_v0  ;;  %v4969_v0 = vmax.f32 %v4937_v19, 0.0 }
 0x3c8   : > { %10752 = vmatprep.subr.bf16.mxu0 %v5030_v27  ;;  %v4953_v27 = vmax.f32 %v4921_v29, 0.0 }
 0x3c9   : > { %v5025_v26 = vpack.c.bf16 %v4970_v42, %v4969_v0 }
 0x3ca   : > { %v5017_v9 = vpack.c.bf16 %v4954_v14, %v4953_v27 }
 0x3cb   : > { %10753 = vmatpush3.bf16.msra.mxu0 %v5022_v10  ;;  %v12003_v10 = vld [vmem:[#allocation15 + $0x54] ss:$8 sps:$4 sm:$0xff]  }
 0x3cc   : > { %10754 = vmatprep.subr.bf16.mxu0 %v5029_v57  ;;  %v12011_v57 = vld [vmem:[#allocation15 + $0x74] ss:$8 sps:$4 sm:$0xff]  }
 0x3cf   : > { %10755 = vmatpush3.bf16.msra.mxu0 %v5021_v59  ;;  %v12026_v59 = vld [vmem:[#allocation15 + $0xc4] ss:$8 sps:$4 sm:$0xff]  }
 0x3d0   : > { %10756 = vmatprep.subr.bf16.mxu0 %v5028_v18  ;;  %v12032_v18 = vld [vmem:[#allocation15 + $0xe4] ss:$8 sps:$4 sm:$0xff]  }
 0x3d3   : > { %10757 = vmatpush3.bf16.msra.mxu0 %v5020_v35 }
 0x3d4   : > { %10758 = vmatprep.subr.bf16.mxu0 %v5027_v15 }
 0x3d7   : > { %10759 = vmatpush3.bf16.msra.mxu0 %v5019_v50 }
 0x3d8   : > { %10760 = vmatprep.subr.bf16.mxu0 %v5026_v45 }
 0x3db   : > { %10761 = vmatpush3.bf16.msra.mxu0 %v5018_v20 }
 0x3dc   : > { %10762 = vmatprep.subr.bf16.mxu0 %v5025_v26 }
 0x3df   : > { %10763 = vmatpush3.bf16.msra.mxu0 %v5017_v9 }
 0x3e2   : > { %5226 = vmatmul.mubr.bf16.vlgmr.msra.gmra.mxu0 %v11988_v7 }
 0x3e3   : > { %5233 = vmatprep.mubr.bf16.mxu0 %v11991_v3 }
 0x3ea   : > { %5234 = vmatmul.mubr.bf16.gmra.mxu0 %v11993_v51 }
 0x3eb   : > { %5241 = vmatprep.mubr.bf16.mxu0 %v11994_v33 }
 0x3f2   : > { %5242 = vmatmul.mubr.bf16.gmra.mxu0 %v11996_v22 }
 0x3f3   : > { %5249 = vmatprep.mubr.bf16.mxu0 %v11997_v2 }
 0x3fa   : > { %5250 = vmatmul.mubr.bf16.gmra.mxu0 %v11999_v44 }
 0x3fb   : > { %5257 = vmatprep.mubr.bf16.mxu0 %v12000_v8 }
 0x402   : > { %5258 = vmatmul.mubr.bf16.gmra.mxu0 %v12002_v4 }
 0x403   : > { %5265 = vmatprep.mubr.bf16.mxu0 %v12003_v10 }
 0x40a   : > { %5266 = vmatmul.mubr.bf16.gmra.mxu0 %v12005_v53 }
 0x40b   : > { %5273 = vmatprep.mubr.bf16.mxu0 %v12008_v11 }
 0x412   : > { %5274 = vmatmul.mubr.bf16.gmra.mxu0 %v12006_v63 }
 0x413   : > { %5281 = vmatprep.mubr.bf16.mxu0 %v12011_v57 }
 0x41a   : > { %5282 = vmatmul.mubr.bf16.gmra.mxu0 %v12009_v17 }
 0x41b   : > { %5289 = vmatprep.mubr.bf16.mxu0 %v12014_v21 }
 0x422   : > { %5290 = vmatmul.mubr.bf16.gmra.mxu0 %v12012_v43 }
 0x423   : > { %5297 = vmatprep.mubr.bf16.mxu0 %v12017_v56 }
 0x42a   : > { %5298 = vmatmul.mubr.bf16.gmra.mxu0 %v12015_v24 }
 0x42b   : > { %5305 = vmatprep.mubr.bf16.mxu0 %v12020_v1 }
 0x432   : > { %5306 = vmatmul.mubr.bf16.gmra.mxu0 %v12018_v40 }
 0x433   : > { %5313 = vmatprep.mubr.bf16.mxu0 %v12023_v62 }
 0x43a   : > { %5314 = vmatmul.mubr.bf16.gmra.mxu0 %v12021_v23 }
 0x43b   : > { %5321 = vmatprep.mubr.bf16.mxu0 %v12026_v59 }
 0x442   : > { %5322 = vmatmul.mubr.bf16.gmra.mxu0 %v12024_v36 }
 0x443   : > { %5329 = vmatprep.mubr.bf16.mxu0 %v12029_v28 }
 0x44a   : > { %5330 = vmatmul.mubr.bf16.gmra.mxu0 %v12027_v61 }
 0x44b   : > { %5337 = vmatprep.mubr.bf16.mxu0 %v12032_v18 }
 0x452   : > { %5338 = vmatmul.mubr.bf16.gmra.mxu0 %v12030_v41 }
 0x453   : > { %5345 = vmatprep.mubr.bf16.mxu0 %v12035_v37 }
 0x45a   : > { %5346 = vmatmul.mubr.bf16.gmra.mxu0 %v12033_v25 }
 0x4a2   : > { %v10764_v13 = vpop.f32.mrf.mxu0 }
 0x4a4   : > { %v10765_v34 = vpop.f32.mrf.mxu0 }
 0x4a5   : > { %v14371_v60 = vadd.f32 %v10765_v34, %v10764_v13 }
 0x4a6   : > { %v10767_v58 = vpop.f32.mrf.mxu0 }
 0x4a8   : > { %v10768_v47 = vpop.f32.mrf.mxu0 }
 0x4a9   : > { %v14373_v6 = vadd.f32 %v10768_v47, %v10767_v58 }
 0x4aa   : > { %v10770_v35 = vpop.f32.mrf.mxu0 }
 0x4ac   : > { %v10771_v48 = vpop.f32.mrf.mxu0 }
 0x4ad   : > { %v14375_v52 = vadd.f32 %v10771_v48, %v10770_v35 }
 0x4ae   : > { %v10773_v55 = vpop.f32.mrf.mxu0 }
 0x4b0   : > { %v10774_v15 = vpop.f32.mrf.mxu0 }
 0x4b1   : > { %v14377_v30 = vadd.f32 %v10774_v15, %v10773_v55 }
 0x4b2   : > { %v10776_v39 = vpop.f32.mrf.mxu0 }
 0x4b4   : > { %v10777_v49 = vpop.f32.mrf.mxu0 }
 0x4b5   : > { %v14379_v38 = vadd.f32 %v10777_v49, %v10776_v39 }
 0x4b6   : > { %v10779_v46 = vpop.f32.mrf.mxu0 }
 0x4b8   : > { %v10780_v16 = vpop.f32.mrf.mxu0 }
 0x4b9   : > { %v14381_v19 = vadd.f32 %v10780_v16, %v10779_v46 }
 0x4ba   : > { %v10782_v31 = vpop.f32.mrf.mxu0 }
 0x4bc   : > { %v10783_v50 = vpop.f32.mrf.mxu0 }
 0x4bd   : > { %v14383_v54 = vadd.f32 %v10783_v50, %v10782_v31  ;;  %v16549_v31 = vld [vmem:[#allocation23_spill] sm:$0xff] }
 0x4be   : > { %v10785_v5 = vpop.f32.mrf.mxu0  ;;  %v5380_v50 = vand.u32 7, %v16549_v31 }
 0x4c0   : > { %v10786_v45 = vpop.f32.mrf.mxu0  ;;  %vm14438_vm13 = vcmp.eq.s32.totalorder %v5380_v50, 7  ;;  %vm14442_vm10 = vcmp.eq.s32.totalorder %v5380_v50, 0 }
 0x4c1   : > { %v14385_v42 = vadd.f32 %v10786_v45, %v10785_v5  ;;  %v12036_v45 = vld [vmem:[%s16550_s5 + $0x10] sm:$0xff]  }
 0x4c2   : > { %v10788_v32 = vpop.f32.mrf.mxu0  ;;  %11246 = vmatprep.subr.bf16.mxu1 %v12036_v45 }
 0x4c3   : > { %11247 = vmatpush3.bf16.msra.mxu1 %v12036_v45 }
 0x4c4   : > { %v10789_v29 = vpop.f32.mrf.mxu0 }
 0x4c5   : > { %v10790_v0 = vadd.f32 %v10789_v29, %v10788_v32 }
 0x4c6   : > { %v10791_v20 = vpop.f32.mrf.mxu0 }
 0x4c7   : > { %v5354_v14 = vmax.f32 %v14371_v60, %v10790_v0  ;;  %v16551_v0 = vld [vmem:[#allocation26_spill] sm:$0xff] }
 0x4c8   : > { %v10792_v26 = vpop.f32.mrf.mxu0 }
 0x4c9   : > { %v14388_v27 = vadd.f32 %v10792_v26, %v10791_v20  ;;  %v5381_v20 = vand.u32 7, %v16551_v0 }
 0x4ca   : > { %v10794_v9 = vpop.f32.mrf.mxu0 }
 0x4cb   : > { %v5355_v7 = vmax.f32 %v14373_v6, %v14388_v27  ;;  %vm14446_vm11 = vcmp.eq.s32.totalorder %v5381_v20, 7  ;;  %vm14450_vm3 = vcmp.eq.s32.totalorder %v5381_v20, 0 }
 0x4cc   : > { %v10795_v3 = vpop.f32.mrf.mxu0 }
 0x4cd   : > { %v14392_v51 = vadd.f32 %v10795_v3, %v10794_v9 }
 0x4ce   : > { %v10797_v33 = vpop.f32.mrf.mxu0 }
 0x4cf   : > { %v5356_v22 = vmax.f32 %v14375_v52, %v14392_v51 }
 0x4d0   : > { %v10798_v2 = vpop.f32.mrf.mxu0 }
 0x4d1   : > { %v14396_v44 = vadd.f32 %v10798_v2, %v10797_v33  ;;  %v16552_v33 = vld [vmem:[#allocation24_spill] sm:$0xff] }
 0x4d2   : > { %v10800_v8 = vpop.f32.mrf.mxu0  ;;  %v5382_v2 = vand.u32 7, %v16552_v33  ;;  %v16566_v33 = vld [vmem:[#allocation27_spill] sm:$0xff] }
 0x4d3   : > { %v5357_v4 = vmax.f32 %v14377_v30, %v14396_v44  ;;  %v12037_v30 = vld [vmem:[%s16550_s5 + $0x8] sm:$0xff]  }
 0x4d4   : > { %v10801_v10 = vpop.f32.mrf.mxu0  ;;  %vm14461_vm7 = vcmp.eq.s32.totalorder %v5382_v2, 7  ;;  %vm14465_vm14 = vcmp.eq.s32.totalorder %v5382_v2, 0  ;;  %v5384_v2 = vand.u32 7, %v16566_v33  ;;  %11248 = vmatprep.subr.bf16.mxu1 %v12037_v30 }
 0x4d5   : > { %v14400_v53 = vadd.f32 %v10801_v10, %v10800_v8  ;;  %11249 = vmatpush3.bf16.msra.mxu1 %v12037_v30  ;;  %v12061_v10 = vld [vmem:[%s16649_s7 + $0x8] sm:$0xff]  }
 0x4d6   : > { %v10803_v11 = vpop.f32.mrf.mxu0  ;;  %vm14503_vm2 = vcmp.eq.s32.totalorder %v5384_v2, 7  ;;  %vm14516_vm8 = vcmp.eq.s32.totalorder %v5384_v2, 0 }
 0x4d7   : > { %v5358_v63 = vmax.f32 %v14379_v38, %v14400_v53 }
 0x4d8   : > { %v10804_v57 = vpop.f32.mrf.mxu0 }
 0x4d9   : > { %v14404_v17 = vadd.f32 %v10804_v57, %v10803_v11 }
 0x4da   : > { %v10806_v21 = vpop.f32.mrf.mxu0 }
 0x4db   : > { %v5359_v43 = vmax.f32 %v14381_v19, %v14404_v17 }
 0x4dc   : > { %v10807_v56 = vpop.f32.mrf.mxu0 }
 0x4dd   : > { %v14408_v24 = vadd.f32 %v10807_v56, %v10806_v21 }
 0x4de   : > { %v10809_v1 = vpop.f32.mrf.mxu0 }
 0x4df   : > { %v5360_v40 = vmax.f32 %v14383_v54, %v14408_v24  ;;  %v16597_v54 = vmov 0 }
 0x4e0   : > { %v10810_v62 = vpop.f32.mrf.mxu0 }
 0x4e1   : > { %v14412_v23 = vadd.f32 %v10810_v62, %v10809_v1 }
 0x4e2   : > { %v10812_v59 = vpop.f32.mrf.mxu0 }
 0x4e3   : > { %v5361_v36 = vmax.f32 %v14385_v42, %v14412_v23 }
 0x4e4   : > { %v10813_v28 = vpop.f32.mrf.mxu0 }
 0x4e5   : > { %v10814_v46 = vadd.f32 %v10813_v28, %v10812_v59 }
 0x4e6   : > { %v10815_v61 = vpop.f32.mrf.mxu0 }
 0x4e8   : > { %v10816_v18 = vpop.f32.mrf.mxu0 }
 0x4e9   : > { %v10817_v26 = vadd.f32 %v10816_v18, %v10815_v61 }
 0x4ea   : > { %v10818_v41 = vpop.f32.mrf.mxu0 }
 0x4ec   : > { %v10819_v37 = vpop.f32.mrf.mxu0 }
 0x4ed   : > { %v10820_v21 = vadd.f32 %v10819_v37, %v10818_v41 }
 0x4ee   : > { %v10821_v25 = vpop.f32.mrf.mxu0 }
 0x4f0   : > { %v10822_v13 = vpop.f32.mrf.mxu0 }
 0x4f2   : > { %v14416_v34 = vpop.f32.mrf.mxu0 }
 0x4f4   : > { %v14418_v60 = vpop.f32.mrf.mxu0 }
 0x4f6   : > { %v14420_v58 = vpop.f32.mrf.mxu0 }
 0x4f8   : > { %v14422_v47 = vpop.f32.mrf.mxu0 }
 0x4fa   : > { %v14424_v35 = vpop.f32.mrf.mxu0 }
 0x4fc   : > { %v14426_v48 = vpop.f32.mrf.mxu0 }
 0x4fe   : > { %v14428_v55 = vpop.f32.mrf.mxu0 }
 0x500   : > { %v14430_v15 = vpop.f32.mrf.mxu0 }
 0x502   : > { %v10836_v39 = vpop.f32.mrf.mxu0 }
 0x504   : > { %v10837_v49 = vpop.f32.mrf.mxu0 }
 0x505   : > { %v10838_v16 = vadd.f32 %v10837_v49, %v10836_v39  ;;  %v16565_v39 = vld [vmem:[#allocation25_spill] sm:$0xff] }
 0x506   : > { %v10839_v5 = vpop.f32.mrf.mxu0  ;;  %v5383_v49 = vand.u32 7, %v16565_v39 }
 0x507   : > { %v5362_v32 = vmax.f32 %v10814_v46, %v10838_v16 }
 0x508   : > { %v10840_v29 = vpop.f32.mrf.mxu0  ;;  %vm14490_vm4 = vcmp.eq.s32.totalorder %v5383_v49, 7  ;;  %vm14499_vm9 = vcmp.eq.s32.totalorder %v5383_v49, 0 }
 0x509   : > { %v5370_v9 = vmax.f32 %v5354_v14, %v5362_v32  ;;  %v10841_v3 = vadd.f32 %v10840_v29, %v10839_v5  ;;  %v10823_v29 = vadd.f32 %v10822_v13, %v10821_v25 }
 0x50a   : > { %v10842_v11 = vpop.f32.mrf.mxu0 }
 0x50b   : > { %v5363_v57 = vmax.f32 %v10817_v26, %v10841_v3  ;;  %v5396_v62 = vsel %vm14438_vm13, 0.0, %v5370_v9  ;;  %v5412_v59 = vsel %vm14442_vm10, 0.0, %v5370_v9 }
 0x50c   : > { %v10843_v1 = vpop.f32.mrf.mxu0  ;;  %v5460_v50 = vrot.slane %v5412_v59, 1 }
 0x50d   : > { %v5371_v28 = vmax.f32 %v5355_v7, %v5363_v57  ;;  %v10844_v61 = vadd.f32 %v10843_v1, %v10842_v11  ;;  %v14474_v7 = vrot.slane %v5396_v62, 7  ;;  %v10826_v1 = vadd.f32 %v14418_v60, %v14416_v34 }
 0x50e   : > { %v10845_v37 = vpop.f32.mrf.mxu0 }
 0x50f   : > { %v5397_v46 = vsel %vm14446_vm11, 0.0, %v5371_v28  ;;  %v5413_v16 = vsel %vm14450_vm3, 0.0, %v5371_v28  ;;  %v5364_v6 = vmax.f32 %v10820_v21, %v10844_v61  ;;  %v11805_v27 = vpack.i.bf16 %v5371_v28, %v5370_v9 }
 0x510   : > { %v5429_v5 = vrot.slane %v5397_v46, 7  ;;  %v5461_v45 = vrot.slane %v5413_v16, 1  ;;  %v10846_v32 = vpop.f32.mrf.mxu0  ;;  %v16573_v61 = vmov 0  ;;  %v16577_v16 = vmov 0 }
 0x511   : > { %v5372_v20 = vmax.f32 %v5356_v22, %v5364_v6  ;;  %v10847_v26 = vadd.f32 %v10846_v32, %v10845_v37  ;;  %11806 = vrot.lane.b32.xlu0 %v11805_v27, %s12319_s26  ;;  %v16574_v61 = vsel %vm14503_vm2, 4294967295, %v16573_v61  ;;  %v16578_v16 = vsel %vm14516_vm8, 4294967295, %v16577_v16  ;;  %v16579_v27 = vld [vmem:[#allocation28_spill] sm:$0xff] }
 0x512   : > { %v10848_v3 = vpop.f32.mrf.mxu0  ;;  %v5462_v11 = vsel %vm16567_vm0, %v5460_v50, %v5461_v45  ;;  %v14484_v9 = vsel %vm16568_vm1, %v14474_v7, %v5429_v5  ;;  %v5385_v50 = vand.u32 7, %v16579_v27  ;;  %vm16581_vm0 = vmmov %vm16568_vm1 }
 0x513   : > { %v5398_v57 = vsel %vm14461_vm7, 0.0, %v5372_v20  ;;  %v5414_v25 = vsel %vm14465_vm14, 0.0, %v5372_v20  ;;  %v5365_v52 = vmax.f32 %v10823_v29, %v10847_v26  ;;  %vm16582_vm1 = vmmov %vm16575_vm5 }
 0x514   : > { %v5431_v51 = vrot.slane %v5398_v57, 7  ;;  %v5463_v22 = vrot.slane %v5414_v25, 1  ;;  %v10849_v21 = vpop.f32.mrf.mxu0  ;;  %v16583_v57 = vmov 0  ;;  %v16585_v25 = vmov 0 }
 0x515   : > { %v5373_v62 = vmax.f32 %v5357_v4, %v5365_v52  ;;  %v10850_v59 = vadd.f32 %v10849_v21, %v10848_v3  ;;  %v16580_v3 = vld [vmem:[#allocation29_spill] sm:$0xff] }
 0x516   : > { %v10851_v37 = vpop.f32.mrf.mxu0  ;;  %v5464_v39 = vsel %vm16575_vm5, %v5461_v45, %v5463_v22  ;;  %v14509_v46 = vsel %vm16576_vm15, %v5429_v5, %v5431_v51  ;;  %v10829_v45 = vadd.f32 %v14422_v47, %v14420_v58  ;;  %v5386_v33 = vand.u32 7, %v16580_v3 }
 0x517   : > { %v5399_v44 = vsel %vm14490_vm4, 0.0, %v5373_v62  ;;  %v5366_v4 = vmax.f32 %v10826_v1, %v10850_v59  ;;  %v11810_v34 = vpack.i.bf16 %v5373_v62, %v5372_v20  ;;  %v11815_v60 = vpack.i.bf16 %v5464_v39, %v5462_v11 }
 0x518   : > { %v5433_v49 = vrot.slane %v5399_v44, 7  ;;  %v10852_v6 = vpop.f32.mrf.mxu0  ;;  %v5415_v5 = vsel %vm14499_vm9, 0.0, %v5373_v62  ;;  %vm14539_vm5 = vcmp.eq.s32.totalorder %v5385_v50, 7  ;;  %vm14543_vm15 = vcmp.eq.s32.totalorder %v5385_v50, 0 }
 0x519   : > { %v5374_v32 = vmax.f32 %v5358_v63, %v5366_v4  ;;  %v10853_v29 = vadd.f32 %v10852_v6, %v10851_v37  ;;  %11811 = vrot.lane.b32.xlu1 %v11810_v34, %s12319_s26  ;;  %11816 = vrot.lane.b32.xlu0 %v11815_v60, %s16043_s25  ;;  %v5465_v20 = vrot.slane %v5415_v5, 1  ;;  %v16584_v57 = vsel %vm14539_vm5, 4294967295, %v16583_v57  ;;  %v16592_v34 = vld [vmem:[#allocation30_spill] sm:$0xff] }
 0x51a   : > { %v10854_v26 = vpop.f32.mrf.mxu0  ;;  %v14532_v2 = vsel %vm16581_vm0, %v5431_v51, %v5433_v49  ;;  %v16586_v25 = vsel %vm14543_vm15, 4294967295, %v16585_v25  ;;  %v10832_v51 = vadd.f32 %v14426_v48, %v14424_v35  ;;  %vm14556_vm0 = vcmp.eq.s32.totalorder %v5386_v33, 7 }
 0x51b   : > { %v5400_v58 = vsel %vm14503_vm2, 0.0, %v5374_v32  ;;  %v5416_v38 = vsel %vm14516_vm8, 0.0, %v5374_v32  ;;  %v5367_v53 = vmax.f32 %v10829_v45, %v10853_v29  ;;  %v5466_v63 = vsel %vm16582_vm1, %v5463_v22, %v5465_v20  ;;  %v12038_v22 = vld [vmem:[%s16550_s5] sm:$0xff]  }
 0x51c   : > { %v5435_v47 = vrot.slane %v5400_v58, 7  ;;  %v5467_v11 = vrot.slane %v5416_v38, 1  ;;  %v10855_v52 = vpop.f32.mrf.mxu0  ;;  %v16587_v59 = vmov 0  ;;  %11250 = vmatprep.subr.bf16.mxu1 %v12038_v22  ;;  %vm14568_vm12 = vcmp.eq.s32.totalorder %v5386_v33, 0  ;;  %v12042_v38 = vld [vmem:[%s16550_s5 + $0x28] sm:$0xff]  }
 0x51d   : > { %v5375_v21 = vmax.f32 %v5359_v43, %v5367_v53  ;;  %v10856_v1 = vadd.f32 %v10855_v52, %v10854_v26  ;;  %5514 = vrot.lane.b32.xlu1 %v5466_v63, %s16043_s25  ;;  %v16588_v59 = vsel %vm14556_vm0, 4294967295, %v16587_v59  ;;  %v16590_v4 = vmov 0  ;;  %11251 = vmatpush3.bf16.msra.mxu1 %v12038_v22 }
 0x51e   : > { %v10857_v62 = vpop.f32.mrf.mxu0  ;;  %v5468_v37 = vsel %vm16582_vm1, %v5465_v20, %v5467_v11  ;;  %v14562_v35 = vsel %vm16589_vm6, %v5433_v49, %v5435_v47  ;;  %v16591_v4 = vsel %vm14568_vm12, 4294967295, %v16590_v4  ;;  %v5387_v60 = vand.u32 7, %v16592_v34  ;;  %vm16593_vm6 = vmmov %vm16582_vm1  ;;  %11260 = vmatprep.subr.bf16.mxu1 %v12042_v38 }
 0x51f   : > { %v5401_v19 = vsel %vm14539_vm5, 0.0, %v5375_v21  ;;  %v5417_v17 = vsel %vm14543_vm15, 0.0, %v5375_v21  ;;  %v5368_v43 = vmax.f32 %v10832_v51, %v10856_v1  ;;  %v11820_v48 = vpack.i.bf16 %v5375_v21, %v5374_v32 }
 0x520   : > { %v5437_v39 = vrot.slane %v5401_v19, 7  ;;  %v5469_v30 = vrot.slane %v5417_v17, 1  ;;  %v10858_v44 = vpop.f32.mrf.mxu0  ;;  %v10835_v49 = vadd.f32 %v14430_v15, %v14428_v55  ;;  %vm16594_vm1 = vcmask 1040384  }
 0x521   : > { %v10859_v6 = vadd.f32 %v10858_v44, %v10857_v62  ;;  %11821 = vrot.lane.b32.xlu0 %v11820_v48, %s12319_s26  ;;  %v5376_v27 = vmax.f32 %v5360_v40, %v5368_v43  ;;  %vm14588_vm15 = vcmp.eq.s32.totalorder %v5387_v60, 7  ;;  %v16595_v20 = vmov 0 }
 0x522   : > { %v5470_v50 = vsel %vm16593_vm6, %v5467_v11, %v5469_v30  ;;  %v14581_v5 = vsel %vm16594_vm1, %v5435_v47, %v5437_v39  ;;  %v16596_v20 = vsel %vm14588_vm15, 4294967295, %v16595_v20  ;;  %vm14592_vm5 = vcmp.eq.s32.totalorder %v5387_v60, 0 }
 0x523   : > { %v5369_v45 = vmax.f32 %v10835_v49, %v10859_v6  ;;  %v5402_v32 = vsel %vm14556_vm0, 0.0, %v5376_v27  ;;  %v5418_v29 = vsel %vm14568_vm12, 0.0, %v5376_v27  ;;  %5497 = vrot.lane.b32.xlu1 %v5376_v27, %s12319_s26  ;;  %v11825_v55 = vpack.i.bf16 %v5470_v50, %v5468_v37  ;;  %vm16599_vm12 = vmmov %vm16593_vm6 }
 0x524   : > { %v5471_v15 = vrot.slane %v5418_v29, 1  ;;  %v16598_v54 = vsel %vm14592_vm5, 4294967295, %v16597_v54  ;;  %v5439_v24 = vrot.slane %v5402_v32, 7 }
 0x525   : > { %11826 = vrot.lane.b32.xlu0 %v11825_v55, %s16043_s25  ;;  %v5377_v40 = vmax.f32 %v5361_v36, %v5369_v45 }
 0x526   : > { %v5472_v26 = vsel %vm16593_vm6, %v5469_v30, %v5471_v15  ;;  %v14602_v3 = vsel %vm16594_vm1, %v5437_v39, %v5439_v24  ;;  %vm16600_vm6 = vmmov %vm16594_vm1 }
 0x527   : > { %v5403_v33 = vsel %vm14588_vm15, 0.0, %v5377_v40  ;;  %v5419_v58 = vsel %vm14592_vm5, 0.0, %v5377_v40  ;;  %vm16601_vm1 = vmmov %vm16599_vm12  ;;  %vm16605_vm5 = vcmask 261120  }
 0x528   : > { %v5473_v53 = vrot.slane %v5419_v58, 1  ;;  %v5441_v63 = vrot.slane %v5403_v33, 7  ;;  %vm16602_vm15 = vmmov %vm16600_vm6 }
 0x529   : > { %5499 = vrot.lane.b32.xlu0 %v5377_v40, %s12319_s26  ;;  %v5451_v22 = vsel %vm16602_vm15, 0.0, %v14474_v7  ;;  %vm16609_vm15 = vcmask 388096   ;;  %s16726_s26 = smov 64  }
 0x52a   : > { %v5474_v42 = vsel %vm16599_vm12, %v5471_v15, %v5473_v53  ;;  %v14614_v23 = vsel %vm16600_vm6, %v5439_v24, %v5441_v63  ;;  %v5476_v47 = vsel %vm16601_vm1, %v5473_v53, 0.0  ;;  %vm16603_vm12 = vcmask 130048   ;;  %vm16606_vm1 = vmmov %vm16605_vm5  ;;  %v12044_v15 = vld [vmem:[%s16550_s5 + $0x20] sm:$0xff]  }
 0x52b   : > { %v11830_v36 = vpack.i.bf16 %v5474_v42, %v5472_v26  ;;  %vm16604_vm6 = vmmov %vm16603_vm12 }
 0x52c   : > { %vm16607_vm8 = vmmov %vm16604_vm6 }
 0x52d   : > { %11831 = vrot.lane.b32.xlu1 %v11830_v36, %s16043_s25  ;;  %vm16608_vm0 = vmmov %vm16606_vm1 }
 0x52e   : > { %vm16610_vm2 = vmmov %vm16609_vm15 }
 0x531   : > { %5524 = vrot.lane.b32.xlu1 %v5476_v47, %s16043_s25 }
 0x583   : > { %v11807_v11 = vpop.permute.xlu0 %11806 }
 0x584   : > { %v11809_v52 = vunpack.i.h.bf16 %v11807_v11  ;;  %v11808_v51 = vunpack.i.l.bf16 %v11807_v11 }
 0x586   : > { %v5534_v17 = vsel %vm16603_vm12, %v5451_v22, %v11808_v51  ;;  %v5535_v43 = vsel %vm16604_vm6, %v14484_v9, %v11809_v52  ;;  %vm16611_vm12 = vmmov %vm16610_vm2 }
 0x58b   : > { %v11812_v21 = vpop.permute.xlu1 %11811  ;;  %v11817_v1 = vpop.permute.xlu0 %11816 }
 0x58c   : > { %v11813_v62 = vunpack.i.l.bf16 %v11812_v21  ;;  %v11819_v37 = vunpack.i.h.bf16 %v11817_v1  ;;  %v11818_v19 = vunpack.i.l.bf16 %v11817_v1  ;;  %v11814_v6 = vunpack.i.h.bf16 %v11812_v21  ;;  %v12049_v21 = vld [vmem:[%s16550_s5 + $0x40] sm:$0xff]  }
 0x58e   : > { %v5542_v48 = vsel %vm16605_vm5, %v5534_v17, %v11818_v19  ;;  %v5543_v39 = vsel %vm16606_vm1, %v5535_v43, %v11819_v37  ;;  %v5536_v30 = vsel %vm16607_vm8, %v14509_v46, %v11813_v62  ;;  %vm16612_vm8 = vmmov %vm16604_vm6 }
 0x58f   : > { %v10620_v44 = vpack.c.bf16 %v5542_v48, %v5542_v48  ;;  %v10621_v34 = vpack.c.bf16 %v5543_v39, %v5543_v39  ;;  %v5515_v60 = vpop.permute.xlu1 %5514  ;;  %v5537_v46 = vsel %vm16612_vm8, %v14532_v2, %v11814_v6  ;;  %vm16613_vm5 = vmmov %vm16604_vm6  ;;  %vm16615_vm6 = vcmask 392192   ;;  %v12051_v48 = vld [vmem:[%s16550_s5 + $0x38] sm:$0xff]  }
 0x590   : > { %v5544_v7 = vsel %vm16608_vm0, %v5536_v30, %v5515_v60  ;;  %vm16616_vm1 = vmmov %vm16615_vm6  ;;  %v12053_v30 = vld [vmem:[%s16550_s5 + $0x30] sm:$0xff]  }
 0x591   : > { %5582 = vst.msk [vmem:[#allocation4 + $0x8] sm:$0xf] %vm16609_vm15, %v10620_v44  ;;  %v10622_v49 = vpack.c.bf16 %v5544_v7, %v5544_v7  ;;  %vm16617_vm15 = vmmov %vm16611_vm12 }
 0x592   : > { %5583 = vst.msk [vmem:[#allocation4 + $0xc] sm:$0xf] %vm16610_vm2, %v10621_v34  ;;  %vm16614_vm2 = vmmov %vm16608_vm0 }
 0x593   : > { %5584 = vst.msk [vmem:[#allocation4 + $0x10] sm:$0xf] %vm16611_vm12, %v10622_v49  ;;  %v11822_v9 = vpop.permute.xlu0 %11821  ;;  %vm16618_vm8 = vmmov %vm16613_vm5 }
 0x594   : > { %v11823_v27 = vunpack.i.l.bf16 %v11822_v9  ;;  %v11824_v2 = vunpack.i.h.bf16 %v11822_v9 }
 0x595   : > { %v5498_v33 = vpop.permute.xlu1 %5497 }
 0x596   : > { %v5538_v55 = vsel %vm16613_vm5, %v14562_v35, %v11823_v27  ;;  %v12046_v35 = vld [vmem:[%s16550_s5 + $0x18] sm:$0xff]   ;;  %v5539_v11 = vsel %vm16618_vm8, %v14581_v5, %v11824_v2  ;;  %v5540_v52 = vsel %vm16613_vm5, %v14602_v3, %v5498_v33  ;;  %vm16623_vm8 = vcmask 392192  }
 0x597   : > { %v11827_v50 = vpop.permute.xlu0 %11826 }
 0x598   : > { %v11829_v45 = vunpack.i.h.bf16 %v11827_v50  ;;  %v11828_v32 = vunpack.i.l.bf16 %v11827_v50  ;;  %v12039_v29 = vld [vmem:[#allocation4 + $0x4] sm:$0xff]  }
 0x599   : > { %11252 = vmatprep.mubr.msk.bf16.mxu1 %vm16615_vm6, %v12039_v29  ;;  %vm16620_vm6 = vmmov %vm16613_vm5  ;;  %v12045_v43 = vld [vmem:[#allocation4 + $0x8] sm:$0xff]  }
 0x59a   : > { %v5545_v24 = vsel %vm16614_vm2, %v5537_v46, %v11828_v32  ;;  %v5546_v40 = vsel %vm16608_vm0, %v5538_v55, %v11829_v45  ;;  %v12040_v26 = vld [vmem:[#allocation4 + $0xc] sm:$0xff]   ;;  %vm16619_vm2 = vmmov %vm16608_vm0 }
 0x59b   : > { %v10623_v58 = vpack.c.bf16 %v5545_v24, %v5545_v24  ;;  %v10624_v53 = vpack.c.bf16 %v5546_v40, %v5546_v40  ;;  %11253 = vmatmul.mubr.msk.bf16.vlgmr.msra.gmra.mxu1 %vm16616_vm1, %v12040_v26  ;;  %v5500_v42 = vpop.permute.xlu0 %5499  ;;  %vm16621_vm1 = vmmov %vm16608_vm0  ;;  %v12052_v34 = vld [vmem:[#allocation4 + $0xc] sm:$0xff]  }
 0x59c   : > { %11261 = vmatpush3.bf16.msra.mxu1 %v12042_v38  ;;  %v5541_v1 = vsel %vm16620_vm6, %v14614_v23, %v5500_v42  ;;  %vm16624_vm5 = vmmov %vm16611_vm12 }
 0x59d   : > { %5585 = vst.msk [vmem:[#allocation4 + $0x14] sm:$0xf] %vm16617_vm15, %v10623_v58  ;;  %11262 = vmatprep.subr.bf16.mxu1 %v12044_v15  ;;  %vm16622_vm15 = vmmov %vm16611_vm12 }
 0x59e   : > { %5586 = vst.msk [vmem:[#allocation4 + $0x18] sm:$0xf] %vm16611_vm12, %v10624_v53 }
 0x59f   : > { %v11832_v63 = vpop.permute.xlu1 %11831 }
 0x5a0   : > { %v11834_v36 = vunpack.i.h.bf16 %v11832_v63  ;;  %v11833_v47 = vunpack.i.l.bf16 %v11832_v63  ;;  %11263 = vmatpush3.bf16.msra.mxu1 %v12044_v15 }
 0x5a1   : > { %11264 = vmatprep.subr.bf16.mxu1 %v12046_v35 }
 0x5a2   : > { %v5548_v51 = vsel %vm16619_vm2, %v5540_v52, %v11834_v36  ;;  %v5547_v38 = vsel %vm16608_vm0, %v5539_v11, %v11833_v47  ;;  %vm16625_vm2 = vmmov %vm16623_vm8 }
 0x5a3   : > { %v10626_v22 = vpack.c.bf16 %v5548_v51, %v5548_v51  ;;  %v10625_v62 = vpack.c.bf16 %v5547_v38, %v5547_v38  ;;  %v5525_v37 = vpop.permute.xlu1 %5524  ;;  %vm16626_vm0 = vmmov %vm16625_vm2 }
 0x5a4   : > { %v5549_v5 = vsel %vm16621_vm1, %v5541_v1, %v5525_v37  ;;  %11265 = vmatpush3.bf16.msra.mxu1 %v12046_v35  ;;  %v12047_v23 = vld [vmem:[#allocation4 + $0x10] sm:$0xff]   ;;  %vm16627_vm6 = vmmov %vm16626_vm0 }
 0x5a5   : > { %v12041_v19 = vld [vmem:[#allocation4 + $0x14] sm:$0xff]   ;;  %5588 = vst.msk [vmem:[#allocation4 + $0x20] sm:$0xf] %vm16622_vm15, %v10626_v22  ;;  %v10627_v3 = vpack.c.bf16 %v5549_v5, %v5549_v5  ;;  %11274 = vmatprep.subr.bf16.mxu1 %v12049_v21  ;;  %vm16628_vm1 = vmmov %vm16626_vm0 }
 0x5a6   : > { %5587 = vst.msk [vmem:[#allocation4 + $0x1c] sm:$0xf] %vm16611_vm12, %v10625_v62  ;;  %11256 = vmatprep.mubr.msk.bf16.mxu1 %vm16623_vm8, %v12041_v19  ;;  %vm16629_vm15 = vmmov %vm16626_vm0  ;;  %v12054_v60 = vld [vmem:[#allocation4 + $0x14] sm:$0xff]  }
 0x5a7   : > { %5589 = vst.msk [vmem:[#allocation4 + $0x24] sm:$0xf] %vm16624_vm5, %v10627_v3  ;;  %vm16630_vm12 = vmmov %vm16626_vm0 }
 0x5a8   : > { %vm16631_vm8 = vmmov %vm16626_vm0 }
 0x5a9   : > { %vm16632_vm5 = vmmov %vm16626_vm0 }
 0x5ad   : > { %v12043_v17 = vld [vmem:[#allocation4 + $0x1c] sm:$0xff]  }
 0x5ae   : > { %11257 = vmatmul.mubr.msk.bf16.gmra.mxu1 %vm16625_vm2, %v12043_v17  ;;  %v12048_v39 = vld [vmem:[#allocation4 + $0x18] sm:$0xff]   ;;  %v12050_v44 = vld [vmem:[#allocation4 + $0x20] sm:$0xff]   ;;  %vm16633_vm2 = vmmov %vm16626_vm0 }
 0x5af   : > { %11266 = vmatprep.mubr.msk.bf16.mxu1 %vm16626_vm0, %v12045_v43  ;;  %v12055_v7 = vld [vmem:[#allocation4 + $0x1c] sm:$0xff]   ;;  %v12056_v49 = vld [vmem:[#allocation4 + $0x24] sm:$0xff]   ;;  %vm16634_vm0 = vcmask 261120  }
 0x5b6   : > { %11267 = vmatmul.mubr.msk.bf16.vlgmr.msra.gmra.mxu1 %vm16627_vm6, %v12047_v23  ;;  %vm16635_vm6 = vmmov %vm16634_vm0 }
 0x5b7   : > { %11270 = vmatprep.mubr.msk.bf16.mxu1 %vm16628_vm1, %v12048_v39  ;;  %11275 = vmatpush3.bf16.msra.mxu1 %v12049_v21  ;;  %vm16636_vm1 = vmmov %vm16634_vm0  ;;  %v12058_v39 = vld [vmem:[%s16649_s7 + $0x20] sm:$0xff]  }
 0x5b8   : > { %11276 = vmatprep.subr.bf16.mxu1 %v12051_v48 }
 0x5bb   : > { %11277 = vmatpush3.bf16.msra.mxu1 %v12051_v48  ;;  %v12057_v48 = vld [vmem:[%s16649_s7 + $0x28] sm:$0xff]  }
 0x5bc   : > { %11278 = vmatprep.subr.bf16.mxu1 %v12053_v30 }
 0x5be   : > { %11271 = vmatmul.mubr.msk.bf16.gmra.mxu1 %vm16629_vm15, %v12050_v44  ;;  %vm16637_vm15 = vmmov %vm16634_vm0 }
 0x5bf   : > { %11280 = vmatprep.mubr.msk.bf16.mxu1 %vm16630_vm12, %v12052_v34  ;;  %11279 = vmatpush3.bf16.msra.mxu1 %v12053_v30  ;;  %vm16638_vm12 = vmmov %vm16634_vm0 }
 0x5c0   : > { %11288 = vmatprep.subr.bf16.mxu1 %v12057_v48 }
 0x5c6   : > { %11281 = vmatmul.mubr.msk.bf16.vlgmr.msra.gmra.mxu1 %vm16631_vm8, %v12054_v60  ;;  %vm16639_vm8 = vmmov %vm16634_vm0 }
 0x5c7   : > { %11284 = vmatprep.mubr.msk.bf16.mxu1 %vm16632_vm5, %v12055_v7  ;;  %vm16640_vm5 = vmmov %vm16634_vm0  ;;  %11289 = vmatpush3.bf16.msra.mxu1 %v12057_v48 }
 0x5c8   : > { %11290 = vmatprep.subr.bf16.mxu1 %v12058_v39 }
 0x5cb   : > { %11291 = vmatpush3.bf16.msra.mxu1 %v12058_v39 }
 0x5ce   : > { %11285 = vmatmul.mubr.msk.bf16.gmra.mxu1 %vm16633_vm2, %v12056_v49  ;;  %vm16641_vm2 = vmmov %vm16634_vm0 }
 0x65b   : > { %v11254_v9 = vpop.f32.mrf.mxu1 }
 0x65c   : > { %5721 = vst.msk [vmem:[#allocation10 + $0x10] sm:$0xff] %vm16634_vm0, %v11254_v9 }
 0x65d   : > { %v5688_v6 = vpop.f32.mrf.mxu1 }
 0x65e   : > { %5719 = vst.msk [vmem:[#allocation10] sm:$0xff] %vm16635_vm6, %v5688_v6  ;;  %vm16642_vm6 = vmmov %vm16634_vm0 }
 0x65f   : > { %v11255_v27 = vpop.f32.mrf.mxu1 }
 0x660   : > { %5722 = vst.msk [vmem:[#allocation10 + $0x18] sm:$0xff] %vm16636_vm1, %v11255_v27  ;;  %vm16643_vm1 = vmmov %vm16634_vm0 }
 0x661   : > { %v5691_v50 = vpop.f32.mrf.mxu1 }
 0x662   : > { %5720 = vst.msk [vmem:[#allocation10 + $0x8] sm:$0xff] %vm16637_vm15, %v5691_v50  ;;  %vm16644_vm15 = vmmov %vm16634_vm0  ;;  %v14711_v50 = vld [vmem:[%s16652_s6] ss:$0 sm:$0xff]  ;;  %s635_s6 = sand.u32 1, %s12303_s22  }
 0x663   : > { %v5859_v15 = vld [vmem:[#allocation10 + $0x10] sm:$0xff] }
 0x665   : > { %v5857_v26 = vld [vmem:[#allocation10] sm:$0xff] }
 0x667   : > { %v5860_v53 = vld [vmem:[#allocation10 + $0x18] sm:$0xff] }
 0x669   : > { %v5858_v63 = vld [vmem:[#allocation10 + $0x8] sm:$0xff] }
 0x66e   : > { %v11258_v45 = vpop.f32.mrf.mxu1 }
 0x66f   : > { %5725 = vst.msk [vmem:[#allocation10 + $0x30] sm:$0xff] %vm16638_vm12, %v11258_v45  ;;  %vm16645_vm12 = vmmov %vm16634_vm0 }
 0x670   : > { %v5704_v32 = vpop.f32.mrf.mxu1 }
 0x671   : > { %5723 = vst.msk [vmem:[#allocation10 + $0x20] sm:$0xff] %vm16639_vm8, %v5704_v32  ;;  %vm16646_vm8 = vmmov %vm16634_vm0 }
 0x672   : > { %v11259_v29 = vpop.f32.mrf.mxu1 }
 0x673   : > { %5726 = vst.msk [vmem:[#allocation10 + $0x38] sm:$0xff] %vm16640_vm5, %v11259_v29  ;;  %vm16647_vm5 = vmmov %vm16634_vm0 }
 0x674   : > { %v5707_v46 = vpop.f32.mrf.mxu1 }
 0x675   : > { %5724 = vst.msk [vmem:[#allocation10 + $0x28] sm:$0xff] %vm16641_vm2, %v5707_v46  ;;  %vm16648_vm2 = vmmov %vm16634_vm0 }
 0x676   : > { %v11268_v55 = vpop.f32.mrf.mxu1  ;;  %v5863_v47 = vld [vmem:[#allocation10 + $0x30] sm:$0xff] }
 0x677   : > { %v5867_v24 = vadd.f32 %v11268_v55, %v5859_v15 }
 0x678   : > { %v5826_v40 = vpop.f32.mrf.mxu1  ;;  %v5861_v51 = vld [vmem:[#allocation10 + $0x20] sm:$0xff] }
 0x679   : > { %5875 = vst.msk [vmem:[#allocation10 + $0x10] sm:$0xff] %vm16634_vm0, %v5867_v24  ;;  %v5865_v33 = vadd.f32 %v5857_v26, %v5826_v40  ;;  %vm6066_vm0 = vcmask 781312  }
 0x67a   : > { %v11269_v58 = vpop.f32.mrf.mxu1  ;;  %v5864_v1 = vld [vmem:[#allocation10 + $0x38] sm:$0xff]  ;;  %6067 = vst.msk [vmem:[#allocation5 + $0x4] sm:$0xf] %vm6066_vm0, %v16350_v12  ;;  %6068 = vst.msk [vmem:[#allocation5 + $0x28] sm:$0xf] %vm6066_vm0, %v16350_v12 }
 0x67b   : > { %5873 = vst.msk [vmem:[#allocation10] sm:$0xff] %vm16642_vm6, %v5865_v33  ;;  %v5868_v2 = vadd.f32 %v11269_v58, %v5860_v53  ;;  %vm16650_vm6 = vmmov %vm16643_vm1 }
 0x67c   : > { %v5829_v35 = vpop.f32.mrf.mxu1  ;;  %v5862_v37 = vld [vmem:[#allocation10 + $0x28] sm:$0xff] }
 0x67d   : > { %5876 = vst.msk [vmem:[#allocation10 + $0x18] sm:$0xff] %vm16643_vm1, %v5868_v2  ;;  %v5866_v42 = vadd.f32 %v5858_v63, %v5829_v35  ;;  %v12059_v2 = vld [vmem:[%s16649_s7 + $0x18] sm:$0xff]  }
 0x67e   : > { %v11272_v36 = vpop.f32.mrf.mxu1  ;;  %11292 = vmatprep.subr.bf16.mxu1 %v12059_v2 }
 0x67f   : > { %5874 = vst.msk [vmem:[#allocation10 + $0x8] sm:$0xff] %vm16644_vm15, %v5866_v42  ;;  %v5871_v11 = vadd.f32 %v11272_v36, %v5863_v47  ;;  %vm16651_vm15 = vmmov %vm16643_vm1  ;;  %11293 = vmatpush3.bf16.msra.mxu1 %v12059_v2 }
 0x680   : > { %v5842_v52 = vpop.f32.mrf.mxu1  ;;  %v6013_v3 = vld [vmem:[#allocation10 + $0x10] sm:$0xff] }
 0x681   : > { %5879 = vst.msk [vmem:[#allocation10 + $0x30] sm:$0xff] %vm16645_vm12, %v5871_v11  ;;  %v5869_v38 = vadd.f32 %v5861_v51, %v5842_v52  ;;  %vm16653_vm12 = vmmov %vm16643_vm1 }
 0x682   : > { %v11273_v21 = vpop.f32.mrf.mxu1  ;;  %v6011_v23 = vld [vmem:[#allocation10] sm:$0xff] }
 0x683   : > { %5877 = vst.msk [vmem:[#allocation10 + $0x20] sm:$0xff] %vm16646_vm8, %v5869_v38  ;;  %v5872_v22 = vadd.f32 %v11273_v21, %v5864_v1  ;;  %vm16654_vm8 = vmmov %vm16643_vm1 }
 0x684   : > { %v5845_v62 = vpop.f32.mrf.mxu1  ;;  %v6014_v34 = vld [vmem:[#allocation10 + $0x18] sm:$0xff] }
 0x685   : > { %5880 = vst.msk [vmem:[#allocation10 + $0x38] sm:$0xff] %vm16647_vm5, %v5872_v22  ;;  %v5870_v5 = vadd.f32 %v5862_v37, %v5845_v62  ;;  %vm16655_vm5 = vmmov %vm16643_vm1 }
 0x686   : > { %v11282_v19 = vpop.f32.mrf.mxu1  ;;  %v6012_v49 = vld [vmem:[#allocation10 + $0x8] sm:$0xff] }
 0x687   : > { %5878 = vst.msk [vmem:[#allocation10 + $0x28] sm:$0xff] %vm16648_vm2, %v5870_v5  ;;  %v6021_v17 = vadd.f32 %v11282_v19, %v6013_v3  ;;  %vm16656_vm2 = vmmov %vm16643_vm1  ;;  %v12060_v19 = vld [vmem:[%s16649_s7 + $0x10] sm:$0xff]  }
 0x688   : > { %v5980_v43 = vpop.f32.mrf.mxu1  ;;  %v6017_v27 = vld [vmem:[#allocation10 + $0x30] sm:$0xff]  ;;  %11294 = vmatprep.subr.bf16.mxu1 %v12060_v19 }
 0x689   : > { %6029 = vst.msk [vmem:[#allocation10 + $0x10] sm:$0xff] %vm16650_vm6, %v6021_v17  ;;  %v6019_v30 = vadd.f32 %v6011_v23, %v5980_v43  ;;  %vm16657_vm6 = vmmov %vm16643_vm1  ;;  %11295 = vmatpush3.bf16.msra.mxu1 %v12060_v19 }
 0x68a   : > { %v11283_v44 = vpop.f32.mrf.mxu1  ;;  %v6015_v32 = vld [vmem:[#allocation10 + $0x20] sm:$0xff]  ;;  %11296 = vmatprep.subr.bf16.mxu1 %v12061_v10 }
 0x68b   : > { %6027 = vst.msk [vmem:[#allocation10] sm:$0xff] %vm16643_vm1, %v6019_v30  ;;  %v6022_v60 = vadd.f32 %v11283_v44, %v6014_v34 }
 0x68c   : > { %v5983_v7 = vpop.f32.mrf.mxu1  ;;  %v6018_v40 = vld [vmem:[#allocation10 + $0x38] sm:$0xff] }
 0x68d   : > { %6030 = vst.msk [vmem:[#allocation10 + $0x18] sm:$0xff] %vm16651_vm15, %v6022_v60  ;;  %v6020_v9 = vadd.f32 %v6012_v49, %v5983_v7  ;;  %11297 = vmatpush3.bf16.msra.mxu1 %v12061_v10  ;;  %vm16667_vm15 = vnez %v16598_v54 }
 0x68e   : > { %v11286_v6 = vpop.f32.mrf.mxu1  ;;  %v6016_v63 = vld [vmem:[#allocation10 + $0x28] sm:$0xff] }
 0x68f   : > { %6028 = vst.msk [vmem:[#allocation10 + $0x8] sm:$0xff] %vm16653_vm12, %v6020_v9  ;;  %v6025_v45 = vadd.f32 %v11286_v6, %v6017_v27  ;;  %vm16668_vm12 = vnez %v16596_v20  ;;  %v14795_v20 = vld [vmem:[%s16649_s7 + $0x58] sm:$0xff]  }
 0x690   : > { %v5996_v29 = vpop.f32.mrf.mxu1  ;;  %v6037_v46 = vld [vmem:[#allocation10 + $0x10] sm:$0xff] }
 0x691   : > { %6033 = vst.msk [vmem:[#allocation10 + $0x30] sm:$0xff] %vm16654_vm8, %v6025_v45  ;;  %v6023_v55 = vadd.f32 %v6015_v32, %v5996_v29  ;;  %v6052_v15 = vadd.f32 %v14711_v50, %v6037_v46  ;;  %vm16669_vm8 = vnez %v16584_v57 }
 0x692   : > { %v11287_v24 = vpop.f32.mrf.mxu1  ;;  %v6035_v26 = vld [vmem:[#allocation10] sm:$0xff] }
 0x693   : > { %6031 = vst.msk [vmem:[#allocation10 + $0x20] sm:$0xff] %vm16655_vm5, %v6023_v55  ;;  %v6026_v33 = vadd.f32 %v11287_v24, %v6018_v40  ;;  %v6060_v58 = vmax.f32 %v6052_v15, 0.0  ;;  %v6050_v53 = vadd.f32 %v14711_v50, %v6035_v26  ;;  %vm16670_vm5 = vnez %v16586_v25 }
 0x694   : > { %v5999_v35 = vpop.f32.mrf.mxu1  ;;  %v6038_v42 = vld [vmem:[#allocation10 + $0x18] sm:$0xff] }
 0x695   : > { %6034 = vst.msk [vmem:[#allocation10 + $0x38] sm:$0xff] %vm16656_vm2, %v6026_v33  ;;  %v6024_v36 = vadd.f32 %v6016_v63, %v5999_v35  ;;  %6154 = vrot.lane.b32.xlu1 %v6060_v58, %s16043_s25  ;;  %v6053_v47 = vadd.f32 %v14711_v50, %v6038_v42  ;;  %v6058_v52 = vmax.f32 %v6050_v53, 0.0  ;;  %v6079_v38 = vsel %vm14465_vm14, 0.0, %v6060_v58 }
 0x696   : > { %v6036_v11 = vld [vmem:[#allocation10 + $0x8] sm:$0xff]  ;;  %v6071_v41 = vsel %vm14461_vm7, 0.0, %v6060_v58  ;;  %v6128_v3 = vrot.slane %v6079_v38, 1  ;;  %vm16662_vm7 = vnez %v16588_v59  ;;  %vm16663_vm14 = vnez %v16578_v16  ;;  %v12062_v59 = vld [vmem:[%s16649_s7] sm:$0xff]  }
 0x697   : > { %6032 = vst.msk [vmem:[#allocation10 + $0x28] sm:$0xff] %vm16657_vm6, %v6024_v36  ;;  %v14725_v51 = vmax.f32 %v6053_v47, 0.0  ;;  %v6051_v21 = vadd.f32 %v14711_v50, %v6036_v11  ;;  %v6077_v37 = vsel %vm14442_vm10, 0.0, %v6058_v52  ;;  %v6069_v28 = vsel %vm14438_vm13, 0.0, %v6058_v52  ;;  %11298 = vmatprep.subr.bf16.mxu1 %v12062_v59 }
 0x698   : > { %v6041_v1 = vld [vmem:[#allocation10 + $0x30] sm:$0xff]  ;;  %vm16658_vm10 = vcmask 1046528   ;;  %v6125_v44 = vrot.slane %v6077_v37, 1  ;;  %v6096_v49 = vrot.slane %v6071_v41, 7  ;;  %v14758_v9 = vrot.slane %v6069_v28, 7  ;;  %11299 = vmatpush3.bf16.msra.mxu1 %v12062_v59 }
 0x699   : > { %v6080_v22 = vsel %vm14499_vm9, 0.0, %v14725_v51  ;;  %v6059_v62 = vmax.f32 %v6051_v21, 0.0  ;;  %v6056_v5 = vadd.f32 %v14711_v50, %v6041_v1  ;;  %vm16659_vm13 = vmmov %vm16658_vm10  ;;  %v6072_v56 = vsel %vm14490_vm4, 0.0, %v14725_v51  ;;  %11308 = vmatprep.subr.bf16.mxu1 %v14795_v20 }
 0x69a   : > { %v14741_v17 = vrot.slane %v6080_v22, 1  ;;  %v6039_v43 = vld [vmem:[#allocation10 + $0x20] sm:$0xff]  ;;  %vm16664_vm9 = vcmask 1040384   ;;  %vm16666_vm4 = vnez %v16591_v4 }
 0x69b   : > { %v11835_v23 = vpack.i.bf16 %v6059_v62, %v6058_v52  ;;  %v6078_v48 = vsel %vm14450_vm3, 0.0, %v6059_v62  ;;  %v6054_v39 = vadd.f32 %v14711_v50, %v6039_v43  ;;  %v6064_v30 = vmax.f32 %v6056_v5, 0.0  ;;  %vm16660_vm3 = vmmov %vm16658_vm10 }
 0x69c   : > { %v6131_v18 = vsel %vm16658_vm10, %v6128_v3, %v14741_v17  ;;  %v6126_v34 = vrot.slane %v6078_v48, 1  ;;  %v6042_v60 = vld [vmem:[#allocation10 + $0x38] sm:$0xff]  ;;  %v6070_v8 = vsel %vm14446_vm11, 0.0, %v6059_v62  ;;  %vm16661_vm11 = vnez %v16574_v61  ;;  %vm16665_vm1 = vmmov %vm16664_vm9 }
 0x69d   : > { %6179 = vrot.lane.b32.xlu1 %v6131_v18, %s16041_s27  ;;  %11836 = vrot.lane.b32.xlu0 %v11835_v23, %s16043_s25  ;;  %v6062_v14 = vmax.f32 %v6054_v39, 0.0  ;;  %v6057_v7 = vadd.f32 %v14711_v50, %v6042_v60  ;;  %v6094_v32 = vrot.slane %v6070_v8, 7  ;;  %v6075_v15 = vsel %vm16662_vm7, 0.0, %v6064_v30  ;;  %vm16671_vm2 = vmmov %vm16665_vm1 }
 0x69e   : > { %v6127_v6 = vsel %vm16659_vm13, %v6125_v44, %v6126_v34  ;;  %v6129_v27 = vsel %vm16660_vm3, %v6126_v34, %v6128_v3  ;;  %v6040_v45 = vld [vmem:[#allocation10 + $0x28] sm:$0xff]  ;;  %v6083_v61 = vsel %vm16666_vm4, 0.0, %v6064_v30  ;;  %vm16672_vm6 = vmmov %vm16665_vm1  ;;  %v6104_v57 = vrot.slane %v6075_v15, 7 }
 0x69f   : > { %v11840_v29 = vpack.i.bf16 %v6129_v27, %v6127_v6  ;;  %v6073_v46 = vsel %vm16661_vm11, 0.0, %v6062_v14  ;;  %v6055_v55 = vadd.f32 %v14711_v50, %v6040_v45  ;;  %v6065_v24 = vmax.f32 %v6057_v7, 0.0  ;;  %vm16673_vm10 = vmmov %vm16660_vm3 }
 0x6a0   : > { %v6081_v40 = vsel %vm16663_vm14, 0.0, %v6062_v14  ;;  %v6097_v26 = vsel %vm16664_vm9, %v6094_v32, %v6096_v49  ;;  %v6095_v13 = vsel %vm16665_vm1, %v14758_v9, %v6094_v32  ;;  %v6098_v50 = vrot.slane %v6072_v56, 7  ;;  %vm16674_vm13 = vmmov %vm16660_vm3 }
 0x6a1   : > { %11841 = vrot.lane.b32.xlu0 %v11840_v29, %s16041_s27  ;;  %v6063_v33 = vmax.f32 %v6055_v55, 0.0  ;;  %v6100_v58 = vrot.slane %v6073_v46, 7  ;;  %v11845_v16 = vpack.i.bf16 %v6062_v14, %v14725_v51  ;;  %v6084_v53 = vsel %vm16667_vm15, 0.0, %v6065_v24  ;;  %vm16675_vm11 = vmmov %vm16660_vm3 }
 0x6a2   : > { %v6132_v2 = vrot.slane %v6081_v40, 1  ;;  %v6076_v35 = vsel %vm16668_vm12, 0.0, %v6065_v24  ;;  %v6138_v36 = vrot.slane %v6084_v53, 1  ;;  %v6136_v11 = vrot.slane %v6083_v61, 1  ;;  %vm16676_vm7 = vmmov %vm16665_vm1 }
 0x6a3   : > { %v11850_v63 = vpack.i.bf16 %v6064_v30, %v6063_v33  ;;  %v6074_v4 = vsel %vm16669_vm8, 0.0, %v6063_v33  ;;  %v6082_v42 = vsel %vm16670_vm5, 0.0, %v6063_v33  ;;  %v6099_v52 = vsel %vm16671_vm2, %v6096_v49, %v6098_v50  ;;  %vm16677_vm14 = vmmov %vm16665_vm1 }
 0x6a4   : > { %v6134_v47 = vrot.slane %v6082_v42, 1  ;;  %v6101_v54 = vsel %vm16672_vm6, %v6098_v50, %v6100_v58  ;;  %v6102_v25 = vrot.slane %v6074_v4, 7  ;;  %v6106_v51 = vrot.slane %v6076_v35, 7  ;;  %vm16678_vm9 = vmmov %vm16665_vm1 }
 0x6a5   : > { %11846 = vrot.lane.b32.xlu0 %v11845_v16, %s16043_s25  ;;  %11851 = vrot.lane.b32.xlu1 %v11850_v63, %s16043_s25  ;;  %v6139_v21 = vsel %vm16674_vm13, %v6136_v11, %v6138_v36  ;;  %v6133_v1 = vsel %vm16660_vm3, %v14741_v17, %v6132_v2  ;;  %vm16679_vm1 = vmmov %vm16660_vm3  ;;  %vm6207_vm4 = vcmask 523264   ;;  %vm16680_vm15 = vcmask 261120  }
 0x6a6   : > { %v6137_v38 = vsel %vm16673_vm10, %v6134_v47, %v6136_v11  ;;  %v6135_v22 = vsel %vm16675_vm11, %v6132_v2, %v6134_v47  ;;  %v6103_v5 = vsel %vm16676_vm7, %v6100_v58, %v6102_v25  ;;  %v6105_v19 = vsel %vm16677_vm14, %v6102_v25, %v6104_v57  ;;  %vm16681_vm12 = vmmov %vm16671_vm2  ;;  %v12066_v11 = vld [vmem:[%s16649_s7 + $0x50] sm:$0xff]  }
 0x6a7   : > { %v11860_v62 = vpack.i.bf16 %v6139_v21, %v6137_v38  ;;  %v11855_v37 = vpack.i.bf16 %v6135_v22, %v6133_v1  ;;  %v6107_v41 = vsel %vm16678_vm9, %v6104_v57, %v6106_v51  ;;  %v6141_v3 = vsel %vm16679_vm1, %v6138_v36, 0.0  ;;  %vm16682_vm8 = vmmov %vm16680_vm15  ;;  %v12068_v38 = vld [vmem:[%s16649_s7 + $0x48] sm:$0xff]   ;;  %v12071_v21 = vld [vmem:[%s16649_s7 + $0x40] sm:$0xff]  }
 0x6a8   : > { %v6116_v44 = vsel %vm16681_vm12, 0.0, %v14758_v9  ;;  %vm16683_vm5 = vmmov %vm16682_vm8  ;;  %vm6332_vm2 = vcmask 785408  }
 0x6a9   : > { %11861 = vrot.lane.b32.xlu1 %v11860_v62, %s16041_s27  ;;  %11856 = vrot.lane.b32.xlu0 %v11855_v37, %s16041_s27  ;;  %vm16684_vm6 = vmmov %vm16683_vm5  ;;  %v12073_v37 = vld [vmem:[%s16649_s7 + $0x30] sm:$0xff]  }
 0x6aa   : > { %vm16685_vm10 = vmmov %vm16683_vm5 }
 0x6ab   : > { %vm16686_vm13 = vmmov %vm16683_vm5 }
 0x6ac   : > { %vm16687_vm3 = vmmov %vm16683_vm5 }
 0x6ad   : > { %6189 = vrot.lane.b32.xlu1 %v6141_v3, %s16041_s27  ;;  %6164 = vrot.lane.b32.xlu0 %v6065_v24, %s16043_s25  ;;  %vm16688_vm11 = vmmov %vm16687_vm3  ;;  %s9663_s27 = scalar_lea.sflag [#allocation17], %s635_s6 }
 0x6ae   : > { %vm16689_vm7 = vmmov %vm16687_vm3 }
 0x6af   : > { %vm16690_vm14 = vmmov %vm16687_vm3 }
 0x6b0   : > { %vm16691_vm9 = vmmov %vm16687_vm3 }
 0x6b1   : > { %vm16692_vm1 = vmmov %vm16687_vm3 }
 0x6b2   : > { %vm16694_vm12 = vmmov %vm16692_vm1 }
 0x707   : > { %v6155_v17 = vpop.permute.xlu1 %6154 }
 0x708   : > { %v6201_v43 = vsel %vm16680_vm15, %v6097_v26, %v6155_v17  ;;  %v12079_v17 = vld [vmem:[%s16649_s7 + $0x78] sm:$0xff]   ;;  %vm16693_vm15 = vmmov %vm16692_vm1 }
 0x70f   : > { %v6180_v28 = vpop.permute.xlu1 %6179  ;;  %v11837_v10 = vpop.permute.xlu0 %11836 }
 0x710   : > { %v6210_v23 = vsel %vm6207_vm4, %v6201_v43, %v6180_v28  ;;  %v11839_v39 = vunpack.i.h.bf16 %v11837_v10  ;;  %v11838_v30 = vunpack.i.l.bf16 %v11837_v10  ;;  %v12081_v28 = vld [vmem:[%s16649_s7 + $0x70] sm:$0xff]  }
 0x711   : > { %v10630_v48 = vpack.c.bf16 %v6210_v23, %v6210_v23  ;;  %v12082_v23 = vld [vmem:[%s16649_s7 + $0x68] sm:$0xff]  }
 0x712   : > { %v6199_v8 = vsel %vm16682_vm8, %v6116_v44, %v11838_v30  ;;  %v6200_v14 = vsel %vm16683_vm5, %v6095_v13, %v11839_v39  ;;  %v12087_v44 = vld [vmem:[%s15926_s14] sm:$0xff]   ;;  %vm16695_vm8 = vmmov %vm16692_vm1 }
 0x713   : > { %6250 = vst.msk [vmem:[#allocation5 + $0x10] sm:$0xf] %vm6066_vm0, %v10630_v48  ;;  %v11842_v18 = vpop.permute.xlu0 %11841  ;;  %v12083_v48 = vld [vmem:[%s16649_s7 + $0x60] sm:$0xff]   ;;  %vm16696_vm5 = vmmov %vm16692_vm1 }
 0x714   : > { %v11844_v34 = vunpack.i.h.bf16 %v11842_v18  ;;  %v11843_v60 = vunpack.i.l.bf16 %v11842_v18 }
 0x716   : > { %v6208_v7 = vsel %vm6207_vm4, %v6199_v8, %v11843_v60  ;;  %v6209_v49 = vsel %vm6207_vm4, %v6200_v14, %v11844_v34 }
 0x717   : > { %v10628_v6 = vpack.c.bf16 %v6208_v7, %v6208_v7  ;;  %v10629_v27 = vpack.c.bf16 %v6209_v49, %v6209_v49  ;;  %v11847_v45 = vpop.permute.xlu0 %11846  ;;  %v11852_v32 = vpop.permute.xlu1 %11851 }
 0x718   : > { %v11849_v56 = vunpack.i.h.bf16 %v11847_v45  ;;  %v11848_v9 = vunpack.i.l.bf16 %v11847_v45  ;;  %v11854_v29 = vunpack.i.h.bf16 %v11852_v32  ;;  %v11853_v46 = vunpack.i.l.bf16 %v11852_v32 }
 0x719   : > { %6248 = vst.msk [vmem:[#allocation5 + $0x8] sm:$0xf] %vm6066_vm0, %v10628_v6  ;;  %6249 = vst.msk [vmem:[#allocation5 + $0xc] sm:$0xf] %vm6066_vm0, %v10629_v27 }
 0x71a   : > { %v6202_v33 = vsel %vm16684_vm6, %v6099_v52, %v11848_v9  ;;  %v6203_v61 = vsel %vm16685_vm10, %v6101_v54, %v11849_v56  ;;  %v6204_v50 = vsel %vm16686_vm13, %v6103_v5, %v11853_v46  ;;  %v6205_v58 = vsel %vm16687_vm3, %v6105_v19, %v11854_v29  ;;  %v12075_v5 = vld [vmem:[%s16649_s7 + $0x88] sm:$0xff]   ;;  %vm16697_vm6 = vmmov %vm16692_vm1 }
 0x71b   : > { %v11862_v55 = vpop.permute.xlu1 %11861  ;;  %v11857_v15 = vpop.permute.xlu0 %11856  ;;  %vm16698_vm10 = vmmov %vm16692_vm1 }
 0x71c   : > { %v11864_v24 = vunpack.i.h.bf16 %v11862_v55  ;;  %v11863_v40 = vunpack.i.l.bf16 %v11862_v55  ;;  %v11859_v26 = vunpack.i.h.bf16 %v11857_v15  ;;  %v11858_v13 = vunpack.i.l.bf16 %v11857_v15  ;;  %vm16699_vm13 = vmmov %vm16692_vm1 }
 0x71d   : > { %vm16700_vm3 = vmmov %vm16692_vm1 }
 0x71e   : > { %v6213_v59 = vsel %vm6207_vm4, %v6204_v50, %v11863_v40  ;;  %v6214_v16 = vsel %vm6207_vm4, %v6205_v58, %v11864_v24  ;;  %v6212_v53 = vsel %vm6207_vm4, %v6203_v61, %v11859_v26  ;;  %v6211_v2 = vsel %vm6207_vm4, %v6202_v33, %v11858_v13 }
 0x71f   : > { %v10633_v35 = vpack.c.bf16 %v6213_v59, %v6213_v59  ;;  %v10634_v63 = vpack.c.bf16 %v6214_v16, %v6214_v16  ;;  %v10632_v4 = vpack.c.bf16 %v6212_v53, %v6212_v53  ;;  %v10631_v42 = vpack.c.bf16 %v6211_v2, %v6211_v2  ;;  %v6190_v36 = vpop.permute.xlu1 %6189  ;;  %v6165_v47 = vpop.permute.xlu0 %6164 }
 0x720   : > { %v6206_v52 = vsel %vm16688_vm11, %v6107_v41, %v6165_v47  ;;  %v12063_v54 = vld [vmem:[#allocation5 + $0x4] sm:$0xff]   ;;  %v12065_v25 = vld [vmem:[#allocation5 + $0xc] sm:$0xff]   ;;  %vm16701_vm11 = vmmov %vm16692_vm1 }
 0x721   : > { %6253 = vst.msk [vmem:[#allocation5 + $0x1c] sm:$0xf] %vm6066_vm0, %v10633_v35  ;;  %6254 = vst.msk [vmem:[#allocation5 + $0x20] sm:$0xf] %vm6066_vm0, %v10634_v63  ;;  %v6215_v57 = vsel %vm6207_vm4, %v6206_v52, %v6190_v36  ;;  %11300 = vmatprep.mubr.msk.bf16.mxu1 %vm6332_vm2, %v12063_v54  ;;  %v12070_v62 = vld [vmem:[#allocation5 + $0x8] sm:$0xff]   ;;  %v12077_v41 = vld [vmem:[%s16649_s7 + $0x80] sm:$0xff]  }
 0x722   : > { %6252 = vst.msk [vmem:[#allocation5 + $0x18] sm:$0xf] %vm6066_vm0, %v10632_v4  ;;  %6251 = vst.msk [vmem:[#allocation5 + $0x14] sm:$0xf] %vm6066_vm0, %v10631_v42  ;;  %v10635_v51 = vpack.c.bf16 %v6215_v57, %v6215_v57  ;;  %11301 = vmatmul.mubr.msk.bf16.vlgmr.msra.gmra.mxu1 %vm6332_vm2, %v12065_v25  ;;  %v12080_v10 = vld [vmem:[#allocation5 + $0xc] sm:$0xff]  }
 0x723   : > { %11309 = vmatpush3.bf16.msra.mxu1 %v14795_v20  ;;  %v12072_v20 = vld [vmem:[%s16649_s7 + $0x38] sm:$0xff]  }
 0x724   : > { %6255 = vst.msk [vmem:[#allocation5 + $0x24] sm:$0xf] %vm6066_vm0, %v10635_v51  ;;  %11310 = vmatprep.subr.bf16.mxu1 %v12066_v11 }
 0x727   : > { %11311 = vmatpush3.bf16.msra.mxu1 %v12066_v11 }
 0x728   : > { %11312 = vmatprep.subr.bf16.mxu1 %v12068_v38  ;;  %v12069_v22 = vld [vmem:[#allocation5 + $0x1c] sm:$0xff]  }
 0x729   : > { %v12067_v1 = vld [vmem:[#allocation5 + $0x14] sm:$0xff]   ;;  %v12085_v30 = vld [vmem:[#allocation5 + $0x1c] sm:$0xff]  }
 0x72a   : > { %11304 = vmatprep.mubr.msk.bf16.mxu1 %vm6332_vm2, %v12067_v1  ;;  %v12074_v19 = vld [vmem:[#allocation5 + $0x10] sm:$0xff]   ;;  %v12076_v3 = vld [vmem:[#allocation5 + $0x18] sm:$0xff]  }
 0x72b   : > { %11305 = vmatmul.mubr.msk.bf16.gmra.mxu1 %vm6332_vm2, %v12069_v22  ;;  %v12078_v43 = vld [vmem:[#allocation5 + $0x20] sm:$0xff]   ;;  %v12084_v39 = vld [vmem:[#allocation5 + $0x14] sm:$0xff]  }
 0x72c   : > { %11313 = vmatpush3.bf16.msra.mxu1 %v12068_v38  ;;  %11320 = vmatprep.mubr.msk.bf16.mxu1 %vm6332_vm2, %v12070_v62  ;;  %v12086_v18 = vld [vmem:[#allocation5 + $0x24] sm:$0xff]  }
 0x72d   : > { %11314 = vmatprep.subr.bf16.mxu1 %v12071_v21 }
 0x730   : > { %11315 = vmatpush3.bf16.msra.mxu1 %v12071_v21 }
 0x731   : > { %11316 = vmatprep.subr.bf16.mxu1 %v12072_v20 }
 0x734   : > { %11317 = vmatpush3.bf16.msra.mxu1 %v12072_v20 }
 0x735   : > { %11318 = vmatprep.subr.bf16.mxu1 %v12073_v37 }
 0x738   : > { %11319 = vmatpush3.bf16.msra.mxu1 %v12073_v37 }
 0x739   : > { %11328 = vmatprep.subr.bf16.mxu1 %v12075_v5 }
 0x73b   : > { %11321 = vmatmul.mubr.msk.bf16.vlgmr.msra.gmra.mxu1 %vm6332_vm2, %v12074_v19 }
 0x73c   : > { %11324 = vmatprep.mubr.msk.bf16.mxu1 %vm6332_vm2, %v12076_v3  ;;  %11329 = vmatpush3.bf16.msra.mxu1 %v12075_v5 }
 0x73d   : > { %11330 = vmatprep.subr.bf16.mxu1 %v12077_v41 }
 0x740   : > { %11331 = vmatpush3.bf16.msra.mxu1 %v12077_v41 }
 0x741   : > { %11332 = vmatprep.subr.bf16.mxu1 %v12079_v17 }
 0x743   : > { %11325 = vmatmul.mubr.msk.bf16.gmra.mxu1 %vm6332_vm2, %v12078_v43 }
 0x744   : > { %11333 = vmatpush3.bf16.msra.mxu1 %v12079_v17  ;;  %11340 = vmatprep.mubr.msk.bf16.mxu1 %vm6332_vm2, %v12080_v10 }
 0x745   : > { %11334 = vmatprep.subr.bf16.mxu1 %v12081_v28 }
 0x748   : > { %11335 = vmatpush3.bf16.msra.mxu1 %v12081_v28 }
 0x749   : > { %11336 = vmatprep.subr.bf16.mxu1 %v12082_v23 }
 0x74c   : > { %11337 = vmatpush3.bf16.msra.mxu1 %v12082_v23 }
 0x74d   : > { %11338 = vmatprep.subr.bf16.mxu1 %v12083_v48 }
 0x750   : > { %11339 = vmatpush3.bf16.msra.mxu1 %v12083_v48 }
 0x753   : > { %11341 = vmatmul.mubr.msk.bf16.vlgmr.msra.gmra.mxu1 %vm6332_vm2, %v12084_v39  ;;  %v10196_v39 = vld [vmem:[%s16712_s8] ss:$0 sm:$0xff]  ;;  %s636_s8 = scalar_lea.vmem [#allocation18], %s635_s6 }
 0x754   : > { %11344 = vmatprep.mubr.msk.bf16.mxu1 %vm6332_vm2, %v12085_v30  ;;  %s9675_s7 = sshll.u32 %s636_s8, 4  ;;  %s9676_s7 = int_to_ptr.vmem [resolvable:$true] %s9675_s7 }
 0x755   : > { %s12247_s25 = scalar_lea.vmem %s9676_s7, 16 }
 0x756   : > { %p12248_p6 = scmp.ne.s32.totalorder %s9676_s7, %s12247_s25 }
 0x758   : > { %p12249_p9 = pnand %p12248_p6, %p12469_p5 }
 0x75a   : > { %p12250_p10 = pneg %p12249_p9 }
 0x75b   : > { %11345 = vmatmul.mubr.msk.bf16.gmra.mxu1 %vm6332_vm2, %v12086_v18 }
 0x75c   : > { %11356 = vmatprep.mubr.msk.bf16.mxu1 %vm6207_vm4, %v12087_v44 }
 0x7e2   : > { %v11302_v34 = vpop.f32.mrf.mxu1 }
 0x7e3   : > { %6412 = vst.msk [vmem:[#allocation11 + $0x10] sm:$0xff] %vm16689_vm7, %v11302_v34  ;;  %vm16702_vm7 = vmmov %vm16692_vm1 }
 0x7e4   : > { %v6379_v60 = vpop.f32.mrf.mxu1 }
 0x7e5   : > { %6410 = vst.msk [vmem:[#allocation11] sm:$0xff] %vm16690_vm14, %v6379_v60  ;;  %vm16703_vm14 = vmmov %vm16692_vm1 }
 0x7e6   : > { %v11303_v8 = vpop.f32.mrf.mxu1 }
 0x7e7   : > { %6413 = vst.msk [vmem:[#allocation11 + $0x18] sm:$0xff] %vm16691_vm9, %v11303_v8  ;;  %vm16704_vm9 = vmmov %vm16692_vm1 }
 0x7e8   : > { %v6382_v14 = vpop.f32.mrf.mxu1 }
 0x7e9   : > { %6411 = vst.msk [vmem:[#allocation11 + $0x8] sm:$0xff] %vm16692_vm1, %v6382_v14 }
 0x7ea   : > { %v6574_v32 = vld [vmem:[#allocation11 + $0x10] sm:$0xff] }
 0x7eb   : > { %v11306_v7 = vpop.f32.mrf.mxu1 }
 0x7ec   : > { %6416 = vst.msk [vmem:[#allocation11 + $0x30] sm:$0xff] %vm16693_vm15, %v11306_v7  ;;  %v6572_v29 = vld [vmem:[#allocation11] sm:$0xff]  ;;  %vm16705_vm15 = vmmov %vm16692_vm1 }
 0x7ed   : > { %v6395_v49 = vpop.f32.mrf.mxu1 }
 0x7ee   : > { %6414 = vst.msk [vmem:[#allocation11 + $0x20] sm:$0xff] %vm16694_vm12, %v6395_v49  ;;  %v6575_v15 = vld [vmem:[#allocation11 + $0x18] sm:$0xff]  ;;  %vm16706_vm12 = vmmov %vm16692_vm1 }
 0x7ef   : > { %v11307_v6 = vpop.f32.mrf.mxu1 }
 0x7f0   : > { %6417 = vst.msk [vmem:[#allocation11 + $0x38] sm:$0xff] %vm16695_vm8, %v11307_v6  ;;  %v6573_v26 = vld [vmem:[#allocation11 + $0x8] sm:$0xff]  ;;  %vm16707_vm8 = vmmov %vm16692_vm1 }
 0x7f1   : > { %v6398_v27 = vpop.f32.mrf.mxu1 }
 0x7f2   : > { %6415 = vst.msk [vmem:[#allocation11 + $0x28] sm:$0xff] %vm16696_vm5, %v6398_v27  ;;  %vm16708_vm5 = vmmov %vm16692_vm1 }
 0x7f3   : > { %v6578_v61 = vld [vmem:[#allocation11 + $0x30] sm:$0xff] }
 0x7f5   : > { %v6576_v59 = vld [vmem:[#allocation11 + $0x20] sm:$0xff] }
 0x7f7   : > { %v6579_v2 = vld [vmem:[#allocation11 + $0x38] sm:$0xff] }
 0x7f9   : > { %v6577_v4 = vld [vmem:[#allocation11 + $0x28] sm:$0xff] }
 0x7fb   : > { %v11322_v45 = vpop.f32.mrf.mxu1 }
 0x7fc   : > { %v6582_v56 = vadd.f32 %v11322_v45, %v6574_v32 }
 0x7fd   : > { %v6541_v9 = vpop.f32.mrf.mxu1 }
 0x7fe   : > { %6590 = vst.msk [vmem:[#allocation11 + $0x10] sm:$0xff] %vm16697_vm6, %v6582_v56  ;;  %v6580_v46 = vadd.f32 %v6572_v29, %v6541_v9  ;;  %vm16709_vm6 = vmmov %vm16692_vm1 }
 0x7ff   : > { %v11323_v55 = vpop.f32.mrf.mxu1 }
 0x800   : > { %6588 = vst.msk [vmem:[#allocation11] sm:$0xff] %vm16698_vm10, %v6580_v46  ;;  %v6583_v24 = vadd.f32 %v11323_v55, %v6575_v15  ;;  %vm16710_vm10 = vmmov %vm16692_vm1 }
 0x801   : > { %v6544_v40 = vpop.f32.mrf.mxu1 }
 0x802   : > { %6591 = vst.msk [vmem:[#allocation11 + $0x18] sm:$0xff] %vm16699_vm13, %v6583_v24  ;;  %v6581_v13 = vadd.f32 %v6573_v26, %v6544_v40  ;;  %vm16711_vm13 = vmmov %vm16692_vm1 }
 0x803   : > { %v11326_v33 = vpop.f32.mrf.mxu1 }
 0x804   : > { %6589 = vst.msk [vmem:[#allocation11 + $0x8] sm:$0xff] %vm16700_vm3, %v6581_v13  ;;  %v6586_v50 = vadd.f32 %v11326_v33, %v6578_v61 }
 0x805   : > { %v6557_v58 = vpop.f32.mrf.mxu1  ;;  %v6752_v47 = vld [vmem:[#allocation11 + $0x10] sm:$0xff] }
 0x806   : > { %6594 = vst.msk [vmem:[#allocation11 + $0x30] sm:$0xff] %vm16701_vm11, %v6586_v50  ;;  %v6584_v16 = vadd.f32 %v6576_v59, %v6557_v58  ;;  %v12088_v59 = vld [vmem:[%s15926_s14 + $0x8] sm:$0xff]  }
 0x807   : > { %v11327_v53 = vpop.f32.mrf.mxu1  ;;  %v6750_v54 = vld [vmem:[#allocation11] sm:$0xff] }
 0x808   : > { %6592 = vst.msk [vmem:[#allocation11 + $0x20] sm:$0xff] %vm16702_vm7, %v6584_v16  ;;  %v6587_v35 = vadd.f32 %v11327_v53, %v6579_v2  ;;  %v12089_v16 = vld [vmem:[%s15926_s14 + $0x10] sm:$0xff]   ;;  %v12090_v53 = vld [vmem:[%s15926_s14 + $0x18] sm:$0xff]   ;;  %v12091_v2 = vld [vmem:[%s16713_s9 + $0x28] sm:$0xff]  }
 0x809   : > { %v6560_v63 = vpop.f32.mrf.mxu1  ;;  %v6753_v51 = vld [vmem:[#allocation11 + $0x18] sm:$0xff] }
 0x80a   : > { %6595 = vst.msk [vmem:[#allocation11 + $0x38] sm:$0xff] %vm16703_vm14, %v6587_v35  ;;  %v6585_v42 = vadd.f32 %v6577_v4, %v6560_v63  ;;  %v12322_v35 = vmov 0.0   ;;  %v12095_v63 = vld [vmem:[%s16713_s9 + $0x58] sm:$0xff]   ;;  %v12092_v4 = vld [vmem:[%s16713_s9 + $0x20] sm:$0xff]  }
 0x80b   : > { %v6751_v1 = vld [vmem:[#allocation11 + $0x8] sm:$0xff]  ;;  %11364 = vmatprep.subr.bf16.mxu0 %v12322_v35 }
 0x80c   : > { %6593 = vst.msk [vmem:[#allocation11 + $0x28] sm:$0xff] %vm16704_vm9, %v6585_v42  ;;  %11365 = vmatpush3.bf16.msra.mxu0 %v12091_v2  ;;  %v12093_v42 = vld [vmem:[%s16713_s9 + $0x18] sm:$0xff]   ;;  %vm12323_vm9 = vmmov 0  }
 0x80d   : > { %v6756_v20 = vld [vmem:[#allocation11 + $0x30] sm:$0xff]  ;;  %11366 = vmatprep.subr.bf16.mxu0 %v12322_v35  ;;  %11376 = vmatprep.mubr.msk.bf16.mxu0 %vm12323_vm9, %v12322_v35 }
 0x80f   : > { %v6754_v19 = vld [vmem:[#allocation11 + $0x20] sm:$0xff] }
 0x810   : > { %11367 = vmatpush3.bf16.msra.mxu0 %v12092_v4  ;;  %v12106_v4 = vld [vmem:[%s16713_s9 + $0x88] sm:$0xff]  }
 0x811   : > { %v6757_v17 = vld [vmem:[#allocation11 + $0x38] sm:$0xff]  ;;  %11368 = vmatprep.subr.bf16.mxu0 %v12322_v35 }
 0x813   : > { %v11342_v36 = vpop.f32.mrf.mxu1  ;;  %v6755_v10 = vld [vmem:[#allocation11 + $0x28] sm:$0xff] }
 0x814   : > { %v6760_v11 = vadd.f32 %v11342_v36, %v6752_v47  ;;  %11369 = vmatpush3.bf16.msra.mxu0 %v12093_v42  ;;  %v12094_v36 = vld [vmem:[%s16713_s9 + $0x10] sm:$0xff]  }
 0x815   : > { %v6719_v52 = vpop.f32.mrf.mxu1  ;;  %11370 = vmatprep.subr.bf16.mxu0 %v12322_v35 }
 0x816   : > { %6768 = vst.msk [vmem:[#allocation11 + $0x10] sm:$0xff] %vm16692_vm1, %v6760_v11  ;;  %v6758_v57 = vadd.f32 %v6750_v54, %v6719_v52  ;;  %vm16723_vm1 = vcmask 1046528  }
 0x817   : > { %v11343_v25 = vpop.f32.mrf.mxu1 }
 0x818   : > { %6766 = vst.msk [vmem:[#allocation11] sm:$0xff] %vm16705_vm15, %v6758_v57  ;;  %v6761_v38 = vadd.f32 %v11343_v25, %v6753_v51  ;;  %11371 = vmatpush3.bf16.msra.mxu0 %v12094_v36  ;;  %v6924_v51 = vand.u32 3, %v16549_v31  ;;  %vm16724_vm15 = vmmov %vm16723_vm1  ;;  %v12107_v36 = vld [vmem:[%s16713_s9 + $0x80] sm:$0xff]  }
 0x819   : > { %v6722_v21 = vpop.f32.mrf.mxu1  ;;  %11372 = vmatprep.subr.bf16.mxu0 %v12322_v35 }
 0x81a   : > { %6769 = vst.msk [vmem:[#allocation11 + $0x18] sm:$0xff] %vm16706_vm12, %v6761_v38  ;;  %v6759_v22 = vadd.f32 %v6751_v1, %v6722_v21  ;;  %v12096_v38 = vld [vmem:[%s16713_s9 + $0x50] sm:$0xff]   ;;  %vm14956_vm3 = vcmp.eq.s32.totalorder %v6924_v51, 3  ;;  %vm14960_vm11 = vcmp.eq.s32.totalorder %v6924_v51, 0  ;;  %vm16725_vm12 = vcmask 1040384  }
 0x81b   : > { %v11346_v62 = vpop.f32.mrf.mxu1 }
 0x81c   : > { %6767 = vst.msk [vmem:[#allocation11 + $0x8] sm:$0xff] %vm16707_vm8, %v6759_v22  ;;  %v6764_v37 = vadd.f32 %v11346_v62, %v6756_v20  ;;  %v6925_v62 = vand.u32 3, %v16551_v0  ;;  %vm6920_vm8 = vcmask 781314  }
 0x81d   : > { %v6735_v5 = vpop.f32.mrf.mxu1  ;;  %v6776_v7 = vld [vmem:[#allocation11 + $0x10] sm:$0xff]  ;;  %6921 = vst.msk [vmem:[#allocation6] sm:$0xc] %vm6920_vm8, %v16350_v12 }
 0x81e   : > { %6772 = vst.msk [vmem:[#allocation11 + $0x30] sm:$0xff] %vm16708_vm5, %v6764_v37  ;;  %v6762_v41 = vadd.f32 %v6754_v19, %v6735_v5  ;;  %v6791_v46 = vadd.f32 %v10196_v39, %v6776_v7  ;;  %vm14964_vm7 = vcmp.eq.s32.totalorder %v6925_v62, 3  ;;  %vm14968_vm14 = vcmp.eq.s32.totalorder %v6925_v62, 0  ;;  %v12102_v7 = vld [vmem:[%s16713_s9] sm:$0xff]   ;;  %v12116_v62 = vld [vmem:[%s15923_s11 + $0x90] sm:$0xff]   ;;  %v12135_v37 = vld [vmem:[%s15923_s11 + $0x48] sm:$0xff]  }
 0x81f   : > { %v11347_v3 = vpop.f32.mrf.mxu1  ;;  %v6774_v55 = vld [vmem:[#allocation11] sm:$0xff]  ;;  %vm6922_vm5 = vcmask 779264  }
 0x820   : > { %6770 = vst.msk [vmem:[#allocation11 + $0x20] sm:$0xff] %vm16709_vm6, %v6762_v41  ;;  %v6765_v43 = vadd.f32 %v11347_v3, %v6757_v17  ;;  %v6799_v26 = vmax.f32 %v6791_v46, 0.0  ;;  %v6789_v13 = vadd.f32 %v10196_v39, %v6774_v55  ;;  %vm16727_vm6 = vmmov %vm16725_vm12 }
 0x821   : > { %v6738_v28 = vpop.f32.mrf.mxu1  ;;  %v6777_v34 = vld [vmem:[#allocation11 + $0x18] sm:$0xff]  ;;  %6923 = vst.msk [vmem:[#allocation6 + $0xc] sm:$0x3] %vm6922_vm5, %v16350_v12  ;;  %vm7369_vm5 = vcmask 1043456  }
 0x822   : > { %6773 = vst.msk [vmem:[#allocation11 + $0x38] sm:$0xff] %vm16710_vm10, %v6765_v43  ;;  %v6763_v23 = vadd.f32 %v6755_v10, %v6738_v28  ;;  %v6792_v45 = vadd.f32 %v10196_v39, %v6777_v34  ;;  %v6797_v50 = vmax.f32 %v6789_v13, 0.0 }
 0x823   : > { %v6775_v32 = vld [vmem:[#allocation11 + $0x8] sm:$0xff] }
 0x824   : > { %6771 = vst.msk [vmem:[#allocation11 + $0x28] sm:$0xff] %vm16711_vm13, %v6763_v23  ;;  %v6800_v24 = vmax.f32 %v6792_v45, 0.0  ;;  %v6790_v40 = vadd.f32 %v10196_v39, %v6775_v32  ;;  %v12097_v23 = vld [vmem:[%s16713_s9 + $0x48] sm:$0xff]   ;;  %v12099_v32 = vld [vmem:[%s16713_s9 + $0x38] sm:$0xff]   ;;  %vm16728_vm13 = vmmov %vm16710_vm10 }
 0x825   : > { %v6780_v48 = vld [vmem:[#allocation11 + $0x30] sm:$0xff] }
 0x826   : > { %v6795_v18 = vadd.f32 %v10196_v39, %v6780_v48  ;;  %v6814_v33 = vpack.c.bf16 %v6800_v24, %v6799_v26  ;;  %v6798_v61 = vmax.f32 %v6790_v40, 0.0  ;;  %v12100_v48 = vld [vmem:[%s16713_s9 + $0x8] sm:$0xff]  }
 0x827   : > { %v6778_v30 = vld [vmem:[#allocation11 + $0x20] sm:$0xff]  ;;  %11373 = vmatpush3.bf16.msra.mxu0 %v12100_v48  ;;  %v12125_v48 = vld [vmem:[%s15923_s11 + $0x10] sm:$0xff]  }
 0x828   : > { %v6793_v8 = vadd.f32 %v10196_v39, %v6778_v30  ;;  %v6803_v49 = vmax.f32 %v6795_v18, 0.0  ;;  %v6813_v58 = vpack.c.bf16 %v6798_v61, %v6797_v50  ;;  %11374 = vmatprep.subr.bf16.mxu0 %v12322_v35 }
 0x829   : > { %v6781_v44 = vld [vmem:[#allocation11 + $0x38] sm:$0xff] }
 0x82a   : > { %v6796_v60 = vadd.f32 %v10196_v39, %v6781_v44  ;;  %v6801_v9 = vmax.f32 %v6793_v8, 0.0  ;;  %v12098_v44 = vld [vmem:[%s16713_s9 + $0x40] sm:$0xff]  }
 0x82b   : > { %v6779_v14 = vld [vmem:[#allocation11 + $0x28] sm:$0xff]  ;;  %11375 = vmatpush3.bf16.msra.mxu0 %v12102_v7 }
 0x82c   : > { %v6804_v6 = vmax.f32 %v6796_v60, 0.0  ;;  %v6794_v27 = vadd.f32 %v10196_v39, %v6779_v14  ;;  %11396 = vmatprep.subr.bf16.mxu0 %v12322_v35 }
 0x82e   : > { %v6816_v56 = vpack.c.bf16 %v6804_v6, %v6803_v49  ;;  %v6802_v29 = vmax.f32 %v6794_v27, 0.0 }
 0x830   : > { %11348 = vmatprep.subr.bf16.mxu1 %v6816_v56  ;;  %v6815_v15 = vpack.c.bf16 %v6802_v29, %v6801_v9 }
 0x831   : > { %11349 = vmatpush3.bf16.msra.mxu1 %v6816_v56  ;;  %v12101_v56 = vld [vmem:[%s16713_s9 + $0x30] sm:$0xff]  }
 0x832   : > { %11350 = vmatprep.subr.bf16.mxu1 %v6815_v15 }
 0x835   : > { %11351 = vmatpush3.bf16.msra.mxu1 %v6815_v15 }
 0x836   : > { %11352 = vmatprep.subr.bf16.mxu1 %v6814_v33 }
 0x839   : > { %11353 = vmatpush3.bf16.msra.mxu1 %v6814_v33 }
 0x83a   : > { %11354 = vmatprep.subr.bf16.mxu1 %v6813_v58 }
 0x83d   : > { %11355 = vmatpush3.bf16.msra.mxu1 %v6813_v58 }
 0x83e   : > { %11380 = vmatprep.subr.bf16.mxu1 %v12322_v35 }
 0x840   : > { %11357 = vmatmul.mubr.msk.bf16.vlgmr.msra.gmra.mxu1 %vm6207_vm4, %v12088_v59 }
 0x841   : > { %11360 = vmatprep.mubr.msk.bf16.mxu1 %vm6207_vm4, %v12089_v16  ;;  %11381 = vmatpush3.bf16.msra.mxu1 %v12095_v63 }
 0x842   : > { %11382 = vmatprep.subr.bf16.mxu1 %v12322_v35 }
 0x845   : > { %11383 = vmatpush3.bf16.msra.mxu1 %v12096_v38 }
 0x846   : > { %11384 = vmatprep.subr.bf16.mxu1 %v12322_v35 }
 0x848   : > { %11361 = vmatmul.mubr.msk.bf16.gmra.mxu1 %vm6207_vm4, %v12090_v53 }
 0x849   : > { %11392 = vmatprep.mubr.msk.bf16.mxu1 %vm12323_vm9, %v12322_v35  ;;  %11385 = vmatpush3.bf16.msra.mxu1 %v12097_v23  ;;  %v12124_v23 = vld [vmem:[%s15923_s11 + $0x70] sm:$0xff]  }
 0x84a   : > { %11386 = vmatprep.subr.bf16.mxu1 %v12322_v35 }
 0x84d   : > { %11387 = vmatpush3.bf16.msra.mxu1 %v12098_v44  ;;  %v12129_v44 = vld [vmem:[%s15923_s11] sm:$0xff]  }
 0x84e   : > { %11388 = vmatprep.subr.bf16.mxu1 %v12322_v35 }
 0x851   : > { %11389 = vmatpush3.bf16.msra.mxu1 %v12099_v32 }
 0x852   : > { %11390 = vmatprep.subr.bf16.mxu1 %v12322_v35 }
 0x855   : > { %11391 = vmatpush3.bf16.msra.mxu1 %v12101_v56 }
 0x856   : > { %7496 = vmatprep.subr.bf16.mxu1 %v16350_v12 }
 0x900   : > { %v11358_v47 = vpop.f32.mrf.mxu1 }
 0x902   : > { %v6883_v11 = vpop.f32.mrf.mxu1 }
 0x903   : > { %v6914_v21 = vmax.f32 %v6883_v11, %v11358_v47  ;;  %v12108_v47 = vld [vmem:[%s16713_s9 + $0x78] sm:$0xff]   ;;  %v12109_v11 = vld [vmem:[%s16713_s9 + $0x70] sm:$0xff]  }
 0x904   : > { %v11359_v52 = vpop.f32.mrf.mxu1 }
 0x906   : > { %v6886_v54 = vpop.f32.mrf.mxu1 }
 0x907   : > { %v6915_v41 = vmax.f32 %v6886_v54, %v11359_v52  ;;  %v12110_v52 = vld [vmem:[%s16713_s9 + $0x68] sm:$0xff]  }
 0x908   : > { %v11362_v57 = vpop.f32.mrf.mxu1 }
 0x90a   : > { %v6899_v25 = vpop.f32.mrf.mxu1 }
 0x90b   : > { %v6916_v1 = vmax.f32 %v6899_v25, %v11362_v57  ;;  %v12113_v57 = vld [vmem:[#allocation6 + $0xc] ss:$0 sps:$4 sm:$0x33]   ;;  %v12111_v25 = vld [vmem:[%s16713_s9 + $0x60] sm:$0xff]  }
 0x90c   : > { %v11363_v22 = vpop.f32.mrf.mxu1  ;;  %v7218_v38 = vrot.slane %v12113_v57, 2  ;;  %v12134_v57 = vld [vmem:[%s15923_s11 + $0xa8] sm:$0xff]  }
 0x90d   : > { %v6918_v20 = vmax.f32 %v6914_v21, %v6916_v1  ;;  %v12114_v1 = vld [vmem:[%s15923_s11 + $0x98] sm:$0xff]  }
 0x90e   : > { %v6902_v19 = vpop.f32.mrf.mxu1 }
 0x90f   : > { %v6917_v3 = vmax.f32 %v6902_v19, %v11363_v22  ;;  %v6928_v43 = vsel %vm14956_vm3, 0.0, %v6918_v20  ;;  %v6932_v28 = vsel %vm14960_vm11, 0.0, %v6918_v20  ;;  %v12115_v22 = vld [vmem:[%s15923_s11 + $0x38] sm:$0xff]   ;;  %v12118_v19 = vld [vmem:[%s15923_s11 + $0x88] sm:$0xff]  }
 0x910   : > { %v6936_v34 = vrot.slane %v6928_v43, 7  ;;  %v6944_v60 = vrot.slane %v6932_v28, 1  ;;  %v12121_v43 = vld [vmem:[%s15923_s11 + $0x20] sm:$0xff]   ;;  %v12122_v28 = vld [vmem:[%s15923_s11 + $0x78] sm:$0xff]  }
 0x911   : > { %v6919_v10 = vmax.f32 %v6915_v41, %v6917_v3  ;;  %v12119_v41 = vld [vmem:[%s15923_s11 + $0x28] sm:$0xff]   ;;  %v12120_v3 = vld [vmem:[%s15923_s11 + $0x80] sm:$0xff]  }
 0x912   : > { %v6941_v15 = vsel %vm16727_vm6, 0.0, %v6936_v34 }
 0x913   : > { %v6929_v39 = vsel %vm14964_vm7, 0.0, %v6919_v10  ;;  %v6933_v30 = vsel %vm14968_vm14, 0.0, %v6919_v10  ;;  %v11865_v18 = vpack.i.bf16 %v6919_v10, %v6918_v20  ;;  %v12117_v20 = vld [vmem:[%s15923_s11 + $0x30] sm:$0xff]   ;;  %v12123_v10 = vld [vmem:[%s15923_s11 + $0x18] sm:$0xff]  }
 0x914   : > { %v6937_v8 = vrot.slane %v6929_v39, 7  ;;  %v6945_v14 = vrot.slane %v6933_v30, 1  ;;  %v12126_v39 = vld [vmem:[%s15923_s11 + $0x68] sm:$0xff]  }
 0x915   : > { %11866 = vrot.lane.b32.xlu0 %v11865_v18, %s16722_s23  ;;  %v12127_v30 = vld [vmem:[%s15923_s11 + $0x8] sm:$0xff]   ;;  %v12128_v18 = vld [vmem:[%s15923_s11 + $0x60] sm:$0xff]  }
 0x916   : > { %v6946_v49 = vsel %vm16723_vm1, %v6944_v60, %v6945_v14  ;;  %v6948_v6 = vsel %vm16724_vm15, %v6945_v14, 0.0  ;;  %v6938_v27 = vsel %vm16725_vm12, %v6936_v34, %v6937_v8  ;;  %vm16729_vm1 = vcmask 1045504  }
 0x917   : > { %v11870_v45 = vpack.i.bf16 %v6948_v6, %v6946_v49  ;;  %vm7324_vm12 = vcmask 521220  }
 0x919   : > { %11871 = vrot.lane.b32.xlu1 %v11870_v45, %s16726_s26 }
 0x987   : > { %v11867_v9 = vpop.permute.xlu0 %11866 }
 0x988   : > { %v11869_v29 = vunpack.i.h.bf16 %v11867_v9  ;;  %v11868_v46 = vunpack.i.l.bf16 %v11867_v9 }
 0x98a   : > { %v6964_v26 = vsel %vm16710_vm10, %v6941_v15, %v11868_v46  ;;  %v6965_v13 = vsel %vm16728_vm13, %v6938_v27, %v11869_v29 }
 0x98b   : > { %v11872_v55 = vpop.permute.xlu1 %11871 }
 0x98c   : > { %v11874_v24 = vunpack.i.h.bf16 %v11872_v55  ;;  %v11873_v40 = vunpack.i.l.bf16 %v11872_v55 }
 0x98e   : > { %v6966_v33 = vsel %vm6207_vm4, %v6964_v26, %v11873_v40  ;;  %v6967_v61 = vsel %vm6207_vm4, %v6965_v13, %v11874_v24 }
 0x98f   : > { %v10636_v50 = vpack.c.bf16 %v6966_v33, %v6966_v33  ;;  %v10637_v58 = vpack.c.bf16 %v6967_v61, %v6967_v61  ;;  %v10257_v33 = vld [vmem:[%s16731_s10] ss:$0 sm:$0xff] }
 0x991   : > { %6976 = vst.msk [vmem:[#allocation6 + $0x4] sm:$0xf] %vm6066_vm0, %v10636_v50  ;;  %6977 = vst.msk [vmem:[#allocation6 + $0x8] sm:$0xf] %vm6066_vm0, %v10637_v58 }
 0x992   : > { %vm16730_vm0 = vmmov %vm16729_vm1 }
 0x998   : > { %v12103_v59 = vld [vmem:[#allocation6 + $0x4] sm:$0xff]  }
 0x999   : > { %v12104_v16 = vld [vmem:[#allocation6] sm:$0xfc]   ;;  %11393 = vmatmul.mubr.msk.bf16.vlgmr.msra.gmra.mxu1 %vm6332_vm2, %v12103_v59  ;;  %v12105_v53 = vld [vmem:[#allocation6 + $0x8] ss:$0 sps:$4 sm:$0x33]  }
 0x99a   : > { %v7002_v2 = vrot.slane %v12104_v16, 2  ;;  %v7003_v63 = vrot.slane %v12105_v53, 2  ;;  %v12112_v54 = vld [vmem:[#allocation6 + $0x4] sm:$0xfc]   ;;  %7497 = vmatpush1.bf16.msra.mxu1 %v12115_v22 }
 0x99b   : > { %v7217_v51 = vrot.slane %v12112_v54, 2  ;;  %7498 = vmatprep.subr.bf16.mxu1 %v16350_v12  ;;  %v12130_v59 = vld [vmem:[%s15923_s11 + $0xb8] sm:$0xff]  }
 0x99c   : > { %v7004_v42 = vsel %vm16729_vm1, %v7002_v2, %v7003_v63  ;;  %v12131_v16 = vld [vmem:[%s15923_s11 + $0x58] sm:$0xff]   ;;  %v12132_v63 = vld [vmem:[%s15923_s11 + $0xb0] sm:$0xff]  }
 0x99d   : > { %11377 = vmatmul.mubr.msk.bf16.vlgmr.msra.gmra.mxu0 %vm6332_vm2, %v7004_v42  ;;  %v7219_v21 = vsel %vm16730_vm0, %v7217_v51, %v7218_v38 }
 0x99e   : > { %11397 = vmatpush3.bf16.msra.mxu0 %v12106_v4  ;;  %11408 = vmatprep.mubr.msk.bf16.mxu0 %vm12323_vm9, %v12322_v35  ;;  %v12133_v4 = vld [vmem:[%s15923_s11 + $0x50] sm:$0xff]  }
 0x99f   : > { %11398 = vmatprep.subr.bf16.mxu0 %v12322_v35  ;;  %7499 = vmatpush1.bf16.msra.mxu1 %v12117_v20 }
 0x9a0   : > { %7500 = vmatprep.subr.bf16.mxu1 %v16350_v12 }
 0x9a2   : > { %11399 = vmatpush3.bf16.msra.mxu0 %v12107_v36 }
 0x9a3   : > { %11400 = vmatprep.subr.bf16.mxu0 %v12322_v35  ;;  %7501 = vmatpush1.bf16.msra.mxu1 %v12119_v41 }
 0x9a4   : > { %7502 = vmatprep.subr.bf16.mxu1 %v16350_v12 }
 0x9a6   : > { %11401 = vmatpush3.bf16.msra.mxu0 %v12108_v47 }
 0x9a7   : > { %11402 = vmatprep.subr.bf16.mxu0 %v12322_v35  ;;  %7503 = vmatpush1.bf16.msra.mxu1 %v12121_v43 }
 0x9a8   : > { %7504 = vmatprep.subr.bf16.mxu1 %v16350_v12 }
 0x9aa   : > { %11403 = vmatpush3.bf16.msra.mxu0 %v12109_v11 }
 0x9ab   : > { %11404 = vmatprep.subr.bf16.mxu0 %v12322_v35  ;;  %7505 = vmatpush1.bf16.msra.mxu1 %v12123_v10 }
 0x9ac   : > { %7506 = vmatprep.subr.bf16.mxu1 %v16350_v12 }
 0x9ae   : > { %11405 = vmatpush3.bf16.msra.mxu0 %v12110_v52 }
 0x9af   : > { %11406 = vmatprep.subr.bf16.mxu0 %v12322_v35  ;;  %7507 = vmatpush1.bf16.msra.mxu1 %v12125_v48 }
 0x9b0   : > { %7508 = vmatprep.subr.bf16.mxu1 %v16350_v12 }
 0x9b2   : > { %11407 = vmatpush3.bf16.msra.mxu0 %v12111_v25 }
 0x9b3   : > { %7650 = vmatprep.subr.bf16.mxu0 %v16350_v12  ;;  %7509 = vmatpush1.bf16.msra.mxu1 %v12127_v30 }
 0x9b4   : > { %7510 = vmatprep.subr.bf16.mxu1 %v16350_v12 }
 0x9b5   : > { %11409 = vmatmul.mubr.msk.bf16.vlgmr.msra.gmra.mxu0 %vm6332_vm2, %v7219_v21  ;;  %vm16732_vm2 = vmmov %vm16727_vm6  ;;  %v12136_v21 = vld [vmem:[%s15923_s11 + $0xa0] sm:$0xff]   ;;  %vm7370_vm6 = vcmask 523268  }
 0x9b6   : > { %7651 = vmatpush1.bf16.msra.mxu0 %v12114_v1  ;;  %v12137_v1 = vld [vmem:[%s15923_s11 + $0x40] sm:$0xff]   ;;  %vm16734_vm10 = vmmov %vm16732_vm2 }
 0x9b7   : > { %7652 = vmatprep.subr.bf16.mxu0 %v16350_v12  ;;  %7511 = vmatpush1.bf16.msra.mxu1 %v12129_v44  ;;  %vm7371_vm13 = vmor %vm7370_vm6, %vm7369_vm5 }
 0x9b8   : > { %7520 = vmatprep.subr.bf16.mxu1 %v16350_v12 }
 0x9ba   : > { %7653 = vmatpush1.bf16.msra.mxu0 %v12116_v62 }
 0x9bb   : > { %7654 = vmatprep.subr.bf16.mxu0 %v16350_v12  ;;  %7521 = vmatpush2.bf16.msra.mxu1 %v12131_v16  ;;  %v12153_v16 = vld [vmem:[%s15923_s11 + $0x110] sm:$0xff]  }
 0x9bc   : > { %7522 = vmatprep.subr.bf16.mxu1 %v16350_v12 }
 0x9be   : > { %7655 = vmatpush1.bf16.msra.mxu0 %v12118_v19 }
 0x9bf   : > { %7656 = vmatprep.subr.bf16.mxu0 %v16350_v12  ;;  %7523 = vmatpush2.bf16.msra.mxu1 %v12133_v4  ;;  %v12155_v4 = vld [vmem:[%s15923_s11 + $0x100] sm:$0xff]  }
 0x9c0   : > { %7524 = vmatprep.subr.bf16.mxu1 %v16350_v12 }
 0x9c2   : > { %7657 = vmatpush1.bf16.msra.mxu0 %v12120_v3 }
 0x9c3   : > { %7658 = vmatprep.subr.bf16.mxu0 %v16350_v12  ;;  %7525 = vmatpush2.bf16.msra.mxu1 %v12135_v37 }
 0x9c4   : > { %7526 = vmatprep.subr.bf16.mxu1 %v16350_v12 }
 0x9c6   : > { %7659 = vmatpush1.bf16.msra.mxu0 %v12122_v28 }
 0x9c7   : > { %7660 = vmatprep.subr.bf16.mxu0 %v16350_v12  ;;  %7527 = vmatpush2.bf16.msra.mxu1 %v12137_v1 }
 0x9c8   : > { %7820 = vmatprep.subr.bf16.mxu1 %v16350_v12 }
 0x9ca   : > { %7661 = vmatpush1.bf16.msra.mxu0 %v12124_v23 }
 0x9cb   : > { %7662 = vmatprep.subr.bf16.mxu0 %v16350_v12 }
 0x9ce   : > { %7663 = vmatpush1.bf16.msra.mxu0 %v12126_v39 }
 0x9cf   : > { %7664 = vmatprep.subr.bf16.mxu0 %v16350_v12 }
 0x9d2   : > { %7665 = vmatpush1.bf16.msra.mxu0 %v12128_v18 }
 0x9d3   : > { %7674 = vmatprep.subr.bf16.mxu0 %v16350_v12 }
 0x9d6   : > { %7675 = vmatpush2.bf16.msra.mxu0 %v12130_v59  ;;  %v12152_v59 = vld [vmem:[%s15923_s11 + $0x118] sm:$0xff]  }
 0x9d7   : > { %7676 = vmatprep.subr.bf16.mxu0 %v16350_v12 }
 0x9da   : > { %7677 = vmatpush2.bf16.msra.mxu0 %v12132_v63 }
 0x9db   : > { %7678 = vmatprep.subr.bf16.mxu0 %v16350_v12 }
 0x9de   : > { %7679 = vmatpush2.bf16.msra.mxu0 %v12134_v57 }
 0x9df   : > { %7680 = vmatprep.subr.bf16.mxu0 %v16350_v12 }
 0x9e2   : > { %7681 = vmatpush2.bf16.msra.mxu0 %v12136_v21 }
 0x9e3   : > { %11412 = vmatprep.subr.bf16.mxu0 %v12322_v35 }
 0xa59   : > { %v7180_v34 = vpop.f32.mrf.mxu1 }
 0xa5b   : > { %v11394_v60 = vpop.f32.mrf.mxu1 }
 0xa5d   : > { %v7183_v8 = vpop.f32.mrf.mxu1  ;;  %v7078_v14 = vpop.f32.mrf.mxu0 }
 0xa5e   : > { %7085 = vst.msk [vmem:[#allocation12] sm:$0xff] %vm6207_vm4, %v7078_v14 }
 0xa5f   : > { %v11395_v7 = vpop.f32.mrf.mxu1  ;;  %v11378_v49 = vpop.f32.mrf.mxu0 }
 0xa61   : > { %v7081_v6 = vpop.f32.mrf.mxu0 }
 0xa62   : > { %7086 = vst.msk [vmem:[#allocation12 + $0x8] sm:$0xff] %vm6207_vm4, %v7081_v6 }
 0xa63   : > { %v11379_v27 = vpop.f32.mrf.mxu0 }
 0xa65   : > { %v7187_v45 = vld [vmem:[#allocation12] sm:$0xff] }
 0xa66   : > { %v7189_v32 = vadd.f32 %v7187_v45, %v7180_v34 }
 0xa68   : > { %7191 = vst.msk [vmem:[#allocation12] sm:$0xff] %vm6207_vm4, %v7189_v32 }
 0xa69   : > { %v7188_v56 = vld [vmem:[#allocation12 + $0x8] sm:$0xff] }
 0xa6a   : > { %v7190_v9 = vadd.f32 %v7188_v56, %v7183_v8 }
 0xa6c   : > { %7192 = vst.msk [vmem:[#allocation12 + $0x8] sm:$0xff] %vm6207_vm4, %v7190_v9 }
 0xa6f   : > { %v7300_v46 = vld [vmem:[#allocation12] sm:$0xff] }
 0xa73   : > { %v7301_v40 = vld [vmem:[#allocation12 + $0x8] sm:$0xff] }
 0xa75   : > { %v7293_v29 = vpop.f32.mrf.mxu0 }
 0xa76   : > { %v7302_v55 = vadd.f32 %v7300_v46, %v7293_v29 }
 0xa77   : > { %v11410_v15 = vpop.f32.mrf.mxu0 }
 0xa78   : > { %7304 = vst.msk [vmem:[#allocation12] sm:$0xff] %vm6207_vm4, %v7302_v55  ;;  %v12142_v55 = vld [vmem:[%s15923_s11 + $0xf8] sm:$0xff]  }
 0xa79   : > { %v7296_v24 = vpop.f32.mrf.mxu0 }
 0xa7a   : > { %v7303_v26 = vadd.f32 %v7301_v40, %v7296_v24 }
 0xa7b   : > { %v11411_v13 = vpop.f32.mrf.mxu0 }
 0xa7c   : > { %7305 = vst.msk [vmem:[#allocation12 + $0x8] sm:$0xff] %vm6207_vm4, %v7303_v26  ;;  %v12145_v26 = vld [vmem:[%s15923_s11 + $0xf0] sm:$0xff]   ;;  %v12147_v13 = vld [vmem:[%s15923_s11 + $0xe0] sm:$0xff]  }
 0xa7f   : > { %v7306_v61 = vld [vmem:[#allocation12] sm:$0xff] }
 0xa80   : > { %v7315_v50 = vadd.f32 %v10257_v33, %v7306_v61  ;;  %v12149_v61 = vld [vmem:[%s15923_s11 + $0xd0] sm:$0xff]  }
 0xa82   : > { %v7317_v58 = vmax.f32 %v7315_v50, 0.0  ;;  %v12150_v50 = vld [vmem:[%s15923_s11 + $0xc8] sm:$0xff]  }
 0xa83   : > { %v7307_v53 = vld [vmem:[#allocation12 + $0x8] sm:$0xff] }
 0xa84   : > { %v7316_v2 = vadd.f32 %v10257_v33, %v7307_v53  ;;  %v7327_v36 = vsel %vm14956_vm3, 0.0, %v7317_v58  ;;  %v7329_v47 = vsel %vm14960_vm11, 0.0, %v7317_v58  ;;  %vm16733_vm3 = vmmov %vm16724_vm15  ;;  %vm7319_vm11 = vcmask 1043458   ;;  %v12148_v33 = vld [vmem:[%s15923_s11 + $0xd8] sm:$0xff]   ;;  %v12154_v53 = vld [vmem:[%s15923_s11 + $0x108] sm:$0xff]  }
 0xa85   : > { %v7333_v25 = vrot.slane %v7327_v36, 7  ;;  %v7341_v5 = vrot.slane %v7329_v47, 1  ;;  %vm7323_vm15 = vcmask 1041408   ;;  %vm16735_vm1 = vmmov %vm16733_vm3 }
 0xa86   : > { %v7318_v42 = vmax.f32 %v7316_v2, 0.0  ;;  %vm7325_vm8 = vmor %vm7324_vm12, %vm7323_vm15 }
 0xa87   : > { %7326 = vst.msk [vmem:[#allocation7 + $0x18] sm:$0x33] %vm7325_vm8, %v16350_v12  ;;  %v7338_v19 = vsel %vm16734_vm10, 0.0, %v7333_v25 }
 0xa88   : > { %v11875_v11 = vpack.i.bf16 %v7318_v42, %v7317_v58  ;;  %v7328_v52 = vsel %vm14964_vm7, 0.0, %v7318_v42  ;;  %v7330_v54 = vsel %vm14968_vm14, 0.0, %v7318_v42  ;;  %vm7320_vm7 = vcmask 523270   ;;  %v12151_v58 = vld [vmem:[%s15923_s11 + $0xc0] sm:$0xff]  }
 0xa89   : > { %v7334_v51 = vrot.slane %v7328_v52, 7  ;;  %v7342_v38 = vrot.slane %v7330_v54, 1  ;;  %vm7321_vm14 = vmor %vm7320_vm7, %vm7319_vm11  ;;  %vm16739_vm11 = vcmask 130048  }
 0xa8a   : > { %11876 = vrot.lane.b32.xlu0 %v11875_v11, %s16726_s26  ;;  %7322 = vst.msk [vmem:[#allocation7] sm:$0xcc] %vm7321_vm14, %v16350_v12 }
 0xa8b   : > { %v7335_v17 = vsel %vm16732_vm2, %v7333_v25, %v7334_v51  ;;  %v7343_v0 = vsel %vm16733_vm3, %v7341_v5, %v7342_v38  ;;  %v7346_v41 = vsel %vm16735_vm1, %v7342_v38, 0.0  ;;  %vm16736_vm2 = vmmov %vm16730_vm0 }
 0xa8c   : > { %vm16737_vm3 = vmmov %vm16730_vm0 }
 0xa8e   : > { %v15175_v23 = vld [vmem:[#allocation7 + $0x18] sm:$0x33] }
 0xa8f   : > { %v10343_v44 = vcombine.high %v15175_v23, %v15175_v23  ;;  %v10342_v63 = vcombine.low %v15175_v23, %v15175_v23 }
 0xa91   : > { %v7374_v48 = vld [vmem:[#allocation7] sm:$0xcc]  ;;  %v7742_v46 = vrot.slane %v10343_v44, 2  ;;  %v7739_v36 = vrot.slane %v10342_v63, 2 }
 0xa92   : > { %v12156_v44 = vld [vmem:[%s15927_s15] sm:$0xff]  }
 0xafc   : > { %v11877_v22 = vpop.permute.xlu0 %11876 }
 0xafd   : > { %v11879_v62 = vunpack.i.h.bf16 %v11877_v22  ;;  %v11878_v20 = vunpack.i.l.bf16 %v11877_v22 }
 0xaff   : > { %v7355_v3 = vsel %vm6207_vm4, %v7338_v19, %v11878_v20  ;;  %v7356_v43 = vsel %vm6207_vm4, %v7335_v17, %v11879_v62 }
 0xb00   : > { %v10638_v28 = vpack.c.bf16 %v7343_v0, %v7355_v3  ;;  %v10639_v10 = vpack.c.bf16 %v7346_v41, %v7356_v43 }
 0xb02   : > { %7372 = vst.msk [vmem:[#allocation7 + $0x8] sm:$0xff] %vm7371_vm13, %v10638_v28  ;;  %7373 = vst.msk [vmem:[#allocation7 + $0x10] sm:$0xff] %vm7371_vm13, %v10639_v10  ;;  %v10357_v28 = vld [vmem:[%s15924_s12] ss:$0 sm:$0xff] }
 0xb09   : > { %v7539_v39 = vld [vmem:[#allocation7 + $0x8] sm:$0xff]  ;;  %v7540_v30 = vld [vmem:[#allocation7 + $0x10] sm:$0xff] }
 0xb0a   : > { %v7376_v18 = vld [vmem:[#allocation7 + $0x10] sm:$0x33]  ;;  %v10301_v34 = vcombine.low %v7539_v39, %v7540_v30  ;;  %v10302_v60 = vcombine.high %v7539_v39, %v7540_v30  ;;  %v10260_v8 = vcombine.low %v7374_v48, %v7539_v39  ;;  %v10261_v14 = vcombine.high %v7374_v48, %v7539_v39  ;;  %v7697_v7 = vld [vmem:[#allocation7 + $0x8] sm:$0xcc] }
 0xb0b   : > { %v10262_v49 = vcombine.low %v7376_v18, %v7376_v18  ;;  %v10263_v6 = vcombine.high %v7376_v18, %v7376_v18  ;;  %v10341_v27 = vcombine.high %v7697_v7, %v7540_v30  ;;  %v10340_v2 = vcombine.low %v7697_v7, %v7540_v30 }
 0xb0c   : > { %10315 = vmatprep.mubr.msk.bf16.mxu0 %vm6207_vm4, %v10302_v60  ;;  %v7417_v45 = vrot.slane %v10261_v14, 2  ;;  %v7414_v32 = vrot.slane %v10260_v8, 2  ;;  %v8058_v60 = vld [vmem:[%s15928_s16 + $0x1e0] sm:$0xff]  ;;  %v8055_v8 = vld [vmem:[%s15928_s16 + $0x1c8] sm:$0xff] }
 0xb0d   : > { %7683 = vmatmul.mubr.bf16.vlgmr.msra.gmra.mxu0 %v10301_v34  ;;  %v7418_v56 = vrot.slane %v10263_v6, 2  ;;  %v7415_v9 = vrot.slane %v10262_v49, 2  ;;  %v7741_v29 = vrot.slane %v10341_v27, 2  ;;  %v7738_v42 = vrot.slane %v10340_v2, 2  ;;  %v8054_v34 = vld [vmem:[%s15928_s16 + $0x1c0] sm:$0xff]  ;;  %v8059_v49 = vld [vmem:[%s15928_s16 + $0x1e8] sm:$0xff] }
 0xb0e   : > { %11414 = vmatprep.mubr.msk.bf16.mxu0 %vm12323_vm9, %v12322_v35  ;;  %v12146_v35 = vld [vmem:[%s15923_s11 + $0xe8] sm:$0xff]   ;;  %vm16738_vm9 = vmmov %vm16730_vm0  ;;  %v10416_v14 = vcombine.low %v8054_v34, %v8058_v60  ;;  %v10417_v7 = vcombine.high %v8054_v34, %v8058_v60  ;;  %v8046_v6 = vld [vmem:[%s15928_s16 + $0x180] sm:$0xff] }
 0xb0f   : > { %v7419_v15 = vsel %vm16730_vm0, %v7417_v45, %v7418_v56  ;;  %v7416_v24 = vsel %vm16736_vm2, %v7414_v32, %v7415_v9  ;;  %v7743_v40 = vsel %vm16737_vm3, %v7741_v29, %v7742_v46  ;;  %v7740_v47 = vsel %vm16738_vm9, %v7738_v42, %v7739_v36  ;;  %v8050_v27 = vld [vmem:[%s15928_s16 + $0x1a0] sm:$0xff]  ;;  %v8047_v9 = vld [vmem:[%s15928_s16 + $0x188] sm:$0xff] }
 0xb10   : > { %10276 = vmatprep.mubr.msk.bf16.mxu1 %vm6207_vm4, %v7419_v15  ;;  %v10418_v45 = vcombine.low %v8055_v8, %v8059_v49  ;;  %v10419_v32 = vcombine.high %v8055_v8, %v8059_v49  ;;  %v10409_v56 = vcombine.high %v8046_v6, %v8050_v27  ;;  %v8051_v29 = vld [vmem:[%s15928_s16 + $0x1a8] sm:$0xff]  ;;  %v8038_v46 = vld [vmem:[%s15928_s16 + $0x140] sm:$0xff] }
 0xb11   : > { %7529 = vmatmul.mubr.bf16.vlgmr.msra.gmra.mxu1 %v7416_v24  ;;  %v8042_v15 = vld [vmem:[%s15928_s16 + $0x160] sm:$0xff]  ;;  %v8039_v24 = vld [vmem:[%s15928_s16 + $0x148] sm:$0xff] }
 0xb12   : > { %7821 = vmatpush1.bf16.msra.mxu1 %v12142_v55  ;;  %10356 = vmatprep.mubr.msk.bf16.mxu1 %vm6207_vm4, %v7743_v40  ;;  %v10411_v55 = vcombine.high %v8047_v9, %v8051_v29  ;;  %v8043_v40 = vld [vmem:[%s15928_s16 + $0x168] sm:$0xff]  ;;  %v8026_v42 = vld [vmem:[%s15928_s16 + $0xe0] sm:$0xff] }
 0xb13   : > { %7822 = vmatprep.subr.bf16.mxu1 %v16350_v12  ;;  %v8023_v36 = vld [vmem:[%s15928_s16 + $0xc8] sm:$0xff]  ;;  %v8122_v34 = vld [vmem:[%s15928_s16 + $0x3e0] sm:$0xff] }
 0xb14   : > { %v8119_v60 = vld [vmem:[%s15928_s16 + $0x3c8] sm:$0xff] }
 0xb15   : > { %v8123_v8 = vld [vmem:[%s15928_s16 + $0x3e8] sm:$0xff] }
 0xb16   : > { %7823 = vmatpush1.bf16.msra.mxu1 %v12145_v26  ;;  %v10408_v26 = vcombine.low %v8046_v6, %v8050_v27  ;;  %v10483_v6 = vcombine.high %v8119_v60, %v8123_v8  ;;  %v8110_v27 = vld [vmem:[%s15928_s16 + $0x380] sm:$0xff] }
 0xb17   : > { %7824 = vmatprep.subr.bf16.mxu1 %v16350_v12 }
 0xb1a   : > { %7825 = vmatpush1.bf16.msra.mxu1 %v12146_v35  ;;  %v10410_v35 = vcombine.low %v8047_v9, %v8051_v29  ;;  %v10482_v29 = vcombine.low %v8119_v60, %v8123_v8 }
 0xb1b   : > { %7826 = vmatprep.subr.bf16.mxu1 %v16350_v12 }
 0xb1e   : > { %7827 = vmatpush1.bf16.msra.mxu1 %v12147_v13  ;;  %v10401_v13 = vcombine.high %v8038_v46, %v8042_v15 }
 0xb1f   : > { %7828 = vmatprep.subr.bf16.mxu1 %v16350_v12 }
 0xb22   : > { %7829 = vmatpush1.bf16.msra.mxu1 %v12148_v33  ;;  %v10403_v33 = vcombine.high %v8039_v24, %v8043_v40 }
 0xb23   : > { %7830 = vmatprep.subr.bf16.mxu1 %v16350_v12 }
 0xb26   : > { %7831 = vmatpush1.bf16.msra.mxu1 %v12149_v61  ;;  %v8030_v61 = vld [vmem:[%s15928_s16 + $0x100] sm:$0xff] }
 0xb27   : > { %7832 = vmatprep.subr.bf16.mxu1 %v16350_v12 }
 0xb2a   : > { %7833 = vmatpush1.bf16.msra.mxu1 %v12150_v50  ;;  %v8034_v50 = vld [vmem:[%s15928_s16 + $0x120] sm:$0xff] }
 0xb2b   : > { %7834 = vmatprep.subr.bf16.mxu1 %v16350_v12  ;;  %v10393_v2 = vcombine.high %v8030_v61, %v8034_v50 }
 0xb2e   : > { %7835 = vmatpush1.bf16.msra.mxu1 %v12151_v58  ;;  %v8031_v58 = vld [vmem:[%s15928_s16 + $0x108] sm:$0xff] }
 0xb2f   : > { %7844 = vmatprep.subr.bf16.mxu1 %v16350_v12 }
 0xb32   : > { %7845 = vmatpush2.bf16.msra.mxu1 %v12152_v59  ;;  %v8035_v59 = vld [vmem:[%s15928_s16 + $0x128] sm:$0xff] }
 0xb33   : > { %7846 = vmatprep.subr.bf16.mxu1 %v16350_v12  ;;  %v10395_v63 = vcombine.high %v8031_v58, %v8035_v59 }
 0xb36   : > { %7847 = vmatpush2.bf16.msra.mxu1 %v12153_v16  ;;  %v10400_v16 = vcombine.low %v8038_v46, %v8042_v15  ;;  %v8102_v15 = vld [vmem:[%s15928_s16 + $0x340] sm:$0xff] }
 0xb37   : > { %7848 = vmatprep.subr.bf16.mxu1 %v16350_v12 }
 0xb3a   : > { %7849 = vmatpush2.bf16.msra.mxu1 %v12154_v53  ;;  %v10402_v53 = vcombine.low %v8039_v24, %v8043_v40  ;;  %v8106_v24 = vld [vmem:[%s15928_s16 + $0x360] sm:$0xff]  ;;  %v8103_v40 = vld [vmem:[%s15928_s16 + $0x348] sm:$0xff] }
 0xb3b   : > { %7850 = vmatprep.subr.bf16.mxu1 %v16350_v12 }
 0xb3e   : > { %7851 = vmatpush2.bf16.msra.mxu1 %v12155_v4  ;;  %v8022_v4 = vld [vmem:[%s15928_s16 + $0xc0] sm:$0xff] }
 0xb3f   : > { %8849 = vmatprep.subr.bf16.mxu1 %v10419_v32  ;;  %v8111_v32 = vld [vmem:[%s15928_s16 + $0x388] sm:$0xff] }
 0xb41   : > { %7853 = vmatmul.mubr.bf16.vlgmr.msra.gmra.mxu1 %v7740_v47  ;;  %v8027_v47 = vld [vmem:[%s15928_s16 + $0xe8] sm:$0xff] }
 0xb42   : > { %8850 = vmatpush1.bf16.msra.mxu1 %v10418_v45  ;;  %v8114_v45 = vld [vmem:[%s15928_s16 + $0x3a0] sm:$0xff] }
 0xb43   : > { %8851 = vmatprep.subr.bf16.mxu1 %v10411_v55  ;;  %v10473_v46 = vcombine.high %v8110_v27, %v8114_v45 }
 0xb46   : > { %8852 = vmatpush1.bf16.msra.mxu1 %v10410_v35  ;;  %v10472_v35 = vcombine.low %v8110_v27, %v8114_v45  ;;  %v8066_v45 = vld [vmem:[%s15928_s16 + $0x220] sm:$0xff] }
 0xb47   : > { %8853 = vmatprep.subr.bf16.mxu1 %v10403_v33  ;;  %v10465_v33 = vcombine.high %v8102_v15, %v8106_v24 }
 0xb4a   : > { %8854 = vmatpush1.bf16.msra.mxu1 %v10402_v53  ;;  %v10464_v53 = vcombine.low %v8102_v15, %v8106_v24 }
 0xb4b   : > { %8855 = vmatprep.subr.bf16.mxu1 %v10395_v63 }
 0xbcd   : > { %v7684_v11 = vpop.f32.mrf.mxu0 }
 0xbcf   : > { %v7686_v52 = vpop.f32.mrf.mxu0 }
 0xbd0   : > { %v10394_v52 = vcombine.low %v8031_v58, %v8035_v59  ;;  %v8098_v58 = vld [vmem:[%s15928_s16 + $0x320] sm:$0xff]  ;;  %v8095_v59 = vld [vmem:[%s15928_s16 + $0x308] sm:$0xff] }
 0xbd1   : > { %v7530_v54 = vpop.f32.mrf.mxu1  ;;  %v7687_v57 = vpop.f32.mrf.mxu0 }
 0xbd2   : > { %7537 = vst.msk [vmem:[#allocation13] sm:$0xff] %vm6207_vm4, %v7530_v54  ;;  %v10385_v54 = vcombine.high %v8022_v4, %v8026_v42  ;;  %8856 = vmatpush1.bf16.msra.mxu1 %v10394_v52 }
 0xbd3   : > { %v7532_v37 = vpop.f32.mrf.mxu1  ;;  %v7689_v25 = vpop.f32.mrf.mxu0 }
 0xbd4   : > { %v8014_v37 = vld [vmem:[%s15928_s16 + $0x80] sm:$0xff] }
 0xbd5   : > { %v7533_v5 = vpop.f32.mrf.mxu1  ;;  %v8018_v25 = vld [vmem:[%s15928_s16 + $0xa0] sm:$0xff] }
 0xbd6   : > { %7538 = vst.msk [vmem:[#allocation13 + $0x8] sm:$0xff] %vm6207_vm4, %v7533_v5  ;;  %v8015_v5 = vld [vmem:[%s15928_s16 + $0x88] sm:$0xff] }
 0xbd7   : > { %v7535_v51 = vpop.f32.mrf.mxu1 }
 0xbd8   : > { %v8019_v51 = vld [vmem:[%s15928_s16 + $0xa8] sm:$0xff] }
 0xbd9   : > { %v7691_v38 = vld [vmem:[#allocation13] sm:$0xff] }
 0xbda   : > { %v7693_v12 = vadd.f32 %v7691_v38, %v7684_v11  ;;  %v10392_v11 = vcombine.low %v8030_v61, %v8034_v50  ;;  %v10384_v38 = vcombine.low %v8022_v4, %v8026_v42  ;;  %v8094_v50 = vld [vmem:[%s15928_s16 + $0x300] sm:$0xff] }
 0xbdb   : > { %v10457_v63 = vcombine.high %v8094_v50, %v8098_v58  ;;  %v8086_v42 = vld [vmem:[%s15928_s16 + $0x2c0] sm:$0xff]  ;;  %v10456_v52 = vcombine.low %v8094_v50, %v8098_v58  ;;  %v8056_v50 = vld [vmem:[%s15928_s16 + $0x1d0] sm:$0xff] }
 0xbdc   : > { %7695 = vst.msk [vmem:[#allocation13] sm:$0xff] %vm6207_vm4, %v7693_v12  ;;  %v10386_v12 = vcombine.low %v8023_v36, %v8027_v47  ;;  %v8060_v58 = vld [vmem:[%s15928_s16 + $0x1f0] sm:$0xff] }
 0xbdd   : > { %v7692_v17 = vld [vmem:[#allocation13 + $0x8] sm:$0xff] }
 0xbde   : > { %v7694_v0 = vadd.f32 %v7692_v17, %v7687_v57  ;;  %v10387_v57 = vcombine.high %v8023_v36, %v8027_v47  ;;  %v10377_v17 = vcombine.high %v8014_v37, %v8018_v25  ;;  %v8090_v36 = vld [vmem:[%s15928_s16 + $0x2e0] sm:$0xff]  ;;  %v8087_v47 = vld [vmem:[%s15928_s16 + $0x2c8] sm:$0xff] }
 0xbe0   : > { %7696 = vst.msk [vmem:[#allocation13 + $0x8] sm:$0xff] %vm6207_vm4, %v7694_v0  ;;  %8857 = vmatprep.subr.bf16.mxu1 %v10387_v57  ;;  %v10379_v0 = vcombine.high %v8015_v5, %v8019_v51  ;;  %v10449_v57 = vcombine.high %v8086_v42, %v8090_v36 }
 0xbe1   : > { %8858 = vmatpush1.bf16.msra.mxu1 %v10386_v12 }
 0xbe2   : > { %8859 = vmatprep.subr.bf16.mxu1 %v10379_v0 }
 0xbe3   : > { %v7861_v1 = vld [vmem:[#allocation13] sm:$0xff] }
 0xbe7   : > { %v7862_v19 = vld [vmem:[#allocation13 + $0x8] sm:$0xff] }
 0xc01   : > { %v7854_v21 = vpop.f32.mrf.mxu1 }
 0xc02   : > { %v7863_v22 = vadd.f32 %v7861_v1, %v7854_v21  ;;  %v8006_v21 = vld [vmem:[%s15928_s16 + $0x40] sm:$0xff] }
 0xc03   : > { %v7856_v62 = vpop.f32.mrf.mxu1  ;;  %v8010_v1 = vld [vmem:[%s15928_s16 + $0x60] sm:$0xff] }
 0xc04   : > { %7865 = vst.msk [vmem:[#allocation13] sm:$0xff] %vm6207_vm4, %v7863_v22  ;;  %v8007_v22 = vld [vmem:[%s15928_s16 + $0x48] sm:$0xff] }
 0xc05   : > { %v7857_v20 = vpop.f32.mrf.mxu1  ;;  %v8011_v62 = vld [vmem:[%s15928_s16 + $0x68] sm:$0xff] }
 0xc06   : > { %v7864_v41 = vadd.f32 %v7862_v19, %v7857_v20  ;;  %v10376_v20 = vcombine.low %v8014_v37, %v8018_v25  ;;  %v10378_v19 = vcombine.low %v8015_v5, %v8019_v51  ;;  %v10448_v25 = vcombine.low %v8086_v42, %v8090_v36 }
 0xc07   : > { %v7859_v3 = vpop.f32.mrf.mxu1  ;;  %v12324_v51 = vmov 1966171168  }
 0xc08   : > { %7866 = vst.msk [vmem:[#allocation13 + $0x8] sm:$0xff] %vm6207_vm4, %v7864_v41  ;;  %v10369_v41 = vcombine.high %v8006_v21, %v8010_v1  ;;  %v10371_v3 = vcombine.high %v8007_v22, %v8011_v62  ;;  %8860 = vmatpush1.bf16.msra.mxu1 %v10378_v19  ;;  %v8078_v19 = vld [vmem:[%s15928_s16 + $0x280] sm:$0xff] }
 0xc0a   : > { %8861 = vmatprep.subr.bf16.mxu1 %v10371_v3  ;;  %v8079_v3 = vld [vmem:[%s15928_s16 + $0x288] sm:$0xff] }
 0xc0b   : > { %v7867_v43 = vld [vmem:[#allocation13] sm:$0xff] }
 0xc0c   : > { %v7876_v10 = vadd.f32 %v10357_v28, %v7867_v43  ;;  %v7998_v43 = vld [vmem:[%s15928_s16] sm:$0xff] }
 0xc0e   : > { %v7878_v39 = vmax.f32 %v7876_v10, 0.0  ;;  %v7999_v10 = vld [vmem:[%s15928_s16 + $0x8] sm:$0xff] }
 0xc0f   : > { %v7868_v23 = vld [vmem:[#allocation13 + $0x8] sm:$0xff] }
 0xc10   : > { %v7877_v48 = vadd.f32 %v10357_v28, %v7868_v23  ;;  %v8002_v28 = vld [vmem:[%s15928_s16 + $0x20] sm:$0xff]  ;;  %v8003_v23 = vld [vmem:[%s15928_s16 + $0x28] sm:$0xff] }
 0xc12   : > { %v7879_v30 = vmax.f32 %v7877_v48, 0.0  ;;  %v10368_v48 = vcombine.low %v8006_v21, %v8010_v1 }
 0xc14   : > { %v7882_v18 = vpack.c.bf16 %v7879_v30, %v7878_v39  ;;  %v10370_v39 = vcombine.low %v8007_v22, %v8011_v62  ;;  %v10361_v30 = vcombine.high %v7998_v43, %v8002_v28 }
 0xc16   : > { %11413 = vmatpush3.bf16.msra.mxu0 %v7882_v18  ;;  %v10363_v18 = vcombine.high %v7999_v10, %v8003_v23  ;;  %8862 = vmatpush1.bf16.msra.mxu1 %v10370_v39  ;;  %v8070_v39 = vld [vmem:[%s15928_s16 + $0x240] sm:$0xff] }
 0xc17   : > { %8808 = vmatprep.subr.bf16.mxu0 %v10417_v7  ;;  %v10362_v7 = vcombine.low %v7999_v10, %v8003_v23 }
 0xc18   : > { %8863 = vmatprep.subr.bf16.mxu1 %v10363_v18  ;;  %v16740_v18 = vlaneseq }
 0xc19   : > { %11415 = vmatmul.mubr.msk.bf16.vlgmr.msra.gmra.mxu0 %vm16739_vm11, %v12156_v44  ;;  %v8118_v44 = vld [vmem:[%s15928_s16 + $0x3c0] sm:$0xff] }
 0xc1a   : > { %8809 = vmatpush1.bf16.msra.mxu0 %v10416_v14  ;;  %v10360_v14 = vcombine.low %v7998_v43, %v8002_v28  ;;  %v10481_v49 = vcombine.high %v8118_v44, %v8122_v34  ;;  %v10480_v9 = vcombine.low %v8118_v44, %v8122_v34  ;;  %8864 = vmatpush1.bf16.msra.mxu1 %v10362_v7  ;;  %vm15426_vm4 = vcmp.lt.s32.totalorder %v16740_v18, 64  ;;  %v8075_v7 = vld [vmem:[%s15928_s16 + $0x268] sm:$0xff]  ;;  %v8024_v44 = vld [vmem:[%s15928_s16 + $0xd0] sm:$0xff] }
 0xc1b   : > { %8810 = vmatprep.subr.bf16.mxu0 %v10409_v56  ;;  %v8115_v56 = vld [vmem:[%s15928_s16 + $0x3a8] sm:$0xff]  ;;  %8865 = vmatprep.subr.bf16.mxu1 %v10483_v6  ;;  %vm7972_vm7 = vcmp.ge.s32.totalorder %v16740_v18, 64  ;;  %vm7973_vm14 = vcmp.lt.s32.totalorder %v16740_v18, 128 }
 0xc1c   : > { %v10475_v55 = vcombine.high %v8111_v32, %v8115_v56  ;;  %vm7974_vm15 = vmand %vm7972_vm7, %vm7973_vm14 }
 0xc1e   : > { %8811 = vmatpush1.bf16.msra.mxu0 %v10408_v26  ;;  %v8107_v26 = vld [vmem:[%s15928_s16 + $0x368] sm:$0xff]  ;;  %8866 = vmatpush2.bf16.msra.mxu1 %v10482_v29 }
 0xc1f   : > { %8812 = vmatprep.subr.bf16.mxu0 %v10401_v13  ;;  %v10474_v13 = vcombine.low %v8111_v32, %v8115_v56  ;;  %8867 = vmatprep.subr.bf16.mxu1 %v10475_v55  ;;  %v10467_v61 = vcombine.high %v8103_v40, %v8107_v26  ;;  %v8063_v32 = vld [vmem:[%s15928_s16 + $0x208] sm:$0xff] }
 0xc20   : > { %v8067_v56 = vld [vmem:[%s15928_s16 + $0x228] sm:$0xff] }
 0xc21   : > { %v10427_v15 = vcombine.high %v8063_v32, %v8067_v56 }
 0xc22   : > { %8813 = vmatpush1.bf16.msra.mxu0 %v10400_v16  ;;  %v8099_v16 = vld [vmem:[%s15928_s16 + $0x328] sm:$0xff]  ;;  %8868 = vmatpush2.bf16.msra.mxu1 %v10474_v13 }
 0xc23   : > { %8814 = vmatprep.subr.bf16.mxu0 %v10393_v2  ;;  %v10466_v2 = vcombine.low %v8103_v40, %v8107_v26  ;;  %8869 = vmatprep.subr.bf16.mxu1 %v10467_v61  ;;  %v10459_v4 = vcombine.high %v8095_v59, %v8099_v16 }
 0xc26   : > { %8815 = vmatpush1.bf16.msra.mxu0 %v10392_v11  ;;  %v8091_v11 = vld [vmem:[%s15928_s16 + $0x2e8] sm:$0xff]  ;;  %8870 = vmatpush2.bf16.msra.mxu1 %v10466_v2  ;;  %v8061_v2 = vld [vmem:[%s15928_s16 + $0x1f8] sm:$0xff] }
 0xc27   : > { %8816 = vmatprep.subr.bf16.mxu0 %v10385_v54  ;;  %v10458_v54 = vcombine.low %v8095_v59, %v8099_v16  ;;  %8871 = vmatprep.subr.bf16.mxu1 %v10459_v4  ;;  %v10451_v37 = vcombine.high %v8087_v47, %v8091_v11  ;;  %v10450_v5 = vcombine.low %v8087_v47, %v8091_v11  ;;  %v8057_v59 = vld [vmem:[%s15928_s16 + $0x1d8] sm:$0xff]  ;;  %v7988_v47 = vsub.s32 0, %v16549_v31 }
 0xc28   : > { %v10420_v16 = vcombine.low %v8056_v50, %v8060_v58  ;;  %v10423_v4 = vcombine.high %v8057_v59, %v8061_v2  ;;  %v7992_v11 = vsub.s32 1, %v16549_v31 }
 0xc2a   : > { %8817 = vmatpush1.bf16.msra.mxu0 %v10384_v38  ;;  %8872 = vmatpush2.bf16.msra.mxu1 %v10458_v54  ;;  %v7948_v38 = vunpack.c.l.s4 %v12324_v51  ;;  %v8048_v54 = vld [vmem:[%s15928_s16 + $0x190] sm:$0xff]  ;;  %v8053_v51 = vld [vmem:[%s15928_s16 + $0x1b8] sm:$0xff] }
 0xc2b   : > { %8818 = vmatprep.subr.bf16.mxu0 %v10377_v17  ;;  %8873 = vmatprep.subr.bf16.mxu1 %v10451_v37 }
 0xc2c   : > { %v7949_v0 = vunpack.c.0.s8 %v7948_v38 }
 0xc2e   : > { %8819 = vmatpush1.bf16.msra.mxu0 %v10376_v20  ;;  %8874 = vmatpush2.bf16.msra.mxu1 %v10450_v5  ;;  %v7952_v62 = vsub.s32 %v7949_v0, %v16549_v31  ;;  %v8049_v5 = vld [vmem:[%s15928_s16 + $0x198] sm:$0xff] }
 0xc2f   : > { %8820 = vmatprep.subr.bf16.mxu0 %v10369_v41  ;;  %v8082_v41 = vld [vmem:[%s15928_s16 + $0x2a0] sm:$0xff]  ;;  %v10415_v0 = vcombine.high %v8049_v5, %v8053_v51 }
 0xc30   : > { %v10440_v10 = vcombine.low %v8078_v19, %v8082_v41  ;;  %v10441_v23 = vcombine.high %v8078_v19, %v8082_v41  ;;  %v10414_v19 = vcombine.low %v8049_v5, %v8053_v51  ;;  %v8112_v51 = vld [vmem:[%s15928_s16 + $0x390] sm:$0xff] }
 0xc32   : > { %8821 = vmatpush1.bf16.msra.mxu0 %v10368_v48  ;;  %v8083_v48 = vld [vmem:[%s15928_s16 + $0x2a8] sm:$0xff] }
 0xc33   : > { %8822 = vmatprep.subr.bf16.mxu0 %v10361_v30  ;;  %v8074_v30 = vld [vmem:[%s15928_s16 + $0x260] sm:$0xff]  ;;  %v10442_v34 = vcombine.low %v8079_v3, %v8083_v48  ;;  %v10443_v60 = vcombine.high %v8079_v3, %v8083_v48 }
 0xc34   : > { %v10433_v8 = vcombine.high %v8070_v39, %v8074_v30 }
 0xc35   : > { %8875 = vmatprep.subr.bf16.mxu1 %v10443_v60  ;;  %v8025_v60 = vld [vmem:[%s15928_s16 + $0xd8] sm:$0xff] }
 0xc36   : > { %8823 = vmatpush1.bf16.msra.mxu0 %v10360_v14  ;;  %v8071_v14 = vld [vmem:[%s15928_s16 + $0x248] sm:$0xff]  ;;  %8876 = vmatpush2.bf16.msra.mxu1 %v10442_v34  ;;  %v8028_v34 = vld [vmem:[%s15928_s16 + $0xf0] sm:$0xff] }
 0xc37   : > { %8824 = vmatprep.subr.bf16.mxu0 %v10481_v49  ;;  %v8062_v49 = vld [vmem:[%s15928_s16 + $0x200] sm:$0xff]  ;;  %v10435_v27 = vcombine.high %v8071_v14, %v8075_v7 }
 0xc38   : > { %v10425_v55 = vcombine.high %v8062_v49, %v8066_v45  ;;  %v10424_v26 = vcombine.low %v8062_v49, %v8066_v45  ;;  %v10389_v49 = vcombine.high %v8024_v44, %v8028_v34  ;;  %v8020_v45 = vld [vmem:[%s15928_s16 + $0xb0] sm:$0xff] }
 0xc39   : > { %8877 = vmatprep.subr.bf16.mxu1 %v10435_v27  ;;  %v8016_v27 = vld [vmem:[%s15928_s16 + $0x90] sm:$0xff] }
 0xc3a   : > { %8825 = vmatpush2.bf16.msra.mxu0 %v10480_v9  ;;  %v10432_v9 = vcombine.low %v8070_v39, %v8074_v30 }
 0xc3b   : > { %8826 = vmatprep.subr.bf16.mxu0 %v10473_v46  ;;  %v10434_v46 = vcombine.low %v8071_v14, %v8075_v7 }
 0xc3d   : > { %8878 = vmatpush2.bf16.msra.mxu1 %v10434_v46  ;;  %v10381_v46 = vcombine.high %v8016_v27, %v8020_v45 }
 0xc3e   : > { %8827 = vmatpush2.bf16.msra.mxu0 %v10472_v35  ;;  %8879 = vmatprep.subr.bf16.mxu1 %v10427_v15  ;;  %v8008_v15 = vld [vmem:[%s15928_s16 + $0x50] sm:$0xff] }
 0xc3f   : > { %8828 = vmatprep.subr.bf16.mxu0 %v10465_v33  ;;  %v10426_v33 = vcombine.low %v8063_v32, %v8067_v56  ;;  %v8017_v32 = vld [vmem:[%s15928_s16 + $0x98] sm:$0xff] }
 0xc40   : > { %v8021_v56 = vld [vmem:[%s15928_s16 + $0xb8] sm:$0xff] }
 0xc41   : > { %8880 = vmatpush2.bf16.msra.mxu1 %v10426_v33 }
 0xc42   : > { %8829 = vmatpush2.bf16.msra.mxu0 %v10464_v53  ;;  %v10421_v53 = vcombine.high %v8056_v50, %v8060_v58  ;;  %8931 = vmatprep.subr.bf16.mxu1 %v10423_v4  ;;  %v8000_v50 = vld [vmem:[%s15928_s16 + $0x10] sm:$0xff] }
 0xc43   : > { %8830 = vmatprep.subr.bf16.mxu0 %v10457_v63  ;;  %v10422_v63 = vcombine.low %v8057_v59, %v8061_v2  ;;  %v8004_v58 = vld [vmem:[%s15928_s16 + $0x30] sm:$0xff]  ;;  %v8001_v59 = vld [vmem:[%s15928_s16 + $0x18] sm:$0xff] }
 0xc46   : > { %8831 = vmatpush2.bf16.msra.mxu0 %v10456_v52 }
 0xc47   : > { %8832 = vmatprep.subr.bf16.mxu0 %v10449_v57 }
 0xc4a   : > { %8833 = vmatpush2.bf16.msra.mxu0 %v10448_v25  ;;  %v8052_v25 = vld [vmem:[%s15928_s16 + $0x1b0] sm:$0xff] }
 0xc4b   : > { %8834 = vmatprep.subr.bf16.mxu0 %v10441_v23  ;;  %v8037_v23 = vld [vmem:[%s15928_s16 + $0x138] sm:$0xff] }
 0xc4e   : > { %8835 = vmatpush2.bf16.msra.mxu0 %v10440_v10  ;;  %v8033_v10 = vld [vmem:[%s15928_s16 + $0x118] sm:$0xff] }
 0xc4f   : > { %8836 = vmatprep.subr.bf16.mxu0 %v10433_v8  ;;  %v10399_v18 = vcombine.high %v8033_v10, %v8037_v23  ;;  %v8029_v8 = vld [vmem:[%s15928_s16 + $0xf8] sm:$0xff]  ;;  %v10398_v7 = vcombine.low %v8033_v10, %v8037_v23 }
 0xc52   : > { %8837 = vmatpush2.bf16.msra.mxu0 %v10432_v9  ;;  %v10388_v9 = vcombine.low %v8024_v44, %v8028_v34 }
 0xc53   : > { %8838 = vmatprep.subr.bf16.mxu0 %v10425_v55  ;;  %v10383_v55 = vcombine.high %v8017_v32, %v8021_v56 }
 0xc56   : > { %8839 = vmatpush2.bf16.msra.mxu0 %v10424_v26  ;;  %v8013_v26 = vld [vmem:[%s15928_s16 + $0x78] sm:$0xff] }
 0xc57   : > { %8890 = vmatprep.subr.bf16.mxu0 %v10421_v53 }
 0xcd9   : > { %v7925_v12 = vpop.f32.mrf.mxu0 }
 0xcda   : > { %v7933_v21 = vrot.slane %v7925_v12, 4 }
 0xcdb   : > { %v11416_v17 = vpop.f32.mrf.mxu0 }
 0xcdc   : > { %v7935_v43 = vmax.f32 %v7925_v12, %v7933_v21  ;;  %v10413_v17 = vcombine.high %v8048_v54, %v8052_v25  ;;  %v8040_v21 = vld [vmem:[%s15928_s16 + $0x150] sm:$0xff] }
 0xcdd   : > { %v7928_v1 = vpop.f32.mrf.mxu0 }
 0xcde   : > { %v7937_v22 = vrot.slane %v7928_v1, 4 }
 0xcdf   : > { %v11417_v20 = vpop.f32.mrf.mxu0 }
 0xce0   : > { %v7939_v28 = vmax.f32 %v7928_v1, %v7937_v22  ;;  %v8044_v1 = vld [vmem:[%s15928_s16 + $0x170] sm:$0xff]  ;;  %v8041_v22 = vld [vmem:[%s15928_s16 + $0x158] sm:$0xff]  ;;  %v10412_v20 = vcombine.low %v8048_v54, %v8052_v25 }
 0xce1   : > { %v10405_v41 = vcombine.high %v8040_v21, %v8044_v1  ;;  %v10404_v48 = vcombine.low %v8040_v21, %v8044_v1  ;;  %v8125_v54 = vld [vmem:[%s15928_s16 + $0x3f8] sm:$0xff] }
 0xce2   : > { %v7940_v6 = vmax.f32 %v7935_v43, %v7939_v28  ;;  %v8032_v43 = vld [vmem:[%s15928_s16 + $0x110] sm:$0xff] }
 0xce3   : > { %v8036_v28 = vld [vmem:[%s15928_s16 + $0x130] sm:$0xff] }
 0xce4   : > { %v7953_v29 = vrot.slane %v7940_v6, %v7952_v62  ;;  %7945 = vst.msk [vmem:[#allocation14] sm:$0x1] %vm15426_vm4, %v7940_v6  ;;  %v10397_v30 = vcombine.high %v8032_v43, %v8036_v28  ;;  %v10396_v14 = vcombine.low %v8032_v43, %v8036_v28  ;;  %v10391_v6 = vcombine.high %v8025_v60, %v8029_v8 }
 0xce6   : > { %v7961_v24 = vrot.slane %v7953_v29, %v7952_v62  ;;  %v7954_v40 = vcombine.high %v7953_v29, %v7953_v29  ;;  %v10390_v29 = vcombine.low %v8025_v60, %v8029_v8 }
 0xce8   : > { %v7976_v35 = vcombine.high %v7961_v24, %v7961_v24  ;;  %v7968_v13 = vrot.slane %v7954_v40, %v7952_v62  ;;  %v8045_v62 = vld [vmem:[%s15928_s16 + $0x178] sm:$0xff]  ;;  %v8012_v24 = vld [vmem:[%s15928_s16 + $0x70] sm:$0xff] }
 0xce9   : > { %v10407_v3 = vcombine.high %v8041_v22, %v8045_v62  ;;  %v10406_v39 = vcombine.low %v8041_v22, %v8045_v62  ;;  %v8009_v40 = vld [vmem:[%s15928_s16 + $0x58] sm:$0xff]  ;;  %v10373_v33 = vcombine.high %v8008_v15, %v8012_v24  ;;  %v10372_v53 = vcombine.low %v8008_v15, %v8012_v24 }
 0xcea   : > { %7969 = vrot.lane.b32.xlu1 %v7968_v13, %s16726_s26  ;;  %v7979_v61 = vcombine.high %v7968_v13, %v7968_v13  ;;  %7978 = vst.msk [vmem:[#allocation14 + $0x1] sm:$0x1] %vm15426_vm4, %v7976_v35  ;;  %v10380_v35 = vcombine.low %v8016_v27, %v8020_v45  ;;  %v10382_v13 = vcombine.low %v8017_v32, %v8021_v56 }
 0xceb   : > { %v10374_v2 = vcombine.low %v8009_v40, %v8013_v26 }
 0xcec   : > { %7980 = vrot.lane.b32.xlu0 %v7979_v61, %s16726_s26  ;;  %v10375_v61 = vcombine.high %v8009_v40, %v8013_v26  ;;  %s10552_s26 = sshll.u32 %s12452_s2, 4  ;;  %s12325_s2 = smov [#allocation18]  }
 0xced   : > { %s9673_s21 = scalar_lea.hbm %s15932_s20, %s10552_s26  ;;  %s12251_s0 = sshll.u32 %s12325_s2, 4  ;;  %s12252_s0 = int_to_ptr.vmem [resolvable:$false] %s12251_s0 }
 0xcee   : > { %s12253_s5 = scalar_lea.vmem %s12252_s0, 32  ;;  %p12254_p11 = scmp.lt.s32.totalorder %s9676_s7, %s12252_s0 }
 0xcef   : > { %p12255_p12 = scmp.lt.s32.totalorder %s12253_s5, %s12247_s25 }
 0xcf1   : > { %p12256_p13 = por %p12255_p12, %p12254_p11 }
 0xcf3   : > { %p12257_p0 = pnand %p12256_p13, %p12250_p10 }
 0xd5c   : > { %v7970_v42 = vpop.permute.xlu1 %7969 }
 0xd5d   : > { %7975 = vst.msk [vmem:[#allocation14] sm:$0x1] %vm7974_vm15, %v7970_v42  ;;  %v8120_v42 = vld [vmem:[%s15928_s16 + $0x3d0] sm:$0xff] }
 0xd5e   : > { %v7981_v36 = vpop.permute.xlu0 %7980 }
 0xd5f   : > { %7983 = vst.msk [vmem:[#allocation14 + $0x1] sm:$0x1] %vm7974_vm15, %v7981_v36  ;;  %v8124_v36 = vld [vmem:[%s15928_s16 + $0x3f0] sm:$0xff] }
 0xd60   : > { %v10485_v25 = vcombine.high %v8120_v42, %v8124_v36  ;;  %v10484_v21 = vcombine.low %v8120_v42, %v8124_v36 }
 0xd66   : > { %v7984_v52 = vld [vmem:[#allocation14] sm:$0x3] }
 0xd67   : > { %v7989_v57 = vrot.slane %v7984_v52, %v7988_v47  ;;  %v7993_v37 = vrot.slane %v7984_v52, %v7992_v11  ;;  %v8121_v52 = vld [vmem:[%s15928_s16 + $0x3d8] sm:$0xff] }
 0xd68   : > { %v10487_v5 = vcombine.high %v8121_v52, %v8125_v54  ;;  %v10486_v1 = vcombine.low %v8121_v52, %v8125_v54 }
 0xd69   : > { %v15486_v38 = vpack.c.bf16 %v7989_v57, %v7989_v57  ;;  %v7997_v12 = vpack.c.bf16 %v7993_v37, %v7993_v37  ;;  %v10364_v57 = vcombine.low %v8000_v50, %v8004_v58 }
 0xd6b   : > { %8840 = vmatprep.mubr.bf16.mxu0 %v7997_v12  ;;  %8881 = vmatprep.mubr.bf16.mxu1 %v7997_v12 }
 0xd6c   : > { %8841 = vmatmul.mubr.bf16.vlgmr.msra.gmra.mxu0 %v15486_v38  ;;  %8882 = vmatmul.mubr.bf16.vlgmr.msra.gmra.mxu1 %v15486_v38 }
 0xd6d   : > { %8891 = vmatpush1.bf16.msra.mxu0 %v10420_v16  ;;  %8932 = vmatpush1.bf16.msra.mxu1 %v10422_v63  ;;  %v8005_v16 = vld [vmem:[%s15928_s16 + $0x38] sm:$0xff]  ;;  %v10365_v63 = vcombine.high %v8000_v50, %v8004_v58 }
 0xd6e   : > { %8892 = vmatprep.subr.bf16.mxu0 %v10413_v17  ;;  %8933 = vmatprep.subr.bf16.mxu1 %v10415_v0  ;;  %v10367_v4 = vcombine.high %v8001_v59, %v8005_v16  ;;  %v10366_v37 = vcombine.low %v8001_v59, %v8005_v16  ;;  %v8113_v17 = vld [vmem:[%s15928_s16 + $0x398] sm:$0xff] }
 0xd6f   : > { %8922 = vmatprep.mubr.bf16.mxu0 %v7997_v12  ;;  %8963 = vmatprep.mubr.bf16.mxu1 %v7997_v12  ;;  %v8116_v12 = vld [vmem:[%s15928_s16 + $0x3b0] sm:$0xff]  ;;  %v8117_v0 = vld [vmem:[%s15928_s16 + $0x3b8] sm:$0xff] }
 0xd70   : > { %v10477_v22 = vcombine.high %v8112_v51, %v8116_v12  ;;  %v10479_v62 = vcombine.high %v8113_v17, %v8117_v0  ;;  %v10476_v43 = vcombine.low %v8112_v51, %v8116_v12  ;;  %v10478_v28 = vcombine.low %v8113_v17, %v8117_v0  ;;  %v12159_v51 = vld [vmem:[%s15930_s18 + $0x70] sm:$0xff]   ;;  %v12161_v17 = vld [vmem:[%s15930_s18 + $0x68] sm:$0xff]  }
 0xd71   : > { %8893 = vmatpush1.bf16.msra.mxu0 %v10412_v20  ;;  %8934 = vmatpush1.bf16.msra.mxu1 %v10414_v19  ;;  %v8104_v20 = vld [vmem:[%s15928_s16 + $0x350] sm:$0xff]  ;;  %v12162_v0 = vld [vmem:[%s15930_s18 + $0x28] sm:$0xff]  }
 0xd72   : > { %8894 = vmatprep.subr.bf16.mxu0 %v10405_v41  ;;  %8935 = vmatprep.subr.bf16.mxu1 %v10407_v3  ;;  %v8108_v19 = vld [vmem:[%s15928_s16 + $0x370] sm:$0xff]  ;;  %v8105_v41 = vld [vmem:[%s15928_s16 + $0x358] sm:$0xff] }
 0xd73   : > { %v8109_v3 = vld [vmem:[%s15928_s16 + $0x378] sm:$0xff]  ;;  %v10469_v10 = vcombine.high %v8104_v20, %v8108_v19  ;;  %v10468_v44 = vcombine.low %v8104_v20, %v8108_v19  ;;  %v12160_v12 = vld [vmem:[%s15930_s18 + $0x30] sm:$0xff]   ;;  %v12169_v19 = vld [vmem:[%s15930_s18 + $0x48] sm:$0xff]  }
 0xd74   : > { %v10471_v23 = vcombine.high %v8105_v41, %v8109_v3  ;;  %v10470_v34 = vcombine.low %v8105_v41, %v8109_v3  ;;  %v12168_v20 = vld [vmem:[%s15930_s18 + $0x10] sm:$0xff]   ;;  %v12170_v41 = vld [vmem:[%s15930_s18 + $0x8] sm:$0xff]   ;;  %v12171_v3 = vld [vmem:[%s15930_s18 + $0x40] sm:$0xff]  }
 0xd75   : > { %8895 = vmatpush1.bf16.msra.mxu0 %v10404_v48  ;;  %8936 = vmatpush1.bf16.msra.mxu1 %v10406_v39  ;;  %v8096_v48 = vld [vmem:[%s15928_s16 + $0x310] sm:$0xff] }
 0xd76   : > { %8896 = vmatprep.subr.bf16.mxu0 %v10397_v30  ;;  %8937 = vmatprep.subr.bf16.mxu1 %v10399_v18  ;;  %v8100_v39 = vld [vmem:[%s15928_s16 + $0x330] sm:$0xff]  ;;  %v8097_v30 = vld [vmem:[%s15928_s16 + $0x318] sm:$0xff] }
 0xd77   : > { %v8101_v18 = vld [vmem:[%s15928_s16 + $0x338] sm:$0xff]  ;;  %v10461_v60 = vcombine.high %v8096_v48, %v8100_v39  ;;  %v10460_v27 = vcombine.low %v8096_v48, %v8100_v39  ;;  %v12193_v48 = vld [vmem:[%s15930_s18 + $0x170] sm:$0xff]  }
 0xd78   : > { %v10463_v8 = vcombine.high %v8097_v30, %v8101_v18  ;;  %v10462_v45 = vcombine.low %v8097_v30, %v8101_v18  ;;  %v12195_v39 = vld [vmem:[%s15930_s18 + $0x130] sm:$0xff]   ;;  %v12197_v30 = vld [vmem:[%s15930_s18 + $0x168] sm:$0xff]  }
 0xd79   : > { %8897 = vmatpush1.bf16.msra.mxu0 %v10396_v14  ;;  %8938 = vmatpush1.bf16.msra.mxu1 %v10398_v7  ;;  %v8088_v14 = vld [vmem:[%s15928_s16 + $0x2d0] sm:$0xff]  ;;  %v12199_v18 = vld [vmem:[%s15930_s18 + $0x128] sm:$0xff]  }
 0xd7a   : > { %8898 = vmatprep.subr.bf16.mxu0 %v10389_v49  ;;  %8939 = vmatprep.subr.bf16.mxu1 %v10391_v6  ;;  %v8092_v7 = vld [vmem:[%s15928_s16 + $0x2f0] sm:$0xff]  ;;  %v8089_v49 = vld [vmem:[%s15928_s16 + $0x2d8] sm:$0xff] }
 0xd7b   : > { %v8093_v6 = vld [vmem:[%s15928_s16 + $0x2f8] sm:$0xff]  ;;  %v10453_v32 = vcombine.high %v8088_v14, %v8092_v7  ;;  %v10452_v15 = vcombine.low %v8088_v14, %v8092_v7  ;;  %v12209_v14 = vld [vmem:[%s15930_s18 + $0x150] sm:$0xff]  }
 0xd7c   : > { %v10455_v56 = vcombine.high %v8089_v49, %v8093_v6  ;;  %v10454_v24 = vcombine.low %v8089_v49, %v8093_v6  ;;  %v12211_v7 = vld [vmem:[%s15930_s18 + $0x110] sm:$0xff]   ;;  %v12213_v49 = vld [vmem:[%s15930_s18 + $0x148] sm:$0xff]  }
 0xd7d   : > { %8899 = vmatpush1.bf16.msra.mxu0 %v10388_v9  ;;  %8940 = vmatpush1.bf16.msra.mxu1 %v10390_v29  ;;  %v8080_v9 = vld [vmem:[%s15928_s16 + $0x290] sm:$0xff]  ;;  %v12215_v6 = vld [vmem:[%s15930_s18 + $0x108] sm:$0xff]  }
 0xd7e   : > { %8900 = vmatprep.subr.bf16.mxu0 %v10381_v46  ;;  %8941 = vmatprep.subr.bf16.mxu1 %v10383_v55  ;;  %v8084_v29 = vld [vmem:[%s15928_s16 + $0x2b0] sm:$0xff]  ;;  %v8081_v46 = vld [vmem:[%s15928_s16 + $0x298] sm:$0xff] }
 0xd7f   : > { %v8085_v55 = vld [vmem:[%s15928_s16 + $0x2b8] sm:$0xff]  ;;  %v10445_v40 = vcombine.high %v8080_v9, %v8084_v29  ;;  %v10444_v50 = vcombine.low %v8080_v9, %v8084_v29 }
 0xd80   : > { %v10447_v26 = vcombine.high %v8081_v46, %v8085_v55  ;;  %v10446_v58 = vcombine.low %v8081_v46, %v8085_v55 }
 0xd81   : > { %8901 = vmatpush1.bf16.msra.mxu0 %v10380_v35  ;;  %8942 = vmatpush1.bf16.msra.mxu1 %v10382_v13  ;;  %v8072_v35 = vld [vmem:[%s15928_s16 + $0x250] sm:$0xff] }
 0xd82   : > { %8902 = vmatprep.subr.bf16.mxu0 %v10373_v33  ;;  %8943 = vmatprep.subr.bf16.mxu1 %v10375_v61  ;;  %v8076_v13 = vld [vmem:[%s15928_s16 + $0x270] sm:$0xff]  ;;  %v8073_v33 = vld [vmem:[%s15928_s16 + $0x258] sm:$0xff] }
 0xd83   : > { %v8077_v61 = vld [vmem:[%s15928_s16 + $0x278] sm:$0xff]  ;;  %v10437_v59 = vcombine.high %v8072_v35, %v8076_v13  ;;  %v10436_v42 = vcombine.low %v8072_v35, %v8076_v13 }
 0xd84   : > { %v10439_v16 = vcombine.high %v8073_v33, %v8077_v61  ;;  %v10438_v36 = vcombine.low %v8073_v33, %v8077_v61 }
 0xd85   : > { %8903 = vmatpush1.bf16.msra.mxu0 %v10372_v53  ;;  %8944 = vmatpush1.bf16.msra.mxu1 %v10374_v2  ;;  %v8064_v53 = vld [vmem:[%s15928_s16 + $0x210] sm:$0xff] }
 0xd86   : > { %8904 = vmatprep.subr.bf16.mxu0 %v10365_v63  ;;  %8945 = vmatprep.subr.bf16.mxu1 %v10367_v4  ;;  %v8068_v2 = vld [vmem:[%s15928_s16 + $0x230] sm:$0xff]  ;;  %v8065_v63 = vld [vmem:[%s15928_s16 + $0x218] sm:$0xff] }
 0xd87   : > { %v8069_v4 = vld [vmem:[%s15928_s16 + $0x238] sm:$0xff]  ;;  %v10429_v52 = vcombine.high %v8064_v53, %v8068_v2 }
 0xd88   : > { %v10431_v54 = vcombine.high %v8065_v63, %v8069_v4 }
 0xd89   : > { %8905 = vmatpush1.bf16.msra.mxu0 %v10364_v57  ;;  %8946 = vmatpush1.bf16.msra.mxu1 %v10366_v37  ;;  %v10428_v57 = vcombine.low %v8064_v53, %v8068_v2  ;;  %v10430_v37 = vcombine.low %v8065_v63, %v8069_v4  ;;  %v12175_v63 = vld [vmem:[%s15930_s18 + $0xf0] sm:$0xff]  }
 0xd8a   : > { %8906 = vmatprep.subr.bf16.mxu0 %v10485_v25  ;;  %8947 = vmatprep.subr.bf16.mxu1 %v10487_v5  ;;  %v12157_v25 = vld [vmem:[%s15930_s18 + $0x78] sm:$0xff]  }
 0xd8b   : > { %v12158_v5 = vld [vmem:[%s15930_s18 + $0x38] sm:$0xff]  }
 0xd8d   : > { %8907 = vmatpush2.bf16.msra.mxu0 %v10484_v21  ;;  %8948 = vmatpush2.bf16.msra.mxu1 %v10486_v1  ;;  %v12164_v21 = vld [vmem:[%s15930_s18 + $0x20] sm:$0xff]   ;;  %v12165_v1 = vld [vmem:[%s15930_s18 + $0x58] sm:$0xff]  }
 0xd8e   : > { %8908 = vmatprep.subr.bf16.mxu0 %v10477_v22  ;;  %8949 = vmatprep.subr.bf16.mxu1 %v10479_v62  ;;  %v12166_v22 = vld [vmem:[%s15930_s18 + $0x18] sm:$0xff]   ;;  %v12167_v62 = vld [vmem:[%s15930_s18 + $0x50] sm:$0xff]  }
 0xd91   : > { %8909 = vmatpush2.bf16.msra.mxu0 %v10476_v43  ;;  %8950 = vmatpush2.bf16.msra.mxu1 %v10478_v28  ;;  %v12172_v43 = vld [vmem:[%s15930_s18] sm:$0xff]   ;;  %v12173_v28 = vld [vmem:[%s15930_s18 + $0xf8] sm:$0xff]  }
 0xd92   : > { %8910 = vmatprep.subr.bf16.mxu0 %v10469_v10  ;;  %8951 = vmatprep.subr.bf16.mxu1 %v10471_v23  ;;  %v12189_v10 = vld [vmem:[%s15930_s18 + $0x178] sm:$0xff]  }
 0xd93   : > { %v12191_v23 = vld [vmem:[%s15930_s18 + $0x138] sm:$0xff]  }
 0xd95   : > { %8911 = vmatpush2.bf16.msra.mxu0 %v10468_v44  ;;  %8952 = vmatpush2.bf16.msra.mxu1 %v10470_v34  ;;  %v12201_v44 = vld [vmem:[%s15930_s18 + $0x160] sm:$0xff]  }
 0xd96   : > { %8912 = vmatprep.subr.bf16.mxu0 %v10461_v60  ;;  %8953 = vmatprep.subr.bf16.mxu1 %v10463_v8  ;;  %v12203_v34 = vld [vmem:[%s15930_s18 + $0x120] sm:$0xff]   ;;  %v12205_v60 = vld [vmem:[%s15930_s18 + $0x158] sm:$0xff]  }
 0xd97   : > { %v12207_v8 = vld [vmem:[%s15930_s18 + $0x118] sm:$0xff]  }
 0xd99   : > { %8913 = vmatpush2.bf16.msra.mxu0 %v10460_v27  ;;  %8954 = vmatpush2.bf16.msra.mxu1 %v10462_v45  ;;  %v12217_v27 = vld [vmem:[%s15930_s18 + $0x140] sm:$0xff]  }
 0xd9a   : > { %8914 = vmatprep.subr.bf16.mxu0 %v10453_v32  ;;  %8955 = vmatprep.subr.bf16.mxu1 %v10455_v56  ;;  %v12219_v45 = vld [vmem:[%s15930_s18 + $0x100] sm:$0xff]   ;;  %v8782_v56 = vsub.s32 3, %v16549_v31 }
 0xd9b   : > { %v15762_v32 = vld [vmem:[%s15929_s17] sm:$0xff] }
 0xd9c   : > { %v8771_v9 = vrot.slane %v15762_v32, %v7988_v47  ;;  %v8775_v29 = vrot.slane %v15762_v32, %v7992_v11  ;;  %v8783_v46 = vrot.slane %v15762_v32, %v8782_v56  ;;  %v12174_v11 = vld [vmem:[%s15930_s18 + $0xb8] sm:$0xff]   ;;  %v12216_v56 = vld [vmem:[%s15930_s18 + $0x188] sm:$0xff]  }
 0xd9d   : > { %8915 = vmatpush2.bf16.msra.mxu0 %v10452_v15  ;;  %8956 = vmatpush2.bf16.msra.mxu1 %v10454_v24 }
 0xd9e   : > { %8916 = vmatprep.subr.bf16.mxu0 %v10445_v40  ;;  %8957 = vmatprep.subr.bf16.mxu1 %v10447_v26 }
 0xda1   : > { %8917 = vmatpush2.bf16.msra.mxu0 %v10444_v50  ;;  %8958 = vmatpush2.bf16.msra.mxu1 %v10446_v58 }
 0xda2   : > { %8918 = vmatprep.subr.bf16.mxu0 %v10437_v59  ;;  %8959 = vmatprep.subr.bf16.mxu1 %v10439_v16 }
 0xda5   : > { %8919 = vmatpush2.bf16.msra.mxu0 %v10436_v42  ;;  %8960 = vmatpush2.bf16.msra.mxu1 %v10438_v36  ;;  %v12176_v42 = vld [vmem:[%s15930_s18 + $0xb0] sm:$0xff]   ;;  %v12177_v36 = vld [vmem:[%s15930_s18 + $0xe8] sm:$0xff]  }
 0xda6   : > { %8920 = vmatprep.subr.bf16.mxu0 %v10429_v52  ;;  %8961 = vmatprep.subr.bf16.mxu1 %v10431_v54  ;;  %v12178_v52 = vld [vmem:[%s15930_s18 + $0xa8] sm:$0xff]   ;;  %v12179_v54 = vld [vmem:[%s15930_s18 + $0xe0] sm:$0xff]  }
 0xda9   : > { %8921 = vmatpush2.bf16.msra.mxu0 %v10428_v57  ;;  %8962 = vmatpush2.bf16.msra.mxu1 %v10430_v37  ;;  %v12180_v57 = vld [vmem:[%s15930_s18 + $0xa0] sm:$0xff]   ;;  %v12181_v37 = vld [vmem:[%s15930_s18 + $0xd8] sm:$0xff]  }
 0xdaa   : > { %10942 = vmatprep.subr.bf16.mxu0 %v12157_v25  ;;  %10986 = vmatprep.subr.bf16.mxu1 %v12189_v10  ;;  %v12182_v25 = vld [vmem:[%s15930_s18 + $0x98] sm:$0xff]   ;;  %v12200_v10 = vld [vmem:[%s15930_s18 + $0x1a8] sm:$0xff]  }
 0xdac   : > { %8923 = vmatmul.mubr.bf16.vlgmr.msra.gmra.mxu0 %v15486_v38  ;;  %8964 = vmatmul.mubr.bf16.vlgmr.msra.gmra.mxu1 %v15486_v38  ;;  %v12163_v38 = vld [vmem:[%s15930_s18 + $0x60] sm:$0xff]  }
 0xdad   : > { %10943 = vmatpush3.bf16.msra.mxu0 %v12158_v5  ;;  %10987 = vmatpush3.bf16.msra.mxu1 %v12191_v23  ;;  %v8778_v5 = vsub.s32 2, %v16549_v31  ;;  %v12202_v23 = vld [vmem:[%s15930_s18 + $0x1e0] sm:$0xff]  }
 0xdae   : > { %10944 = vmatprep.subr.bf16.mxu0 %v12159_v51  ;;  %10988 = vmatprep.subr.bf16.mxu1 %v12193_v48  ;;  %v12183_v51 = vld [vmem:[%s15930_s18 + $0xd0] sm:$0xff]   ;;  %v12204_v48 = vld [vmem:[%s15930_s18 + $0x1a0] sm:$0xff]  }
 0xdb1   : > { %10945 = vmatpush3.bf16.msra.mxu0 %v12160_v12  ;;  %10989 = vmatpush3.bf16.msra.mxu1 %v12195_v39  ;;  %v12184_v12 = vld [vmem:[%s15930_s18 + $0x90] sm:$0xff]   ;;  %v12206_v39 = vld [vmem:[%s15930_s18 + $0x1d8] sm:$0xff]  }
 0xdb2   : > { %10946 = vmatprep.subr.bf16.mxu0 %v12161_v17  ;;  %10990 = vmatprep.subr.bf16.mxu1 %v12197_v30  ;;  %v8779_v17 = vrot.slane %v15762_v32, %v8778_v5  ;;  %v12208_v30 = vld [vmem:[%s15930_s18 + $0x198] sm:$0xff]   ;;  %v9116_v5 = vld [vmem:[%s15931_s19] sm:$0x1] }
 0xdb5   : > { %10947 = vmatpush3.bf16.msra.mxu0 %v12162_v0  ;;  %10991 = vmatpush3.bf16.msra.mxu1 %v12199_v18  ;;  %v12185_v0 = vld [vmem:[%s15930_s18 + $0xc8] sm:$0xff]   ;;  %v12210_v18 = vld [vmem:[%s15930_s18 + $0x1d0] sm:$0xff]  }
 0xdb6   : > { %10948 = vmatprep.subr.bf16.mxu0 %v12163_v38  ;;  %10992 = vmatprep.subr.bf16.mxu1 %v12201_v44  ;;  %v12186_v38 = vld [vmem:[%s15930_s18 + $0x88] sm:$0xff]   ;;  %v8786_v44 = vsub.s32 4, %v16549_v31 }
 0xdb9   : > { %10949 = vmatpush3.bf16.msra.mxu0 %v12164_v21  ;;  %10993 = vmatpush3.bf16.msra.mxu1 %v12203_v34  ;;  %v8794_v34 = vsub.s32 6, %v16549_v31 }
 0xdba   : > { %10950 = vmatprep.subr.bf16.mxu0 %v12165_v1  ;;  %10994 = vmatprep.subr.bf16.mxu1 %v12205_v60  ;;  %v12187_v1 = vld [vmem:[%s15930_s18 + $0xc0] sm:$0xff]   ;;  %v12212_v60 = vld [vmem:[%s15930_s18 + $0x190] sm:$0xff]  }
 0xdbd   : > { %10951 = vmatpush3.bf16.msra.mxu0 %v12166_v22  ;;  %10995 = vmatpush3.bf16.msra.mxu1 %v12207_v8  ;;  %v12188_v22 = vld [vmem:[%s15930_s18 + $0x80] sm:$0xff]   ;;  %v8790_v8 = vsub.s32 5, %v16549_v31 }
 0xdbe   : > { %10952 = vmatprep.subr.bf16.mxu0 %v12167_v62  ;;  %10996 = vmatprep.subr.bf16.mxu1 %v12209_v14  ;;  %v8798_v14 = vsub.s32 7, %v16549_v31 }
 0xdc1   : > { %10953 = vmatpush3.bf16.msra.mxu0 %v12168_v20  ;;  %10997 = vmatpush3.bf16.msra.mxu1 %v12211_v7  ;;  %v12190_v20 = vld [vmem:[%s15930_s18 + $0x1f8] sm:$0xff]   ;;  %v12214_v7 = vld [vmem:[%s15930_s18 + $0x1c8] sm:$0xff]  }
 0xdc2   : > { %10954 = vmatprep.subr.bf16.mxu0 %v12169_v19  ;;  %10998 = vmatprep.subr.bf16.mxu1 %v12213_v49  ;;  %v12192_v19 = vld [vmem:[%s15930_s18 + $0x1b8] sm:$0xff]   ;;  %v8787_v49 = vrot.slane %v15762_v32, %v8786_v44 }
 0xdc5   : > { %10955 = vmatpush3.bf16.msra.mxu0 %v12170_v41  ;;  %10999 = vmatpush3.bf16.msra.mxu1 %v12215_v6  ;;  %v8795_v6 = vrot.slane %v15762_v32, %v8794_v34 }
 0xdc6   : > { %10956 = vmatprep.subr.bf16.mxu0 %v12171_v3  ;;  %11000 = vmatprep.subr.bf16.mxu1 %v12217_v27  ;;  %v12194_v3 = vld [vmem:[%s15930_s18 + $0x1f0] sm:$0xff]   ;;  %v8791_v27 = vrot.slane %v15762_v32, %v8790_v8 }
 0xdc9   : > { %10957 = vmatpush3.bf16.msra.mxu0 %v12172_v43  ;;  %11001 = vmatpush3.bf16.msra.mxu1 %v12219_v45  ;;  %v12196_v43 = vld [vmem:[%s15930_s18 + $0x1b0] sm:$0xff]   ;;  %v8799_v45 = vrot.slane %v15762_v32, %v8798_v14  ;;  %v12220_v32 = vld [vmem:[%s15930_s18 + $0x180] sm:$0xff]  }
 0xdca   : > { %10964 = vmatprep.subr.bf16.mxu0 %v12173_v28  ;;  %v12198_v28 = vld [vmem:[%s15930_s18 + $0x1e8] sm:$0xff]  }
 0xe2c   : > { %v8842_v55 = vpop.f32.mrf.mxu0  ;;  %v8883_v15 = vpop.f32.mrf.mxu1 }
 0xe2d   : > { %v8843_v24 = vadd.f32 %v8842_v55, %v8771_v9  ;;  %v8884_v21 = vadd.f32 %v8883_v15, %v8779_v17 }
 0xe2e   : > { %v8844_v40 = vpop.f32.mrf.mxu0  ;;  %v8885_v26 = vpop.f32.mrf.mxu1 }
 0xe2f   : > { %v8845_v35 = vadd.f32 %v8844_v40, %v8775_v29  ;;  %v8886_v13 = vadd.f32 %v8885_v26, %v8783_v46  ;;  %v8972_v33 = vmax.f32 %v8843_v24, 0.0  ;;  %v8974_v62 = vmax.f32 %v8884_v21, 0.0  ;;  %v12218_v29 = vld [vmem:[%s15930_s18 + $0x1c0] sm:$0xff]  }
 0xe30   : > { %v8846_v61 = vpop.f32.mrf.mxu0  ;;  %v8887_v50 = vpop.f32.mrf.mxu1 }
 0xe31   : > { %v8973_v58 = vmax.f32 %v8845_v35, 0.0  ;;  %v8975_v59 = vmax.f32 %v8886_v13, 0.0  ;;  %v8980_v2 = vpack.c.bf16 %v8972_v33, %v8972_v33  ;;  %v8982_v41 = vpack.c.bf16 %v8974_v62, %v8974_v62 }
 0xe32   : > { %v8847_v16 = vpop.f32.mrf.mxu0  ;;  %v8888_v47 = vpop.f32.mrf.mxu1 }
 0xe33   : > { %v8981_v53 = vpack.c.bf16 %v8973_v58, %v8973_v58  ;;  %v8983_v4 = vpack.c.bf16 %v8975_v59, %v8975_v59 }
 0xe35   : > { %9533 = vmatprep.mubr.bf16.mxu0 %v8981_v53 }
 0xe36   : > { %9534 = vmatmul.mubr.bf16.vlgmr.msra.gmra.mxu0 %v8980_v2 }
 0xe37   : > { %10965 = vmatpush3.bf16.msra.mxu0 %v12174_v11  ;;  %9573 = vmatprep.mubr.bf16.mxu0 %v8983_v4 }
 0xe38   : > { %10966 = vmatprep.subr.bf16.mxu0 %v12175_v63 }
 0xe3b   : > { %10967 = vmatpush3.bf16.msra.mxu0 %v12176_v42 }
 0xe3c   : > { %10968 = vmatprep.subr.bf16.mxu0 %v12177_v36 }
 0xe3f   : > { %10969 = vmatpush3.bf16.msra.mxu0 %v12178_v52 }
 0xe40   : > { %10970 = vmatprep.subr.bf16.mxu0 %v12179_v54 }
 0xe43   : > { %10971 = vmatpush3.bf16.msra.mxu0 %v12180_v57 }
 0xe44   : > { %10972 = vmatprep.subr.bf16.mxu0 %v12181_v37 }
 0xe47   : > { %10973 = vmatpush3.bf16.msra.mxu0 %v12182_v25 }
 0xe48   : > { %10974 = vmatprep.subr.bf16.mxu0 %v12183_v51 }
 0xe4b   : > { %10975 = vmatpush3.bf16.msra.mxu0 %v12184_v12 }
 0xe4c   : > { %10976 = vmatprep.subr.bf16.mxu0 %v12185_v0 }
 0xe4f   : > { %10977 = vmatpush3.bf16.msra.mxu0 %v12186_v38 }
 0xe50   : > { %10978 = vmatprep.subr.bf16.mxu0 %v12187_v1 }
 0xe53   : > { %10979 = vmatpush3.bf16.msra.mxu0 %v12188_v22 }
 0xe54   : > { %11008 = vmatprep.subr.bf16.mxu0 %v12190_v20 }
 0xe56   : > { %9574 = vmatmul.mubr.bf16.vlgmr.msra.gmra.mxu0 %v8982_v41 }
 0xe57   : > { %11009 = vmatpush3.bf16.msra.mxu0 %v12192_v19 }
 0xe58   : > { %11010 = vmatprep.subr.bf16.mxu0 %v12194_v3 }
 0xe5b   : > { %11011 = vmatpush3.bf16.msra.mxu0 %v12196_v43 }
 0xe5c   : > { %11012 = vmatprep.subr.bf16.mxu0 %v12198_v28 }
 0xe5f   : > { %11013 = vmatpush3.bf16.msra.mxu0 %v12200_v10 }
 0xe60   : > { %11014 = vmatprep.subr.bf16.mxu0 %v12202_v23 }
 0xe63   : > { %11015 = vmatpush3.bf16.msra.mxu0 %v12204_v48 }
 0xe64   : > { %11016 = vmatprep.subr.bf16.mxu0 %v12206_v39 }
 0xe67   : > { %11017 = vmatpush3.bf16.msra.mxu0 %v12208_v30 }
 0xe68   : > { %11018 = vmatprep.subr.bf16.mxu0 %v12210_v18 }
 0xe6b   : > { %11019 = vmatpush3.bf16.msra.mxu0 %v12212_v60 }
 0xe6c   : > { %v8924_v9 = vpop.f32.mrf.mxu0  ;;  %v8965_v31 = vpop.f32.mrf.mxu1  ;;  %11020 = vmatprep.subr.bf16.mxu0 %v12214_v7 }
 0xe6d   : > { %v8925_v46 = vadd.f32 %v8924_v9, %v8787_v49  ;;  %v8966_v55 = vadd.f32 %v8965_v31, %v8795_v6 }
 0xe6e   : > { %v8926_v15 = vpop.f32.mrf.mxu0  ;;  %v8967_v24 = vpop.f32.mrf.mxu1 }
 0xe6f   : > { %v8927_v40 = vadd.f32 %v8926_v15, %v8791_v27  ;;  %v8968_v26 = vadd.f32 %v8967_v24, %v8799_v45  ;;  %11021 = vmatpush3.bf16.msra.mxu0 %v12216_v56  ;;  %v8976_v35 = vmax.f32 %v8925_v46, 0.0  ;;  %v8978_v13 = vmax.f32 %v8966_v55, 0.0 }
 0xe70   : > { %v8928_v33 = vpop.f32.mrf.mxu0  ;;  %v8969_v61 = vpop.f32.mrf.mxu1  ;;  %11022 = vmatprep.subr.bf16.mxu0 %v12218_v29 }
 0xe71   : > { %v8977_v50 = vmax.f32 %v8927_v40, 0.0  ;;  %v8979_v58 = vmax.f32 %v8968_v26, 0.0  ;;  %v8984_v11 = vpack.c.bf16 %v8976_v35, %v8976_v35  ;;  %v8986_v2 = vpack.c.bf16 %v8978_v13, %v8978_v13 }
 0xe72   : > { %v8929_v59 = vpop.f32.mrf.mxu0  ;;  %v8970_v16 = vpop.f32.mrf.mxu1 }
 0xe73   : > { %v8985_v47 = vpack.c.bf16 %v8977_v50, %v8977_v50  ;;  %v8987_v53 = vpack.c.bf16 %v8979_v58, %v8979_v58  ;;  %11023 = vmatpush3.bf16.msra.mxu0 %v12220_v32 }
 0xe75   : > { %9613 = vmatprep.mubr.bf16.mxu1 %v8985_v47  ;;  %9653 = vmatprep.mubr.bf16.mxu0 %v8987_v53 }
 0xe76   : > { %9614 = vmatmul.mubr.bf16.vlgmr.msra.gmra.mxu1 %v8984_v11  ;;  %9654 = vmatmul.mubr.bf16.vlgmr.msra.gmra.mxu0 %v8986_v2 }
 0xef6   : > { %v10958_v63 = vpop.f32.mrf.mxu0 }
 0xef8   : > { %v10959_v4 = vpop.f32.mrf.mxu0 }
 0xef9   : > { %v10960_v25 = vadd.f32 %v10959_v4, %v10958_v63 }
 0xefa   : > { %v10961_v42 = vpop.f32.mrf.mxu0 }
 0xefb   : > { %v9536_v0 = vadd.f32 %v10960_v25, %v9116_v5 }
 0xefc   : > { %v10962_v36 = vpop.f32.mrf.mxu0 }
 0xf16   : > { %v10980_v52 = vpop.f32.mrf.mxu0 }
 0xf18   : > { %v10981_v54 = vpop.f32.mrf.mxu0 }
 0xf19   : > { %v10982_v51 = vadd.f32 %v10981_v54, %v10980_v52 }
 0xf1a   : > { %v10983_v57 = vpop.f32.mrf.mxu0 }
 0xf1b   : > { %v9576_v1 = vadd.f32 %v10982_v51, %v9536_v0 }
 0xf1c   : > { %v10984_v37 = vpop.f32.mrf.mxu0 }
 0xf36   : > { %v11002_v12 = vpop.f32.mrf.mxu1  ;;  %v11024_v17 = vpop.f32.mrf.mxu0 }
 0xf38   : > { %v11003_v38 = vpop.f32.mrf.mxu1  ;;  %v11025_v21 = vpop.f32.mrf.mxu0 }
 0xf39   : > { %v11004_v22 = vadd.f32 %v11003_v38, %v11002_v12  ;;  %v11026_v41 = vadd.f32 %v11025_v21, %v11024_v17 }
 0xf3a   : > { %v11005_v62 = vpop.f32.mrf.mxu1  ;;  %v11027_v20 = vpop.f32.mrf.mxu0 }
 0xf3b   : > { %v9616_v19 = vadd.f32 %v11004_v22, %v9576_v1 }
 0xf3c   : > { %v11006_v3 = vpop.f32.mrf.mxu1  ;;  %v11028_v43 = vpop.f32.mrf.mxu0 }
 0xf3d   : > { %v9656_v28 = vadd.f32 %v11026_v41, %v9616_v19 }
 0xf3f   : > { %9661 = vst [vmem:[%s636_s8] sm:$0x1] %v9656_v28 }
 0xf40   : > { %12260 = shalt.err (!%p12257_p0)
}
 0xf41   : > { %s12261_s10 = scalar_lea.hbm %s9673_s21, 16  ;;  %s12265_s8 = scalar_lea.hbm %s15932_s20, 32 }
 0xf42   : > { %p12262_p1 = scmp.ne.s32.totalorder %s9673_s21, %s12261_s10  ;;  %p12266_p4 = scmp.lt.s32.totalorder %s9673_s21, %s15932_s20 }
 0xf43   : > { %p12267_p7 = scmp.lt.s32.totalorder %s12265_s8, %s12261_s10 }
 0xf44   : > { %p12263_p2 = pnand %p12262_p1, %p12469_p5 }
 0xf45   : > { %p12268_p8 = por %p12267_p7, %p12266_p4 }
 0xf46   : > { %p12264_p3 = pneg %p12263_p2 }
 0xf48   : > { %p12269_p6 = pnand %p12268_p8, %p12264_p3 }
 0xf4a   : > { %12272 = shalt.err (!%p12269_p6)
}
 0xf4b   : > { %11428 = dma.vmem_to_hbm [thread:$0]  (%p12469_p5), %s9676_s7, 16, %s9673_s21, %s9663_s27  }
 0xf4c PF: > { %p11440_p9 = scmp.ge.s32.totalorder %s12311_s24, 2  ;;  %s9687_s25 = sand.u32 1, %s12299_s1  }
 0xf4d   : > { %p16743_p10 = scmp.ne.s32.totalorder %s16058_s29, 0  ;;  %s9688_s2 = scalar_lea.sflag [#allocation17], %s9687_s25 }
 0xf4f   : > { %p11435_p11 = pnand %p11440_p9, %p16743_p10 }
 0xf51   : > { %p11436_p12 = pneg %p11435_p11 }
 0xf53   : > { %12294 = dma.done.wait (%p11436_p12), %s9688_s2, 16  }
 0xf54   : > { %12296 = vsyncadd (%p11436_p12), %s9688_s2, 4294967280  ;;  %s16744_s10 = sld [smem:[#allocation21_spill]]  ;;  %p31_p13 = scmp.ge.s32.totalorder %s12456_s3, 4  }
 0xf55   : > { %s16745_s23 = sld [smem:[#allocation22_spill]]  ;;  %s16746_s1 = smov %s12303_s22 }
 0xf56   : > { %s16748_s24 = smov %s12456_s3  ;;  %33 = sbr.rel (!%p31_p13) target bundleno = 16 (0x10), region = 152 }
 0xf5a   : > { %s16747_s22 = smov %s16744_s10 }
 0xf5b   :  { %9692 = vsyncpa [#allocation16], 1 }
 0xf5c   :  { %9694 = vsyncpa [#allocation16 + $0x1], 1 }
 0xf5d   :  { %9695 = vsyncpa [#allocation17], 1 }
 0xf5e   :  { %9697 = vsyncpa [#allocation17 + $0x1], 1 }

</bundles_post_ra>
